<compile_context>
chip_gen: v6e
topology: v6e:2x2x1
jax: 0.10.0
libtpu: 0.0.40
codegen_flags: <defaults>
</compile_context>

<pallas_src>
import functools

import jax
import jax.numpy as jnp
import numpy as np
from jax import lax
from jax.experimental import pallas as pl
from jax.experimental.pallas import tpu as pltpu

ALPHA = 0.2
# adapter_dict = {0..4: expert adapters}; index 5 == 'adapter_all'
NUM_ADAPTERS = 6
_NEG_BIG = -1e30  # running-max init / padded-column logit (avoids -inf arithmetic)


# --------------------------------------------------------------------------- #
# Small static helpers
# --------------------------------------------------------------------------- #
def _round_up(x, m):
    return ((x + m - 1) // m) * m


def _pick_divisor_tile(total, preferred, quantum):
    """Largest multiple of `quantum` dividing `total`, capped at `preferred`."""
    if total <= preferred or total % quantum != 0:
        return total
    t = (preferred // quantum) * quantum
    while t >= quantum:
        if total % t == 0:
            return t
        t -= quantum
    return total


def _vmem_limit_bytes():
    """Per-generation VMEM budget with headroom (v7x: 64 MiB, v5e/v6e: 128 MiB)."""
    cap = 64 * 1024 * 1024  # conservative fallback (v7x physical per-TC size)
    try:
        cap = int(getattr(pltpu.get_tpu_info(), "vmem_capacity_bytes", cap))
    except Exception:
        pass
    return min(int(cap * 0.85), 110 * 1024 * 1024)


def _spec(shape, index_map, buffer_count=None):
    """BlockSpec with an optional pipeline buffer-count hint (resident blocks -> 1)."""
    if buffer_count is not None and hasattr(pl, "Buffered"):
        try:
            return pl.BlockSpec(shape, index_map,
                                pipeline_mode=pl.Buffered(buffer_count))
        except TypeError:
            pass
    return pl.BlockSpec(shape, index_map)


def _ce_footprint(tn, tv, d, fused):
    """Approximate VMEM bytes for the CE kernel at the chosen tiles."""
    b2 = 2  # bf16
    total = 2 * d * tv * b2          # wv slice (double-buffered)
    total += 2 * tn * tv * b2        # blended logits out (double-buffered)
    total += tn * 4 + 2 * tn * 4     # labels + NLL blocks
    total += 5 * tn * 4              # m/l/z scratch columns
    if fused:
        total += tn * d * b2 + 2 * d * d * b2   # x + both DxD weights (1 buffer)
        total += 2 * tn * d * b2                # h_all/h_act scratch
    else:
        total += 2 * tn * d * b2                # h_all/h_act inputs (1 buffer)
    return total


# --------------------------------------------------------------------------- #
# Kernel bodies
# --------------------------------------------------------------------------- #
def _init_ce_state(m_all, l_all, m_act, l_act, z_bl):
    neg = jnp.full(m_all.shape, _NEG_BIG, jnp.float32)
    zero = jnp.zeros(m_all.shape, jnp.float32)
    m_all[...] = neg
    m_act[...] = neg
    l_all[...] = zero
    l_act[...] = zero
    z_bl[...] = zero


def _ce_vocab_tile(alpha, v_real, h_all, h_act, labels_ref, wv_ref,
                   logits_ref, nll_ref, m_all, l_all, m_act, l_act, z_bl):
    """Per (token tile, vocab tile): blended logits store + online CE update."""
    vi = pl.program_id(1)
    nv = pl.num_programs(1)
    tn = h_all.shape[0]
    tv = wv_ref.shape[1]

    wv = wv_ref[...]
    la = jnp.dot(h_all, wv, preferred_element_type=jnp.float32)   # 'adapter_all'
    lb = jnp.dot(h_act, wv, preferred_element_type=jnp.float32)   # active expert

    cols = lax.broadcasted_iota(jnp.int32, (tn, tv), 1) + vi * tv
    if v_real % tv != 0:  # static: vocab was padded -> mask padded columns
        valid_col = cols < v_real
        la = jnp.where(valid_col, la, _NEG_BIG)
        lb = jnp.where(valid_col, lb, _NEG_BIG)

    # Blended logits tile — the only [N, V] array that reaches HBM (bf16 store).
    blend = la + alpha * (lb - la)                       # f32, reused below
    logits_ref[...] = blend.astype(logits_ref.dtype)

    # Single merged label-logit pick on the blended f32 tile (no per-adapter z).
    hit = cols == labels_ref[...]
    z_bl[...] = z_bl[...] + jnp.sum(jnp.where(hit, blend, 0.0),
                                    axis=-1, keepdims=True)

    # TODO(synk): on v6e/v7x the exp() could run in bf16 for EUP throughput.
    def online(m_ref, l_ref, logits):
        m_prev = m_ref[...]
        m_new = jnp.maximum(m_prev, jnp.max(logits, axis=-1, keepdims=True))
        l_ref[...] = (l_ref[...] * jnp.exp(m_prev - m_new)
                      + jnp.sum(jnp.exp(logits - m_new), axis=-1, keepdims=True))
        m_ref[...] = m_new

    online(m_all, l_all, la)
    online(m_act, l_act, lb)

    @pl.when(vi == nv - 1)
    def _():
        mask = (labels_ref[...] >= 0).astype(jnp.float32)
        lse_blend = ((1.0 - alpha) * (m_all[...] + jnp.log(l_all[...]))
                     + alpha * (m_act[...] + jnp.log(l_act[...])))
        nll_ref[...] = mask * (lse_blend - z_bl[...])


def _fused_kernel(alpha, v_real,
                  labels_ref, x_ref, w_all_ref, w_act_ref, wv_ref,
                  logits_ref, nll_ref,
                  h_all_sc, h_act_sc, m_all, l_all, m_act, l_act, z_bl):
    vi = pl.program_id(1)

    @pl.when(vi == 0)
    def _():
        x = x_ref[...]
        h_all_sc[...] = jnp.dot(x, w_all_ref[...],
                                preferred_element_type=jnp.float32).astype(h_all_sc.dtype)
        h_act_sc[...] = jnp.dot(x, w_act_ref[...],
                                preferred_element_type=jnp.float32).astype(h_act_sc.dtype)
        _init_ce_state(m_all, l_all, m_act, l_act, z_bl)

    _ce_vocab_tile(alpha, v_real, h_all_sc[...], h_act_sc[...],
                   labels_ref, wv_ref, logits_ref, nll_ref,
                   m_all, l_all, m_act, l_act, z_bl)


def _split_ce_kernel(alpha, v_real,
                     labels_ref, h_all_ref, h_act_ref, wv_ref,
                     logits_ref, nll_ref,
                     m_all, l_all, m_act, l_act, z_bl):
    vi = pl.program_id(1)

    @pl.when(vi == 0)
    def _():
        _init_ce_state(m_all, l_all, m_act, l_act, z_bl)

    _ce_vocab_tile(alpha, v_real, h_all_ref[...], h_act_ref[...],
                   labels_ref, wv_ref, logits_ref, nll_ref,
                   m_all, l_all, m_act, l_act, z_bl)


def _hidden_kernel(x_ref, w_all_ref, w_act_ref, h_all_ref, h_act_ref,
                   acc_all, acc_act):
    """K-tiled x @ W_eff for both adapters (used when D x D weights don't fit VMEM)."""
    ki = pl.program_id(1)

    @pl.when(ki == 0)
    def _():
        acc_all[...] = jnp.zeros_like(acc_all)
        acc_act[...] = jnp.zeros_like(acc_act)

    x = x_ref[...]
    acc_all[...] += jnp.dot(x, w_all_ref[...], preferred_element_type=jnp.float32)
    acc_act[...] += jnp.dot(x, w_act_ref[...], preferred_element_type=jnp.float32)

    @pl.when(ki == pl.num_programs(1) - 1)
    def _():
        h_all_ref[...] = acc_all[...].astype(h_all_ref.dtype)
        h_act_ref[...] = acc_act[...].astype(h_act_ref.dtype)


# --------------------------------------------------------------------------- #
# pallas_call wrappers
# --------------------------------------------------------------------------- #
def _ce_call_fused(labels, x, w_all, w_act, wv, alpha, v_real, tn, tv,
                   vmem_limit, cost, use_buffered):
    n, d = x.shape
    v_pad = wv.shape[1]
    bc = 1 if use_buffered else None
    kernel = functools.partial(_fused_kernel, float(alpha), int(v_real))
    return pl.pallas_call(
        kernel,
        out_shape=(jax.ShapeDtypeStruct((n, v_pad), jnp.bfloat16),   # blended logits
                   jax.ShapeDtypeStruct((n, 1), jnp.float32)),       # masked blended NLL
        grid_spec=pltpu.PrefetchScalarGridSpec(
            num_scalar_prefetch=0,
            grid=(n // tn, v_pad // tv),
            in_specs=[
                _spec((tn, 1), lambda ni, vi: (ni, 0), bc),    # labels (int32, resident)
                _spec((tn, d), lambda ni, vi: (ni, 0), bc),    # activations (resident)
                _spec((d, d), lambda ni, vi: (0, 0), bc),      # W_eff 'adapter_all'
                _spec((d, d), lambda ni, vi: (0, 0), bc),      # W_eff active expert
                _spec((d, tv), lambda ni, vi: (0, vi)),        # vocab-head slice (streamed)
            ],
            out_specs=(
                _spec((tn, tv), lambda ni, vi: (ni, vi)),      # blended logits tile
                _spec((tn, 1), lambda ni, vi: (ni, 0)),        # NLL (resident over vi)
            ),
            scratch_shapes=([pltpu.VMEM((tn, d), jnp.bfloat16) for _ in range(2)]
                            + [pltpu.VMEM((tn, 1), jnp.float32) for _ in range(5)]),
        ),
        compiler_params=pltpu.CompilerParams(
            dimension_semantics=("parallel", "arbitrary"),
            vmem_limit_bytes=vmem_limit,
        ),
        cost_estimate=cost,
    )(labels, x, w_all, w_act, wv)


def _ce_call_split(labels, h_all, h_act, wv, alpha, v_real, tn, tv,
                   vmem_limit, cost, use_buffered):
    n, d = h_all.shape
    v_pad = wv.shape[1]
    bc = 1 if use_buffered else None
    kernel = functools.partial(_split_ce_kernel, float(alpha), int(v_real))
    return pl.pallas_call(
        kernel,
        out_shape=(jax.ShapeDtypeStruct((n, v_pad), jnp.bfloat16),
                   jax.ShapeDtypeStruct((n, 1), jnp.float32)),
        grid_spec=pltpu.PrefetchScalarGridSpec(
            num_scalar_prefetch=0,
            grid=(n // tn, v_pad // tv),
            in_specs=[
                _spec((tn, 1), lambda ni, vi: (ni, 0), bc),    # labels
                _spec((tn, d), lambda ni, vi: (ni, 0), bc),    # h_all (resident)
                _spec((tn, d), lambda ni, vi: (ni, 0), bc),    # h_act (resident)
                _spec((d, tv), lambda ni, vi: (0, vi)),        # vocab-head slice
            ],
            out_specs=(
                _spec((tn, tv), lambda ni, vi: (ni, vi)),
                _spec((tn, 1), lambda ni, vi: (ni, 0)),
            ),
            scratch_shapes=[pltpu.VMEM((tn, 1), jnp.float32) for _ in range(5)],
        ),
        compiler_params=pltpu.CompilerParams(
            dimension_semantics=("parallel", "arbitrary"),
            vmem_limit_bytes=vmem_limit,
        ),
        cost_estimate=cost,
    )(labels, h_all, h_act, wv)


def _hidden_states(x, w_all, w_act, *, tm, tk, vmem_limit):
    n, d = x.shape
    return pl.pallas_call(
        _hidden_kernel,
        out_shape=(jax.ShapeDtypeStruct((n, d), jnp.bfloat16),
                   jax.ShapeDtypeStruct((n, d), jnp.bfloat16)),
        grid_spec=pltpu.PrefetchScalarGridSpec(
            num_scalar_prefetch=0,
            grid=(n // tm, d // tk),
            in_specs=[
                pl.BlockSpec((tm, tk), lambda i, k: (i, k)),
                pl.BlockSpec((tk, d), lambda i, k: (k, 0)),
                pl.BlockSpec((tk, d), lambda i, k: (k, 0)),
            ],
            out_specs=(
                pl.BlockSpec((tm, d), lambda i, k: (i, 0)),
                pl.BlockSpec((tm, d), lambda i, k: (i, 0)),
            ),
            scratch_shapes=[pltpu.VMEM((tm, d), jnp.float32),
                            pltpu.VMEM((tm, d), jnp.float32)],
        ),
        compiler_params=pltpu.CompilerParams(
            dimension_semantics=("parallel", "arbitrary"),
            vmem_limit_bytes=vmem_limit,
        ),
    )(x, w_all, w_act)


# --------------------------------------------------------------------------- #
# Model wrapper (plain-JAX glue around the kernels)
# --------------------------------------------------------------------------- #
def init_params(key, vocab, d, r):
    ks = jax.random.split(key, 5)
    return {
        "emb": jax.random.normal(ks[0], (vocab, d), jnp.float32) * 0.02,
        "w":   jax.random.normal(ks[1], (d, d), jnp.float32) * (1.0 / d ** 0.5),
        "a":   jax.random.normal(ks[2], (NUM_ADAPTERS, d, r), jnp.float32) * 0.1,
        "b":   jax.random.normal(ks[3], (NUM_ADAPTERS, r, d), jnp.float32) * 0.1,
        "wv":  jax.random.normal(ks[4], (d, vocab), jnp.float32) * (1.0 / d ** 0.5),
    }


def custom_model_with_expert_forward(params, input_ids, attention_mask, labels,
                                     category, alpha=ALPHA, *,
                                     tn=512, tv=512, force_split=None):
    bsz, seq = input_ids.shape
    d = params["w"].shape[0]
    vocab = params["wv"].shape[1]
    n = bsz * seq
    vmem_limit = _vmem_limit_bytes()

    # self.model.set_adapter(adapter_dict[category.item()]) / 'adapter_all':
    # fold each LoRA adapter into an effective dense weight (tiny D x r x D matmul).
    a_act, b_act = params["a"][category], params["b"][category]
    a_all, b_all = params["a"][NUM_ADAPTERS - 1], params["b"][NUM_ADAPTERS - 1]
    w_eff_act = (params["w"] + a_act @ b_act).astype(jnp.bfloat16)
    w_eff_all = (params["w"] + a_all @ b_all).astype(jnp.bfloat16)
    wv = params["wv"].astype(jnp.bfloat16)
    # TODO(synk): quantize wv (int8 on v5e/v6e, fp8 on v7x) with per-column scales
    # to halve the dominant streamed operand.

    # Embedding lookup (glue) + bf16 activations.
    x = params["emb"][input_ids.reshape(-1)].astype(jnp.bfloat16)        # [N, D]

    # Labels: encode ignored tokens (attention_mask==0 or HF ignore_index) as -1;
    # the kernel derives the mask from label >= 0 (no separate mask stream).
    labels_flat = labels.reshape(n).astype(jnp.int32)
    valid = (attention_mask.reshape(n) > 0) & (labels_flat >= 0)
    labels_enc = jnp.where(valid, labels_flat, -1)
    denom = jnp.maximum(jnp.sum(valid.astype(jnp.float32)), 1.0)

    # -------- static tile / padding / path choices --------
    use_split = bool(force_split) if force_split is not None else \
        (2 * d * d * 2 > vmem_limit // 4)   # resident DxD weights > ~25% of VMEM

    tv_eff = max(128, (min(tv, _round_up(vocab, 128)) // 128) * 128)
    tn_eff = max(128, min(_round_up(tn, 128), _round_up(max(n // 2, 1), 128)))
    while _ce_footprint(tn_eff, tv_eff, d, not use_split) > int(0.8 * vmem_limit) \
            and tn_eff > 128:
        tn_eff //= 2
    while _ce_footprint(tn_eff, tv_eff, d, not use_split) > int(0.8 * vmem_limit) \
            and tv_eff > 128:
        tv_eff //= 2

    v_pad = _round_up(vocab, tv_eff)
    n_tiles = max(2, pl.cdiv(n, tn_eff))        # >= 2 token tiles (v7x megacore)
    n_pad = n_tiles * tn_eff

    x_p = x if n_pad == n else jnp.zeros((n_pad, d), jnp.bfloat16).at[:n].set(x)
    labels_p = labels_enc.reshape(n, 1)
    if n_pad != n:
        labels_p = jnp.full((n_pad, 1), -1, jnp.int32).at[:n].set(labels_p)
    wv_p = wv if v_pad == vocab else \
        jnp.zeros((d, v_pad), jnp.bfloat16).at[:, :vocab].set(wv)

    flops = 2 * 2 * n_pad * d * v_pad                       # two vocab-head matmuls
    if not use_split:
        flops += 2 * 2 * n_pad * d * d                      # in-kernel hidden matmuls
    cost = pl.CostEstimate(
        flops=int(flops),
        transcendentals=int(2 * n_pad * v_pad),
        bytes_accessed=int(n_pad * v_pad * 2
                           + (n_pad // tn_eff) * d * v_pad * 2
                           + (2 if use_split else 1) * n_pad * d * 2
                           + (0 if use_split else 2 * d * d * 2)
                           + n_pad * 8),
    )

    if use_split:
        # Large-D path: hidden states from a separate small kernel so the fused
        # CE loop's VMEM budget is independent of D^2 (fits v7x's 64 MiB).
        h_all, h_act = _hidden_states(x_p, w_eff_all, w_eff_act,
                                      tm=tn_eff,
                                      tk=_pick_divisor_tile(d, 256, 128),
                                      vmem_limit=vmem_limit)
        call = functools.partial(_ce_call_split, labels_p, h_all, h_act, wv_p,
                                 alpha, vocab, tn_eff, tv_eff, vmem_limit, cost)
    else:
        call = functools.partial(_ce_call_fused, labels_p, x_p, w_eff_all,
                                 w_eff_act, wv_p, alpha, vocab, tn_eff, tv_eff,
                                 vmem_limit, cost)

    try:
        logits_pad, nll = call(True)        # Buffered(1) on resident blocks
    except Exception:                       # fall back to default buffering
        logits_pad, nll = call(False)

    loss = jnp.sum(nll) / denom
    logits = logits_pad[:n, :vocab].reshape(bsz, seq, vocab)
    # TODO(synk): HF causal-LM CE also shifts logits[:, :-1] vs labels[:, 1:];
    # the synthetic inner model here scores position t against label t.
    return {"loss": loss, "logits": logits}


# --------------------------------------------------------------------------- #
# Pure-JAX reference (same bf16 casts, f32 math) for correctness checking
# --------------------------------------------------------------------------- #
def _reference_forward(params, input_ids, attention_mask, labels, category,
                       alpha=ALPHA):
    x = params["emb"][input_ids.reshape(-1)].astype(jnp.bfloat16).astype(jnp.float32)
    a_act, b_act = params["a"][category], params["b"][category]
    a_all, b_all = params["a"][NUM_ADAPTERS - 1], params["b"][NUM_ADAPTERS - 1]
    w_act = (params["w"] + a_act @ b_act).astype(jnp.bfloat16).astype(jnp.float32)
    w_all = (params["w"] + a_all @ b_all).astype(jnp.bfloat16).astype(jnp.float32)
    wv = params["wv"].astype(jnp.bfloat16).astype(jnp.float32)

    lab = labels.reshape(-1).astype(jnp.int32)
    mask = ((attention_mask.reshape(-1) > 0) & (lab >= 0)).astype(jnp.float32)
    denom = jnp.maximum(mask.sum(), 1.0)

    def one_adapter(w_eff):
        h = (x @ w_eff).astype(jnp.bfloat16).astype(jnp.float32)
        logits = h @ wv
        lse = jax.nn.logsumexp(logits, axis=-1)
        z = jnp.take_along_axis(logits, jnp.maximum(lab, 0)[:, None], axis=-1)[:, 0]
        return logits, jnp.sum(mask * (lse - z)) / denom

    logits_all, loss_all = one_adapter(w_all)
    logits_act, loss_act = one_adapter(w_act)
    bsz, seq = input_ids.shape
    return {
        "loss": (1.0 - alpha) * loss_all + alpha * loss_act,
        "logits": ((1.0 - alpha) * logits_all
                   + alpha * logits_act).reshape(bsz, seq, -1),
    }


if __name__ == "__main__":
    B, S, D, R, VOCAB = 2, 64, 128, 8, 512

    key = jax.random.PRNGKey(0)
    kp, k_ids, k_lab = jax.random.split(key, 3)
    params = init_params(kp, VOCAB, D, R)

    input_ids = jax.random.randint(k_ids, (B, S), 0, VOCAB, dtype=jnp.int32)
    labels = jax.random.randint(k_lab, (B, S), 0, VOCAB, dtype=jnp.int32)
    labels = labels.at[0, 0].set(-100)                      # HF ignore_index
    attention_mask = jnp.ones((B, S), dtype=jnp.int32).at[1, S - 2:].set(0)
    category = jnp.array(3, dtype=jnp.int32)                # 'adapter_motivation'

    ref = _reference_forward(params, input_ids, attention_mask, labels, category)

    # Fused path: weights resident in the CE kernel, several vocab tiles so the
    # online-logsumexp loop is exercised.
    out = custom_model_with_expert_forward(params, input_ids, attention_mask,
                                           labels, category, tv=128)
    jax.block_until_ready(out["logits"])
    jax.block_until_ready(out["loss"])
    assert out["logits"].shape == (B, S, VOCAB)
    assert out["loss"].shape == () and bool(jnp.isfinite(out["loss"]))
    np.testing.assert_allclose(np.asarray(out["loss"], np.float32),
                               np.asarray(ref["loss"], np.float32),
                               rtol=2e-2, atol=1e-3)
    np.testing.assert_allclose(np.asarray(out["logits"], np.float32),
                               np.asarray(ref["logits"], np.float32),
                               rtol=5e-2, atol=2e-2)

    # Split path (separate hidden-state kernel, i.e. the large-D / v7x route) and
    # a vocab tile that does not divide V (exercises the padded-column mask).
    out2 = custom_model_with_expert_forward(params, input_ids, attention_mask,
                                            labels, category, tv=384,
                                            force_split=True)
    jax.block_until_ready(out2["loss"])
    np.testing.assert_allclose(np.asarray(out2["loss"], np.float32),
                               np.asarray(ref["loss"], np.float32),
                               rtol=2e-2, atol=1e-3)
    np.testing.assert_allclose(np.asarray(out2["logits"], np.float32),
                               np.asarray(ref["logits"], np.float32),
                               rtol=5e-2, atol=2e-2)

    print("KERNEL_OK")
</pallas_src>

<mosaic_0001>
module attributes {stable_mosaic.version = 11 : i64} {
  func.func @_fused_kernel(%arg0: i32, %arg1: i32, %arg2: memref<128x1xi32, #tpu.memory_space<vmem>>, %arg3: memref<128x128xbf16, #tpu.memory_space<vmem>>, %arg4: memref<128x128xbf16, #tpu.memory_space<vmem>>, %arg5: memref<128x128xbf16, #tpu.memory_space<vmem>>, %arg6: memref<128x128xbf16, #tpu.memory_space<vmem>>, %arg7: memref<128x128xbf16, #tpu.memory_space<vmem>>, %arg8: memref<128x1xf32, #tpu.memory_space<vmem>>, %arg9: memref<128x128xbf16, #tpu.memory_space<vmem>>, %arg10: memref<128x128xbf16, #tpu.memory_space<vmem>>, %arg11: memref<128x1xf32, #tpu.memory_space<vmem>>, %arg12: memref<128x1xf32, #tpu.memory_space<vmem>>, %arg13: memref<128x1xf32, #tpu.memory_space<vmem>>, %arg14: memref<128x1xf32, #tpu.memory_space<vmem>>, %arg15: memref<128x1xf32, #tpu.memory_space<vmem>>) attributes {dimension_semantics = [#tpu.dimension_semantics<parallel>, #tpu.dimension_semantics<arbitrary>], iteration_bounds = array<i64: 2, 4>, scalar_prefetch = 0 : i64, scratch_operands = 7 : i64, tpu.core_type = #tpu.core_type<tc>, window_params = [{pipeline_mode = #tpu.pipeline_mode<synchronous>, transform_indices = @transform_0, window_bounds = array<i64: 128, 1>}, {pipeline_mode = #tpu.pipeline_mode<synchronous>, transform_indices = @transform_1, window_bounds = array<i64: 128, 128>}, {pipeline_mode = #tpu.pipeline_mode<synchronous>, transform_indices = @transform_2, window_bounds = array<i64: 128, 128>}, {pipeline_mode = #tpu.pipeline_mode<synchronous>, transform_indices = @transform_3, window_bounds = array<i64: 128, 128>}, {transform_indices = @transform_4, window_bounds = array<i64: 128, 128>}, {transform_indices = @transform_5, window_bounds = array<i64: 128, 128>}, {transform_indices = @transform_6, window_bounds = array<i64: 128, 1>}]} {
    %c0_i32 = arith.constant 0 : i32
    %0 = arith.cmpi eq, %arg1, %c0_i32 : i32
    %1 = arith.extui %0 : i1 to i32
    %c0_i32_0 = arith.constant 0 : i32
    %2 = arith.cmpi ne, %1, %c0_i32_0 : i32
    scf.if %2 {
      %c0_39 = arith.constant 0 : index
      %c0_40 = arith.constant 0 : index
      %63 = vector.load %arg3[%c0_39, %c0_40] : memref<128x128xbf16, #tpu.memory_space<vmem>>, vector<128x128xbf16>
      %c0_41 = arith.constant 0 : index
      %c0_42 = arith.constant 0 : index
      %64 = vector.load %arg4[%c0_41, %c0_42] : memref<128x128xbf16, #tpu.memory_space<vmem>>, vector<128x128xbf16>
      %cst_43 = arith.constant dense<0.000000e+00> : vector<128x128xf32>
      %65 = tpu.matmul %63, %64, %cst_43 {dimension_numbers = #tpu.dot_dimension_numbers<[1], [0], [0], [1], [0, 0, 1, 1], [], []>} : vector<128x128xbf16>, vector<128x128xbf16>, vector<128x128xf32> -> vector<128x128xf32>
      %66 = arith.truncf %65 : vector<128x128xf32> to vector<128x128xbf16>
      %c0_44 = arith.constant 0 : index
      %c0_45 = arith.constant 0 : index
      %67 = vector.load %arg9[%c0_44, %c0_45] : memref<128x128xbf16, #tpu.memory_space<vmem>>, vector<128x128xbf16>
      tpu.vector_store %arg9[%c0_44, %c0_45], %66 {strides = array<i32>} : memref<128x128xbf16, #tpu.memory_space<vmem>>, vector<128x128xbf16>,
      %c0_46 = arith.constant 0 : index
      %c0_47 = arith.constant 0 : index
      %68 = vector.load %arg5[%c0_46, %c0_47] : memref<128x128xbf16, #tpu.memory_space<vmem>>, vector<128x128xbf16>
      %cst_48 = arith.constant dense<0.000000e+00> : vector<128x128xf32>
      %69 = tpu.matmul %63, %68, %cst_48 {dimension_numbers = #tpu.dot_dimension_numbers<[1], [0], [0], [1], [0, 0, 1, 1], [], []>} : vector<128x128xbf16>, vector<128x128xbf16>, vector<128x128xf32> -> vector<128x128xf32>
      %70 = arith.truncf %69 : vector<128x128xf32> to vector<128x128xbf16>
      %c0_49 = arith.constant 0 : index
      %c0_50 = arith.constant 0 : index
      %71 = vector.load %arg10[%c0_49, %c0_50] : memref<128x128xbf16, #tpu.memory_space<vmem>>, vector<128x128xbf16>
      tpu.vector_store %arg10[%c0_49, %c0_50], %70 {strides = array<i32>} : memref<128x128xbf16, #tpu.memory_space<vmem>>, vector<128x128xbf16>,
      %cst_51 = arith.constant -1.000000e+30 : f32
      %72 = vector.broadcast %cst_51 : f32 to vector<128x1xf32>
      %cst_52 = arith.constant 0.000000e+00 : f32
      %73 = vector.broadcast %cst_52 : f32 to vector<128x1xf32>
      %c0_53 = arith.constant 0 : index
      %c0_54 = arith.constant 0 : index
      %74 = vector.load %arg11[%c0_53, %c0_54] : memref<128x1xf32, #tpu.memory_space<vmem>>, vector<128x1xf32>
      tpu.vector_store %arg11[%c0_53, %c0_54], %72 {strides = array<i32>} : memref<128x1xf32, #tpu.memory_space<vmem>>, vector<128x1xf32>,
      %c0_55 = arith.constant 0 : index
      %c0_56 = arith.constant 0 : index
      %75 = vector.load %arg13[%c0_55, %c0_56] : memref<128x1xf32, #tpu.memory_space<vmem>>, vector<128x1xf32>
      tpu.vector_store %arg13[%c0_55, %c0_56], %72 {strides = array<i32>} : memref<128x1xf32, #tpu.memory_space<vmem>>, vector<128x1xf32>,
      %c0_57 = arith.constant 0 : index
      %c0_58 = arith.constant 0 : index
      %76 = vector.load %arg12[%c0_57, %c0_58] : memref<128x1xf32, #tpu.memory_space<vmem>>, vector<128x1xf32>
      tpu.vector_store %arg12[%c0_57, %c0_58], %73 {strides = array<i32>} : memref<128x1xf32, #tpu.memory_space<vmem>>, vector<128x1xf32>,
      %c0_59 = arith.constant 0 : index
      %c0_60 = arith.constant 0 : index
      %77 = vector.load %arg14[%c0_59, %c0_60] : memref<128x1xf32, #tpu.memory_space<vmem>>, vector<128x1xf32>
      tpu.vector_store %arg14[%c0_59, %c0_60], %73 {strides = array<i32>} : memref<128x1xf32, #tpu.memory_space<vmem>>, vector<128x1xf32>,
      %c0_61 = arith.constant 0 : index
      %c0_62 = arith.constant 0 : index
      %78 = vector.load %arg15[%c0_61, %c0_62] : memref<128x1xf32, #tpu.memory_space<vmem>>, vector<128x1xf32>
      tpu.vector_store %arg15[%c0_61, %c0_62], %73 {strides = array<i32>} : memref<128x1xf32, #tpu.memory_space<vmem>>, vector<128x1xf32>,
    } else {
    }
    %c0 = arith.constant 0 : index
    %c0_1 = arith.constant 0 : index
    %3 = vector.load %arg9[%c0, %c0_1] : memref<128x128xbf16, #tpu.memory_space<vmem>>, vector<128x128xbf16>
    %c0_2 = arith.constant 0 : index
    %c0_3 = arith.constant 0 : index
    %4 = vector.load %arg10[%c0_2, %c0_3] : memref<128x128xbf16, #tpu.memory_space<vmem>>, vector<128x128xbf16>
    %c0_4 = arith.constant 0 : index
    %c0_5 = arith.constant 0 : index
    %5 = vector.load %arg6[%c0_4, %c0_5] : memref<128x128xbf16, #tpu.memory_space<vmem>>, vector<128x128xbf16>
    %cst = arith.constant dense<0.000000e+00> : vector<128x128xf32>
    %6 = tpu.matmul %3, %5, %cst {dimension_numbers = #tpu.dot_dimension_numbers<[1], [0], [0], [1], [0, 0, 1, 1], [], []>} : vector<128x128xbf16>, vector<128x128xbf16>, vector<128x128xf32> -> vector<128x128xf32>
    %cst_6 = arith.constant dense<0.000000e+00> : vector<128x128xf32>
    %7 = tpu.matmul %4, %5, %cst_6 {dimension_numbers = #tpu.dot_dimension_numbers<[1], [0], [0], [1], [0, 0, 1, 1], [], []>} : vector<128x128xbf16>, vector<128x128xbf16>, vector<128x128xf32> -> vector<128x128xf32>
    %8 = tpu.iota {dimensions = array<i32: 1>} : vector<128x128xi32>
    %c128_i32 = arith.constant 128 : i32
    %9 = arith.muli %arg1, %c128_i32 : i32
    %10 = vector.broadcast %9 : i32 to vector<128x128xi32>
    %11 = arith.addi %8, %10 : vector<128x128xi32>
    %12 = arith.subf %7, %6 : vector<128x128xf32>
    %cst_7 = arith.constant 2.000000e-01 : f32
    %13 = vector.broadcast %cst_7 : f32 to vector<128x128xf32>
    %14 = arith.mulf %13, %12 : vector<128x128xf32>
    %15 = arith.addf %6, %14 : vector<128x128xf32>
    %16 = arith.truncf %15 : vector<128x128xf32> to vector<128x128xbf16>
    %c0_8 = arith.constant 0 : index
    %c0_9 = arith.constant 0 : index
    %17 = vector.load %arg7[%c0_8, %c0_9] : memref<128x128xbf16, #tpu.memory_space<vmem>>, vector<128x128xbf16>
    tpu.vector_store %arg7[%c0_8, %c0_9], %16 {strides = array<i32>} : memref<128x128xbf16, #tpu.memory_space<vmem>>, vector<128x128xbf16>,
    %c0_10 = arith.constant 0 : index
    %c0_11 = arith.constant 0 : index
    %18 = vector.load %arg2[%c0_10, %c0_11] : memref<128x1xi32, #tpu.memory_space<vmem>>, vector<128x1xi32>
    %19 = vector.broadcast %18 : vector<128x1xi32> to vector<128x128xi32>
    %20 = arith.cmpi eq, %11, %19 : vector<128x128xi32>
    %c0_12 = arith.constant 0 : index
    %c0_13 = arith.constant 0 : index
    %21 = vector.load %arg15[%c0_12, %c0_13] : memref<128x1xf32, #tpu.memory_space<vmem>>, vector<128x1xf32>
    %cst_14 = arith.constant 0.000000e+00 : f32
    %22 = vector.broadcast %cst_14 : f32 to vector<128x128xf32>
    %23 = arith.select %20, %15, %22 : vector<128x128xi1>, vector<128x128xf32>
    %cst_15 = arith.constant dense<0.000000e+00> : vector<128xf32>
    %24 = vector.multi_reduction <add>, %23, %cst_15 [1] : vector<128x128xf32> to vector<128xf32>
    %25 = vector.shape_cast %24 : vector<128xf32> to vector<128x1xf32>
    %26 = arith.addf %21, %25 : vector<128x1xf32>
    %c0_16 = arith.constant 0 : index
    %c0_17 = arith.constant 0 : index
    %27 = vector.load %arg15[%c0_16, %c0_17] : memref<128x1xf32, #tpu.memory_space<vmem>>, vector<128x1xf32>
    tpu.vector_store %arg15[%c0_16, %c0_17], %26 {strides = array<i32>} : memref<128x1xf32, #tpu.memory_space<vmem>>, vector<128x1xf32>,
    %c0_18 = arith.constant 0 : index
    %c0_19 = arith.constant 0 : index
    %28 = vector.load %arg11[%c0_18, %c0_19] : memref<128x1xf32, #tpu.memory_space<vmem>>, vector<128x1xf32>
    %cst_20 = arith.constant dense<0xFF800000> : vector<128xf32>
    %29 = vector.multi_reduction <maximumf>, %6, %cst_20 [1] : vector<128x128xf32> to vector<128xf32>
    %30 = vector.shape_cast %29 : vector<128xf32> to vector<128x1xf32>
    %31 = arith.maximumf %28, %30 : vector<128x1xf32>
    %c0_21 = arith.constant 0 : index
    %c0_22 = arith.constant 0 : index
    %32 = vector.load %arg12[%c0_21, %c0_22] : memref<128x1xf32, #tpu.memory_space<vmem>>, vector<128x1xf32>
    %33 = arith.subf %28, %31 : vector<128x1xf32>
    %34 = math.exp %33 : vector<128x1xf32>
    %35 = arith.mulf %32, %34 : vector<128x1xf32>
    %36 = vector.broadcast %31 : vector<128x1xf32> to vector<128x128xf32>
    %37 = arith.subf %6, %36 : vector<128x128xf32>
    %38 = math.exp %37 : vector<128x128xf32>
    %cst_23 = arith.constant dense<0.000000e+00> : vector<128xf32>
    %39 = vector.multi_reduction <add>, %38, %cst_23 [1] : vector<128x128xf32> to vector<128xf32>
    %40 = vector.shape_cast %39 : vector<128xf32> to vector<128x1xf32>
    %41 = arith.addf %35, %40 : vector<128x1xf32>
    %c0_24 = arith.constant 0 : index
    %c0_25 = arith.constant 0 : index
    %42 = vector.load %arg12[%c0_24, %c0_25] : memref<128x1xf32, #tpu.memory_space<vmem>>, vector<128x1xf32>
    tpu.vector_store %arg12[%c0_24, %c0_25], %41 {strides = array<i32>} : memref<128x1xf32, #tpu.memory_space<vmem>>, vector<128x1xf32>,
    %c0_26 = arith.constant 0 : index
    %c0_27 = arith.constant 0 : index
    %43 = vector.load %arg11[%c0_26, %c0_27] : memref<128x1xf32, #tpu.memory_space<vmem>>, vector<128x1xf32>
    tpu.vector_store %arg11[%c0_26, %c0_27], %31 {strides = array<i32>} : memref<128x1xf32, #tpu.memory_space<vmem>>, vector<128x1xf32>,
    %c0_28 = arith.constant 0 : index
    %c0_29 = arith.constant 0 : index
    %44 = vector.load %arg13[%c0_28, %c0_29] : memref<128x1xf32, #tpu.memory_space<vmem>>, vector<128x1xf32>
    %cst_30 = arith.constant dense<0xFF800000> : vector<128xf32>
    %45 = vector.multi_reduction <maximumf>, %7, %cst_30 [1] : vector<128x128xf32> to vector<128xf32>
    %46 = vector.shape_cast %45 : vector<128xf32> to vector<128x1xf32>
    %47 = arith.maximumf %44, %46 : vector<128x1xf32>
    %c0_31 = arith.constant 0 : index
    %c0_32 = arith.constant 0 : index
    %48 = vector.load %arg14[%c0_31, %c0_32] : memref<128x1xf32, #tpu.memory_space<vmem>>, vector<128x1xf32>
    %49 = arith.subf %44, %47 : vector<128x1xf32>
    %50 = math.exp %49 : vector<128x1xf32>
    %51 = arith.mulf %48, %50 : vector<128x1xf32>
    %52 = vector.broadcast %47 : vector<128x1xf32> to vector<128x128xf32>
    %53 = arith.subf %7, %52 : vector<128x128xf32>
    %54 = math.exp %53 : vector<128x128xf32>
    %cst_33 = arith.constant dense<0.000000e+00> : vector<128xf32>
    %55 = vector.multi_reduction <add>, %54, %cst_33 [1] : vector<128x128xf32> to vector<128xf32>
    %56 = vector.shape_cast %55 : vector<128xf32> to vector<128x1xf32>
    %57 = arith.addf %51, %56 : vector<128x1xf32>
    %c0_34 = arith.constant 0 : index
    %c0_35 = arith.constant 0 : index
    %58 = vector.load %arg14[%c0_34, %c0_35] : memref<128x1xf32, #tpu.memory_space<vmem>>, vector<128x1xf32>
    tpu.vector_store %arg14[%c0_34, %c0_35], %57 {strides = array<i32>} : memref<128x1xf32, #tpu.memory_space<vmem>>, vector<128x1xf32>,
    %c0_36 = arith.constant 0 : index
    %c0_37 = arith.constant 0 : index
    %59 = vector.load %arg13[%c0_36, %c0_37] : memref<128x1xf32, #tpu.memory_space<vmem>>, vector<128x1xf32>
    tpu.vector_store %arg13[%c0_36, %c0_37], %47 {strides = array<i32>} : memref<128x1xf32, #tpu.memory_space<vmem>>, vector<128x1xf32>,
    %c3_i32 = arith.constant 3 : i32
    %60 = arith.cmpi eq, %arg1, %c3_i32 : i32
    %61 = arith.extui %60 : i1 to i32
    %c0_i32_38 = arith.constant 0 : i32
    %62 = arith.cmpi ne, %61, %c0_i32_38 : i32
    scf.if %62 {
      %c0_39 = arith.constant 0 : index
      %c0_40 = arith.constant 0 : index
      %63 = vector.load %arg2[%c0_39, %c0_40] : memref<128x1xi32, #tpu.memory_space<vmem>>, vector<128x1xi32>
      %c0_i32_41 = arith.constant 0 : i32
      %64 = vector.broadcast %c0_i32_41 : i32 to vector<128x1xi32>
      %65 = arith.cmpi sge, %63, %64 : vector<128x1xi32>
      %66 = arith.extui %65 : vector<128x1xi1> to vector<128x1xi32>
      %67 = arith.sitofp %66 : vector<128x1xi32> to vector<128x1xf32>
      %c0_42 = arith.constant 0 : index
      %c0_43 = arith.constant 0 : index
      %68 = vector.load %arg11[%c0_42, %c0_43] : memref<128x1xf32, #tpu.memory_space<vmem>>, vector<128x1xf32>
      %c0_44 = arith.constant 0 : index
      %c0_45 = arith.constant 0 : index
      %69 = vector.load %arg12[%c0_44, %c0_45] : memref<128x1xf32, #tpu.memory_space<vmem>>, vector<128x1xf32>
      %70 = math.log %69 : vector<128x1xf32>
      %71 = arith.addf %68, %70 : vector<128x1xf32>
      %cst_46 = arith.constant 8.000000e-01 : f32
      %72 = vector.broadcast %cst_46 : f32 to vector<128x1xf32>
      %73 = arith.mulf %72, %71 : vector<128x1xf32>
      %c0_47 = arith.constant 0 : index
      %c0_48 = arith.constant 0 : index
      %74 = vector.load %arg13[%c0_47, %c0_48] : memref<128x1xf32, #tpu.memory_space<vmem>>, vector<128x1xf32>
      %c0_49 = arith.constant 0 : index
      %c0_50 = arith.constant 0 : index
      %75 = vector.load %arg14[%c0_49, %c0_50] : memref<128x1xf32, #tpu.memory_space<vmem>>, vector<128x1xf32>
      %76 = math.log %75 : vector<128x1xf32>
      %77 = arith.addf %74, %76 : vector<128x1xf32>
      %cst_51 = arith.constant 2.000000e-01 : f32
      %78 = vector.broadcast %cst_51 : f32 to vector<128x1xf32>
      %79 = arith.mulf %78, %77 : vector<128x1xf32>
      %80 = arith.addf %73, %79 : vector<128x1xf32>
      %c0_52 = arith.constant 0 : index
      %c0_53 = arith.constant 0 : index
      %81 = vector.load %arg15[%c0_52, %c0_53] : memref<128x1xf32, #tpu.memory_space<vmem>>, vector<128x1xf32>
      %82 = arith.subf %80, %81 : vector<128x1xf32>
      %83 = arith.mulf %67, %82 : vector<128x1xf32>
      %c0_54 = arith.constant 0 : index
      %c0_55 = arith.constant 0 : index
      %84 = vector.load %arg8[%c0_54, %c0_55] : memref<128x1xf32, #tpu.memory_space<vmem>>, vector<128x1xf32>
      tpu.vector_store %arg8[%c0_54, %c0_55], %83 {strides = array<i32>} : memref<128x1xf32, #tpu.memory_space<vmem>>, vector<128x1xf32>,
    } else {
    }
    return
  }
  func.func @transform_0(%arg0: i32, %arg1: i32) -> (i32, i32) {
    %c0_i32 = arith.constant 0 : i32
    %c0_i32_0 = arith.constant 0 : i32
    return %arg0, %c0_i32 : i32, i32
  }
  func.func @transform_1(%arg0: i32, %arg1: i32) -> (i32, i32) {
    %c0_i32 = arith.constant 0 : i32
    %c0_i32_0 = arith.constant 0 : i32
    return %arg0, %c0_i32 : i32, i32
  }
  func.func @transform_2(%arg0: i32, %arg1: i32) -> (i32, i32) {
    %c0_i32 = arith.constant 0 : i32
    %c0_i32_0 = arith.constant 0 : i32
    %c0_i32_1 = arith.constant 0 : i32
    return %c0_i32, %c0_i32_0 : i32, i32
  }
  func.func @transform_3(%arg0: i32, %arg1: i32) -> (i32, i32) {
    %c0_i32 = arith.constant 0 : i32
    %c0_i32_0 = arith.constant 0 : i32
    %c0_i32_1 = arith.constant 0 : i32
    return %c0_i32, %c0_i32_0 : i32, i32
  }
  func.func @transform_4(%arg0: i32, %arg1: i32) -> (i32, i32) {
    %c0_i32 = arith.constant 0 : i32
    %c0_i32_0 = arith.constant 0 : i32
    return %c0_i32, %arg1 : i32, i32
  }
  func.func @transform_5(%arg0: i32, %arg1: i32) -> (i32, i32) {
    %c0_i32 = arith.constant 0 : i32
    return %arg0, %arg1 : i32, i32
  }
  func.func @transform_6(%arg0: i32, %arg1: i32) -> (i32, i32) {
    %c0_i32 = arith.constant 0 : i32
    %c0_i32_0 = arith.constant 0 : i32
    return %arg0, %c0_i32 : i32, i32
  }
}

module attributes {stable_mosaic.version = 11 : i64} {
  func.func @_fused_kernel(%arg0: i32, %arg1: i32, %arg2: memref<128x1xi32, #tpu.memory_space<vmem>>, %arg3: memref<128x128xbf16, #tpu.memory_space<vmem>>, %arg4: memref<128x128xbf16, #tpu.memory_space<vmem>>, %arg5: memref<128x128xbf16, #tpu.memory_space<vmem>>, %arg6: memref<128x128xbf16, #tpu.memory_space<vmem>>, %arg7: memref<128x128xbf16, #tpu.memory_space<vmem>>, %arg8: memref<128x1xf32, #tpu.memory_space<vmem>>, %arg9: memref<128x128xbf16, #tpu.memory_space<vmem>>, %arg10: memref<128x128xbf16, #tpu.memory_space<vmem>>, %arg11: memref<128x1xf32, #tpu.memory_space<vmem>>, %arg12: memref<128x1xf32, #tpu.memory_space<vmem>>, %arg13: memref<128x1xf32, #tpu.memory_space<vmem>>, %arg14: memref<128x1xf32, #tpu.memory_space<vmem>>, %arg15: memref<128x1xf32, #tpu.memory_space<vmem>>) attributes {dimension_semantics = [#tpu.dimension_semantics<parallel>, #tpu.dimension_semantics<arbitrary>], iteration_bounds = array<i64: 2, 4>, scalar_prefetch = 0 : i64, scratch_operands = 7 : i64, tpu.core_type = #tpu.core_type<tc>, window_params = [{transform_indices = @transform_0, window_bounds = array<i64: 128, 1>}, {transform_indices = @transform_1, window_bounds = array<i64: 128, 128>}, {pipeline_mode = #tpu.pipeline_mode<synchronous>, transform_indices = @transform_2, window_bounds = array<i64: 128, 128>}, {pipeline_mode = #tpu.pipeline_mode<synchronous>, transform_indices = @transform_3, window_bounds = array<i64: 128, 128>}, {transform_indices = @transform_4, window_bounds = array<i64: 128, 128>}, {transform_indices = @transform_5, window_bounds = array<i64: 128, 128>}, {transform_indices = @transform_6, window_bounds = array<i64: 128, 1>}]} {
    %c0_i32 = arith.constant 0 : i32
    %0 = arith.cmpi eq, %arg1, %c0_i32 : i32
    %1 = arith.extui %0 : i1 to i32
    %c0_i32_0 = arith.constant 0 : i32
    %2 = arith.cmpi ne, %1, %c0_i32_0 : i32
    scf.if %2 {
      %c0_39 = arith.constant 0 : index
      %c0_40 = arith.constant 0 : index
      %63 = vector.load %arg3[%c0_39, %c0_40] : memref<128x128xbf16, #tpu.memory_space<vmem>>, vector<128x128xbf16>
      %c0_41 = arith.constant 0 : index
      %c0_42 = arith.constant 0 : index
      %64 = vector.load %arg4[%c0_41, %c0_42] : memref<128x128xbf16, #tpu.memory_space<vmem>>, vector<128x128xbf16>
      %cst_43 = arith.constant dense<0.000000e+00> : vector<128x128xf32>
      %65 = tpu.matmul %63, %64, %cst_43 {dimension_numbers = #tpu.dot_dimension_numbers<[1], [0], [0], [1], [0, 0, 1, 1], [], []>} : vector<128x128xbf16>, vector<128x128xbf16>, vector<128x128xf32> -> vector<128x128xf32>
      %66 = arith.truncf %65 : vector<128x128xf32> to vector<128x128xbf16>
      %c0_44 = arith.constant 0 : index
      %c0_45 = arith.constant 0 : index
      %67 = vector.load %arg9[%c0_44, %c0_45] : memref<128x128xbf16, #tpu.memory_space<vmem>>, vector<128x128xbf16>
      tpu.vector_store %arg9[%c0_44, %c0_45], %66 {strides = array<i32>} : memref<128x128xbf16, #tpu.memory_space<vmem>>, vector<128x128xbf16>,
      %c0_46 = arith.constant 0 : index
      %c0_47 = arith.constant 0 : index
      %68 = vector.load %arg5[%c0_46, %c0_47] : memref<128x128xbf16, #tpu.memory_space<vmem>>, vector<128x128xbf16>
      %cst_48 = arith.constant dense<0.000000e+00> : vector<128x128xf32>
      %69 = tpu.matmul %63, %68, %cst_48 {dimension_numbers = #tpu.dot_dimension_numbers<[1], [0], [0], [1], [0, 0, 1, 1], [], []>} : vector<128x128xbf16>, vector<128x128xbf16>, vector<128x128xf32> -> vector<128x128xf32>
      %70 = arith.truncf %69 : vector<128x128xf32> to vector<128x128xbf16>
      %c0_49 = arith.constant 0 : index
      %c0_50 = arith.constant 0 : index
      %71 = vector.load %arg10[%c0_49, %c0_50] : memref<128x128xbf16, #tpu.memory_space<vmem>>, vector<128x128xbf16>
      tpu.vector_store %arg10[%c0_49, %c0_50], %70 {strides = array<i32>} : memref<128x128xbf16, #tpu.memory_space<vmem>>, vector<128x128xbf16>,
      %cst_51 = arith.constant -1.000000e+30 : f32
      %72 = vector.broadcast %cst_51 : f32 to vector<128x1xf32>
      %cst_52 = arith.constant 0.000000e+00 : f32
      %73 = vector.broadcast %cst_52 : f32 to vector<128x1xf32>
      %c0_53 = arith.constant 0 : index
      %c0_54 = arith.constant 0 : index
      %74 = vector.load %arg11[%c0_53, %c0_54] : memref<128x1xf32, #tpu.memory_space<vmem>>, vector<128x1xf32>
      tpu.vector_store %arg11[%c0_53, %c0_54], %72 {strides = array<i32>} : memref<128x1xf32, #tpu.memory_space<vmem>>, vector<128x1xf32>,
      %c0_55 = arith.constant 0 : index
      %c0_56 = arith.constant 0 : index
      %75 = vector.load %arg13[%c0_55, %c0_56] : memref<128x1xf32, #tpu.memory_space<vmem>>, vector<128x1xf32>
      tpu.vector_store %arg13[%c0_55, %c0_56], %72 {strides = array<i32>} : memref<128x1xf32, #tpu.memory_space<vmem>>, vector<128x1xf32>,
      %c0_57 = arith.constant 0 : index
      %c0_58 = arith.constant 0 : index
      %76 = vector.load %arg12[%c0_57, %c0_58] : memref<128x1xf32, #tpu.memory_space<vmem>>, vector<128x1xf32>
      tpu.vector_store %arg12[%c0_57, %c0_58], %73 {strides = array<i32>} : memref<128x1xf32, #tpu.memory_space<vmem>>, vector<128x1xf32>,
      %c0_59 = arith.constant 0 : index
      %c0_60 = arith.constant 0 : index
      %77 = vector.load %arg14[%c0_59, %c0_60] : memref<128x1xf32, #tpu.memory_space<vmem>>, vector<128x1xf32>
      tpu.vector_store %arg14[%c0_59, %c0_60], %73 {strides = array<i32>} : memref<128x1xf32, #tpu.memory_space<vmem>>, vector<128x1xf32>,
      %c0_61 = arith.constant 0 : index
      %c0_62 = arith.constant 0 : index
      %78 = vector.load %arg15[%c0_61, %c0_62] : memref<128x1xf32, #tpu.memory_space<vmem>>, vector<128x1xf32>
      tpu.vector_store %arg15[%c0_61, %c0_62], %73 {strides = array<i32>} : memref<128x1xf32, #tpu.memory_space<vmem>>, vector<128x1xf32>,
    } else {
    }
    %c0 = arith.constant 0 : index
    %c0_1 = arith.constant 0 : index
    %3 = vector.load %arg9[%c0, %c0_1] : memref<128x128xbf16, #tpu.memory_space<vmem>>, vector<128x128xbf16>
    %c0_2 = arith.constant 0 : index
    %c0_3 = arith.constant 0 : index
    %4 = vector.load %arg10[%c0_2, %c0_3] : memref<128x128xbf16, #tpu.memory_space<vmem>>, vector<128x128xbf16>
    %c0_4 = arith.constant 0 : index
    %c0_5 = arith.constant 0 : index
    %5 = vector.load %arg6[%c0_4, %c0_5] : memref<128x128xbf16, #tpu.memory_space<vmem>>, vector<128x128xbf16>
    %cst = arith.constant dense<0.000000e+00> : vector<128x128xf32>
    %6 = tpu.matmul %3, %5, %cst {dimension_numbers = #tpu.dot_dimension_numbers<[1], [0], [0], [1], [0, 0, 1, 1], [], []>} : vector<128x128xbf16>, vector<128x128xbf16>, vector<128x128xf32> -> vector<128x128xf32>
    %cst_6 = arith.constant dense<0.000000e+00> : vector<128x128xf32>
    %7 = tpu.matmul %4, %5, %cst_6 {dimension_numbers = #tpu.dot_dimension_numbers<[1], [0], [0], [1], [0, 0, 1, 1], [], []>} : vector<128x128xbf16>, vector<128x128xbf16>, vector<128x128xf32> -> vector<128x128xf32>
    %8 = tpu.iota {dimensions = array<i32: 1>} : vector<128x128xi32>
    %c128_i32 = arith.constant 128 : i32
    %9 = arith.muli %arg1, %c128_i32 : i32
    %10 = vector.broadcast %9 : i32 to vector<128x128xi32>
    %11 = arith.addi %8, %10 : vector<128x128xi32>
    %12 = arith.subf %7, %6 : vector<128x128xf32>
    %cst_7 = arith.constant 2.000000e-01 : f32
    %13 = vector.broadcast %cst_7 : f32 to vector<128x128xf32>
    %14 = arith.mulf %13, %12 : vector<128x128xf32>
    %15 = arith.addf %6, %14 : vector<128x128xf32>
    %16 = arith.truncf %15 : vector<128x128xf32> to vector<128x128xbf16>
    %c0_8 = arith.constant 0 : index
    %c0_9 = arith.constant 0 : index
    %17 = vector.load %arg7[%c0_8, %c0_9] : memref<128x128xbf16, #tpu.memory_space<vmem>>, vector<128x128xbf16>
    tpu.vector_store %arg7[%c0_8, %c0_9], %16 {strides = array<i32>} : memref<128x128xbf16, #tpu.memory_space<vmem>>, vector<128x128xbf16>,
    %c0_10 = arith.constant 0 : index
    %c0_11 = arith.constant 0 : index
    %18 = vector.load %arg2[%c0_10, %c0_11] : memref<128x1xi32, #tpu.memory_space<vmem>>, vector<128x1xi32>
    %19 = vector.broadcast %18 : vector<128x1xi32> to vector<128x128xi32>
    %20 = arith.cmpi eq, %11, %19 : vector<128x128xi32>
    %c0_12 = arith.constant 0 : index
    %c0_13 = arith.constant 0 : index
    %21 = vector.load %arg15[%c0_12, %c0_13] : memref<128x1xf32, #tpu.memory_space<vmem>>, vector<128x1xf32>
    %cst_14 = arith.constant 0.000000e+00 : f32
    %22 = vector.broadcast %cst_14 : f32 to vector<128x128xf32>
    %23 = arith.select %20, %15, %22 : vector<128x128xi1>, vector<128x128xf32>
    %cst_15 = arith.constant dense<0.000000e+00> : vector<128xf32>
    %24 = vector.multi_reduction <add>, %23, %cst_15 [1] : vector<128x128xf32> to vector<128xf32>
    %25 = vector.shape_cast %24 : vector<128xf32> to vector<128x1xf32>
    %26 = arith.addf %21, %25 : vector<128x1xf32>
    %c0_16 = arith.constant 0 : index
    %c0_17 = arith.constant 0 : index
    %27 = vector.load %arg15[%c0_16, %c0_17] : memref<128x1xf32, #tpu.memory_space<vmem>>, vector<128x1xf32>
    tpu.vector_store %arg15[%c0_16, %c0_17], %26 {strides = array<i32>} : memref<128x1xf32, #tpu.memory_space<vmem>>, vector<128x1xf32>,
    %c0_18 = arith.constant 0 : index
    %c0_19 = arith.constant 0 : index
    %28 = vector.load %arg11[%c0_18, %c0_19] : memref<128x1xf32, #tpu.memory_space<vmem>>, vector<128x1xf32>
    %cst_20 = arith.constant dense<0xFF800000> : vector<128xf32>
    %29 = vector.multi_reduction <maximumf>, %6, %cst_20 [1] : vector<128x128xf32> to vector<128xf32>
    %30 = vector.shape_cast %29 : vector<128xf32> to vector<128x1xf32>
    %31 = arith.maximumf %28, %30 : vector<128x1xf32>
    %c0_21 = arith.constant 0 : index
    %c0_22 = arith.constant 0 : index
    %32 = vector.load %arg12[%c0_21, %c0_22] : memref<128x1xf32, #tpu.memory_space<vmem>>, vector<128x1xf32>
    %33 = arith.subf %28, %31 : vector<128x1xf32>
    %34 = math.exp %33 : vector<128x1xf32>
    %35 = arith.mulf %32, %34 : vector<128x1xf32>
    %36 = vector.broadcast %31 : vector<128x1xf32> to vector<128x128xf32>
    %37 = arith.subf %6, %36 : vector<128x128xf32>
    %38 = math.exp %37 : vector<128x128xf32>
    %cst_23 = arith.constant dense<0.000000e+00> : vector<128xf32>
    %39 = vector.multi_reduction <add>, %38, %cst_23 [1] : vector<128x128xf32> to vector<128xf32>
    %40 = vector.shape_cast %39 : vector<128xf32> to vector<128x1xf32>
    %41 = arith.addf %35, %40 : vector<128x1xf32>
    %c0_24 = arith.constant 0 : index
    %c0_25 = arith.constant 0 : index
    %42 = vector.load %arg12[%c0_24, %c0_25] : memref<128x1xf32, #tpu.memory_space<vmem>>, vector<128x1xf32>
    tpu.vector_store %arg12[%c0_24, %c0_25], %41 {strides = array<i32>} : memref<128x1xf32, #tpu.memory_space<vmem>>, vector<128x1xf32>,
    %c0_26 = arith.constant 0 : index
    %c0_27 = arith.constant 0 : index
    %43 = vector.load %arg11[%c0_26, %c0_27] : memref<128x1xf32, #tpu.memory_space<vmem>>, vector<128x1xf32>
    tpu.vector_store %arg11[%c0_26, %c0_27], %31 {strides = array<i32>} : memref<128x1xf32, #tpu.memory_space<vmem>>, vector<128x1xf32>,
    %c0_28 = arith.constant 0 : index
    %c0_29 = arith.constant 0 : index
    %44 = vector.load %arg13[%c0_28, %c0_29] : memref<128x1xf32, #tpu.memory_space<vmem>>, vector<128x1xf32>
    %cst_30 = arith.constant dense<0xFF800000> : vector<128xf32>
    %45 = vector.multi_reduction <maximumf>, %7, %cst_30 [1] : vector<128x128xf32> to vector<128xf32>
    %46 = vector.shape_cast %45 : vector<128xf32> to vector<128x1xf32>
    %47 = arith.maximumf %44, %46 : vector<128x1xf32>
    %c0_31 = arith.constant 0 : index
    %c0_32 = arith.constant 0 : index
    %48 = vector.load %arg14[%c0_31, %c0_32] : memref<128x1xf32, #tpu.memory_space<vmem>>, vector<128x1xf32>
    %49 = arith.subf %44, %47 : vector<128x1xf32>
    %50 = math.exp %49 : vector<128x1xf32>
    %51 = arith.mulf %48, %50 : vector<128x1xf32>
    %52 = vector.broadcast %47 : vector<128x1xf32> to vector<128x128xf32>
    %53 = arith.subf %7, %52 : vector<128x128xf32>
    %54 = math.exp %53 : vector<128x128xf32>
    %cst_33 = arith.constant dense<0.000000e+00> : vector<128xf32>
    %55 = vector.multi_reduction <add>, %54, %cst_33 [1] : vector<128x128xf32> to vector<128xf32>
    %56 = vector.shape_cast %55 : vector<128xf32> to vector<128x1xf32>
    %57 = arith.addf %51, %56 : vector<128x1xf32>
    %c0_34 = arith.constant 0 : index
    %c0_35 = arith.constant 0 : index
    %58 = vector.load %arg14[%c0_34, %c0_35] : memref<128x1xf32, #tpu.memory_space<vmem>>, vector<128x1xf32>
    tpu.vector_store %arg14[%c0_34, %c0_35], %57 {strides = array<i32>} : memref<128x1xf32, #tpu.memory_space<vmem>>, vector<128x1xf32>,
    %c0_36 = arith.constant 0 : index
    %c0_37 = arith.constant 0 : index
    %59 = vector.load %arg13[%c0_36, %c0_37] : memref<128x1xf32, #tpu.memory_space<vmem>>, vector<128x1xf32>
    tpu.vector_store %arg13[%c0_36, %c0_37], %47 {strides = array<i32>} : memref<128x1xf32, #tpu.memory_space<vmem>>, vector<128x1xf32>,
    %c3_i32 = arith.constant 3 : i32
    %60 = arith.cmpi eq, %arg1, %c3_i32 : i32
    %61 = arith.extui %60 : i1 to i32
    %c0_i32_38 = arith.constant 0 : i32
    %62 = arith.cmpi ne, %61, %c0_i32_38 : i32
    scf.if %62 {
      %c0_39 = arith.constant 0 : index
      %c0_40 = arith.constant 0 : index
      %63 = vector.load %arg2[%c0_39, %c0_40] : memref<128x1xi32, #tpu.memory_space<vmem>>, vector<128x1xi32>
      %c0_i32_41 = arith.constant 0 : i32
      %64 = vector.broadcast %c0_i32_41 : i32 to vector<128x1xi32>
      %65 = arith.cmpi sge, %63, %64 : vector<128x1xi32>
      %66 = arith.extui %65 : vector<128x1xi1> to vector<128x1xi32>
      %67 = arith.sitofp %66 : vector<128x1xi32> to vector<128x1xf32>
      %c0_42 = arith.constant 0 : index
      %c0_43 = arith.constant 0 : index
      %68 = vector.load %arg11[%c0_42, %c0_43] : memref<128x1xf32, #tpu.memory_space<vmem>>, vector<128x1xf32>
      %c0_44 = arith.constant 0 : index
      %c0_45 = arith.constant 0 : index
      %69 = vector.load %arg12[%c0_44, %c0_45] : memref<128x1xf32, #tpu.memory_space<vmem>>, vector<128x1xf32>
      %70 = math.log %69 : vector<128x1xf32>
      %71 = arith.addf %68, %70 : vector<128x1xf32>
      %cst_46 = arith.constant 8.000000e-01 : f32
      %72 = vector.broadcast %cst_46 : f32 to vector<128x1xf32>
      %73 = arith.mulf %72, %71 : vector<128x1xf32>
      %c0_47 = arith.constant 0 : index
      %c0_48 = arith.constant 0 : index
      %74 = vector.load %arg13[%c0_47, %c0_48] : memref<128x1xf32, #tpu.memory_space<vmem>>, vector<128x1xf32>
      %c0_49 = arith.constant 0 : index
      %c0_50 = arith.constant 0 : index
      %75 = vector.load %arg14[%c0_49, %c0_50] : memref<128x1xf32, #tpu.memory_space<vmem>>, vector<128x1xf32>
      %76 = math.log %75 : vector<128x1xf32>
      %77 = arith.addf %74, %76 : vector<128x1xf32>
      %cst_51 = arith.constant 2.000000e-01 : f32
      %78 = vector.broadcast %cst_51 : f32 to vector<128x1xf32>
      %79 = arith.mulf %78, %77 : vector<128x1xf32>
      %80 = arith.addf %73, %79 : vector<128x1xf32>
      %c0_52 = arith.constant 0 : index
      %c0_53 = arith.constant 0 : index
      %81 = vector.load %arg15[%c0_52, %c0_53] : memref<128x1xf32, #tpu.memory_space<vmem>>, vector<128x1xf32>
      %82 = arith.subf %80, %81 : vector<128x1xf32>
      %83 = arith.mulf %67, %82 : vector<128x1xf32>
      %c0_54 = arith.constant 0 : index
      %c0_55 = arith.constant 0 : index
      %84 = vector.load %arg8[%c0_54, %c0_55] : memref<128x1xf32, #tpu.memory_space<vmem>>, vector<128x1xf32>
      tpu.vector_store %arg8[%c0_54, %c0_55], %83 {strides = array<i32>} : memref<128x1xf32, #tpu.memory_space<vmem>>, vector<128x1xf32>,
    } else {
    }
    return
  }
  func.func @transform_0(%arg0: i32, %arg1: i32) -> (i32, i32) {
    %c0_i32 = arith.constant 0 : i32
    %c0_i32_0 = arith.constant 0 : i32
    return %arg0, %c0_i32 : i32, i32
  }
  func.func @transform_1(%arg0: i32, %arg1: i32) -> (i32, i32) {
    %c0_i32 = arith.constant 0 : i32
    %c0_i32_0 = arith.constant 0 : i32
    return %arg0, %c0_i32 : i32, i32
  }
  func.func @transform_2(%arg0: i32, %arg1: i32) -> (i32, i32) {
    %c0_i32 = arith.constant 0 : i32
    %c0_i32_0 = arith.constant 0 : i32
    %c0_i32_1 = arith.constant 0 : i32
    return %c0_i32, %c0_i32_0 : i32, i32
  }
  func.func @transform_3(%arg0: i32, %arg1: i32) -> (i32, i32) {
    %c0_i32 = arith.constant 0 : i32
    %c0_i32_0 = arith.constant 0 : i32
    %c0_i32_1 = arith.constant 0 : i32
    return %c0_i32, %c0_i32_0 : i32, i32
  }
  func.func @transform_4(%arg0: i32, %arg1: i32) -> (i32, i32) {
    %c0_i32 = arith.constant 0 : i32
    %c0_i32_0 = arith.constant 0 : i32
    return %c0_i32, %arg1 : i32, i32
  }
  func.func @transform_5(%arg0: i32, %arg1: i32) -> (i32, i32) {
    %c0_i32 = arith.constant 0 : i32
    return %arg0, %arg1 : i32, i32
  }
  func.func @transform_6(%arg0: i32, %arg1: i32) -> (i32, i32) {
    %c0_i32 = arith.constant 0 : i32
    %c0_i32_0 = arith.constant 0 : i32
    return %arg0, %c0_i32 : i32, i32
  }
}

</mosaic_0001>

<bundles_post_ra>
// kernel: tpu_custom_call.1
= control target key start
LH: loop header
LB: loop body
LE: loop exit
PB: predicated region body
PF: predicated region fallthrough
CT: control target
= control target key end

     0   :  { %s5440_s0 = inlined_call_operand.vmem [shape: s32[256,1], index: 0, kind: input, shape index: {}]   ;;  %s5441_s1 = inlined_call_operand.hbm [shape: bf16[256,128], index: 1, kind: input, shape index: {}]   ;;  %s5442_s2 = inlined_call_operand.hbm [shape: bf16[128,128], index: 2, kind: input, shape index: {}]   ;;  %s5443_s3 = inlined_call_operand.hbm [shape: bf16[128,128], index: 3, kind: input, shape index: {}]   ;;  %s5444_s4 = inlined_call_operand.vmem [shape: bf16[128,512], index: 4, kind: input, shape index: {}]   ;;  %s5445_s5 = inlined_call_operand.hbm [shape: bf16[256,512], index: 5, kind: output, shape index: {0}]   ;;  %s5446_s6 = inlined_call_operand.vmem [shape: f32[256,1], index: 6, kind: output, shape index: {1}]  }
   0x1   :  { %5514 = sst [smem:[#allocation79_spill]] %s5440_s0 }
   0x2   :  { %5515 = sst [smem:[#allocation80_spill]] %s5445_s5 }
   0x3   :  { %5516 = sst [smem:[#allocation81_spill]] %s5446_s6 }
   0x4   :  { %12 = vsyncpa [#allocation10], 0 }
   0x5   :  { %13 = vsyncpa [#allocation13], 0 }
   0x6   :  { %14 = vsyncpa [#allocation11], 0 }
   0x7   :  { %16 = vsyncpa [#allocation11 + $0x1], 0  ;;  %s4190_s21 = smov 0   ;;  %s4192_s22 = smov 0  }
   0x8   :  { %s4194_s23 = smov 0   ;;  %s4196_s24 = smov 0  }
   0x9   :  { %s4198_s25 = smov 0   ;;  %s4200_s26 = smov 0  }
   0xa   :  { %s4202_s27 = smov 0   ;;  %s4204_s28 = smov 0  }
   0xb   :  { %s4206_s29 = smov 0   ;;  %s4208_s30 = smov 0  }
   0xc   :  { %s4210_s7 = smov 0   ;;  %s4212_s8 = smov 0  }
   0xd   :  { %s4214_s9 = smov 0  }
   0xe LB: > { %5517 = sst [smem:[#allocation20_spill]] %s4092_s21  ;;  %s3008_s10 = sadd.s32 4294967295, %s4140_s9   ;;  %s4140_s9 = sphi %s4214_s9, %s22_s9   ;;  %s4136_s8 = sphi %s4212_s8, %s5689_s8   ;;  %s4132_s7 = sphi %s4210_s7, %s5695_s7   ;;  %s4128_s30 = sphi %s4208_s30, %s5687_s30   ;;  %s4124_s29 = sphi %s4206_s29, %s5694_s29   ;;  %s4120_s28 = sphi %s4204_s28, %s5686_s28   ;;  %s4116_s27 = sphi %s4202_s27, %s5685_s27   ;;  %s4112_s26 = sphi %s4200_s26, %s5684_s26   ;;  %s4108_s25 = sphi %s4198_s25, %s5693_s25   ;;  %s4104_s24 = sphi %s4196_s24, %s5692_s24   ;;  %s4100_s23 = sphi %s4194_s23, %s5682_s23   ;;  %s4096_s22 = sphi %s4192_s22, %s5691_s22   ;;  %s4092_s21 = sphi %s4190_s21, %s5690_s21  }
   0xf   : > { %5518 = sst [smem:[#allocation21_spill]] %s4100_s23  ;;  %s31_s12 = sadd.s32 1, %s4132_s7 }
  0x10   : > { %5519 = sst [smem:[#allocation22_spill]] %s4116_s27  ;;  %s34_s13 = sadd.s32 1, %s4136_s8 }
  0x11   : > { %5520 = sst [smem:[#allocation23_spill]] %s4120_s28  ;;  %p32_p0 = scmp.ge.s32.totalorder %s31_s12, 4 }
  0x12   : > { %5521 = sst [smem:[#allocation24_spill]] %s4124_s29  ;;  %s67_s14 = sadd.s32 1, %s4120_s28 }
  0x13   : > { %5522 = sst [smem:[#allocation25_spill]] %s4136_s8  ;;  %p80_p1 = scmp.ne.s32.totalorder %s4116_s27, %s4112_s26 }
  0x14   : > { %p4259_p2 = scmp.eq.s32.totalorder %s3008_s10, 0  ;;  %s5697_s12 = smov (%p32_p0, %s31_s12), 0 }
  0x15   : > { %5524 = sst [smem:[#allocation26_spill]] %s5697_s12  ;;  %s5699_s13 = smov (!%p32_p0, %s34_s13), %s4136_s8 }
  0x16   : > { %s5523_s15 = scalar_select %p4259_p2, 1, 0 }
  0x17   : > { %p4268_p3 = por %p4259_p2, %p80_p1  ;;  %s132_s17 = ssub.s32 %s4132_s7, %s5697_s12 }
  0x18   : > { %p36_p4 = scmp.ge.s32.totalorder %s5699_s13, 2  ;;  %p133_p5 = scmp.eq.s32.totalorder %s132_s17, 0 }
  0x19   : > { %s5525_s16 = scalar_select %p4268_p3, 1, 0 }
  0x1a   : > { %s135_s18 = sadd.s32 1, %s4108_s25  ;;  %p142_p6 = scmp.ne.s32.totalorder %s4108_s25, %s4104_s24 }
  0x1b   : > { %s5701_s13 = smov (%p36_p4, %s5699_s13), 0  ;;  %p143_p7 = scmp.eq.s32.totalorder %s4140_s9, 0 }
  0x1c   : > { %5526 = sst [smem:[#allocation27_spill]] %s5701_s13  ;;  %s64_s20 = ssub.s32 %s4136_s8, %s5701_s13 }
  0x1d   : > { %s4280_s19 = scalar_select %p133_p5, %s4108_s25, %s135_s18  }
  0x1e   : > { %p65_p8 = scmp.eq.s32.totalorder %s64_s20, 0  ;;  %s160_s26 = sor.u32 %s132_s17, %s64_s20 }
  0x1f   : > { %5527 = sst [smem:[#allocation28_spill]] %s4280_s19  ;;  %p4285_p9 = por %p143_p7, %p142_p6 }
  0x20   : > { %p161_p10 = scmp.eq.s32.totalorder %s160_s26, 0  ;;  %s163_s27 = sadd.s32 1, %s4100_s23 }
  0x21   : > { %s5528_s11 = scalar_select %p4285_p9, 1, 0 }
  0x22   : > { %s4290_s12 = scalar_select %p65_p8, %s4120_s28, %s67_s14  }
  0x23   : > { %p173_p11 = scmp.ne.s32.totalorder %s4100_s23, %s4096_s22  ;;  %p174_p12 = scmp.eq.s32.totalorder %s3008_s10, 7 }
  0x24   : > { %5529 = sst [smem:[#allocation29_spill]] %s4290_s12  ;;  %p179_p13 = scmp.ne.s32.totalorder %s4096_s22, %s4092_s21 }
  0x25   : > { %s4296_s5 = scalar_select %p161_p10, %s4100_s23, %s163_s27  }
  0x26   : > { %s5531_s18 = sadd.s32 4294967294, %s4140_s9   ;;  %p3010_p1 = scmp.ge.s32.totalorder %s4140_s9, 1 }
  0x27   : > { %5530 = sst [smem:[#allocation30_spill]] %s4296_s5  ;;  %p180_p0 = scmp.eq.s32.totalorder %s5531_s18, 7 }
  0x28   : > { %p4303_p4 = por %p174_p12, %p173_p11  ;;  %p213_p5 = scmp.lt.s32.totalorder %s4140_s9, 9 }
  0x29   : > { %p4308_p6 = por %p180_p0, %p179_p13  ;;  %s4142_s27 = smov [#allocation12]  }
  0x2a   : > { %s5532_s17 = scalar_select %p4303_p4, 1, 0 }
  0x2b   : > { %s5534_s20 = scalar_select %p4308_p6, 1, 0 }
  0x2c   : > { %5533 = sst [smem:[#allocation31_spill]] %s5532_s17  ;;  %p4312_p7 = pnand %p3010_p1, %p213_p5 }
  0x2d   : > { %5535 = sst [smem:[#allocation32_spill]] %s5534_s20  ;;  %s250_s10 = sshll.u32 %s4142_s27, 4  ;;  %s251_s10 = int_to_ptr.vmem [resolvable:$true] %s250_s10 }
  0x2e   : > { %s5536_s14 = scalar_select %p4312_p7, 1, 0 }
  0x2f   : > { %p3543_p8 = pneg %p4312_p7  ;;  %s3931_s13 = scalar_lea.vmem %s251_s10, 1024 }
  0x30   : > { %p3932_p13 = scmp.ne.s32.totalorder %s251_s10, %s3931_s13  ;;  %p3939_p5 = scmp.lt.s32.totalorder %s251_s10, %s251_s10 }
  0x31   : > { %p4320_p10 = pnand %p3543_p8, %p4268_p3  ;;  %p4326_p11 = pnand %p3543_p8, %p4259_p2 }
  0x32   : > { %p3940_p6 = scmp.lt.s32.totalorder %s3931_s13, %s3931_s13 }
  0x33   : > { %s5538_s18 = scalar_select %p4326_p11, 1, 0 }
  0x34   : > { %p5462_p12 = pneg %p4326_p11  ;;  %p3941_p4 = por %p3940_p6, %p3939_p5 }
  0x36   : > { %p3934_p0 = pnand %p3932_p13, %p5462_p12 }
  0x38   : > { %p3935_p1 = pneg %p3934_p0 }
  0x3a   : > { %p3942_p3 = pnand %p3941_p4, %p3935_p1 }
  0x3c   : > { %3945 = shalt.err (!%p3942_p3)
}
  0x3d   : > { %s4143_s27 = smov 64   ;;  %s4144_s8 = smov 4  }
  0x3e   : > { %3549 = dma.hbm_to_vmem [thread:$0]  (!%p4326_p11), %s5442_s2, 1024, %s251_s10, [#allocation13], %s4143_s27, %s4143_s27, %s4144_s8  }
  0x3f   : > { %s3148_s19 = sshll.u32 %s4128_s30, 10  ;;  %s4145_s5 = smov [#allocation9]  }
  0x40   : > { %s237_s23 = sshll.u32 %s4145_s5, 4  ;;  %s236_s21 = scalar_lea.hbm %s5441_s1, %s3148_s19  ;;  %s238_s23 = int_to_ptr.vmem [resolvable:$true] %s237_s23 }
  0x41   : > { %s3946_s17 = scalar_lea.hbm %s236_s21, 1024  ;;  %p3948_p4 = pneg %p4320_p10 }
  0x42   : > { %p3947_p3 = scmp.ne.s32.totalorder %s236_s21, %s3946_s17  ;;  %s3951_s0 = scalar_lea.hbm %s5441_s1, 2048 }
  0x43   : > { %p3952_p13 = scmp.lt.s32.totalorder %s236_s21, %s5441_s1  ;;  %p3953_p0 = scmp.lt.s32.totalorder %s3951_s0, %s3946_s17 }
  0x44   : > { %p3949_p6 = pnand %p3948_p4, %p3947_p3 }
  0x45   : > { %p3954_p1 = por %p3953_p0, %p3952_p13 }
  0x46   : > { %p3950_p8 = pneg %p3949_p6 }
  0x48   : > { %p3955_p5 = pnand %p3954_p1, %p3950_p8 }
  0x4a   : > { %3958 = shalt.err (!%p3955_p5)
}
  0x4b   : > { %s3959_s5 = scalar_lea.vmem %s238_s23, 1024  ;;  %p3967_p9 = scmp.lt.s32.totalorder %s238_s23, %s238_s23 }
  0x4c   : > { %p3960_p12 = scmp.ne.s32.totalorder %s238_s23, %s3959_s5  ;;  %p3968_p11 = scmp.lt.s32.totalorder %s3959_s5, %s3959_s5 }
  0x4e   : > { %p3962_p2 = pnand %p3960_p12, %p3948_p4  ;;  %p3969_p3 = por %p3968_p11, %p3967_p9 }
  0x50   : > { %p3963_p7 = pneg %p3962_p2 }
  0x52   : > { %p3970_p6 = pnand %p3969_p3, %p3963_p7 }
  0x54   : > { %3973 = shalt.err (!%p3970_p6)
}
  0x55   : > { %3546 = dma.hbm_to_vmem [thread:$0]  (!%p4320_p10), %s236_s21, 1024, %s238_s23, [#allocation10], %s4143_s27, %s4143_s27, %s4144_s8  }
  0x56   : > { %s4146_s0 = smov [#allocation14]   ;;  %p5539_p13 = scmp.ne.s32.totalorder %s5538_s18, 0 }
  0x57   : > { %s263_s6 = sshll.u32 %s4146_s0, 4  ;;  %s264_s6 = int_to_ptr.vmem [resolvable:$true] %s263_s6 }
  0x58   : > { %s3985_s29 = scalar_lea.vmem %s264_s6, 1024  ;;  %p5540_p12 = pneg %p5539_p13 }
  0x59   : > { %p3986_p8 = scmp.ne.s32.totalorder %s264_s6, %s3985_s29  ;;  %p3993_p0 = scmp.lt.s32.totalorder %s264_s6, %s264_s6 }
  0x5a   : > { %p3994_p9 = scmp.lt.s32.totalorder %s3985_s29, %s3985_s29 }
  0x5b   : > { %p3988_p2 = pnand %p3986_p8, %p5540_p12 }
  0x5c   : > { %p3995_p7 = por %p3994_p9, %p3993_p0 }
  0x5d   : > { %p3989_p4 = pneg %p3988_p2 }
  0x5f   : > { %p3996_p11 = pnand %p3995_p7, %p3989_p4 }
  0x61   : > { %3999 = shalt.err (!%p3996_p11)
}
  0x62   : > { %3552 = dma.hbm_to_vmem [thread:$0]  (!%p5539_p13), %s5443_s3, 1024, %s264_s6, [#allocation13], %s4143_s27, %s4143_s27, %s4144_s8  }
  0x63   : > { %p3015_p10 = scmp.ge.s32.totalorder %s4140_s9, 8 }
  0x64   : > { %p5541_p1 = scmp.ne.s32.totalorder (!%p3015_p10), %s5528_s11, 0 }
  0x65   : > { %273 = sbr.rel (%p3015_p10) target bundleno = 121 (0x79), region = 32 }
  0x6a   : > { %276 = sbr.rel (!%p5541_p1) target bundleno = 121 (0x79), region = 36  ;;  %s278_s19 = sand.u32 (%p5541_p1), 1, %s4108_s25  }
  0x6b   : > { %s3017_s17 = sshll.u32 (%p5541_p1), %s4132_s7, 2  ;;  %s3016_s20 = sshll.u32 (%p5541_p1), %s278_s19, 6 }
  0x6c   : > { %s4379_s18 = scalar_lea.vmem (%p5541_p1), %s5444_s4, %s3017_s17  ;;  %s280_s8 = scalar_lea.vmem (%p5541_p1), [#allocation15], %s3016_s20 }
  0x6d   : > { %v299_v0 = vld [vmem:[%s4379_s18] sm:$0xf] (%p5541_p1)  ;;  %v301_v1 = vld [vmem:[%s4379_s18 + $0x10] sm:$0xf] (%p5541_p1) }
  0x6e   : > { %300 = vst [vmem:[%s280_s8] sm:$0xf] (%p5541_p1), %v299_v0  ;;  %302 = vst [vmem:[%s280_s8 + $0x4] sm:$0xf] (%p5541_p1), %v301_v1  ;;  %v303_v2 = vld [vmem:[%s4379_s18 + $0x20] sm:$0xf] (%p5541_p1) }
  0x6f   : > { %v305_v3 = vld [vmem:[%s4379_s18 + $0x30] sm:$0xf]  ;;  %v307_v4 = vld [vmem:[%s4379_s18 + $0x40] sm:$0xf]  ;;  %304 = vst [vmem:[%s280_s8 + $0x8] sm:$0xf] %v303_v2 }
  0x70   : > { %306 = vst [vmem:[%s280_s8 + $0xc] sm:$0xf] %v305_v3  ;;  %308 = vst [vmem:[%s280_s8 + $0x10] sm:$0xf] %v307_v4  ;;  %v309_v5 = vld [vmem:[%s4379_s18 + $0x50] sm:$0xf] }
  0x71   : > { %v311_v6 = vld [vmem:[%s4379_s18 + $0x60] sm:$0xf]  ;;  %v313_v7 = vld [vmem:[%s4379_s18 + $0x70] sm:$0xf]  ;;  %310 = vst [vmem:[%s280_s8 + $0x14] sm:$0xf] %v309_v5 }
  0x72   : > { %312 = vst [vmem:[%s280_s8 + $0x18] sm:$0xf] %v311_v6  ;;  %314 = vst [vmem:[%s280_s8 + $0x1c] sm:$0xf] %v313_v7  ;;  %v315_v8 = vld [vmem:[%s4379_s18 + $0x80] sm:$0xf] }
  0x73   : > { %v317_v9 = vld [vmem:[%s4379_s18 + $0x90] sm:$0xf]  ;;  %v319_v10 = vld [vmem:[%s4379_s18 + $0xa0] sm:$0xf]  ;;  %316 = vst [vmem:[%s280_s8 + $0x20] sm:$0xf] %v315_v8 }
  0x74   : > { %318 = vst [vmem:[%s280_s8 + $0x24] sm:$0xf] %v317_v9  ;;  %320 = vst [vmem:[%s280_s8 + $0x28] sm:$0xf] %v319_v10  ;;  %v321_v11 = vld [vmem:[%s4379_s18 + $0xb0] sm:$0xf] }
  0x75   : > { %v323_v12 = vld [vmem:[%s4379_s18 + $0xc0] sm:$0xf]  ;;  %v325_v13 = vld [vmem:[%s4379_s18 + $0xd0] sm:$0xf]  ;;  %322 = vst [vmem:[%s280_s8 + $0x2c] sm:$0xf] %v321_v11 }
  0x76   : > { %324 = vst [vmem:[%s280_s8 + $0x30] sm:$0xf] %v323_v12  ;;  %326 = vst [vmem:[%s280_s8 + $0x34] sm:$0xf] %v325_v13  ;;  %v327_v14 = vld [vmem:[%s4379_s18 + $0xe0] sm:$0xf] }
  0x77   : > { %v329_v15 = vld [vmem:[%s4379_s18 + $0xf0] sm:$0xf]  ;;  %328 = vst [vmem:[%s280_s8 + $0x38] sm:$0xf] %v327_v14 }
  0x78   : > { %330 = vst [vmem:[%s280_s8 + $0x3c] sm:$0xf] %v329_v15 }
  0x79 PF: > { %p5542_p5 = scmp.ne.s32.totalorder %s5536_s14, 0 }
  0x7b   : > { %389 = sbr.rel (%p5542_p5) target bundleno = 1264 (0x4f0), region = 77 }
  0x80   : > { %p5543_p3 = scmp.ne.s32.totalorder %s5525_s16, 0 }
  0x82   : > { %4079 = dma.done.wait (%p5543_p3), [#allocation10], 1024  }
  0x83   : > { %4081 = vsyncadd (%p5543_p3), [#allocation10], 4294966272  ;;  %p5544_p6 = scmp.ne.s32.totalorder %s5523_s15, 0 }
  0x85   : > { %4083 = dma.done.wait (%p5544_p6), [#allocation13], 2048  }
  0x86   : > { %4085 = vsyncadd (%p5544_p6), [#allocation13], 4294965248  ;;  %s404_s11 = sand.u32 1, %s4104_s24   ;;  %s433_s27 = sand.u32 1, %s4096_s22  }
  0x87   : > { %s3021_s14 = sshll.u32 %s404_s11, 6  ;;  %s3022_s13 = sshll.u32 %s433_s27, 6 }
  0x88   : > { %s3023_s28 = sshll.u32 %s4128_s30, 4  ;;  %s5545_s0 = sld [smem:[#allocation79_spill]] }
  0x89   : > { %p444_p8 = scmp.lt.s32.totalorder %s3023_s28, 31  ;;  %s5546_s21 = sld [smem:[#allocation81_spill]] }
  0x8a   : > { %s4422_s19 = scalar_lea.vmem [#allocation15], %s3021_s14  ;;  %s4424_s24 = scalar_lea.vmem [#allocation16], %s3022_s13 }
  0x8b   : > { %s5703_s28 = smov (!%p444_p8, %s3023_s28), 31  ;;  %s5547_s17 = sld [smem:[#allocation24_spill]] }
  0x8c   : > { %s3024_s16 = sshll.u32 %s5703_s28, 3 }
  0x8e   : > { %s4415_s6 = scalar_lea.vmem %s5545_s0, %s3024_s16 }
  0x8f   : > { %s4420_s23 = scalar_lea.vmem %s5546_s21, %s3024_s16 }
  0x91   : > { %p3027_p13 = scmp.ne.s32.totalorder %s5547_s17, 0 }
  0x93   : > { %461 = sbr.rel (%p3027_p13) target bundleno = 412 (0x19c), region = 97 }
  0x98   : > { %v3678_v16 = vld [vmem:[#allocation12 + $0x38] sm:$0xff]   ;;  %v3680_v18 = vld [vmem:[#allocation12 + $0x30] sm:$0xff]   ;;  %v3682_v20 = vld [vmem:[#allocation12 + $0x28] sm:$0xff]   ;;  %vm1008_vm0 = vcmask 7168   ;;  %v4147_v40 = vmov -1e+30  }
  0x99   : > { %v3679_v17 = vld [vmem:[#allocation14 + $0x38] sm:$0xff]   ;;  %3403 = vmatprep.subr.bf16.mxu0 %v3678_v16  ;;  %v3681_v19 = vld [vmem:[#allocation14 + $0x30] sm:$0xff]   ;;  %v3683_v21 = vld [vmem:[#allocation14 + $0x28] sm:$0xff]   ;;  %1009 = vst.msk [vmem:[#allocation4] sm:$0xff] %vm1008_vm0, %v4147_v40  ;;  %v4148_v41 = vmov 0.0  }
  0x9a   : > { %3435 = vmatprep.subr.bf16.mxu1 %v3679_v17  ;;  %3404 = vmatpush3.bf16.msra.mxu0 %v3678_v16  ;;  %v3684_v22 = vld [vmem:[#allocation12 + $0x20] sm:$0xff]   ;;  %v3686_v24 = vld [vmem:[#allocation12 + $0x18] sm:$0xff]   ;;  %v3688_v26 = vld [vmem:[#allocation12 + $0x10] sm:$0xff]   ;;  %1010 = vst.msk [vmem:[#allocation4 + $0x8] sm:$0xff] %vm1008_vm0, %v4147_v40 }
  0x9b   : > { %3436 = vmatpush3.bf16.msra.mxu1 %v3679_v17  ;;  %3405 = vmatprep.subr.bf16.mxu0 %v3680_v18  ;;  %v3685_v23 = vld [vmem:[#allocation14 + $0x20] sm:$0xff]   ;;  %v3687_v25 = vld [vmem:[#allocation14 + $0x18] sm:$0xff]   ;;  %v3689_v28 = vld [vmem:[#allocation14 + $0x10] sm:$0xff]   ;;  %1011 = vst.msk [vmem:[#allocation4 + $0x10] sm:$0xff] %vm1008_vm0, %v4147_v40 }
  0x9c   : > { %3437 = vmatprep.subr.bf16.mxu1 %v3681_v19  ;;  %v3694_v27 = vld [vmem:[#allocation9] sm:$0xff]   ;;  %v3690_v29 = vld [vmem:[#allocation12 + $0x8] sm:$0xff]   ;;  %v3696_v34 = vld [vmem:[#allocation9 + $0x10] sm:$0xff]   ;;  %1012 = vst.msk [vmem:[#allocation4 + $0x18] sm:$0xff] %vm1008_vm0, %v4147_v40 }
  0x9d   : > { %3419 = vmatprep.mubr.bf16.mxu0 %v3694_v27  ;;  %3451 = vmatprep.mubr.bf16.mxu1 %v3694_v27  ;;  %v3691_v30 = vld [vmem:[#allocation14 + $0x8] sm:$0xff]   ;;  %v3692_v31 = vld [vmem:[#allocation12] sm:$0xff]   ;;  %v3697_v35 = vld [vmem:[#allocation9 + $0x18] sm:$0xff]   ;;  %1013 = vst.msk [vmem:[#allocation4 + $0x20] sm:$0xff] %vm1008_vm0, %v4147_v40 }
  0x9e   : > { %3406 = vmatpush3.bf16.msra.mxu0 %v3680_v18  ;;  %v3693_v32 = vld [vmem:[#allocation14] sm:$0xff]   ;;  %v3695_v33 = vld [vmem:[#allocation9 + $0x8] sm:$0xff]   ;;  %v3700_v38 = vld [vmem:[#allocation9 + $0x30] sm:$0xff]   ;;  %1014 = vst.msk [vmem:[#allocation4 + $0x28] sm:$0xff] %vm1008_vm0, %v4147_v40 }
  0x9f   : > { %3438 = vmatpush3.bf16.msra.mxu1 %v3681_v19  ;;  %3407 = vmatprep.subr.bf16.mxu0 %v3682_v20  ;;  %v3698_v36 = vld [vmem:[#allocation9 + $0x20] sm:$0xff]   ;;  %v3699_v37 = vld [vmem:[#allocation9 + $0x28] sm:$0xff]   ;;  %v3701_v39 = vld [vmem:[#allocation9 + $0x38] sm:$0xff]   ;;  %1015 = vst.msk [vmem:[#allocation4 + $0x30] sm:$0xff] %vm1008_vm0, %v4147_v40 }
  0xa0   : > { %3439 = vmatprep.subr.bf16.mxu1 %v3683_v21  ;;  %1016 = vst.msk [vmem:[#allocation4 + $0x38] sm:$0xff] %vm1008_vm0, %v4147_v40  ;;  %1017 = vst.msk [vmem:[#allocation4 + $0x40] sm:$0xff] %vm1008_vm0, %v4147_v40 }
  0xa1   : > { %1018 = vst.msk [vmem:[#allocation4 + $0x48] sm:$0xff] %vm1008_vm0, %v4147_v40  ;;  %1019 = vst.msk [vmem:[#allocation4 + $0x50] sm:$0xff] %vm1008_vm0, %v4147_v40 }
  0xa2   : > { %3408 = vmatpush3.bf16.msra.mxu0 %v3682_v20  ;;  %1020 = vst.msk [vmem:[#allocation4 + $0x58] sm:$0xff] %vm1008_vm0, %v4147_v40  ;;  %1021 = vst.msk [vmem:[#allocation4 + $0x60] sm:$0xff] %vm1008_vm0, %v4147_v40 }
  0xa3   : > { %3440 = vmatpush3.bf16.msra.mxu1 %v3683_v21  ;;  %3409 = vmatprep.subr.bf16.mxu0 %v3684_v22  ;;  %1022 = vst.msk [vmem:[#allocation4 + $0x68] sm:$0xff] %vm1008_vm0, %v4147_v40  ;;  %1023 = vst.msk [vmem:[#allocation4 + $0x70] sm:$0xff] %vm1008_vm0, %v4147_v40 }
  0xa4   : > { %3441 = vmatprep.subr.bf16.mxu1 %v3685_v23  ;;  %1024 = vst.msk [vmem:[#allocation4 + $0x78] sm:$0xff] %vm1008_vm0, %v4147_v40  ;;  %1025 = vst.msk [vmem:[#allocation6] sm:$0xff] %vm1008_vm0, %v4147_v40 }
  0xa5   : > { %1026 = vst.msk [vmem:[#allocation6 + $0x8] sm:$0xff] %vm1008_vm0, %v4147_v40  ;;  %1027 = vst.msk [vmem:[#allocation6 + $0x10] sm:$0xff] %vm1008_vm0, %v4147_v40 }
  0xa6   : > { %3410 = vmatpush3.bf16.msra.mxu0 %v3684_v22  ;;  %1028 = vst.msk [vmem:[#allocation6 + $0x18] sm:$0xff] %vm1008_vm0, %v4147_v40  ;;  %1029 = vst.msk [vmem:[#allocation6 + $0x20] sm:$0xff] %vm1008_vm0, %v4147_v40 }
  0xa7   : > { %3442 = vmatpush3.bf16.msra.mxu1 %v3685_v23  ;;  %3411 = vmatprep.subr.bf16.mxu0 %v3686_v24  ;;  %1030 = vst.msk [vmem:[#allocation6 + $0x28] sm:$0xff] %vm1008_vm0, %v4147_v40  ;;  %1031 = vst.msk [vmem:[#allocation6 + $0x30] sm:$0xff] %vm1008_vm0, %v4147_v40 }
  0xa8   : > { %3443 = vmatprep.subr.bf16.mxu1 %v3687_v25  ;;  %1032 = vst.msk [vmem:[#allocation6 + $0x38] sm:$0xff] %vm1008_vm0, %v4147_v40  ;;  %1033 = vst.msk [vmem:[#allocation6 + $0x40] sm:$0xff] %vm1008_vm0, %v4147_v40 }
  0xa9   : > { %1034 = vst.msk [vmem:[#allocation6 + $0x48] sm:$0xff] %vm1008_vm0, %v4147_v40  ;;  %1035 = vst.msk [vmem:[#allocation6 + $0x50] sm:$0xff] %vm1008_vm0, %v4147_v40 }
  0xaa   : > { %3412 = vmatpush3.bf16.msra.mxu0 %v3686_v24  ;;  %1036 = vst.msk [vmem:[#allocation6 + $0x58] sm:$0xff] %vm1008_vm0, %v4147_v40  ;;  %1037 = vst.msk [vmem:[#allocation6 + $0x60] sm:$0xff] %vm1008_vm0, %v4147_v40 }
  0xab   : > { %3444 = vmatpush3.bf16.msra.mxu1 %v3687_v25  ;;  %3413 = vmatprep.subr.bf16.mxu0 %v3688_v26  ;;  %1038 = vst.msk [vmem:[#allocation6 + $0x68] sm:$0xff] %vm1008_vm0, %v4147_v40  ;;  %1039 = vst.msk [vmem:[#allocation6 + $0x70] sm:$0xff] %vm1008_vm0, %v4147_v40 }
  0xac   : > { %3445 = vmatprep.subr.bf16.mxu1 %v3689_v28  ;;  %1040 = vst.msk [vmem:[#allocation6 + $0x78] sm:$0xff] %vm1008_vm0, %v4147_v40  ;;  %1041 = vst.msk [vmem:[#allocation5] sm:$0xff] %vm1008_vm0, %v4148_v41 }
  0xad   : > { %1042 = vst.msk [vmem:[#allocation5 + $0x8] sm:$0xff] %vm1008_vm0, %v4148_v41  ;;  %1043 = vst.msk [vmem:[#allocation5 + $0x10] sm:$0xff] %vm1008_vm0, %v4148_v41 }
  0xae   : > { %3414 = vmatpush3.bf16.msra.mxu0 %v3688_v26  ;;  %1044 = vst.msk [vmem:[#allocation5 + $0x18] sm:$0xff] %vm1008_vm0, %v4148_v41  ;;  %1045 = vst.msk [vmem:[#allocation5 + $0x20] sm:$0xff] %vm1008_vm0, %v4148_v41 }
  0xaf   : > { %3446 = vmatpush3.bf16.msra.mxu1 %v3689_v28  ;;  %3415 = vmatprep.subr.bf16.mxu0 %v3690_v29  ;;  %1046 = vst.msk [vmem:[#allocation5 + $0x28] sm:$0xff] %vm1008_vm0, %v4148_v41  ;;  %1047 = vst.msk [vmem:[#allocation5 + $0x30] sm:$0xff] %vm1008_vm0, %v4148_v41 }
  0xb0   : > { %3447 = vmatprep.subr.bf16.mxu1 %v3691_v30  ;;  %1048 = vst.msk [vmem:[#allocation5 + $0x38] sm:$0xff] %vm1008_vm0, %v4148_v41  ;;  %1049 = vst.msk [vmem:[#allocation5 + $0x40] sm:$0xff] %vm1008_vm0, %v4148_v41 }
  0xb1   : > { %1050 = vst.msk [vmem:[#allocation5 + $0x48] sm:$0xff] %vm1008_vm0, %v4148_v41  ;;  %1051 = vst.msk [vmem:[#allocation5 + $0x50] sm:$0xff] %vm1008_vm0, %v4148_v41 }
  0xb2   : > { %3416 = vmatpush3.bf16.msra.mxu0 %v3690_v29  ;;  %1052 = vst.msk [vmem:[#allocation5 + $0x58] sm:$0xff] %vm1008_vm0, %v4148_v41  ;;  %1053 = vst.msk [vmem:[#allocation5 + $0x60] sm:$0xff] %vm1008_vm0, %v4148_v41 }
  0xb3   : > { %3448 = vmatpush3.bf16.msra.mxu1 %v3691_v30  ;;  %3417 = vmatprep.subr.bf16.mxu0 %v3692_v31  ;;  %1054 = vst.msk [vmem:[#allocation5 + $0x68] sm:$0xff] %vm1008_vm0, %v4148_v41  ;;  %1055 = vst.msk [vmem:[#allocation5 + $0x70] sm:$0xff] %vm1008_vm0, %v4148_v41 }
  0xb4   : > { %3449 = vmatprep.subr.bf16.mxu1 %v3693_v32  ;;  %1056 = vst.msk [vmem:[#allocation5 + $0x78] sm:$0xff] %vm1008_vm0, %v4148_v41  ;;  %1057 = vst.msk [vmem:[#allocation7] sm:$0xff] %vm1008_vm0, %v4148_v41 }
  0xb5   : > { %1058 = vst.msk [vmem:[#allocation7 + $0x8] sm:$0xff] %vm1008_vm0, %v4148_v41  ;;  %1059 = vst.msk [vmem:[#allocation7 + $0x10] sm:$0xff] %vm1008_vm0, %v4148_v41 }
  0xb6   : > { %3418 = vmatpush3.bf16.msra.mxu0 %v3692_v31  ;;  %1060 = vst.msk [vmem:[#allocation7 + $0x18] sm:$0xff] %vm1008_vm0, %v4148_v41  ;;  %1061 = vst.msk [vmem:[#allocation7 + $0x20] sm:$0xff] %vm1008_vm0, %v4148_v41 }
  0xb7   : > { %3450 = vmatpush3.bf16.msra.mxu1 %v3693_v32  ;;  %1062 = vst.msk [vmem:[#allocation7 + $0x28] sm:$0xff] %vm1008_vm0, %v4148_v41  ;;  %1063 = vst.msk [vmem:[#allocation7 + $0x30] sm:$0xff] %vm1008_vm0, %v4148_v41 }
  0xb8   : > { %1064 = vst.msk [vmem:[#allocation7 + $0x38] sm:$0xff] %vm1008_vm0, %v4148_v41  ;;  %1065 = vst.msk [vmem:[#allocation7 + $0x40] sm:$0xff] %vm1008_vm0, %v4148_v41 }
  0xb9   : > { %3420 = vmatmul.mubr.bf16.vlgmr.msra.gmra.mxu0 %v3695_v33  ;;  %1066 = vst.msk [vmem:[#allocation7 + $0x48] sm:$0xff] %vm1008_vm0, %v4148_v41  ;;  %1067 = vst.msk [vmem:[#allocation7 + $0x50] sm:$0xff] %vm1008_vm0, %v4148_v41 }
  0xba   : > { %3452 = vmatmul.mubr.bf16.vlgmr.msra.gmra.mxu1 %v3695_v33  ;;  %3423 = vmatprep.mubr.bf16.mxu0 %v3696_v34  ;;  %1068 = vst.msk [vmem:[#allocation7 + $0x58] sm:$0xff] %vm1008_vm0, %v4148_v41  ;;  %1069 = vst.msk [vmem:[#allocation7 + $0x60] sm:$0xff] %vm1008_vm0, %v4148_v41 }
  0xbb   : > { %3455 = vmatprep.mubr.bf16.mxu1 %v3696_v34  ;;  %1070 = vst.msk [vmem:[#allocation7 + $0x68] sm:$0xff] %vm1008_vm0, %v4148_v41  ;;  %1071 = vst.msk [vmem:[#allocation7 + $0x70] sm:$0xff] %vm1008_vm0, %v4148_v41 }
  0xbc   : > { %1072 = vst.msk [vmem:[#allocation7 + $0x78] sm:$0xff] %vm1008_vm0, %v4148_v41  ;;  %1073 = vst.msk [vmem:[#allocation8] sm:$0xff] %vm1008_vm0, %v4148_v41 }
  0xbd   : > { %1074 = vst.msk [vmem:[#allocation8 + $0x8] sm:$0xff] %vm1008_vm0, %v4148_v41  ;;  %1075 = vst.msk [vmem:[#allocation8 + $0x10] sm:$0xff] %vm1008_vm0, %v4148_v41 }
  0xbe   : > { %1076 = vst.msk [vmem:[#allocation8 + $0x18] sm:$0xff] %vm1008_vm0, %v4148_v41  ;;  %1077 = vst.msk [vmem:[#allocation8 + $0x20] sm:$0xff] %vm1008_vm0, %v4148_v41 }
  0xbf   : > { %1078 = vst.msk [vmem:[#allocation8 + $0x28] sm:$0xff] %vm1008_vm0, %v4148_v41  ;;  %1079 = vst.msk [vmem:[#allocation8 + $0x30] sm:$0xff] %vm1008_vm0, %v4148_v41 }
  0xc0   : > { %1080 = vst.msk [vmem:[#allocation8 + $0x38] sm:$0xff] %vm1008_vm0, %v4148_v41  ;;  %1081 = vst.msk [vmem:[#allocation8 + $0x40] sm:$0xff] %vm1008_vm0, %v4148_v41 }
  0xc1   : > { %3424 = vmatmul.mubr.bf16.gmra.mxu0 %v3697_v35  ;;  %1082 = vst.msk [vmem:[#allocation8 + $0x48] sm:$0xff] %vm1008_vm0, %v4148_v41  ;;  %1083 = vst.msk [vmem:[#allocation8 + $0x50] sm:$0xff] %vm1008_vm0, %v4148_v41 }
  0xc2   : > { %3456 = vmatmul.mubr.bf16.gmra.mxu1 %v3697_v35  ;;  %3427 = vmatprep.mubr.bf16.mxu0 %v3698_v36  ;;  %1084 = vst.msk [vmem:[#allocation8 + $0x58] sm:$0xff] %vm1008_vm0, %v4148_v41  ;;  %1085 = vst.msk [vmem:[#allocation8 + $0x60] sm:$0xff] %vm1008_vm0, %v4148_v41 }
  0xc3   : > { %3459 = vmatprep.mubr.bf16.mxu1 %v3698_v36  ;;  %1086 = vst.msk [vmem:[#allocation8 + $0x68] sm:$0xff] %vm1008_vm0, %v4148_v41  ;;  %1087 = vst.msk [vmem:[#allocation8 + $0x70] sm:$0xff] %vm1008_vm0, %v4148_v41 }
  0xc4   : > { %1088 = vst.msk [vmem:[#allocation8 + $0x78] sm:$0xff] %vm1008_vm0, %v4148_v41 }
  0xc9   : > { %3428 = vmatmul.mubr.bf16.gmra.mxu0 %v3699_v37 }
  0xca   : > { %3460 = vmatmul.mubr.bf16.gmra.mxu1 %v3699_v37  ;;  %3431 = vmatprep.mubr.bf16.mxu0 %v3700_v38 }
  0xcb   : > { %3463 = vmatprep.mubr.bf16.mxu1 %v3700_v38 }
  0xd1   : > { %3432 = vmatmul.mubr.bf16.gmra.mxu0 %v3701_v39 }
  0xd2   : > { %3464 = vmatmul.mubr.bf16.gmra.mxu1 %v3701_v39 }
 0x179   : > { %v3421_v42 = vpop.f32.mrf.mxu0 }
 0x17a   : > { %v3453_v43 = vpop.f32.mrf.mxu1 }
 0x17b   : > { %v624_v44 = vpop.f32.mrf.mxu0 }
 0x17c   : > { %v865_v45 = vpop.f32.mrf.mxu1 }
 0x17d   : > { %v3422_v46 = vpop.f32.mrf.mxu0 }
 0x17e   : > { %v3206_v47 = vpack.c.bf16 %v3422_v46, %v3421_v42  ;;  %v3454_v48 = vpop.f32.mrf.mxu1 }
 0x17f   : > { %v3246_v49 = vpack.c.bf16 %v3454_v48, %v3453_v43  ;;  %v627_v50 = vpop.f32.mrf.mxu0 }
 0x180   : > { %3318 = vst [vmem:[#allocation2 + $0x8] sm:$0xff] %v3206_v47   ;;  %v3201_v51 = vpack.c.bf16 %v627_v50, %v624_v44  ;;  %v868_v52 = vpop.f32.mrf.mxu1 }
 0x181   : > { %3325 = vst [vmem:[#allocation3 + $0x8] sm:$0xff] %v3246_v49   ;;  %v3241_v53 = vpack.c.bf16 %v868_v52, %v865_v45  ;;  %v3425_v54 = vpop.f32.mrf.mxu0 }
 0x182   : > { %3202 = vst [vmem:[#allocation2] sm:$0xff] %v3201_v51   ;;  %v3457_v55 = vpop.f32.mrf.mxu1 }
 0x183   : > { %3242 = vst [vmem:[#allocation3] sm:$0xff] %v3241_v53   ;;  %v640_v56 = vpop.f32.mrf.mxu0 }
 0x184   : > { %v881_v57 = vpop.f32.mrf.mxu1 }
 0x185   : > { %v3426_v58 = vpop.f32.mrf.mxu0 }
 0x186   : > { %v3216_v59 = vpack.c.bf16 %v3426_v58, %v3425_v54  ;;  %v3458_v60 = vpop.f32.mrf.mxu1 }
 0x187   : > { %v3256_v61 = vpack.c.bf16 %v3458_v60, %v3457_v55  ;;  %v643_v62 = vpop.f32.mrf.mxu0 }
 0x188   : > { %3320 = vst [vmem:[#allocation2 + $0x18] sm:$0xff] %v3216_v59   ;;  %v3211_v63 = vpack.c.bf16 %v643_v62, %v640_v56  ;;  %v884_v0 = vpop.f32.mrf.mxu1 }
 0x189   : > { %3327 = vst [vmem:[#allocation3 + $0x18] sm:$0xff] %v3256_v61   ;;  %v3251_v1 = vpack.c.bf16 %v884_v0, %v881_v57  ;;  %v3429_v2 = vpop.f32.mrf.mxu0 }
 0x18a   : > { %3319 = vst [vmem:[#allocation2 + $0x10] sm:$0xff] %v3211_v63   ;;  %v3461_v3 = vpop.f32.mrf.mxu1 }
 0x18b   : > { %3326 = vst [vmem:[#allocation3 + $0x10] sm:$0xff] %v3251_v1   ;;  %v656_v4 = vpop.f32.mrf.mxu0 }
 0x18c   : > { %v897_v5 = vpop.f32.mrf.mxu1 }
 0x18d   : > { %v3430_v6 = vpop.f32.mrf.mxu0 }
 0x18e   : > { %v3226_v7 = vpack.c.bf16 %v3430_v6, %v3429_v2  ;;  %v3462_v8 = vpop.f32.mrf.mxu1 }
 0x18f   : > { %v3266_v9 = vpack.c.bf16 %v3462_v8, %v3461_v3  ;;  %v659_v10 = vpop.f32.mrf.mxu0 }
 0x190   : > { %3322 = vst [vmem:[#allocation2 + $0x28] sm:$0xff] %v3226_v7   ;;  %v3221_v11 = vpack.c.bf16 %v659_v10, %v656_v4  ;;  %v900_v12 = vpop.f32.mrf.mxu1 }
 0x191   : > { %3329 = vst [vmem:[#allocation3 + $0x28] sm:$0xff] %v3266_v9   ;;  %v3261_v13 = vpack.c.bf16 %v900_v12, %v897_v5  ;;  %v3433_v14 = vpop.f32.mrf.mxu0 }
 0x192   : > { %3321 = vst [vmem:[#allocation2 + $0x20] sm:$0xff] %v3221_v11   ;;  %v3465_v15 = vpop.f32.mrf.mxu1 }
 0x193   : > { %3328 = vst [vmem:[#allocation3 + $0x20] sm:$0xff] %v3261_v13   ;;  %v672_v16 = vpop.f32.mrf.mxu0 }
 0x194   : > { %v913_v17 = vpop.f32.mrf.mxu1 }
 0x195   : > { %v3434_v18 = vpop.f32.mrf.mxu0 }
 0x196   : > { %v3236_v19 = vpack.c.bf16 %v3434_v18, %v3433_v14  ;;  %v3466_v20 = vpop.f32.mrf.mxu1 }
 0x197   : > { %v3276_v21 = vpack.c.bf16 %v3466_v20, %v3465_v15  ;;  %v675_v22 = vpop.f32.mrf.mxu0 }
 0x198   : > { %3324 = vst [vmem:[#allocation2 + $0x38] sm:$0xff] %v3236_v19   ;;  %v3231_v23 = vpack.c.bf16 %v675_v22, %v672_v16  ;;  %v916_v24 = vpop.f32.mrf.mxu1 }
 0x199   : > { %3331 = vst [vmem:[#allocation3 + $0x38] sm:$0xff] %v3276_v21   ;;  %v3271_v25 = vpack.c.bf16 %v916_v24, %v913_v17 }
 0x19a   : > { %3323 = vst [vmem:[#allocation2 + $0x30] sm:$0xff] %v3231_v23  }
 0x19b   : > { %3330 = vst [vmem:[#allocation3 + $0x30] sm:$0xff] %v3271_v25  }
 0x19c PF: > { %v3704_v26 = vld [vmem:[%s4422_s19 + $0x38] sm:$0xff]   ;;  %v3705_v27 = vld [vmem:[%s4422_s19 + $0x30] sm:$0xff]   ;;  %v4149_v28 = vmov 0   ;;  %v3706_v29 = vld [vmem:[%s4422_s19 + $0x28] sm:$0xff]   ;;  %s5548_s20 = sld [smem:[#allocation24_spill]]  ;;  %v1475_v12 = vlaneseq }
 0x19d   : > { %3703 = vset.pattern.permute.xlu1 %v4149_v28  ;;  %3702 = vset.pattern.permute.xlu0 %v4149_v28  ;;  %v3707_v30 = vld [vmem:[%s4422_s19 + $0x20] sm:$0xff]   ;;  %v3708_v33 = vld [vmem:[%s4422_s19 + $0x18] sm:$0xff]   ;;  %v3709_v34 = vld [vmem:[%s4422_s19 + $0x10] sm:$0xff]  }
 0x19e   : > { %3467 = vmatprep.subr.bf16.mxu0 %v3704_v26  ;;  %3499 = vmatprep.subr.bf16.mxu1 %v3704_v26  ;;  %v3712_v31 = vld [vmem:[#allocation2] sm:$0xff]   ;;  %v3710_v35 = vld [vmem:[%s4422_s19 + $0x8] sm:$0xff]   ;;  %v1610_v37 = vld [vmem:[%s4415_s6 + $0x10] sm:$0xff]  ;;  %v1476_v23 = vand.u32 127, %v1475_v12 }
 0x19f   : > { %3468 = vmatpush3.bf16.msra.mxu0 %v3704_v26  ;;  %3500 = vmatpush3.bf16.msra.mxu1 %v3704_v26  ;;  %v3713_v32 = vld [vmem:[#allocation3] sm:$0xff]   ;;  %v1611_v39 = vld [vmem:[%s4415_s6 + $0x18] sm:$0xff]  ;;  %v1609_v40 = vld [vmem:[%s4415_s6 + $0x8] sm:$0xff] }
 0x1a0   : > { %3469 = vmatprep.subr.bf16.mxu0 %v3705_v27  ;;  %3501 = vmatprep.subr.bf16.mxu1 %v3705_v27  ;;  %v3711_v36 = vld [vmem:[%s4422_s19] sm:$0xff]   ;;  %v3714_v41 = vld [vmem:[#allocation2 + $0x8] sm:$0xff]   ;;  %v3716_v45 = vld [vmem:[#allocation2 + $0x10] sm:$0xff]  }
 0x1a1   : > { %3483 = vmatprep.mubr.bf16.mxu0 %v3712_v31  ;;  %3515 = vmatprep.mubr.bf16.mxu1 %v3713_v32  ;;  %v1608_v38 = vld [vmem:[%s4415_s6] sm:$0xff]  ;;  %v3715_v42 = vld [vmem:[#allocation3 + $0x8] sm:$0xff]   ;;  %v3717_v46 = vld [vmem:[#allocation3 + $0x10] sm:$0xff]  }
 0x1a2   : > { %1631 = vperm.xlu1 %3703, %v1610_v37   ;;  %1625 = vperm.xlu0 %3702, %v1608_v38   ;;  %v1613_v43 = vld [vmem:[%s4415_s6 + $0x28] sm:$0xff]  ;;  %v1612_v44 = vld [vmem:[%s4415_s6 + $0x20] sm:$0xff]  ;;  %v1615_v47 = vld [vmem:[%s4415_s6 + $0x38] sm:$0xff]  ;;  %s3108_s10 = sshll.u32 %s5548_s20, 7  ;;  %p3125_p12 = scmp.ne.s32.totalorder %s5548_s20, 3 }
 0x1a3   : > { %3470 = vmatpush3.bf16.msra.mxu0 %v3705_v27  ;;  %3502 = vmatpush3.bf16.msra.mxu1 %v3705_v27  ;;  %v1614_v48 = vld [vmem:[%s4415_s6 + $0x30] sm:$0xff]  ;;  %v3718_v49 = vld [vmem:[#allocation2 + $0x18] sm:$0xff]   ;;  %v1617_v51 = vld [vmem:[%s4415_s6 + $0x48] sm:$0xff]  ;;  %v1478_v31 = vstv %s3108_s10 }
 0x1a4   : > { %3471 = vmatprep.subr.bf16.mxu0 %v3706_v29  ;;  %3503 = vmatprep.subr.bf16.mxu1 %v3706_v29  ;;  %v3719_v50 = vld [vmem:[#allocation3 + $0x18] sm:$0xff]   ;;  %v1616_v52 = vld [vmem:[%s4415_s6 + $0x40] sm:$0xff]  ;;  %v1618_v56 = vld [vmem:[%s4415_s6 + $0x50] sm:$0xff] }
 0x1a5   : > { %v3720_v53 = vld [vmem:[#allocation2 + $0x20] sm:$0xff]   ;;  %v1619_v55 = vld [vmem:[%s4415_s6 + $0x58] sm:$0xff]  ;;  %v3722_v57 = vld [vmem:[#allocation2 + $0x28] sm:$0xff]  }
 0x1a6   : > { %1634 = vperm.xlu1 %3703, %v1611_v39   ;;  %1628 = vperm.xlu0 %3702, %v1609_v40   ;;  %v3721_v54 = vld [vmem:[#allocation3 + $0x20] sm:$0xff]   ;;  %v3723_v58 = vld [vmem:[#allocation3 + $0x28] sm:$0xff]   ;;  %v3724_v61 = vld [vmem:[#allocation2 + $0x30] sm:$0xff]  }
 0x1a7   : > { %3472 = vmatpush3.bf16.msra.mxu0 %v3706_v29  ;;  %3504 = vmatpush3.bf16.msra.mxu1 %v3706_v29  ;;  %v1621_v59 = vld [vmem:[%s4415_s6 + $0x68] sm:$0xff]  ;;  %v1620_v60 = vld [vmem:[%s4415_s6 + $0x60] sm:$0xff]  ;;  %v3725_v62 = vld [vmem:[#allocation3 + $0x30] sm:$0xff]  }
 0x1a8   : > { %3473 = vmatprep.subr.bf16.mxu0 %v3707_v30  ;;  %3505 = vmatprep.subr.bf16.mxu1 %v3707_v30  ;;  %v1623_v63 = vld [vmem:[%s4415_s6 + $0x78] sm:$0xff]  ;;  %v1622_v0 = vld [vmem:[%s4415_s6 + $0x70] sm:$0xff] }
 0x1a9   : > { %v3726_v1 = vld [vmem:[#allocation2 + $0x38] sm:$0xff]  }
 0x1aa   : > { %1640 = vperm.xlu1 %3703, %v1613_v43   ;;  %1637 = vperm.xlu0 %3702, %v1612_v44   ;;  %v3727_v2 = vld [vmem:[#allocation3 + $0x38] sm:$0xff]  }
 0x1ab   : > { %3474 = vmatpush3.bf16.msra.mxu0 %v3707_v30  ;;  %3506 = vmatpush3.bf16.msra.mxu1 %v3707_v30 }
 0x1ac   : > { %3475 = vmatprep.subr.bf16.mxu0 %v3708_v33  ;;  %3507 = vmatprep.subr.bf16.mxu1 %v3708_v33 }
 0x1ae   : > { %1646 = vperm.xlu1 %3703, %v1615_v47   ;;  %1643 = vperm.xlu0 %3702, %v1614_v48  }
 0x1af   : > { %3476 = vmatpush3.bf16.msra.mxu0 %v3708_v33  ;;  %3508 = vmatpush3.bf16.msra.mxu1 %v3708_v33 }
 0x1b0   : > { %3477 = vmatprep.subr.bf16.mxu0 %v3709_v34  ;;  %3509 = vmatprep.subr.bf16.mxu1 %v3709_v34 }
 0x1b2   : > { %1652 = vperm.xlu1 %3703, %v1617_v51   ;;  %1649 = vperm.xlu0 %3702, %v1616_v52  }
 0x1b3   : > { %3478 = vmatpush3.bf16.msra.mxu0 %v3709_v34  ;;  %3510 = vmatpush3.bf16.msra.mxu1 %v3709_v34 }
 0x1b4   : > { %3479 = vmatprep.subr.bf16.mxu0 %v3710_v35  ;;  %3511 = vmatprep.subr.bf16.mxu1 %v3710_v35 }
 0x1b6   : > { %1658 = vperm.xlu1 %3703, %v1619_v55   ;;  %1655 = vperm.xlu0 %3702, %v1618_v56  }
 0x1b7   : > { %3480 = vmatpush3.bf16.msra.mxu0 %v3710_v35  ;;  %3512 = vmatpush3.bf16.msra.mxu1 %v3710_v35 }
 0x1b8   : > { %3481 = vmatprep.subr.bf16.mxu0 %v3711_v36  ;;  %3513 = vmatprep.subr.bf16.mxu1 %v3711_v36 }
 0x1ba   : > { %1664 = vperm.xlu1 %3703, %v1621_v59   ;;  %1661 = vperm.xlu0 %3702, %v1620_v60  }
 0x1bb   : > { %3482 = vmatpush3.bf16.msra.mxu0 %v3711_v36  ;;  %3514 = vmatpush3.bf16.msra.mxu1 %v3711_v36 }
 0x1be   : > { %3484 = vmatmul.mubr.bf16.vlgmr.msra.gmra.mxu0 %v3714_v41  ;;  %3516 = vmatmul.mubr.bf16.vlgmr.msra.gmra.mxu1 %v3715_v42  ;;  %v4599_v41 = vadd.s32 %v1478_v31, %v1476_v23 }
 0x1bf   : > { %3487 = vmatprep.mubr.bf16.mxu0 %v3716_v45  ;;  %3519 = vmatprep.mubr.bf16.mxu1 %v3717_v46 }
 0x1c0   : > { %1670 = vperm.xlu1 %3703, %v1623_v63   ;;  %1667 = vperm.xlu0 %3702, %v1622_v0  }
 0x1c6   : > { %3488 = vmatmul.mubr.bf16.gmra.mxu0 %v3718_v49  ;;  %3520 = vmatmul.mubr.bf16.gmra.mxu1 %v3719_v50 }
 0x1c7   : > { %3491 = vmatprep.mubr.bf16.mxu0 %v3720_v53  ;;  %3523 = vmatprep.mubr.bf16.mxu1 %v3721_v54 }
 0x1ce   : > { %3492 = vmatmul.mubr.bf16.gmra.mxu0 %v3722_v57  ;;  %3524 = vmatmul.mubr.bf16.gmra.mxu1 %v3723_v58 }
 0x1cf   : > { %3495 = vmatprep.mubr.bf16.mxu0 %v3724_v61  ;;  %3527 = vmatprep.mubr.bf16.mxu1 %v3725_v62 }
 0x1d6   : > { %3496 = vmatmul.mubr.bf16.gmra.mxu0 %v3726_v1  ;;  %3528 = vmatmul.mubr.bf16.gmra.mxu1 %v3727_v2 }
 0x21d   : > { %v4531_v3 = vpop.permute.xlu1 %1631  ;;  %v4568_v24 = vpop.permute.xlu0 %1625 }
 0x21e   : > { %vm1674_vm1 = vcmp.eq.s32.totalorder %v4599_v41, %v4531_v3  ;;  %vm1672_vm2 = vcmp.eq.s32.totalorder %v4599_v41, %v4568_v24 }
 0x221   : > { %v4551_v13 = vpop.permute.xlu1 %1634  ;;  %v1629_v46 = vpop.permute.xlu0 %1628 }
 0x222   : > { %vm1675_vm3 = vcmp.eq.s32.totalorder %v4599_v41, %v4551_v13  ;;  %vm1673_vm4 = vcmp.eq.s32.totalorder %v4599_v41, %v1629_v46 }
 0x225   : > { %v4582_v32 = vpop.permute.xlu1 %1640  ;;  %v4646_v1 = vpop.permute.xlu0 %1637 }
 0x226   : > { %vm1676_vm7 = vcmp.eq.s32.totalorder %v4599_v41, %v4646_v1  ;;  %vm1677_vm10 = vcmp.eq.s32.totalorder %v4599_v41, %v4582_v32 }
 0x229   : > { %v4617_v52 = vpop.permute.xlu1 %1646 }
 0x22a   : > { %vm1679_vm8 = vcmp.eq.s32.totalorder %v4599_v41, %v4617_v52 }
 0x27e   : > { %v4533_v4 = vpop.f32.mrf.mxu0  ;;  %v4535_v5 = vpop.f32.mrf.mxu1 }
 0x27f   : > { %v1482_v6 = vsub.f32 %v4535_v5, %v4533_v4  ;;  %2157 = vmax.xlane.f32.xlu0 %v4535_v5  ;;  %1805 = vmax.xlane.f32.xlu1 %v4533_v4 }
 0x280   : > { %v4541_v7 = vpop.f32.mrf.mxu0  ;;  %v4543_v8 = vpop.f32.mrf.mxu1 }
 0x281   : > { %v1480_v9 = vsub.f32 %v4543_v8, %v4541_v7  ;;  %v1498_v14 = vmul.f32 0.2, %v1482_v6 }
 0x282   : > { %v4547_v10 = vpop.f32.mrf.mxu0  ;;  %v4549_v11 = vpop.f32.mrf.mxu1 }
 0x283   : > { %v1483_v15 = vsub.f32 %v4549_v11, %v4547_v10  ;;  %2153 = vmax.xlane.f32.xlu0 %v4543_v8  ;;  %1801 = vmax.xlane.f32.xlu1 %v4541_v7  ;;  %v1496_v20 = vmul.f32 0.2, %v1480_v9  ;;  %v1514_v27 = vadd.f32 %v4533_v4, %v1498_v14  ;;  %v4660_v14 = vpop.permute.xlu1 %1652 }
 0x284   : > { %v4557_v16 = vpop.f32.mrf.mxu0  ;;  %v4559_v17 = vpop.f32.mrf.mxu1  ;;  %vm1681_vm15 = vcmp.eq.s32.totalorder %v4599_v41, %v4660_v14 }
 0x285   : > { %v1499_v18 = vmul.f32 0.2, %v1483_v15  ;;  %v1481_v19 = vsub.f32 %v4559_v17, %v4557_v16  ;;  %v1512_v38 = vadd.f32 %v1496_v20, %v4541_v7  ;;  %v1706_v63 = vsel %vm1674_vm1, %v1514_v27, 0.0 }
 0x286   : > { %v4564_v21 = vpop.f32.mrf.mxu0  ;;  %v4566_v22 = vpop.f32.mrf.mxu1  ;;  %vm1768_vm1 = vcmask 7168  }
 0x287   : > { %v1497_v25 = vmul.f32 0.2, %v1481_v19  ;;  %v1486_v26 = vsub.f32 %v4566_v22, %v4564_v21  ;;  %2155 = vmax.xlane.f32.xlu1 %v4559_v17  ;;  %1807 = vmax.xlane.f32.xlu0 %v4547_v10  ;;  %v4576_v28 = vadd.f32 %v4547_v10, %v1499_v18  ;;  %v1704_v24 = vsel %vm1672_vm2, %v1512_v38, 0.0 }
 0x288   : > { %v4578_v29 = vpop.f32.mrf.mxu0  ;;  %v4580_v30 = vpop.f32.mrf.mxu1 }
 0x289   : > { %v1502_v33 = vmul.f32 0.2, %v1486_v26  ;;  %v1484_v34 = vsub.f32 %v4580_v30, %v4578_v29  ;;  %v3286_v35 = vpack.c.bf16 %v4576_v28, %v1514_v27  ;;  %v4593_v39 = vadd.f32 %v1497_v25, %v4557_v16 }
 0x28a   : > { %v4587_v36 = vpop.f32.mrf.mxu0  ;;  %v4589_v37 = vpop.f32.mrf.mxu1 }
 0x28b   : > { %v1487_v40 = vsub.f32 %v4589_v37, %v4587_v36  ;;  %2159 = vmax.xlane.f32.xlu0 %v4549_v11  ;;  %1813 = vmax.xlane.f32.xlu1 %v4564_v21  ;;  %3332 = vst [vmem:[%s4424_s24 + $0x8] sm:$0xff] %v3286_v35   ;;  %v1500_v42 = vmul.f32 0.2, %v1484_v34  ;;  %v3281_v45 = vpack.c.bf16 %v4593_v39, %v1512_v38  ;;  %v1644_v35 = vpop.permute.xlu0 %1643 }
 0x28c   : > { %v4602_v43 = vpop.f32.mrf.mxu0  ;;  %v4604_v44 = vpop.f32.mrf.mxu1  ;;  %v4610_v49 = vadd.f32 %v4564_v21, %v1502_v33  ;;  %vm1678_vm5 = vcmp.eq.s32.totalorder %v4599_v41, %v1644_v35 }
 0x28d   : > { %v1503_v47 = vmul.f32 0.2, %v1487_v40  ;;  %v1485_v48 = vsub.f32 %v4604_v44, %v4602_v43  ;;  %3282 = vst [vmem:[%s4424_s24] sm:$0xff] %v3281_v45   ;;  %v4633_v58 = vadd.f32 %v1500_v42, %v4578_v29 }
 0x28e   : > { %v4612_v50 = vpop.f32.mrf.mxu0  ;;  %v4614_v51 = vpop.f32.mrf.mxu1 }
 0x28f   : > { %v1501_v53 = vmul.f32 0.2, %v1485_v48  ;;  %v1490_v54 = vsub.f32 %v4614_v51, %v4612_v50  ;;  %1803 = vmax.xlane.f32.xlu0 %v4557_v16  ;;  %2165 = vmax.xlane.f32.xlu1 %v4566_v22  ;;  %v4626_v55 = vadd.f32 %v4587_v36, %v1503_v47  ;;  %v1707_v47 = vsel %vm1675_vm3, %v4576_v28, 0.0 }
 0x290   : > { %v4628_v56 = vpop.f32.mrf.mxu0  ;;  %v4630_v57 = vpop.f32.mrf.mxu1  ;;  %v1705_v48 = vsel %vm1673_vm4, %v4593_v39, 0.0 }
 0x291   : > { %v3296_v59 = vpack.c.bf16 %v4626_v55, %v4610_v49  ;;  %v1488_v60 = vsub.f32 %v4630_v57, %v4628_v56  ;;  %v4644_v0 = vadd.f32 %v1501_v53, %v4602_v43  ;;  %v1506_v2 = vmul.f32 0.2, %v1490_v54 }
 0x292   : > { %v4639_v61 = vpop.f32.mrf.mxu0  ;;  %v4641_v62 = vpop.f32.mrf.mxu1 }
 0x293   : > { %v1491_v3 = vsub.f32 %v4641_v62, %v4639_v61  ;;  %1724 = vadd.xlane.f32.xlu0 %v1706_v63  ;;  %1809 = vmax.xlane.f32.xlu1 %v4578_v29  ;;  %3334 = vst [vmem:[%s4424_s24 + $0x18] sm:$0xff] %v3296_v59   ;;  %v3291_v12 = vpack.c.bf16 %v4644_v0, %v4633_v58  ;;  %v1504_v19 = vmul.f32 0.2, %v1488_v60  ;;  %v1659_v59 = vpop.permute.xlu1 %1658  ;;  %v1709_v52 = vsel %vm1677_vm10, %v4644_v0, 0.0 }
 0x294   : > { %v4654_v6 = vpop.f32.mrf.mxu0  ;;  %v4656_v9 = vpop.f32.mrf.mxu1  ;;  %v1522_v27 = vadd.f32 %v4612_v50, %v1506_v2  ;;  %vm1683_vm12 = vcmp.eq.s32.totalorder %v4599_v41, %v1659_v59 }
 0x295   : > { %v1507_v15 = vmul.f32 0.2, %v1491_v3  ;;  %v1489_v18 = vsub.f32 %v4656_v9, %v4654_v6  ;;  %3333 = vst [vmem:[%s4424_s24 + $0x10] sm:$0xff] %v3291_v12   ;;  %v1520_v53 = vadd.f32 %v1504_v19, %v4628_v56  ;;  %v1710_v12 = vsel %vm1678_vm5, %v4610_v49, 0.0 }
 0x296   : > { %v4664_v20 = vpop.f32.mrf.mxu0  ;;  %v4666_v23 = vpop.f32.mrf.mxu1 }
 0x297   : > { %v1505_v25 = vmul.f32 0.2, %v1489_v18  ;;  %v1494_v26 = vsub.f32 %v4666_v23, %v4664_v20  ;;  %1720 = vadd.xlane.f32.xlu0 %v1704_v24  ;;  %2161 = vmax.xlane.f32.xlu1 %v4580_v30  ;;  %v4677_v31 = vadd.f32 %v4639_v61, %v1507_v15  ;;  %v1665_v24 = vpop.permute.xlu1 %1664 }
 0x298   : > { %v4679_v33 = vpop.f32.mrf.mxu0  ;;  %v4681_v34 = vpop.f32.mrf.mxu1  ;;  %vm1685_vm6 = vcmp.eq.s32.totalorder %v4599_v41, %v1665_v24 }
 0x299   : > { %v1492_v38 = vsub.f32 %v4681_v34, %v4679_v33  ;;  %v3306_v40 = vpack.c.bf16 %v4677_v31, %v1522_v27  ;;  %v4699_v54 = vadd.f32 %v1505_v25, %v4654_v6  ;;  %v1510_v60 = vmul.f32 0.2, %v1494_v26 }
 0x29a   : > { %v4686_v42 = vpop.f32.mrf.mxu0  ;;  %v4688_v45 = vpop.f32.mrf.mxu1  ;;  %v1715_v32 = vsel %vm1683_vm12, %v4677_v31, 0.0 }
 0x29b   : > { %v1495_v63 = vsub.f32 %v4688_v45, %v4686_v42  ;;  %1726 = vadd.xlane.f32.xlu0 %v1707_v47  ;;  %1722 = vadd.xlane.f32.xlu1 %v1705_v48  ;;  %3336 = vst [vmem:[%s4424_s24 + $0x28] sm:$0xff] %v3306_v40   ;;  %v3301_v39 = vpack.c.bf16 %v4699_v54, %v1520_v53  ;;  %v1508_v46 = vmul.f32 0.2, %v1492_v38  ;;  %v1708_v40 = vsel %vm1676_vm7, %v4633_v58, 0.0  ;;  %v1650_v47 = vpop.permute.xlu0 %1649  ;;  %v1671_v59 = vpop.permute.xlu1 %1670 }
 0x29c   : > { %v4705_v13 = vpop.f32.mrf.mxu0  ;;  %v4707_v28 = vpop.f32.mrf.mxu1  ;;  %v1526_v18 = vadd.f32 %v4664_v20, %v1510_v60  ;;  %v1711_v48 = vsel %vm1679_vm8, %v4626_v55, 0.0  ;;  %vm1680_vm11 = vcmp.eq.s32.totalorder %v4599_v41, %v1650_v47  ;;  %vm1687_vm0 = vcmp.eq.s32.totalorder %v4599_v41, %v1671_v59  ;;  %v4829_v59 = vld [vmem:[#allocation4 + $0x8] sm:$0xff] }
 0x29d   : > { %v1511_v2 = vmul.f32 0.2, %v1495_v63  ;;  %v1493_v3 = vsub.f32 %v4707_v28, %v4705_v13  ;;  %3335 = vst [vmem:[%s4424_s24 + $0x20] sm:$0xff] %v3301_v39   ;;  %v1524_v25 = vadd.f32 %v1508_v46, %v4679_v33  ;;  %v1712_v55 = vsel %vm1680_vm11, %v1520_v53, 0.0  ;;  %v4760_v39 = vld [vmem:[#allocation6 + $0x10] sm:$0xff] }
 0x29e   : > { %v1713_v53 = vsel %vm1681_vm15, %v4699_v54, 0.0  ;;  %v4762_v46 = vld [vmem:[#allocation4 + $0x10] sm:$0xff] }
 0x29f   : > { %v1509_v15 = vmul.f32 0.2, %v1493_v3  ;;  %1732 = vadd.xlane.f32.xlu1 %v1710_v12  ;;  %1815 = vmax.xlane.f32.xlu0 %v4587_v36  ;;  %v1527_v19 = vadd.f32 %v4686_v42, %v1511_v2  ;;  %v1656_v60 = vpop.permute.xlu0 %1655  ;;  %v4770_v12 = vld [vmem:[#allocation6] sm:$0xff] }
 0x2a0   : > { %vm1682_vm9 = vcmp.eq.s32.totalorder %v4599_v41, %v1656_v60 }
 0x2a1   : > { %v3316_v26 = vpack.c.bf16 %v1527_v19, %v1526_v18  ;;  %v1525_v35 = vadd.f32 %v1509_v15, %v4705_v13  ;;  %v1714_v58 = vsel %vm1682_vm9, %v1522_v27, 0.0  ;;  %v1719_v63 = vsel %vm1687_vm0, %v1527_v19, 0.0  ;;  %v4772_v15 = vld [vmem:[#allocation4] sm:$0xff] }
 0x2a3   : > { %2167 = vmax.xlane.f32.xlu0 %v4589_v37  ;;  %1821 = vmax.xlane.f32.xlu1 %v4612_v50  ;;  %3338 = vst [vmem:[%s4424_s24 + $0x38] sm:$0xff] %v3316_v26   ;;  %v1717_v49 = vsel %vm1685_vm6, %v1525_v35, 0.0  ;;  %v3311_v38 = vpack.c.bf16 %v1525_v35, %v1524_v25  ;;  %v1662_v1 = vpop.permute.xlu0 %1661  ;;  %v4790_v35 = vld [vmem:[#allocation6 + $0x8] sm:$0xff] }
 0x2a4   : > { %vm1684_vm14 = vcmp.eq.s32.totalorder %v4599_v41, %v1662_v1  ;;  %v1688_v1 = vld [vmem:[#allocation8] sm:$0xff] }
 0x2a5   : > { %3337 = vst [vmem:[%s4424_s24 + $0x30] sm:$0xff] %v3311_v38   ;;  %v1716_v31 = vsel %vm1684_vm14, %v1524_v25, 0.0  ;;  %v4863_v38 = vld [vmem:[#allocation6 + $0x20] sm:$0xff] }
 0x2a6   : > { %5554 = vst [vmem:[#allocation38_spill] sm:$0xff] %v4863_v38 }
 0x2a7   : > { %1811 = vmax.xlane.f32.xlu0 %v4602_v43  ;;  %2173 = vmax.xlane.f32.xlu1 %v4614_v51  ;;  %v1668_v0 = vpop.permute.xlu0 %1667 }
 0x2a8   : > { %vm1686_vm13 = vcmp.eq.s32.totalorder %v4599_v41, %v1668_v0 }
 0x2a9   : > { %v1718_v27 = vsel %vm1686_vm13, %v1526_v18, 0.0 }
 0x2ab   : > { %2163 = vmax.xlane.f32.xlu0 %v4604_v44  ;;  %1728 = vadd.xlane.f32.xlu1 %v1708_v40 }
 0x2af   : > { %1734 = vadd.xlane.f32.xlu0 %v1711_v48  ;;  %1817 = vmax.xlane.f32.xlu1 %v4628_v56 }
 0x2b3   : > { %2169 = vmax.xlane.f32.xlu1 %v4630_v57  ;;  %1823 = vmax.xlane.f32.xlu0 %v4639_v61 }
 0x2b7   : > { %1740 = vadd.xlane.f32.xlu1 %v1714_v58  ;;  %2175 = vmax.xlane.f32.xlu0 %v4641_v62 }
 0x2bb   : > { %1730 = vadd.xlane.f32.xlu0 %v1709_v52  ;;  %1829 = vmax.xlane.f32.xlu1 %v4664_v20  ;;  %v4810_v52 = vld [vmem:[#allocation6 + $0x18] sm:$0xff] }
 0x2bf   : > { %1819 = vmax.xlane.f32.xlu0 %v4654_v6  ;;  %2181 = vmax.xlane.f32.xlu1 %v4666_v23 }
 0x2c3   : > { %2171 = vmax.xlane.f32.xlu0 %v4656_v9  ;;  %1736 = vadd.xlane.f32.xlu1 %v1712_v55  ;;  %v4812_v55 = vld [vmem:[#allocation4 + $0x30] sm:$0xff] }
 0x2c4   : > { %5549 = vst [vmem:[#allocation33_spill] sm:$0xff] %v4812_v55 }
 0x2c7   : > { %1742 = vadd.xlane.f32.xlu0 %v1715_v32  ;;  %1825 = vmax.xlane.f32.xlu1 %v4679_v33 }
 0x2cb   : > { %2177 = vmax.xlane.f32.xlu1 %v4681_v34  ;;  %1831 = vmax.xlane.f32.xlu0 %v4686_v42 }
 0x2cf   : > { %1748 = vadd.xlane.f32.xlu1 %v1718_v27  ;;  %2183 = vmax.xlane.f32.xlu0 %v4688_v45 }
 0x2d3   : > { %1744 = vadd.xlane.f32.xlu1 %v1716_v31  ;;  %1738 = vadd.xlane.f32.xlu0 %v1713_v53 }
 0x2d7   : > { %1827 = vmax.xlane.f32.xlu0 %v4705_v13 }
 0x2db   : > { %2179 = vmax.xlane.f32.xlu0 %v4707_v28 }
 0x2df   : > { %1750 = vadd.xlane.f32.xlu0 %v1719_v63  ;;  %v4831_v63 = vld [vmem:[#allocation6 + $0x30] sm:$0xff] }
 0x2e0   : > { %5551 = vst [vmem:[#allocation35_spill] sm:$0xff] %v4831_v63 }
 0x2e3   : > { %1746 = vadd.xlane.f32.xlu0 %v1717_v49  ;;  %v4792_v49 = vld [vmem:[#allocation4 + $0x18] sm:$0xff] }
 0x308   : > { %v2158_v14 = vpop.xlane.xlu0 %2157  ;;  %v1806_v2 = vpop.xlane.xlu1 %1805 }
 0x309   : > { %v4765_v54 = vmax.f32 %v4760_v39, %v2158_v14  ;;  %v4768_v3 = vmax.f32 %v4762_v46, %v1806_v2 }
 0x30b   : > { %2475 = vst.msk [vmem:[#allocation6 + $0x10] sm:$0xff] %vm1768_vm1, %v4765_v54  ;;  %2123 = vst.msk [vmem:[#allocation4 + $0x10] sm:$0xff] %vm1768_vm1, %v4768_v3  ;;  %1941 = vperm.xlu1 %3703, %v4768_v3   ;;  %2293 = vperm.xlu0 %3702, %v4765_v54  }
 0x30c   : > { %v2154_v19 = vpop.xlane.xlu0 %2153  ;;  %v1802_v24 = vpop.xlane.xlu1 %1801 }
 0x30d   : > { %v4785_v25 = vmax.f32 %v4770_v12, %v2154_v19  ;;  %v4788_v26 = vmax.f32 %v4772_v15, %v1802_v24 }
 0x30f   : > { %2473 = vst.msk [vmem:[#allocation6] sm:$0xff] %vm1768_vm1, %v4785_v25  ;;  %2121 = vst.msk [vmem:[#allocation4] sm:$0xff] %vm1768_vm1, %v4788_v26  ;;  %1931 = vperm.xlu1 %3703, %v4788_v26   ;;  %2283 = vperm.xlu0 %3702, %v4785_v25  }
 0x310   : > { %v2156_v47 = vpop.xlane.xlu1 %2155  ;;  %v1808_v48 = vpop.xlane.xlu0 %1807 }
 0x311   : > { %v4805_v60 = vmax.f32 %v4790_v35, %v2156_v47  ;;  %v4808_v58 = vmax.f32 %v4792_v49, %v1808_v48 }
 0x313   : > { %2474 = vst.msk [vmem:[#allocation6 + $0x8] sm:$0xff] %vm1768_vm1, %v4805_v60  ;;  %2124 = vst.msk [vmem:[#allocation4 + $0x18] sm:$0xff] %vm1768_vm1, %v4808_v58  ;;  %1946 = vperm.xlu1 %3703, %v4808_v58  }
 0x314   : > { %v2160_v0 = vpop.xlane.xlu0 %2159  ;;  %v1814_v27 = vpop.xlane.xlu1 %1813 }
 0x315   : > { %v4824_v31 = vmax.f32 %v4810_v52, %v2160_v0  ;;  %v4827_v53 = vmax.f32 %v4812_v55, %v1814_v27  ;;  %v1690_v0 = vld [vmem:[#allocation8 + $0x10] sm:$0xff]  ;;  %v4848_v27 = vld [vmem:[#allocation4 + $0x20] sm:$0xff] }
 0x316   : > { %5553 = vst [vmem:[#allocation37_spill] sm:$0xff] %v4848_v27  ;;  %v4890_v55 = vld [vmem:[#allocation4 + $0x50] sm:$0xff] }
 0x317   : > { %5550 = vst [vmem:[#allocation34_spill] sm:$0xff] %v4827_v53  ;;  %2476 = vst.msk [vmem:[#allocation6 + $0x18] sm:$0xff] %vm1768_vm1, %v4824_v31  ;;  %2298 = vperm.xlu1 %3703, %v4824_v31  }
 0x318   : > { %2127 = vst.msk [vmem:[#allocation4 + $0x30] sm:$0xff] %vm1768_vm1, %v4827_v53  ;;  %v1804_v19 = vpop.xlane.xlu0 %1803  ;;  %v2166_v24 = vpop.xlane.xlu1 %2165  ;;  %5559 = vst [vmem:[#allocation43_spill] sm:$0xff] %v4890_v55 }
 0x319   : > { %v4843_v47 = vmax.f32 %v4829_v59, %v1804_v19  ;;  %v4846_v48 = vmax.f32 %v4831_v63, %v2166_v24 }
 0x31b   : > { %5552 = vst [vmem:[#allocation36_spill] sm:$0xff] %v4846_v48  ;;  %2122 = vst.msk [vmem:[#allocation4 + $0x8] sm:$0xff] %vm1768_vm1, %v4843_v47  ;;  %2288 = vperm.xlu1 %3703, %v4805_v60   ;;  %1936 = vperm.xlu0 %3702, %v4843_v47  }
 0x31c   : > { %2479 = vst.msk [vmem:[#allocation6 + $0x30] sm:$0xff] %vm1768_vm1, %v4846_v48  ;;  %v1725_v19 = vpop.xlane.xlu0 %1724  ;;  %v1810_v24 = vpop.xlane.xlu1 %1809 }
 0x31d   : > { %v1754_v14 = vadd.f32 %v1725_v19, %v1690_v0  ;;  %v4861_v32 = vmax.f32 %v4848_v27, %v1810_v24  ;;  %v1691_v19 = vld [vmem:[#allocation8 + $0x18] sm:$0xff]  ;;  %v1689_v24 = vld [vmem:[#allocation8 + $0x8] sm:$0xff] }
 0x31f   : > { %1771 = vst.msk [vmem:[#allocation8 + $0x10] sm:$0xff] %vm1768_vm1, %v1754_v14  ;;  %2125 = vst.msk [vmem:[#allocation4 + $0x20] sm:$0xff] %vm1768_vm1, %v4861_v32  ;;  %1961 = vperm.xlu0 %3702, %v4827_v53  }
 0x320   : > { %v1721_v40 = vpop.xlane.xlu0 %1720  ;;  %v2162_v41 = vpop.xlane.xlu1 %2161 }
 0x321   : > { %v1752_v18 = vadd.f32 %v1721_v40, %v1688_v1  ;;  %v4872_v0 = vmax.f32 %v4863_v38, %v2162_v41  ;;  %v1694_v40 = vld [vmem:[#allocation8 + $0x30] sm:$0xff]  ;;  %v4880_v1 = vld [vmem:[#allocation4 + $0x38] sm:$0xff] }
 0x322   : > { %5556 = vst [vmem:[#allocation40_spill] sm:$0xff] %v4880_v1 }
 0x323   : > { %5555 = vst [vmem:[#allocation39_spill] sm:$0xff] %v4872_v0  ;;  %1769 = vst.msk [vmem:[#allocation8] sm:$0xff] %vm1768_vm1, %v1752_v18  ;;  %2313 = vperm.xlu0 %3702, %v4846_v48   ;;  %v4888_v48 = vld [vmem:[#allocation6 + $0x38] sm:$0xff] }
 0x324   : > { %2477 = vst.msk [vmem:[#allocation6 + $0x20] sm:$0xff] %vm1768_vm1, %v4872_v0  ;;  %v1727_v2 = vpop.xlane.xlu0 %1726  ;;  %v1723_v27 = vpop.xlane.xlu1 %1722  ;;  %5558 = vst [vmem:[#allocation42_spill] sm:$0xff] %v4888_v48 }
 0x325   : > { %v1755_v63 = vadd.f32 %v1727_v2, %v1691_v19  ;;  %v1753_v53 = vadd.f32 %v1723_v27, %v1689_v24  ;;  %v4905_v24 = vld [vmem:[#allocation4 + $0x28] sm:$0xff] }
 0x326   : > { %5562 = vst [vmem:[#allocation46_spill] sm:$0xff] %v4905_v24  ;;  %v4925_v2 = vld [vmem:[#allocation6 + $0x28] sm:$0xff] }
 0x327   : > { %1772 = vst.msk [vmem:[#allocation8 + $0x18] sm:$0xff] %vm1768_vm1, %v1755_v63  ;;  %1770 = vst.msk [vmem:[#allocation8 + $0x8] sm:$0xff] %vm1768_vm1, %v1753_v53  ;;  %1951 = vperm.xlu0 %3702, %v4861_v32  }
 0x328   : > { %v1733_v41 = vpop.xlane.xlu1 %1732  ;;  %v1816_v18 = vpop.xlane.xlu0 %1815  ;;  %5566 = vst [vmem:[#allocation50_spill] sm:$0xff] %v4925_v2 }
 0x329   : > { %v1758_v14 = vadd.f32 %v1733_v41, %v1694_v40  ;;  %v4886_v38 = vmax.f32 %v4880_v1, %v1816_v18  ;;  %v1695_v41 = vld [vmem:[#allocation8 + $0x38] sm:$0xff] }
 0x32b   : > { %5557 = vst [vmem:[#allocation41_spill] sm:$0xff] %v4886_v38  ;;  %1775 = vst.msk [vmem:[#allocation8 + $0x30] sm:$0xff] %vm1768_vm1, %v1758_v14  ;;  %1966 = vperm.xlu1 %3703, %v4886_v38   ;;  %2303 = vperm.xlu0 %3702, %v4872_v0   ;;  %v4907_v14 = vld [vmem:[#allocation6 + $0x50] sm:$0xff] }
 0x32c   : > { %2128 = vst.msk [vmem:[#allocation4 + $0x38] sm:$0xff] %vm1768_vm1, %v4886_v38  ;;  %v2168_v53 = vpop.xlane.xlu0 %2167  ;;  %v1822_v63 = vpop.xlane.xlu1 %1821  ;;  %5563 = vst [vmem:[#allocation47_spill] sm:$0xff] %v4907_v14 }
 0x32d   : > { %v4900_v27 = vmax.f32 %v4888_v48, %v2168_v53  ;;  %v4903_v19 = vmax.f32 %v4890_v55, %v1822_v63  ;;  %v1692_v48 = vld [vmem:[#allocation8 + $0x20] sm:$0xff] }
 0x32f   : > { %5560 = vst [vmem:[#allocation44_spill] sm:$0xff] %v4900_v27  ;;  %5561 = vst [vmem:[#allocation45_spill] sm:$0xff] %v4903_v19  ;;  %2318 = vperm.xlu1 %3703, %v4900_v27   ;;  %1981 = vperm.xlu0 %3702, %v4903_v19  }
 0x330   : > { %2480 = vst.msk [vmem:[#allocation6 + $0x38] sm:$0xff] %vm1768_vm1, %v4900_v27  ;;  %2131 = vst.msk [vmem:[#allocation4 + $0x50] sm:$0xff] %vm1768_vm1, %v4903_v19  ;;  %v1812_v18 = vpop.xlane.xlu0 %1811  ;;  %v2174_v53 = vpop.xlane.xlu1 %2173 }
 0x331   : > { %v4920_v63 = vmax.f32 %v4905_v24, %v1812_v18  ;;  %v4923_v40 = vmax.f32 %v4907_v14, %v2174_v53  ;;  %v4940_v24 = vld [vmem:[#allocation4 + $0x40] sm:$0xff] }
 0x332   : > { %5568 = vst [vmem:[#allocation52_spill] sm:$0xff] %v4940_v24 }
 0x333   : > { %5564 = vst [vmem:[#allocation48_spill] sm:$0xff] %v4920_v63  ;;  %5565 = vst [vmem:[#allocation49_spill] sm:$0xff] %v4923_v40  ;;  %1956 = vperm.xlu1 %3703, %v4920_v63   ;;  %2333 = vperm.xlu0 %3702, %v4923_v40  }
 0x334   : > { %2126 = vst.msk [vmem:[#allocation4 + $0x28] sm:$0xff] %vm1768_vm1, %v4920_v63  ;;  %2483 = vst.msk [vmem:[#allocation6 + $0x50] sm:$0xff] %vm1768_vm1, %v4923_v40  ;;  %v2164_v18 = vpop.xlane.xlu0 %2163  ;;  %v1729_v53 = vpop.xlane.xlu1 %1728 }
 0x335   : > { %v4938_v55 = vmax.f32 %v4925_v2, %v2164_v18  ;;  %v1756_v27 = vadd.f32 %v1729_v53, %v1692_v48  ;;  %v4951_v48 = vld [vmem:[#allocation6 + $0x40] sm:$0xff]  ;;  %v4953_v53 = vld [vmem:[#allocation4 + $0x58] sm:$0xff] }
 0x336   : > { %5570 = vst [vmem:[#allocation54_spill] sm:$0xff] %v4951_v48  ;;  %5571 = vst [vmem:[#allocation55_spill] sm:$0xff] %v4953_v53  ;;  %v4967_v2 = vld [vmem:[#allocation6 + $0x58] sm:$0xff] }
 0x337   : > { %5567 = vst [vmem:[#allocation51_spill] sm:$0xff] %v4938_v55  ;;  %2478 = vst.msk [vmem:[#allocation6 + $0x28] sm:$0xff] %vm1768_vm1, %v4938_v55  ;;  %2308 = vperm.xlu1 %3703, %v4938_v55  }
 0x338   : > { %1773 = vst.msk [vmem:[#allocation8 + $0x20] sm:$0xff] %vm1768_vm1, %v1756_v27  ;;  %v1735_v19 = vpop.xlane.xlu0 %1734  ;;  %v1818_v40 = vpop.xlane.xlu1 %1817  ;;  %5574 = vst [vmem:[#allocation58_spill] sm:$0xff] %v4967_v2 }
 0x339   : > { %v1759_v14 = vadd.f32 %v1735_v19, %v1695_v41  ;;  %v4949_v18 = vmax.f32 %v4940_v24, %v1818_v40  ;;  %v1698_v41 = vld [vmem:[#allocation8 + $0x50] sm:$0xff] }
 0x33b   : > { %5569 = vst [vmem:[#allocation53_spill] sm:$0xff] %v4949_v18  ;;  %1776 = vst.msk [vmem:[#allocation8 + $0x38] sm:$0xff] %vm1768_vm1, %v1759_v14  ;;  %1971 = vperm.xlu0 %3702, %v4949_v18   ;;  %v1693_v14 = vld [vmem:[#allocation8 + $0x28] sm:$0xff] }
 0x33c   : > { %2129 = vst.msk [vmem:[#allocation4 + $0x40] sm:$0xff] %vm1768_vm1, %v4949_v18  ;;  %v2170_v27 = vpop.xlane.xlu1 %2169  ;;  %v1824_v55 = vpop.xlane.xlu0 %1823 }
 0x33d   : > { %v4962_v19 = vmax.f32 %v4951_v48, %v2170_v27  ;;  %v4965_v40 = vmax.f32 %v4953_v53, %v1824_v55  ;;  %v4982_v48 = vld [vmem:[#allocation4 + $0x70] sm:$0xff] }
 0x33e   : > { %5576 = vst [vmem:[#allocation60_spill] sm:$0xff] %v4982_v48 }
 0x33f   : > { %5572 = vst [vmem:[#allocation56_spill] sm:$0xff] %v4962_v19  ;;  %5573 = vst [vmem:[#allocation57_spill] sm:$0xff] %v4965_v40  ;;  %1986 = vperm.xlu1 %3703, %v4965_v40   ;;  %2323 = vperm.xlu0 %3702, %v4962_v19  }
 0x340   : > { %2481 = vst.msk [vmem:[#allocation6 + $0x40] sm:$0xff] %vm1768_vm1, %v4962_v19  ;;  %2132 = vst.msk [vmem:[#allocation4 + $0x58] sm:$0xff] %vm1768_vm1, %v4965_v40  ;;  %v1741_v55 = vpop.xlane.xlu1 %1740  ;;  %v2176_v27 = vpop.xlane.xlu0 %2175 }
 0x341   : > { %v1762_v18 = vadd.f32 %v1741_v55, %v1698_v41  ;;  %v4980_v24 = vmax.f32 %v4967_v2, %v2176_v27  ;;  %v4993_v55 = vld [vmem:[#allocation4 + $0x48] sm:$0xff]  ;;  %v4995_v27 = vld [vmem:[#allocation6 + $0x70] sm:$0xff] }
 0x342   : > { %5578 = vst [vmem:[#allocation62_spill] sm:$0xff] %v4993_v55  ;;  %5579 = vst [vmem:[#allocation63_spill] sm:$0xff] %v4995_v27 }
 0x343   : > { %5575 = vst [vmem:[#allocation59_spill] sm:$0xff] %v4980_v24  ;;  %1779 = vst.msk [vmem:[#allocation8 + $0x50] sm:$0xff] %vm1768_vm1, %v1762_v18  ;;  %2338 = vperm.xlu1 %3703, %v4980_v24  }
 0x344   : > { %2484 = vst.msk [vmem:[#allocation6 + $0x58] sm:$0xff] %vm1768_vm1, %v4980_v24  ;;  %v1731_v19 = vpop.xlane.xlu0 %1730  ;;  %v1830_v40 = vpop.xlane.xlu1 %1829 }
 0x345   : > { %v1757_v53 = vadd.f32 %v1731_v19, %v1693_v14  ;;  %v4991_v41 = vmax.f32 %v4982_v48, %v1830_v40  ;;  %v5008_v40 = vld [vmem:[#allocation6 + $0x48] sm:$0xff]  ;;  %v1696_v14 = vld [vmem:[#allocation8 + $0x40] sm:$0xff] }
 0x346   : > { %5582 = vst [vmem:[#allocation66_spill] sm:$0xff] %v5008_v40 }
 0x347   : > { %5577 = vst [vmem:[#allocation61_spill] sm:$0xff] %v4991_v41  ;;  %1774 = vst.msk [vmem:[#allocation8 + $0x28] sm:$0xff] %vm1768_vm1, %v1757_v53  ;;  %v1699_v53 = vld [vmem:[#allocation8 + $0x58] sm:$0xff] }
 0x348   : > { %2135 = vst.msk [vmem:[#allocation4 + $0x70] sm:$0xff] %vm1768_vm1, %v4991_v41  ;;  %v1820_v0 = vpop.xlane.xlu0 %1819  ;;  %v2182_v24 = vpop.xlane.xlu1 %2181 }
 0x349   : > { %v5003_v2 = vmax.f32 %v4993_v55, %v1820_v0  ;;  %v5006_v19 = vmax.f32 %v4995_v27, %v2182_v24  ;;  %v5023_v55 = vld [vmem:[#allocation4 + $0x60] sm:$0xff] }
 0x34a   : > { %5584 = vst [vmem:[#allocation68_spill] sm:$0xff] %v5023_v55 }
 0x34b   : > { %5580 = vst [vmem:[#allocation64_spill] sm:$0xff] %v5003_v2  ;;  %5581 = vst [vmem:[#allocation65_spill] sm:$0xff] %v5006_v19  ;;  %1976 = vperm.xlu1 %3703, %v5003_v2   ;;  %2353 = vperm.xlu0 %3702, %v5006_v19  }
 0x34c   : > { %2130 = vst.msk [vmem:[#allocation4 + $0x48] sm:$0xff] %vm1768_vm1, %v5003_v2  ;;  %2487 = vst.msk [vmem:[#allocation6 + $0x70] sm:$0xff] %vm1768_vm1, %v5006_v19  ;;  %v2172_v0 = vpop.xlane.xlu0 %2171  ;;  %v1737_v24 = vpop.xlane.xlu1 %1736 }
 0x34d   : > { %v5021_v48 = vmax.f32 %v5008_v40, %v2172_v0  ;;  %v1760_v63 = vadd.f32 %v1737_v24, %v1696_v14  ;;  %v5034_v14 = vld [vmem:[#allocation6 + $0x60] sm:$0xff]  ;;  %v5036_v24 = vld [vmem:[#allocation4 + $0x78] sm:$0xff] }
 0x34e   : > { %5586 = vst [vmem:[#allocation70_spill] sm:$0xff] %v5034_v14  ;;  %5587 = vst [vmem:[#allocation71_spill] sm:$0xff] %v5036_v24  ;;  %v5050_v40 = vld [vmem:[#allocation6 + $0x78] sm:$0xff] }
 0x34f   : > { %5583 = vst [vmem:[#allocation67_spill] sm:$0xff] %v5021_v48  ;;  %2482 = vst.msk [vmem:[#allocation6 + $0x48] sm:$0xff] %vm1768_vm1, %v5021_v48  ;;  %2328 = vperm.xlu1 %3703, %v5021_v48  }
 0x350   : > { %1777 = vst.msk [vmem:[#allocation8 + $0x40] sm:$0xff] %vm1768_vm1, %v1760_v63  ;;  %v1743_v18 = vpop.xlane.xlu0 %1742  ;;  %v1826_v19 = vpop.xlane.xlu1 %1825  ;;  %5590 = vst [vmem:[#allocation74_spill] sm:$0xff] %v5050_v40 }
 0x351   : > { %v1763_v27 = vadd.f32 %v1743_v18, %v1699_v53  ;;  %v5032_v0 = vmax.f32 %v5023_v55, %v1826_v19  ;;  %v1702_v53 = vld [vmem:[#allocation8 + $0x70] sm:$0xff] }
 0x353   : > { %5585 = vst [vmem:[#allocation69_spill] sm:$0xff] %v5032_v0  ;;  %1780 = vst.msk [vmem:[#allocation8 + $0x58] sm:$0xff] %vm1768_vm1, %v1763_v27  ;;  %2001 = vperm.xlu1 %3703, %v4991_v41   ;;  %v1700_v27 = vld [vmem:[#allocation8 + $0x60] sm:$0xff] }
 0x354   : > { %2133 = vst.msk [vmem:[#allocation4 + $0x60] sm:$0xff] %vm1768_vm1, %v5032_v0  ;;  %v2178_v63 = vpop.xlane.xlu1 %2177  ;;  %v1832_v48 = vpop.xlane.xlu0 %1831 }
 0x355   : > { %v5045_v18 = vmax.f32 %v5034_v14, %v2178_v63  ;;  %v5048_v19 = vmax.f32 %v5036_v24, %v1832_v48  ;;  %v1697_v14 = vld [vmem:[#allocation8 + $0x48] sm:$0xff] }
 0x357   : > { %5588 = vst [vmem:[#allocation72_spill] sm:$0xff] %v5045_v18  ;;  %5589 = vst [vmem:[#allocation73_spill] sm:$0xff] %v5048_v19  ;;  %1991 = vperm.xlu1 %3703, %v5032_v0   ;;  %2343 = vperm.xlu0 %3702, %v5045_v18  }
 0x358   : > { %2485 = vst.msk [vmem:[#allocation6 + $0x60] sm:$0xff] %vm1768_vm1, %v5045_v18  ;;  %2136 = vst.msk [vmem:[#allocation4 + $0x78] sm:$0xff] %vm1768_vm1, %v5048_v19  ;;  %v1749_v48 = vpop.xlane.xlu1 %1748  ;;  %v2184_v63 = vpop.xlane.xlu0 %2183 }
 0x359   : > { %v1766_v55 = vadd.f32 %v1749_v48, %v1702_v53  ;;  %v5063_v41 = vmax.f32 %v5050_v40, %v2184_v63  ;;  %v5071_v53 = vld [vmem:[#allocation4 + $0x68] sm:$0xff] }
 0x35a   : > { %5591 = vst [vmem:[#allocation75_spill] sm:$0xff] %v5071_v53  ;;  %v5078_v63 = vld [vmem:[#allocation6 + $0x68] sm:$0xff] }
 0x35b   : > { %1783 = vst.msk [vmem:[#allocation8 + $0x70] sm:$0xff] %vm1768_vm1, %v1766_v55  ;;  %2488 = vst.msk [vmem:[#allocation6 + $0x78] sm:$0xff] %vm1768_vm1, %v5063_v41  ;;  %2006 = vperm.xlu1 %3703, %v5048_v19  }
 0x35c   : > { %v1745_v24 = vpop.xlane.xlu1 %1744  ;;  %v1739_v18 = vpop.xlane.xlu0 %1738  ;;  %5593 = vst [vmem:[#allocation77_spill] sm:$0xff] %v5078_v63 }
 0x35d   : > { %v1764_v0 = vadd.f32 %v1745_v24, %v1700_v27  ;;  %v1761_v2 = vadd.f32 %v1739_v18, %v1697_v14 }
 0x35f   : > { %1781 = vst.msk [vmem:[#allocation8 + $0x60] sm:$0xff] %vm1768_vm1, %v1764_v0  ;;  %1778 = vst.msk [vmem:[#allocation8 + $0x48] sm:$0xff] %vm1768_vm1, %v1761_v2  ;;  %v1703_v0 = vld [vmem:[#allocation8 + $0x78] sm:$0xff] }
 0x360   : > { %v1828_v48 = vpop.xlane.xlu0 %1827 }
 0x361   : > { %v5076_v55 = vmax.f32 %v5071_v53, %v1828_v48  ;;  %v1701_v48 = vld [vmem:[#allocation8 + $0x68] sm:$0xff] }
 0x363   : > { %5592 = vst [vmem:[#allocation76_spill] sm:$0xff] %v5076_v55  ;;  %2134 = vst.msk [vmem:[#allocation4 + $0x68] sm:$0xff] %vm1768_vm1, %v5076_v55  ;;  %1996 = vperm.xlu0 %3702, %v5076_v55  }
 0x364   : > { %v2180_v14 = vpop.xlane.xlu0 %2179 }
 0x365   : > { %v5086_v24 = vmax.f32 %v5078_v63, %v2180_v14 }
 0x367   : > { %5594 = vst [vmem:[#allocation78_spill] sm:$0xff] %v5086_v24  ;;  %2486 = vst.msk [vmem:[#allocation6 + $0x68] sm:$0xff] %vm1768_vm1, %v5086_v24  ;;  %2348 = vperm.xlu1 %3703, %v5086_v24  }
 0x368   : > { %v1751_v18 = vpop.xlane.xlu0 %1750 }
 0x369   : > { %v1767_v27 = vadd.f32 %v1751_v18, %v1703_v0 }
 0x36b   : > { %1784 = vst.msk [vmem:[#allocation8 + $0x78] sm:$0xff] %vm1768_vm1, %v1767_v27  ;;  %2358 = vperm.xlu1 %3703, %v5063_v41  }
 0x36c   : > { %v1747_v38 = vpop.xlane.xlu0 %1746 }
 0x36d   : > { %v1765_v40 = vadd.f32 %v1747_v38, %v1701_v48 }
 0x36f   : > { %1782 = vst.msk [vmem:[#allocation8 + $0x68] sm:$0xff] %vm1768_vm1, %v1765_v40 }
 0x386   : > { %v1942_v14 = vpop.permute.xlu1 %1941  ;;  %v2294_v55 = vpop.permute.xlu0 %2293 }
 0x387   : > { %v2011_v2 = vsub.f32 %v4533_v4, %v1942_v14  ;;  %v2363_v63 = vsub.f32 %v4535_v5, %v2294_v55 }
 0x389   : > { %v2029_v53 = vmul.f32 1.442695, %v2011_v2  ;;  %v2381_v19 = vmul.f32 1.442695, %v2363_v63 }
 0x38a   : > { %v1932_v24 = vpop.permute.xlu1 %1931  ;;  %v2284_v1 = vpop.permute.xlu0 %2283 }
 0x38b   : > { %3728 = vpow2.f32 %v2029_v53  ;;  %v2009_v0 = vsub.f32 %v4541_v7, %v1932_v24  ;;  %v2361_v18 = vsub.f32 %v4543_v8, %v2284_v1 }
 0x38c   : > { %3730 = vpow2.f32 %v2381_v19 }
 0x38d   : > { %v2025_v27 = vmul.f32 1.442695, %v2009_v0  ;;  %v2377_v38 = vmul.f32 1.442695, %v2361_v18 }
 0x38e   : > { %v1947_v48 = vpop.permute.xlu1 %1946 }
 0x38f   : > { %3732 = vpow2.f32 %v2025_v27  ;;  %v2012_v40 = vsub.f32 %v4547_v10, %v1947_v48 }
 0x390   : > { %3734 = vpow2.f32 %v2377_v38 }
 0x391   : > { %v2031_v4 = vmul.f32 1.442695, %v2012_v40 }
 0x392   : > { %v2299_v14 = vpop.permute.xlu1 %2298 }
 0x393   : > { %3736 = vpow2.f32 %v2031_v4  ;;  %v2364_v5 = vsub.f32 %v4549_v11, %v2299_v14 }
 0x395   : > { %v2383_v55 = vmul.f32 1.442695, %v2364_v5 }
 0x396   : > { %v2289_v63 = vpop.permute.xlu1 %2288  ;;  %v1937_v53 = vpop.permute.xlu0 %1936 }
 0x397   : > { %3738 = vpow2.f32 %v2383_v55  ;;  %v2362_v7 = vsub.f32 %v4559_v17, %v2289_v63  ;;  %v2010_v8 = vsub.f32 %v4557_v16, %v1937_v53 }
 0x398   : > { %v3729_v1 = vpop.eup %3728 }
 0x399   : > { %v3731_v19 = vpop.eup %3730  ;;  %v2379_v24 = vmul.f32 1.442695, %v2362_v7  ;;  %v2027_v2 = vmul.f32 1.442695, %v2010_v8  ;;  %2061 = vadd.xlane.f32.xlu0 %v3729_v1 }
 0x39a   : > { %2413 = vadd.xlane.f32.xlu1 %v3731_v19  ;;  %v1962_v10 = vpop.permute.xlu0 %1961 }
 0x39b   : > { %3740 = vpow2.f32 %v2379_v24  ;;  %v2015_v0 = vsub.f32 %v4564_v21, %v1962_v10 }
 0x39c   : > { %v3733_v18 = vpop.eup %3732  ;;  %3742 = vpow2.f32 %v2027_v2 }
 0x39d   : > { %v3735_v11 = vpop.eup %3734  ;;  %v2037_v27 = vmul.f32 1.442695, %v2015_v0  ;;  %2057 = vadd.xlane.f32.xlu0 %v3733_v18 }
 0x39e   : > { %2409 = vadd.xlane.f32.xlu1 %v3735_v11  ;;  %v2314_v38 = vpop.permute.xlu0 %2313 }
 0x39f   : > { %3744 = vpow2.f32 %v2037_v27  ;;  %v2367_v16 = vsub.f32 %v4566_v22, %v2314_v38 }
 0x3a0   : > { %v3737_v17 = vpop.eup %3736 }
 0x3a1   : > { %v2389_v48 = vmul.f32 1.442695, %v2367_v16  ;;  %2063 = vadd.xlane.f32.xlu0 %v3737_v17 }
 0x3a2   : > { %v1952_v40 = vpop.permute.xlu0 %1951 }
 0x3a3   : > { %3746 = vpow2.f32 %v2389_v48  ;;  %v2013_v4 = vsub.f32 %v4578_v29, %v1952_v40 }
 0x3a4   : > { %v3739_v14 = vpop.eup %3738 }
 0x3a5   : > { %v2033_v5 = vmul.f32 1.442695, %v2013_v4  ;;  %2415 = vadd.xlane.f32.xlu0 %v3739_v14 }
 0x3a6   : > { %v1967_v21 = vpop.permute.xlu1 %1966  ;;  %v2304_v55 = vpop.permute.xlu0 %2303 }
 0x3a7   : > { %3748 = vpow2.f32 %v2033_v5  ;;  %v2016_v63 = vsub.f32 %v4587_v36, %v1967_v21  ;;  %v2365_v53 = vsub.f32 %v4580_v30, %v2304_v55 }
 0x3a8   : > { %v3741_v7 = vpop.eup %3740 }
 0x3a9   : > { %v3743_v8 = vpop.eup %3742  ;;  %v2039_v22 = vmul.f32 1.442695, %v2016_v63  ;;  %v2385_v1 = vmul.f32 1.442695, %v2365_v53  ;;  %2411 = vadd.xlane.f32.xlu0 %v3741_v7 }
 0x3aa   : > { %2059 = vadd.xlane.f32.xlu1 %v3743_v8  ;;  %v2319_v19 = vpop.permute.xlu1 %2318  ;;  %v1982_v24 = vpop.permute.xlu0 %1981 }
 0x3ab   : > { %3750 = vpow2.f32 %v2039_v22  ;;  %v2368_v29 = vsub.f32 %v4589_v37, %v2319_v19  ;;  %v2019_v2 = vsub.f32 %v4612_v50, %v1982_v24 }
 0x3ac   : > { %v3745_v10 = vpop.eup %3744  ;;  %3752 = vpow2.f32 %v2385_v1 }
 0x3ad   : > { %v2391_v0 = vmul.f32 1.442695, %v2368_v29  ;;  %v2045_v18 = vmul.f32 1.442695, %v2019_v2 }
 0x3ae   : > { %2069 = vadd.xlane.f32.xlu1 %v3745_v10  ;;  %v1957_v36 = vpop.permute.xlu1 %1956  ;;  %v2334_v30 = vpop.permute.xlu0 %2333 }
 0x3af   : > { %3754 = vpow2.f32 %v2391_v0  ;;  %v2014_v11 = vsub.f32 %v4602_v43, %v1957_v36  ;;  %v2371_v27 = vsub.f32 %v4614_v51, %v2334_v30 }
 0x3b0   : > { %v3747_v38 = vpop.eup %3746  ;;  %3756 = vpow2.f32 %v2045_v18 }
 0x3b1   : > { %v2035_v16 = vmul.f32 1.442695, %v2014_v11  ;;  %v2397_v17 = vmul.f32 1.442695, %v2371_v27 }
 0x3b2   : > { %2421 = vadd.xlane.f32.xlu1 %v3747_v38  ;;  %v2309_v37 = vpop.permute.xlu1 %2308 }
 0x3b3   : > { %3758 = vpow2.f32 %v2035_v16  ;;  %v2366_v50 = vsub.f32 %v4604_v44, %v2309_v37 }
 0x3b4   : > { %v3749_v48 = vpop.eup %3748  ;;  %3760 = vpow2.f32 %v2397_v17 }
 0x3b5   : > { %v2387_v40 = vmul.f32 1.442695, %v2366_v50 }
 0x3b6   : > { %2065 = vadd.xlane.f32.xlu1 %v3749_v48  ;;  %v1972_v4 = vpop.permute.xlu0 %1971 }
 0x3b7   : > { %3762 = vpow2.f32 %v2387_v40  ;;  %v2017_v14 = vsub.f32 %v4628_v56, %v1972_v4 }
 0x3b8   : > { %v3751_v43 = vpop.eup %3750 }
 0x3b9   : > { %v3753_v5 = vpop.eup %3752  ;;  %v2041_v51 = vmul.f32 1.442695, %v2017_v14  ;;  %2071 = vadd.xlane.f32.xlu0 %v3751_v43 }
 0x3ba   : > { %2417 = vadd.xlane.f32.xlu1 %v3753_v5  ;;  %v1987_v21 = vpop.permute.xlu1 %1986  ;;  %v2324_v55 = vpop.permute.xlu0 %2323 }
 0x3bb   : > { %3764 = vpow2.f32 %v2041_v51  ;;  %v2020_v63 = vsub.f32 %v4639_v61, %v1987_v21  ;;  %v2369_v44 = vsub.f32 %v4630_v57, %v2324_v55 }
 0x3bc   : > { %v3755_v53 = vpop.eup %3754 }
 0x3bd   : > { %v3757_v7 = vpop.eup %3756  ;;  %v2047_v8 = vmul.f32 1.442695, %v2020_v63  ;;  %v2393_v22 = vmul.f32 1.442695, %v2369_v44  ;;  %2423 = vadd.xlane.f32.xlu0 %v3755_v53 }
 0x3be   : > { %2077 = vadd.xlane.f32.xlu1 %v3757_v7  ;;  %v2339_v1 = vpop.permute.xlu1 %2338 }
 0x3bf   : > { %3766 = vpow2.f32 %v2047_v8  ;;  %v2372_v56 = vsub.f32 %v4641_v62, %v2339_v1 }
 0x3c0   : > { %v3759_v19 = vpop.eup %3758  ;;  %3768 = vpow2.f32 %v2393_v22 }
 0x3c1   : > { %v3761_v24 = vpop.eup %3760  ;;  %v2399_v29 = vmul.f32 1.442695, %v2372_v56  ;;  %2067 = vadd.xlane.f32.xlu0 %v3759_v19 }
 0x3c2   : > { %2429 = vadd.xlane.f32.xlu1 %v3761_v24 }
 0x3c3   : > { %3770 = vpow2.f32 %v2399_v29 }
 0x3c4   : > { %v3763_v61 = vpop.eup %3762 }
 0x3c5   : > { %2419 = vadd.xlane.f32.xlu0 %v3763_v61  ;;  %v5595_v61 = vsub.f32 %v4762_v46, %v4768_v3  ;;  %v5601_v3 = vsub.f32 %v4790_v35, %v4805_v60  ;;  %v1849_v60 = vld [vmem:[#allocation5] sm:$0xff] }
 0x3c6   : > { %v1977_v57 = vpop.permute.xlu1 %1976  ;;  %v2354_v27 = vpop.permute.xlu0 %2353 }
 0x3c7   : > { %v2018_v2 = vsub.f32 %v4654_v6, %v1977_v57  ;;  %v2375_v43 = vsub.f32 %v4666_v23, %v2354_v27  ;;  %v1885_v57 = vmul.f32 1.442695, %v5595_v61 }
 0x3c8   : > { %v3765_v10 = vpop.eup %3764 }
 0x3c9   : > { %v2043_v0 = vmul.f32 1.442695, %v2018_v2  ;;  %2073 = vadd.xlane.f32.xlu1 %v3765_v10  ;;  %v2405_v21 = vmul.f32 1.442695, %v2375_v43  ;;  %v5597_v10 = vsub.f32 %v4772_v15, %v4788_v26  ;;  %v2235_v15 = vmul.f32 1.442695, %v5601_v3 }
 0x3ca   : > { %v2329_v18 = vpop.permute.xlu1 %2328  ;;  %v5621_v3 = vld [vmem:[#allocation45_spill] sm:$0xff] }
 0x3cb   : > { %3772 = vpow2.f32 %v2043_v0  ;;  %v2370_v36 = vsub.f32 %v4656_v9, %v2329_v18  ;;  %v1881_v0 = vmul.f32 1.442695, %v5597_v10  ;;  %v5598_v18 = vsub.f32 %v4770_v12, %v4785_v25 }
 0x3cc   : > { %v3767_v62 = vpop.eup %3766  ;;  %v5602_v12 = vsub.f32 %v4829_v59, %v4843_v47 }
 0x3cd   : > { %v3769_v30 = vpop.eup %3768  ;;  %v2395_v11 = vmul.f32 1.442695, %v2370_v36  ;;  %2079 = vadd.xlane.f32.xlu0 %v3767_v62  ;;  %v2233_v36 = vmul.f32 1.442695, %v5598_v18  ;;  %v5599_v62 = vsub.f32 %v4792_v49, %v4808_v58  ;;  %v2203_v49 = vld [vmem:[#allocation7 + $0x10] sm:$0xff]  ;;  %v5617_v18 = vld [vmem:[#allocation42_spill] sm:$0xff] }
 0x3ce   : > { %2425 = vadd.xlane.f32.xlu1 %v3769_v30  ;;  %v2002_v38 = vpop.permute.xlu1 %2001  ;;  %v1883_v25 = vmul.f32 1.442695, %v5602_v12  ;;  %v1851_v30 = vld [vmem:[#allocation5 + $0x10] sm:$0xff] }
 0x3cf   : > { %3774 = vpow2.f32 %v2395_v11  ;;  %v2023_v16 = vsub.f32 %v4664_v20, %v2002_v38  ;;  %v1887_v46 = vmul.f32 1.442695, %v5599_v62  ;;  %v5603_v38 = vld [vmem:[#allocation33_spill] sm:$0xff] }
 0x3d0   : > { %v3771_v17 = vpop.eup %3770 }
 0x3d1   : > { %v2053_v37 = vmul.f32 1.442695, %v2023_v16  ;;  %2431 = vadd.xlane.f32.xlu0 %v3771_v17  ;;  %v5604_v16 = vld [vmem:[#allocation34_spill] sm:$0xff] }
 0x3d2   : > { %v1992_v6 = vpop.permute.xlu1 %1991  ;;  %v2344_v50 = vpop.permute.xlu0 %2343 }
 0x3d3   : > { %3776 = vpow2.f32 %v2053_v37  ;;  %v2021_v48 = vsub.f32 %v4679_v33, %v1992_v6  ;;  %v2373_v9 = vsub.f32 %v4681_v34, %v2344_v50 }
 0x3d5   : > { %v2049_v40 = vmul.f32 1.442695, %v2021_v48  ;;  %v2401_v4 = vmul.f32 1.442695, %v2373_v9  ;;  %v2201_v48 = vld [vmem:[#allocation7] sm:$0xff] }
 0x3d6   : > { %v2007_v14 = vpop.permute.xlu1 %2006 }
 0x3d7   : > { %3778 = vpow2.f32 %v2049_v40  ;;  %v2024_v5 = vsub.f32 %v4686_v42, %v2007_v14  ;;  %v5606_v40 = vld [vmem:[#allocation35_spill] sm:$0xff] }
 0x3d8   : > { %v3773_v51 = vpop.eup %3772  ;;  %3780 = vpow2.f32 %v2401_v4  ;;  %v5607_v4 = vld [vmem:[#allocation36_spill] sm:$0xff] }
 0x3d9   : > { %v2055_v20 = vmul.f32 1.442695, %v2024_v5  ;;  %2075 = vadd.xlane.f32.xlu0 %v3773_v51  ;;  %v5608_v14 = vsub.f32 %v5606_v40, %v5607_v4  ;;  %v5630_v40 = vld [vmem:[#allocation51_spill] sm:$0xff] }
 0x3db   : > { %3782 = vpow2.f32 %v2055_v20  ;;  %v2245_v43 = vmul.f32 1.442695, %v5608_v14  ;;  %v1852_v20 = vld [vmem:[#allocation5 + $0x18] sm:$0xff] }
 0x3dc   : > { %v3775_v55 = vpop.eup %3774  ;;  %3784 = vpow2.f32 %v2405_v21 }
 0x3dd   : > { %2427 = vadd.xlane.f32.xlu0 %v3775_v55 }
 0x3de   : > { %v1997_v63 = vpop.permute.xlu0 %1996 }
 0x3df   : > { %v2022_v33 = vsub.f32 %v4705_v13, %v1997_v63 }
 0x3e0   : > { %v3777_v34 = vpop.eup %3776 }
 0x3e1   : > { %v2051_v44 = vmul.f32 1.442695, %v2022_v33  ;;  %2085 = vadd.xlane.f32.xlu1 %v3777_v34 }
 0x3e2   : > { %v2349_v53 = vpop.permute.xlu1 %2348 }
 0x3e3   : > { %3786 = vpow2.f32 %v2051_v44  ;;  %v2374_v23 = vsub.f32 %v4707_v28, %v2349_v53  ;;  %v5609_v44 = vld [vmem:[#allocation37_spill] sm:$0xff] }
 0x3e4   : > { %v3779_v42 = vpop.eup %3778  ;;  %v5610_v53 = vsub.f32 %v5609_v44, %v4861_v32 }
 0x3e5   : > { %v2403_v7 = vmul.f32 1.442695, %v2374_v23  ;;  %2081 = vadd.xlane.f32.xlu1 %v3779_v42  ;;  %v3781_v22 = vpop.eup %3780 }
 0x3e6   : > { %v2359_v8 = vpop.permute.xlu1 %2358  ;;  %v1889_v23 = vmul.f32 1.442695, %v5610_v53 }
 0x3e7   : > { %3788 = vpow2.f32 %v2403_v7  ;;  %v2376_v1 = vsub.f32 %v4688_v45, %v2359_v8  ;;  %v5596_v45 = vsub.f32 %v4760_v39, %v4765_v54  ;;  %v5600_v39 = vsub.f32 %v4810_v52, %v4824_v31  ;;  %v2204_v7 = vld [vmem:[#allocation7 + $0x18] sm:$0xff] }
 0x3e8   : > { %v3783_v56 = vpop.eup %3782  ;;  %v5605_v52 = vsub.f32 %v5603_v38, %v5604_v16  ;;  %v5623_v38 = vld [vmem:[#allocation46_spill] sm:$0xff]  ;;  %v5624_v16 = vld [vmem:[#allocation48_spill] sm:$0xff] }
 0x3e9   : > { %v2407_v19 = vmul.f32 1.442695, %v2376_v1  ;;  %2087 = vadd.xlane.f32.xlu0 %v3783_v56  ;;  %2433 = vadd.xlane.f32.xlu1 %v3781_v22  ;;  %v3785_v13 = vpop.eup %3784  ;;  %v2237_v2 = vmul.f32 1.442695, %v5596_v45  ;;  %v2239_v54 = vmul.f32 1.442695, %v5600_v39 }
 0x3ea   : > { %v1893_v31 = vmul.f32 1.442695, %v5605_v52  ;;  %v5611_v22 = vld [vmem:[#allocation40_spill] sm:$0xff]  ;;  %v5612_v1 = vld [vmem:[#allocation41_spill] sm:$0xff]  ;;  %v2202_v45 = vld [vmem:[#allocation7 + $0x8] sm:$0xff]  ;;  %v5625_v52 = vsub.f32 %v5623_v38, %v5624_v16 }
 0x3eb   : > { %3790 = vpow2.f32 %v2407_v19  ;;  %v5613_v56 = vsub.f32 %v5611_v22, %v5612_v1  ;;  %v5635_v1 = vld [vmem:[#allocation55_spill] sm:$0xff] }
 0x3ec   : > { %3792 = vpow2.f32 %v1885_v57  ;;  %v2211_v38 = vld [vmem:[#allocation7 + $0x50] sm:$0xff] }
 0x3ed   : > { %2437 = vadd.xlane.f32.xlu1 %v3785_v13  ;;  %3794 = vpow2.f32 %v2237_v2  ;;  %v1895_v19 = vmul.f32 1.442695, %v5613_v56  ;;  %v5636_v56 = vld [vmem:[#allocation57_spill] sm:$0xff] }
 0x3ee   : > { %3796 = vpow2.f32 %v1881_v0  ;;  %v1850_v0 = vld [vmem:[#allocation5 + $0x8] sm:$0xff] }
 0x3ef   : > { %3798 = vpow2.f32 %v2233_v36  ;;  %v5618_v36 = vld [vmem:[#allocation44_spill] sm:$0xff] }
 0x3f0   : > { %v3787_v24 = vpop.eup %3786  ;;  %3800 = vpow2.f32 %v1887_v46  ;;  %v5619_v62 = vsub.f32 %v5617_v18, %v5618_v36 }
 0x3f1   : > { %2083 = vadd.xlane.f32.xlu0 %v3787_v24  ;;  %3802 = vpow2.f32 %v2239_v54  ;;  %v5620_v54 = vld [vmem:[#allocation43_spill] sm:$0xff] }
 0x3f2   : > { %3804 = vpow2.f32 %v2235_v15  ;;  %v2247_v46 = vmul.f32 1.442695, %v5619_v62  ;;  %v5622_v15 = vsub.f32 %v5620_v54, %v5621_v3  ;;  %v1859_v62 = vld [vmem:[#allocation5 + $0x50] sm:$0xff] }
 0x3f3   : > { %3806 = vpow2.f32 %v1883_v25  ;;  %v5642_v54 = vld [vmem:[#allocation59_spill] sm:$0xff] }
 0x3f4   : > { %v3789_v29 = vpop.eup %3788  ;;  %3808 = vpow2.f32 %v1893_v31  ;;  %v1891_v31 = vmul.f32 1.442695, %v5625_v52 }
 0x3f5   : > { %2435 = vadd.xlane.f32.xlu0 %v3789_v29  ;;  %3810 = vpow2.f32 %v2245_v43  ;;  %v5614_v29 = vld [vmem:[#allocation38_spill] sm:$0xff] }
 0x3f6   : > { %3812 = vpow2.f32 %v1889_v23  ;;  %v1856_v23 = vld [vmem:[#allocation5 + $0x38] sm:$0xff] }
 0x3f7   : > { %3814 = vpow2.f32 %v1895_v19  ;;  %v5637_v19 = vsub.f32 %v5635_v1, %v5636_v56 }
 0x3f8   : > { %v3791_v28 = vpop.eup %3790 }
 0x3f9   : > { %2439 = vadd.xlane.f32.xlu0 %v3791_v28  ;;  %v3793_v26 = vpop.eup %3792  ;;  %v5615_v28 = vld [vmem:[#allocation39_spill] sm:$0xff] }
 0x3fa   : > { %v3795_v11 = vpop.eup %3794  ;;  %v1915_v58 = vmul.f32 %v3793_v26, %v1851_v30  ;;  %v5616_v61 = vsub.f32 %v5614_v29, %v5615_v28  ;;  %v1901_v26 = vmul.f32 1.442695, %v5622_v15  ;;  %v5638_v28 = vld [vmem:[#allocation54_spill] sm:$0xff] }
 0x3fb   : > { %v3797_v27 = vpop.eup %3796  ;;  %v2267_v17 = vmul.f32 %v3795_v11, %v2203_v49 }
 0x3fc   : > { %v3799_v37 = vpop.eup %3798  ;;  %v1913_v47 = vmul.f32 %v3797_v27, %v1849_v60  ;;  %v2241_v57 = vmul.f32 1.442695, %v5616_v61  ;;  %v5639_v61 = vld [vmem:[#allocation56_spill] sm:$0xff] }
 0x3fd   : > { %v3801_v9 = vpop.eup %3800  ;;  %v2265_v5 = vmul.f32 %v3799_v37, %v2201_v48 }
 0x3fe   : > { %v1916_v33 = vmul.f32 %v3801_v9, %v1852_v20  ;;  %v3803_v34 = vpop.eup %3802  ;;  %3816 = vpow2.f32 %v2241_v57  ;;  %v5629_v9 = vld [vmem:[#allocation50_spill] sm:$0xff]  ;;  %v1853_v20 = vld [vmem:[#allocation5 + $0x20] sm:$0xff]  ;;  %v5640_v57 = vsub.f32 %v5638_v28, %v5639_v61 }
 0x3ff   : > { %v2268_v13 = vmul.f32 %v3803_v34, %v2204_v7  ;;  %v3805_v24 = vpop.eup %3804  ;;  %3818 = vpow2.f32 %v2247_v46  ;;  %v5631_v4 = vsub.f32 %v5629_v9, %v5630_v40 }
 0x400   : > { %v3807_v2 = vpop.eup %3806  ;;  %v2266_v39 = vmul.f32 %v3805_v24, %v2202_v45  ;;  %3820 = vpow2.f32 %v1901_v26 }
 0x401   : > { %v1914_v12 = vmul.f32 %v3807_v2, %v1850_v0  ;;  %v3809_v30 = vpop.eup %3808  ;;  %3822 = vpow2.f32 %v1891_v31  ;;  %v2243_v14 = vmul.f32 1.442695, %v5631_v4 }
 0x422   : > { %v2062_v35 = vpop.xlane.xlu0 %2061 }
 0x423   : > { %v2414_v6 = vpop.xlane.xlu1 %2413  ;;  %v2091_v50 = vadd.f32 %v2062_v35, %v1915_v58  ;;  %v1855_v58 = vld [vmem:[#allocation5 + $0x30] sm:$0xff]  ;;  %v5627_v35 = vld [vmem:[#allocation49_spill] sm:$0xff] }
 0x424   : > { %v2443_v59 = vadd.f32 %v2414_v6, %v2267_v17  ;;  %v5626_v17 = vld [vmem:[#allocation47_spill] sm:$0xff]  ;;  %v1919_v6 = vmul.f32 %v3809_v30, %v1855_v58 }
 0x425   : > { %2107 = vst.msk [vmem:[#allocation5 + $0x10] sm:$0xff] %vm1768_vm1, %v2091_v50  ;;  %v5628_v60 = vsub.f32 %v5626_v17, %v5627_v35  ;;  %v3811_v50 = vpop.eup %3810 }
 0x426   : > { %2459 = vst.msk [vmem:[#allocation7 + $0x10] sm:$0xff] %vm1768_vm1, %v2443_v59  ;;  %v2058_v51 = vpop.xlane.xlu0 %2057  ;;  %v2207_v59 = vld [vmem:[#allocation7 + $0x30] sm:$0xff] }
 0x427   : > { %v2410_v21 = vpop.xlane.xlu1 %2409  ;;  %v2089_v55 = vadd.f32 %v2058_v51, %v1913_v47  ;;  %v2253_v37 = vmul.f32 1.442695, %v5628_v60  ;;  %v2271_v43 = vmul.f32 %v3811_v50, %v2207_v59  ;;  %v2206_v60 = vld [vmem:[#allocation7 + $0x28] sm:$0xff]  ;;  %v5645_v59 = vld [vmem:[#allocation64_spill] sm:$0xff] }
 0x428   : > { %v2441_v63 = vadd.f32 %v2410_v21, %v2265_v5  ;;  %v3813_v5 = vpop.eup %3812 }
 0x429   : > { %2105 = vst.msk [vmem:[#allocation5] sm:$0xff] %vm1768_vm1, %v2089_v55  ;;  %3824 = vpow2.f32 %v2253_v37  ;;  %v5632_v55 = vld [vmem:[#allocation52_spill] sm:$0xff]  ;;  %v3815_v44 = vpop.eup %3814  ;;  %v1917_v53 = vmul.f32 %v3813_v5, %v1853_v20  ;;  %v5648_v20 = vld [vmem:[#allocation67_spill] sm:$0xff] }
 0x42a   : > { %2457 = vst.msk [vmem:[#allocation7] sm:$0xff] %vm1768_vm1, %v2441_v63  ;;  %v2064_v42 = vpop.xlane.xlu0 %2063  ;;  %3826 = vpow2.f32 %v2243_v14  ;;  %v5633_v63 = vld [vmem:[#allocation53_spill] sm:$0xff]  ;;  %v1920_v24 = vmul.f32 %v3815_v44, %v1856_v23  ;;  %v1860_v44 = vld [vmem:[#allocation5 + $0x58] sm:$0xff] }
 0x42b   : > { %v2092_v8 = vadd.f32 %v2064_v42, %v1916_v33  ;;  %v5634_v33 = vsub.f32 %v5632_v55, %v5633_v63  ;;  %v3817_v42 = vpop.eup %3816 }
 0x42c   : > { %v3819_v29 = vpop.eup %3818 }
 0x42d   : > { %2108 = vst.msk [vmem:[#allocation5 + $0x18] sm:$0xff] %vm1768_vm1, %v2092_v8  ;;  %v1897_v34 = vmul.f32 1.442695, %v5634_v33  ;;  %v2205_v8 = vld [vmem:[#allocation7 + $0x20] sm:$0xff]  ;;  %v3821_v0 = vpop.eup %3820 }
 0x42e   : > { %v2416_v32 = vpop.xlane.xlu0 %2415  ;;  %v2269_v45 = vmul.f32 %v3817_v42, %v2205_v8  ;;  %v2209_v42 = vld [vmem:[#allocation7 + $0x40] sm:$0xff] }
 0x42f   : > { %v2444_v10 = vadd.f32 %v2416_v32, %v2268_v13  ;;  %3828 = vpow2.f32 %v1897_v34  ;;  %v1903_v13 = vmul.f32 1.442695, %v5637_v19  ;;  %v2249_v32 = vmul.f32 1.442695, %v5640_v57  ;;  %v5651_v8 = vld [vmem:[#allocation61_spill] sm:$0xff] }
 0x431   : > { %2460 = vst.msk [vmem:[#allocation7 + $0x18] sm:$0xff] %vm1768_vm1, %v2444_v10  ;;  %v2208_v10 = vld [vmem:[#allocation7 + $0x38] sm:$0xff]  ;;  %3830 = vpow2.f32 %v1903_v13 }
 0x432   : > { %v2412_v25 = vpop.xlane.xlu0 %2411  ;;  %v2272_v26 = vmul.f32 %v3819_v29, %v2208_v10  ;;  %3832 = vpow2.f32 %v2249_v32  ;;  %v2212_v29 = vld [vmem:[#allocation7 + $0x58] sm:$0xff] }
 0x433   : > { %v2060_v11 = vpop.xlane.xlu1 %2059  ;;  %v2442_v49 = vadd.f32 %v2412_v25, %v2266_v39  ;;  %v5641_v39 = vld [vmem:[#allocation58_spill] sm:$0xff]  ;;  %v1923_v25 = vmul.f32 %v3821_v0, %v1859_v62  ;;  %v5653_v32 = vld [vmem:[#allocation68_spill] sm:$0xff] }
 0x434   : > { %v2090_v27 = vadd.f32 %v2060_v11, %v1914_v12  ;;  %v5643_v3 = vsub.f32 %v5641_v39, %v5642_v54  ;;  %v3823_v12 = vpop.eup %3822  ;;  %v1854_v11 = vld [vmem:[#allocation5 + $0x28] sm:$0xff] }
 0x435   : > { %2458 = vst.msk [vmem:[#allocation7 + $0x8] sm:$0xff] %vm1768_vm1, %v2442_v49  ;;  %v1918_v52 = vmul.f32 %v3823_v12, %v1854_v11  ;;  %v5656_v62 = vld [vmem:[#allocation70_spill] sm:$0xff]  ;;  %v5662_v11 = vld [vmem:[#allocation63_spill] sm:$0xff] }
 0x436   : > { %2106 = vst.msk [vmem:[#allocation5 + $0x8] sm:$0xff] %vm1768_vm1, %v2090_v27  ;;  %v2255_v15 = vmul.f32 1.442695, %v5643_v3  ;;  %v3825_v49 = vpop.eup %3824  ;;  %v5659_v3 = vld [vmem:[#allocation71_spill] sm:$0xff] }
 0x437   : > { %v2070_v48 = vpop.xlane.xlu1 %2069  ;;  %v3827_v31 = vpop.eup %3826  ;;  %v2275_v17 = vmul.f32 %v3825_v49, %v2211_v38  ;;  %v5663_v49 = vld [vmem:[#allocation65_spill] sm:$0xff] }
 0x438   : > { %v2095_v47 = vadd.f32 %v2070_v48, %v1919_v6  ;;  %3834 = vpow2.f32 %v2255_v15  ;;  %v5644_v48 = vld [vmem:[#allocation62_spill] sm:$0xff]  ;;  %v2270_v40 = vmul.f32 %v3827_v31, %v2206_v60  ;;  %v5660_v15 = vld [vmem:[#allocation73_spill] sm:$0xff]  ;;  %v5666_v60 = vld [vmem:[#allocation76_spill] sm:$0xff] }
 0x439   : > { %v2210_v31 = vld [vmem:[#allocation7 + $0x48] sm:$0xff] }
 0x43a   : > { %2111 = vst.msk [vmem:[#allocation5 + $0x30] sm:$0xff] %vm1768_vm1, %v2095_v47  ;;  %v5646_v47 = vsub.f32 %v5644_v48, %v5645_v59 }
 0x43b   : > { %v2422_v51 = vpop.xlane.xlu1 %2421 }
 0x43c   : > { %v2447_v21 = vadd.f32 %v2422_v51, %v2271_v43  ;;  %v1899_v9 = vmul.f32 1.442695, %v5646_v47  ;;  %v3829_v4 = vpop.eup %3828  ;;  %v1857_v43 = vld [vmem:[#allocation5 + $0x40] sm:$0xff]  ;;  %v5647_v51 = vld [vmem:[#allocation66_spill] sm:$0xff]  ;;  %v1863_v47 = vld [vmem:[#allocation5 + $0x70] sm:$0xff] }
 0x43d   : > { %v1921_v63 = vmul.f32 %v3829_v4, %v1857_v43  ;;  %v5669_v4 = vld [vmem:[#allocation78_spill] sm:$0xff] }
 0x43e   : > { %2463 = vst.msk [vmem:[#allocation7 + $0x30] sm:$0xff] %vm1768_vm1, %v2447_v21  ;;  %3836 = vpow2.f32 %v1899_v9  ;;  %v5649_v21 = vsub.f32 %v5647_v51, %v5648_v20  ;;  %v3831_v33 = vpop.eup %3830 }
 0x43f   : > { %v2066_v7 = vpop.xlane.xlu1 %2065  ;;  %v1924_v56 = vmul.f32 %v3831_v33, %v1860_v44  ;;  %v5671_v33 = vld [vmem:[#allocation74_spill] sm:$0xff] }
 0x440   : > { %v2093_v22 = vadd.f32 %v2066_v7, %v1917_v53  ;;  %v2251_v55 = vmul.f32 1.442695, %v5649_v21  ;;  %v3833_v53 = vpop.eup %3832  ;;  %v5650_v7 = vld [vmem:[#allocation60_spill] sm:$0xff]  ;;  %v1861_v21 = vld [vmem:[#allocation5 + $0x60] sm:$0xff] }
 0x441   : > { %v2273_v13 = vmul.f32 %v3833_v53, %v2209_v42 }
 0x442   : > { %2109 = vst.msk [vmem:[#allocation5 + $0x20] sm:$0xff] %vm1768_vm1, %v2093_v22  ;;  %v2072_v2 = vpop.xlane.xlu0 %2071  ;;  %v5652_v22 = vsub.f32 %v5650_v7, %v5651_v8  ;;  %3838 = vpow2.f32 %v2251_v55  ;;  %v2213_v7 = vld [vmem:[#allocation7 + $0x60] sm:$0xff]  ;;  %v1864_v8 = vld [vmem:[#allocation5 + $0x78] sm:$0xff] }
 0x443   : > { %v2418_v18 = vpop.xlane.xlu1 %2417  ;;  %v2096_v36 = vadd.f32 %v2072_v2, %v1920_v24 }
 0x444   : > { %v2445_v46 = vadd.f32 %v2418_v18, %v2269_v45  ;;  %v1909_v1 = vmul.f32 1.442695, %v5652_v22  ;;  %v5654_v45 = vld [vmem:[#allocation69_spill] sm:$0xff] }
 0x445   : > { %2112 = vst.msk [vmem:[#allocation5 + $0x38] sm:$0xff] %vm1768_vm1, %v2096_v36  ;;  %v3835_v19 = vpop.eup %3834  ;;  %v5655_v2 = vsub.f32 %v5653_v32, %v5654_v45  ;;  %v1862_v45 = vld [vmem:[#allocation5 + $0x68] sm:$0xff] }
 0x446   : > { %2461 = vst.msk [vmem:[#allocation7 + $0x20] sm:$0xff] %vm1768_vm1, %v2445_v46  ;;  %v2424_v30 = vpop.xlane.xlu0 %2423  ;;  %3840 = vpow2.f32 %v1909_v1  ;;  %v2276_v0 = vmul.f32 %v3835_v19, %v2212_v29  ;;  %v5657_v46 = vld [vmem:[#allocation72_spill] sm:$0xff]  ;;  %v2215_v29 = vld [vmem:[#allocation7 + $0x70] sm:$0xff] }
 0x447   : > { %v2078_v58 = vpop.xlane.xlu1 %2077  ;;  %v2448_v27 = vadd.f32 %v2424_v30, %v2272_v26  ;;  %v1905_v10 = vmul.f32 1.442695, %v5655_v2  ;;  %v5658_v39 = vsub.f32 %v5656_v62, %v5657_v46  ;;  %v5661_v26 = vsub.f32 %v5659_v3, %v5660_v15  ;;  %v1858_v30 = vld [vmem:[#allocation5 + $0x48] sm:$0xff]  ;;  %v2216_v3 = vld [vmem:[#allocation7 + $0x78] sm:$0xff] }
 0x448   : > { %v2099_v16 = vadd.f32 %v2078_v58, %v1923_v25  ;;  %v5664_v58 = vsub.f32 %v5662_v11, %v5663_v49 }
 0x449   : > { %2464 = vst.msk [vmem:[#allocation7 + $0x38] sm:$0xff] %vm1768_vm1, %v2448_v27  ;;  %v2257_v54 = vmul.f32 1.442695, %v5658_v39  ;;  %3842 = vpow2.f32 %v1905_v10  ;;  %v1911_v12 = vmul.f32 1.442695, %v5661_v26 }
 0x44a   : > { %2115 = vst.msk [vmem:[#allocation5 + $0x50] sm:$0xff] %vm1768_vm1, %v2099_v16  ;;  %v2068_v35 = vpop.xlane.xlu0 %2067  ;;  %v2261_v27 = vmul.f32 1.442695, %v5664_v58 }
 0x44b   : > { %v2430_v37 = vpop.xlane.xlu1 %2429  ;;  %v2094_v6 = vadd.f32 %v2068_v35, %v1918_v52  ;;  %v3837_v25 = vpop.eup %3836  ;;  %3844 = vpow2.f32 %v2257_v54  ;;  %v5665_v35 = vld [vmem:[#allocation75_spill] sm:$0xff] }
 0x44c   : > { %v2451_v50 = vadd.f32 %v2430_v37, %v2275_v17  ;;  %3846 = vpow2.f32 %v1911_v12  ;;  %v1922_v38 = vmul.f32 %v3837_v25, %v1858_v30  ;;  %v5667_v37 = vsub.f32 %v5665_v35, %v5666_v60 }
 0x44d   : > { %2110 = vst.msk [vmem:[#allocation5 + $0x28] sm:$0xff] %vm1768_vm1, %v2094_v6  ;;  %3848 = vpow2.f32 %v2261_v27 }
 0x44e   : > { %2467 = vst.msk [vmem:[#allocation7 + $0x50] sm:$0xff] %vm1768_vm1, %v2451_v50  ;;  %v2420_v14 = vpop.xlane.xlu0 %2419  ;;  %v1907_v6 = vmul.f32 1.442695, %v5667_v37 }
 0x44f   : > { %v2446_v5 = vadd.f32 %v2420_v14, %v2270_v40  ;;  %v3839_v16 = vpop.eup %3838  ;;  %v5668_v40 = vld [vmem:[#allocation77_spill] sm:$0xff] }
 0x450   : > { %v2274_v50 = vmul.f32 %v3839_v16, %v2210_v31  ;;  %3850 = vpow2.f32 %v1907_v6  ;;  %v5670_v14 = vsub.f32 %v5668_v40, %v5669_v4 }
 0x451   : > { %2462 = vst.msk [vmem:[#allocation7 + $0x28] sm:$0xff] %vm1768_vm1, %v2446_v5 }
 0x452   : > { %v2074_v34 = vpop.xlane.xlu1 %2073  ;;  %v2259_v43 = vmul.f32 1.442695, %v5670_v14 }
 0x453   : > { %v2097_v23 = vadd.f32 %v2074_v34, %v1921_v63  ;;  %v3841_v48 = vpop.eup %3840  ;;  %v5672_v34 = vsub.f32 %v5671_v33, %v5063_v41 }
 0x454   : > { %v1927_v5 = vmul.f32 %v3841_v48, %v1863_v47  ;;  %3852 = vpow2.f32 %v2259_v43 }
 0x455   : > { %2113 = vst.msk [vmem:[#allocation5 + $0x40] sm:$0xff] %vm1768_vm1, %v2097_v23  ;;  %v2263_v44 = vmul.f32 1.442695, %v5672_v34 }
 0x456   : > { %v2080_v24 = vpop.xlane.xlu0 %2079  ;;  %v3843_v51 = vpop.eup %3842 }
 0x457   : > { %v2426_v28 = vpop.xlane.xlu1 %2425  ;;  %v2100_v61 = vadd.f32 %v2080_v24, %v1924_v56  ;;  %v1925_v53 = vmul.f32 %v3843_v51, %v1861_v21  ;;  %3854 = vpow2.f32 %v2263_v44 }
 0x458   : > { %v2449_v57 = vadd.f32 %v2426_v28, %v2273_v13  ;;  %v3845_v63 = vpop.eup %3844 }
 0x459   : > { %2116 = vst.msk [vmem:[#allocation5 + $0x58] sm:$0xff] %vm1768_vm1, %v2100_v61  ;;  %v3847_v23 = vpop.eup %3846  ;;  %v2277_v1 = vmul.f32 %v3845_v63, %v2213_v7 }
 0x45a   : > { %2465 = vst.msk [vmem:[#allocation7 + $0x40] sm:$0xff] %vm1768_vm1, %v2449_v57  ;;  %v2432_v18 = vpop.xlane.xlu0 %2431  ;;  %v1928_v56 = vmul.f32 %v3847_v23, %v1864_v8  ;;  %v3849_v19 = vpop.eup %3848 }
 0x45b   : > { %v2452_v36 = vadd.f32 %v2432_v18, %v2276_v0  ;;  %v2279_v61 = vmul.f32 %v3849_v19, %v2215_v29 }
 0x45d   : > { %2468 = vst.msk [vmem:[#allocation7 + $0x58] sm:$0xff] %vm1768_vm1, %v2452_v36  ;;  %v3851_v57 = vpop.eup %3850  ;;  %v2214_v36 = vld [vmem:[#allocation7 + $0x68] sm:$0xff] }
 0x45e   : > { %v1926_v10 = vmul.f32 %v3851_v57, %v1862_v45 }
 0x461   : > { %v3853_v0 = vpop.eup %3852 }
 0x462   : > { %v2076_v52 = vpop.xlane.xlu0 %2075  ;;  %v2278_v46 = vmul.f32 %v3853_v0, %v2214_v36 }
 0x463   : > { %v2098_v17 = vadd.f32 %v2076_v52, %v1922_v38 }
 0x464   : > { %v3855_v39 = vpop.eup %3854 }
 0x465   : > { %2114 = vst.msk [vmem:[#allocation5 + $0x48] sm:$0xff] %vm1768_vm1, %v2098_v17  ;;  %v2280_v26 = vmul.f32 %v3855_v39, %v2216_v3 }
 0x466   : > { %v2428_v59 = vpop.xlane.xlu0 %2427 }
 0x467   : > { %v2450_v9 = vadd.f32 %v2428_v59, %v2274_v50 }
 0x469   : > { %2466 = vst.msk [vmem:[#allocation7 + $0x48] sm:$0xff] %vm1768_vm1, %v2450_v9 }
 0x46a   : > { %v2086_v20 = vpop.xlane.xlu1 %2085 }
 0x46b   : > { %v2103_v55 = vadd.f32 %v2086_v20, %v1927_v5 }
 0x46d   : > { %2119 = vst.msk [vmem:[#allocation5 + $0x70] sm:$0xff] %vm1768_vm1, %v2103_v55 }
 0x46e   : > { %v2082_v42 = vpop.xlane.xlu1 %2081 }
 0x46f   : > { %v2101_v22 = vadd.f32 %v2082_v42, %v1925_v53 }
 0x471   : > { %2117 = vst.msk [vmem:[#allocation5 + $0x60] sm:$0xff] %vm1768_vm1, %v2101_v22 }
 0x472   : > { %v2434_v13 = vpop.xlane.xlu1 %2433  ;;  %v2088_v24 = vpop.xlane.xlu0 %2087 }
 0x473   : > { %v2453_v41 = vadd.f32 %v2434_v13, %v2277_v1  ;;  %v2104_v28 = vadd.f32 %v2088_v24, %v1928_v56 }
 0x475   : > { %2469 = vst.msk [vmem:[#allocation7 + $0x60] sm:$0xff] %vm1768_vm1, %v2453_v41  ;;  %2120 = vst.msk [vmem:[#allocation5 + $0x78] sm:$0xff] %vm1768_vm1, %v2104_v28 }
 0x476   : > { %v2438_v32 = vpop.xlane.xlu1 %2437 }
 0x477   : > { %v2455_v2 = vadd.f32 %v2438_v32, %v2279_v61 }
 0x479   : > { %2471 = vst.msk [vmem:[#allocation7 + $0x70] sm:$0xff] %vm1768_vm1, %v2455_v2 }
 0x47a   : > { %v2084_v18 = vpop.xlane.xlu0 %2083 }
 0x47b   : > { %v2102_v62 = vadd.f32 %v2084_v18, %v1926_v10 }
 0x47d   : > { %2118 = vst.msk [vmem:[#allocation5 + $0x68] sm:$0xff] %vm1768_vm1, %v2102_v62 }
 0x47e   : > { %v2436_v54 = vpop.xlane.xlu0 %2435 }
 0x47f   : > { %v2454_v15 = vadd.f32 %v2436_v54, %v2278_v46 }
 0x481   : > { %2470 = vst.msk [vmem:[#allocation7 + $0x68] sm:$0xff] %vm1768_vm1, %v2454_v15  ;;  %2492 = sbr.rel (%p3125_p12) target bundleno = 1235 (0x4d3), region = 101 }
 0x482   : > { %v2440_v12 = vpop.xlane.xlu0 %2439 }
 0x483   : > { %v2456_v25 = vadd.f32 %v2440_v12, %v2280_v26 }
 0x485   : > { %2472 = vst.msk [vmem:[#allocation7 + $0x78] sm:$0xff] %vm1768_vm1, %v2456_v25 }
 0x486   : > { %v2573_v30 = vld [vmem:[#allocation5] sm:$0xff]  ;;  %v2574_v49 = vld [vmem:[#allocation5 + $0x8] sm:$0xff]  ;;  %v2575_v27 = vld [vmem:[#allocation5 + $0x10] sm:$0xff]  ;;  %v4150_v14 = vmov 0.0  }
 0x487   : > { %3856 = vlog2.f32 %v2573_v30  ;;  %v2669_v11 = vld [vmem:[#allocation7] sm:$0xff]  ;;  %v2670_v58 = vld [vmem:[#allocation7 + $0x8] sm:$0xff]  ;;  %v2671_v38 = vld [vmem:[#allocation7 + $0x10] sm:$0xff] }
 0x488   : > { %3858 = vlog2.f32 %v2669_v11  ;;  %v2576_v16 = vld [vmem:[#allocation5 + $0x18] sm:$0xff]  ;;  %v2493_v31 = vld [vmem:[%s4415_s6] sm:$0xff]  ;;  %v2494_v17 = vld [vmem:[%s4415_s6 + $0x8] sm:$0xff] }
 0x489   : > { %3860 = vlog2.f32 %v2574_v49  ;;  %v2672_v52 = vld [vmem:[#allocation7 + $0x18] sm:$0xff]  ;;  %v2577_v35 = vld [vmem:[#allocation5 + $0x20] sm:$0xff]  ;;  %v2495_v60 = vld [vmem:[%s4415_s6 + $0x10] sm:$0xff]  ;;  %vm2509_vm2 = vcmp.ge.s32.totalorder %v2493_v31, 0  ;;  %vm2510_vm3 = vcmp.ge.s32.totalorder %v2494_v17, 0 }
 0x48a   : > { %3862 = vlog2.f32 %v2670_v58  ;;  %v2673_v37 = vld [vmem:[#allocation7 + $0x20] sm:$0xff]  ;;  %v2496_v6 = vld [vmem:[%s4415_s6 + $0x18] sm:$0xff]  ;;  %v2578_v50 = vld [vmem:[#allocation5 + $0x28] sm:$0xff]  ;;  %vm2511_vm4 = vcmp.ge.s32.totalorder %v2495_v60, 0  ;;  %v5264_v43 = vsel %vm2509_vm2, 1.0, %v4150_v14  ;;  %v5267_v51 = vsel %vm2510_vm3, 1.0, %v4150_v14 }
 0x48b   : > { %3864 = vlog2.f32 %v2575_v27  ;;  %v2674_v48 = vld [vmem:[#allocation7 + $0x28] sm:$0xff]  ;;  %v2497_v59 = vld [vmem:[%s4415_s6 + $0x20] sm:$0xff]  ;;  %v2579_v47 = vld [vmem:[#allocation5 + $0x30] sm:$0xff]  ;;  %vm2512_vm5 = vcmp.ge.s32.totalorder %v2496_v6, 0  ;;  %v5272_v34 = vsel %vm2511_vm4, 1.0, %v4150_v14 }
 0x48c   : > { %3866 = vlog2.f32 %v2671_v38  ;;  %v2498_v9 = vld [vmem:[%s4415_s6 + $0x28] sm:$0xff]  ;;  %v2675_v40 = vld [vmem:[#allocation7 + $0x30] sm:$0xff]  ;;  %v2557_v5 = vld [vmem:[#allocation4] sm:$0xff]  ;;  %vm2513_vm6 = vcmp.ge.s32.totalorder %v2497_v59, 0  ;;  %v5276_v7 = vsel %vm2512_vm5, 1.0, %v4150_v14 }
 0x48d   : > { %3868 = vlog2.f32 %v2576_v16  ;;  %v2499_v20 = vld [vmem:[%s4415_s6 + $0x30] sm:$0xff]  ;;  %v2580_v21 = vld [vmem:[#allocation5 + $0x38] sm:$0xff]  ;;  %v2653_v33 = vld [vmem:[#allocation6] sm:$0xff]  ;;  %vm2514_vm7 = vcmp.ge.s32.totalorder %v2498_v9, 0  ;;  %v5280_v57 = vsel %vm2513_vm6, 1.0, %v4150_v14 }
 0x48e   : > { %3870 = vlog2.f32 %v2672_v52  ;;  %v2676_v44 = vld [vmem:[#allocation7 + $0x38] sm:$0xff]  ;;  %v2558_v42 = vld [vmem:[#allocation4 + $0x8] sm:$0xff]  ;;  %v2581_v8 = vld [vmem:[#allocation5 + $0x40] sm:$0xff]  ;;  %vm2515_vm8 = vcmp.ge.s32.totalorder %v2499_v20, 0  ;;  %v5284_v36 = vsel %vm2514_vm7, 1.0, %v4150_v14 }
 0x48f   : > { %3872 = vlog2.f32 %v2577_v35  ;;  %v2654_v19 = vld [vmem:[#allocation6 + $0x8] sm:$0xff]  ;;  %v2677_v13 = vld [vmem:[#allocation7 + $0x40] sm:$0xff]  ;;  %v2559_v28 = vld [vmem:[#allocation4 + $0x10] sm:$0xff]  ;;  %v5288_v3 = vsel %vm2515_vm8, 1.0, %v4150_v14 }
 0x490   : > { %3874 = vlog2.f32 %v2673_v37  ;;  %v2655_v61 = vld [vmem:[#allocation6 + $0x10] sm:$0xff]  ;;  %v2582_v32 = vld [vmem:[#allocation5 + $0x48] sm:$0xff]  ;;  %v2560_v18 = vld [vmem:[#allocation4 + $0x18] sm:$0xff] }
 0x491   : > { %3876 = vlog2.f32 %v2578_v50  ;;  %v2678_v15 = vld [vmem:[#allocation7 + $0x48] sm:$0xff]  ;;  %v2765_v12 = vld [vmem:[#allocation8] sm:$0xff]  ;;  %v2656_v49 = vld [vmem:[#allocation6 + $0x18] sm:$0xff] }
 0x492   : > { %3878 = vlog2.f32 %v2674_v48  ;;  %v2561_v31 = vld [vmem:[#allocation4 + $0x20] sm:$0xff]  ;;  %v2766_v35 = vld [vmem:[#allocation8 + $0x8] sm:$0xff]  ;;  %v2767_v37 = vld [vmem:[#allocation8 + $0x10] sm:$0xff] }
 0x493   : > { %3880 = vlog2.f32 %v2579_v47  ;;  %v5291_v20 = vld [vmem:[%s4415_s6 + $0x38] sm:$0xff] }
 0x494   : > { %v3857_v4 = vpop.eup %3856  ;;  %3882 = vlog2.f32 %v2675_v40  ;;  %vm2516_vm9 = vcmp.ge.s32.totalorder %v5291_v20, 0 }
 0x495   : > { %v3859_v55 = vpop.eup %3858  ;;  %v2590_v63 = vmul.f32 0.6931472, %v3857_v4  ;;  %3884 = vlog2.f32 %v2580_v21  ;;  %v2657_v4 = vld [vmem:[#allocation6 + $0x20] sm:$0xff] }
 0x496   : > { %v3861_v53 = vpop.eup %3860  ;;  %v2686_v23 = vmul.f32 0.6931472, %v3859_v55  ;;  %3886 = vlog2.f32 %v2676_v44 }
 0x497   : > { %v3863_v22 = vpop.eup %3862  ;;  %v2621_v1 = vadd.f32 %v2590_v63, %v2557_v5  ;;  %v2592_v56 = vmul.f32 0.6931472, %v3861_v53  ;;  %3888 = vlog2.f32 %v2581_v8  ;;  %v2562_v5 = vld [vmem:[#allocation4 + $0x28] sm:$0xff] }
 0x498   : > { %v3865_v24 = vpop.eup %3864  ;;  %v2717_v29 = vadd.f32 %v2686_v23, %v2653_v33  ;;  %v2688_v41 = vmul.f32 0.6931472, %v3863_v22  ;;  %3890 = vlog2.f32 %v2677_v13 }
 0x499   : > { %v3867_v45 = vpop.eup %3866  ;;  %v2637_v2 = vmul.f32 0.8, %v2621_v1  ;;  %v2622_v10 = vadd.f32 %v2592_v56, %v2558_v42  ;;  %v2594_v0 = vmul.f32 0.6931472, %v3865_v24  ;;  %3892 = vlog2.f32 %v2582_v32  ;;  %v2658_v1 = vld [vmem:[#allocation6 + $0x28] sm:$0xff] }
 0x49a   : > { %v3869_v62 = vpop.eup %3868  ;;  %v2733_v46 = vmul.f32 0.2, %v2717_v29  ;;  %v2718_v39 = vadd.f32 %v2688_v41, %v2654_v19  ;;  %v2690_v54 = vmul.f32 0.6931472, %v3867_v45  ;;  %3894 = vlog2.f32 %v2678_v15  ;;  %v2768_v19 = vld [vmem:[#allocation8 + $0x18] sm:$0xff] }
 0x49b   : > { %v3871_v26 = vpop.eup %3870  ;;  %v2638_v25 = vmul.f32 0.8, %v2622_v10  ;;  %v2623_v30 = vadd.f32 %v2594_v0, %v2559_v28  ;;  %v2596_v11 = vmul.f32 0.6931472, %v3869_v62  ;;  %v2563_v28 = vld [vmem:[#allocation4 + $0x30] sm:$0xff]  ;;  %v2564_v0 = vld [vmem:[#allocation4 + $0x38] sm:$0xff] }
 0x49c   : > { %v3873_v58 = vpop.eup %3872  ;;  %v2749_v27 = vadd.f32 %v2733_v46, %v2637_v2  ;;  %v2734_v38 = vmul.f32 0.2, %v2718_v39  ;;  %v2719_v16 = vadd.f32 %v2690_v54, %v2655_v61  ;;  %v2692_v52 = vmul.f32 0.6931472, %v3871_v26  ;;  %v2659_v10 = vld [vmem:[#allocation6 + $0x30] sm:$0xff] }
 0x49d   : > { %v3875_v17 = vpop.eup %3874  ;;  %v2639_v60 = vmul.f32 0.8, %v2623_v30  ;;  %v2624_v6 = vadd.f32 %v2596_v11, %v2560_v18  ;;  %v2598_v50 = vmul.f32 0.6931472, %v3873_v58  ;;  %v2660_v11 = vld [vmem:[#allocation6 + $0x38] sm:$0xff] }
 0x49e   : > { %v3877_v48 = vpop.eup %3876  ;;  %v2781_v59 = vsub.f32 %v2749_v27, %v2765_v12  ;;  %v2750_v47 = vadd.f32 %v2734_v38, %v2638_v25  ;;  %v2735_v9 = vmul.f32 0.2, %v2719_v16  ;;  %v2720_v40 = vadd.f32 %v2692_v52, %v2656_v49  ;;  %v2769_v25 = vld [vmem:[#allocation8 + $0x20] sm:$0xff] }
 0x49f   : > { %v3879_v21 = vpop.eup %3878  ;;  %v2640_v55 = vmul.f32 0.8, %v2624_v6  ;;  %v2625_v63 = vadd.f32 %v2598_v50, %v2561_v31  ;;  %v2694_v33 = vmul.f32 0.6931472, %v3875_v17  ;;  %v2600_v44 = vmul.f32 0.6931472, %v3877_v48 }
 0x4a0   : > { %v3881_v53 = vpop.eup %3880  ;;  %v2797_v23 = vmul.f32 %v5264_v43, %v2781_v59  ;;  %v2782_v42 = vsub.f32 %v2750_v47, %v2766_v35  ;;  %v2751_v8 = vadd.f32 %v2735_v9, %v2639_v60  ;;  %v2736_v22 = vmul.f32 0.2, %v2720_v40  ;;  %v2501_v52 = vld [vmem:[%s4415_s6 + $0x40] sm:$0xff]  ;;  %v2770_v35 = vld [vmem:[#allocation8 + $0x28] sm:$0xff]  ;;  %v2771_v40 = vld [vmem:[#allocation8 + $0x30] sm:$0xff] }
 0x4a1   : > { %v3883_v56 = vpop.eup %3882  ;;  %v2641_v13 = vmul.f32 0.8, %v2625_v63  ;;  %v2721_v24 = vadd.f32 %v2694_v33, %v2657_v4  ;;  %v2626_v29 = vadd.f32 %v2600_v44, %v2562_v5  ;;  %v2696_v41 = vmul.f32 0.6931472, %v3879_v21  ;;  %v2565_v31 = vld [vmem:[#allocation4 + $0x40] sm:$0xff]  ;;  %v2772_v44 = vld [vmem:[#allocation8 + $0x38] sm:$0xff] }
 0x4a2   : > { %v3885_v61 = vpop.eup %3884  ;;  %2813 = vst.msk [vmem:[%s4420_s23] sm:$0xff] %vm1768_vm1, %v2797_v23  ;;  %v2798_v32 = vmul.f32 %v5267_v51, %v2782_v42  ;;  %v2783_v43 = vsub.f32 %v2751_v8, %v2767_v37  ;;  %v2752_v45 = vadd.f32 %v2736_v22, %v2640_v55  ;;  %v2602_v2 = vmul.f32 0.6931472, %v3881_v53  ;;  %v2661_v47 = vld [vmem:[#allocation6 + $0x40] sm:$0xff]  ;;  %v2566_v53 = vld [vmem:[#allocation4 + $0x48] sm:$0xff]  ;;  %v2583_v23 = vld [vmem:[#allocation5 + $0x50] sm:$0xff] }
 0x4a3   : > { %v3887_v18 = vpop.eup %3886  ;;  %v2737_v62 = vmul.f32 0.2, %v2721_v24  ;;  %v2642_v46 = vmul.f32 0.8, %v2626_v29  ;;  %v2722_v39 = vadd.f32 %v2696_v41, %v2658_v1  ;;  %v2698_v54 = vmul.f32 0.6931472, %v3883_v56 }
 0x4a4   : > { %v3889_v15 = vpop.eup %3888  ;;  %2814 = vst.msk [vmem:[%s4420_s23 + $0x8] sm:$0xff] %vm1768_vm1, %v2798_v32  ;;  %v2799_v26 = vmul.f32 %v5272_v34, %v2783_v43  ;;  %v2784_v12 = vsub.f32 %v2752_v45, %v2768_v19  ;;  %v2627_v51 = vadd.f32 %v2602_v2, %v2563_v28  ;;  %v2604_v30 = vmul.f32 0.6931472, %v3885_v61  ;;  %v2662_v56 = vld [vmem:[#allocation6 + $0x48] sm:$0xff]  ;;  %v2679_v19 = vld [vmem:[#allocation7 + $0x50] sm:$0xff]  ;;  %v2584_v41 = vld [vmem:[#allocation5 + $0x58] sm:$0xff] }
 0x4a5   : > { %v3891_v49 = vpop.eup %3890  ;;  %v2753_v58 = vadd.f32 %v2737_v62, %v2641_v13  ;;  %v2738_v27 = vmul.f32 0.2, %v2722_v39  ;;  %v2723_v38 = vadd.f32 %v2698_v54, %v2659_v10  ;;  %v2700_v16 = vmul.f32 0.6931472, %v3887_v18  ;;  %v2502_v32 = vld [vmem:[%s4415_s6 + $0x48] sm:$0xff]  ;;  %v2680_v45 = vld [vmem:[#allocation7 + $0x58] sm:$0xff] }
 0x4a6   : > { %2815 = vst.msk [vmem:[%s4420_s23 + $0x10] sm:$0xff] %vm1768_vm1, %v2799_v26  ;;  %v2800_v17 = vmul.f32 %v5276_v7, %v2784_v12  ;;  %v2643_v60 = vmul.f32 0.8, %v2627_v51  ;;  %v2628_v34 = vadd.f32 %v2604_v30, %v2564_v0  ;;  %v2606_v37 = vmul.f32 0.6931472, %v3889_v15  ;;  %v3893_v9 = vpop.eup %3892  ;;  %v2585_v18 = vld [vmem:[#allocation5 + $0x60] sm:$0xff] }
 0x4a7   : > { %v2785_v6 = vsub.f32 %v2753_v58, %v2769_v25  ;;  %v2754_v50 = vadd.f32 %v2738_v27, %v2642_v46  ;;  %v2739_v48 = vmul.f32 0.2, %v2723_v38  ;;  %v2724_v59 = vadd.f32 %v2700_v16, %v2660_v11  ;;  %v3895_v42 = vpop.eup %3894  ;;  %v2681_v39 = vld [vmem:[#allocation7 + $0x60] sm:$0xff]  ;;  %v2774_v12 = vld [vmem:[#allocation8 + $0x48] sm:$0xff]  ;;  %v2587_v30 = vld [vmem:[#allocation5 + $0x70] sm:$0xff] }
 0x4a8   : > { %2816 = vst.msk [vmem:[%s4420_s23 + $0x18] sm:$0xff] %vm1768_vm1, %v2800_v17  ;;  %v2644_v4 = vmul.f32 0.8, %v2628_v34  ;;  %vm2517_vm10 = vcmp.ge.s32.totalorder %v2501_v52, 0  ;;  %v2629_v5 = vadd.f32 %v2606_v37, %v2565_v31  ;;  %v2702_v21 = vmul.f32 0.6931472, %v3891_v49 }
 0x4a9   : > { %v2801_v7 = vmul.f32 %v5280_v57, %v2785_v6  ;;  %v2786_v55 = vsub.f32 %v2754_v50, %v2770_v35  ;;  %v2755_v63 = vadd.f32 %v2739_v48, %v2643_v60  ;;  %v2740_v33 = vmul.f32 0.2, %v2724_v59  ;;  %v2682_v25 = vld [vmem:[#allocation7 + $0x68] sm:$0xff]  ;;  %v2683_v58 = vld [vmem:[#allocation7 + $0x70] sm:$0xff]  ;;  %v2588_v38 = vld [vmem:[#allocation5 + $0x78] sm:$0xff] }
 0x4aa   : > { %v2645_v8 = vmul.f32 0.8, %v2629_v5  ;;  %v2725_v22 = vadd.f32 %v2702_v21, %v2661_v47  ;;  %v2608_v1 = vmul.f32 0.6931472, %v3893_v9  ;;  %v2704_v29 = vmul.f32 0.6931472, %v3895_v42 }
 0x4ab   : > { %2817 = vst.msk [vmem:[%s4420_s23 + $0x20] sm:$0xff] %vm1768_vm1, %v2801_v7  ;;  %v2802_v13 = vmul.f32 %v5284_v36, %v2786_v55  ;;  %v2787_v24 = vsub.f32 %v2755_v63, %v2771_v40  ;;  %v2756_v57 = vadd.f32 %v2740_v33, %v2644_v4  ;;  %v3133_v28 = vsel %vm2516_vm9, 1.0, %v4150_v14  ;;  %v2773_v36 = vld [vmem:[#allocation8 + $0x40] sm:$0xff]  ;;  %v2684_v16 = vld [vmem:[#allocation7 + $0x78] sm:$0xff]  ;;  %v2503_v31 = vld [vmem:[%s4415_s6 + $0x50] sm:$0xff] }
 0x4ac   : > { %v2741_v61 = vmul.f32 0.2, %v2725_v22  ;;  %v2630_v43 = vadd.f32 %v2608_v1, %v2566_v53  ;;  %3896 = vlog2.f32 %v2583_v23  ;;  %v2726_v0 = vadd.f32 %v2704_v29, %v2662_v56  ;;  %v2567_v35 = vld [vmem:[#allocation4 + $0x50] sm:$0xff]  ;;  %v2504_v60 = vld [vmem:[%s4415_s6 + $0x58] sm:$0xff]  ;;  %v2505_v50 = vld [vmem:[%s4415_s6 + $0x60] sm:$0xff] }
 0x4ad   : > { %2818 = vst.msk [vmem:[%s4420_s23 + $0x28] sm:$0xff] %vm1768_vm1, %v2802_v13  ;;  %v2803_v2 = vmul.f32 %v5288_v3, %v2787_v24  ;;  %v2788_v10 = vsub.f32 %v2756_v57, %v2772_v44  ;;  %3898 = vlog2.f32 %v2679_v19  ;;  %v3134_v20 = vsel %vm2517_vm10, 1.0, %v4150_v14  ;;  %v2586_v3 = vld [vmem:[#allocation5 + $0x68] sm:$0xff]  ;;  %v2663_v6 = vld [vmem:[#allocation6 + $0x50] sm:$0xff]  ;;  %v2568_v47 = vld [vmem:[#allocation4 + $0x58] sm:$0xff] }
 0x4ae   : > { %v2757_v62 = vadd.f32 %v2741_v61, %v2645_v8  ;;  %v2646_v46 = vmul.f32 0.8, %v2630_v43  ;;  %3900 = vlog2.f32 %v2584_v41  ;;  %vm2518_vm11 = vcmp.ge.s32.totalorder %v2502_v32, 0  ;;  %v2664_v5 = vld [vmem:[#allocation6 + $0x58] sm:$0xff]  ;;  %v2569_v63 = vld [vmem:[#allocation4 + $0x60] sm:$0xff]  ;;  %v2775_v42 = vld [vmem:[#allocation8 + $0x50] sm:$0xff] }
 0x4af   : > { %2819 = vst.msk [vmem:[%s4420_s23 + $0x30] sm:$0xff] %vm1768_vm1, %v2803_v2  ;;  %v2804_v54 = vmul.f32 %v3133_v28, %v2788_v10  ;;  %v2742_v15 = vmul.f32 0.2, %v2726_v0  ;;  %3902 = vlog2.f32 %v2680_v45  ;;  %v3135_v49 = vsel %vm2518_vm11, 1.0, %v4150_v14  ;;  %v2665_v33 = vld [vmem:[#allocation6 + $0x60] sm:$0xff]  ;;  %v2506_v1 = vld [vmem:[%s4415_s6 + $0x68] sm:$0xff] }
 0x4b0   : > { %v2789_v26 = vsub.f32 %v2757_v62, %v2773_v36  ;;  %3904 = vlog2.f32 %v2585_v18  ;;  %vm2519_vm12 = vcmp.ge.s32.totalorder %v2503_v31, 0  ;;  %vm2520_vm13 = vcmp.ge.s32.totalorder %v2504_v60, 0  ;;  %v2570_v29 = vld [vmem:[#allocation4 + $0x68] sm:$0xff] }
 0x4b1   : > { %2820 = vst.msk [vmem:[%s4420_s23 + $0x38] sm:$0xff] %vm1768_vm1, %v2804_v54  ;;  %v2758_v51 = vadd.f32 %v2742_v15, %v2646_v46  ;;  %3906 = vlog2.f32 %v2681_v39  ;;  %vm2521_vm14 = vcmp.ge.s32.totalorder %v2505_v50, 0  ;;  %v3136_v53 = vsel %vm2519_vm12, 1.0, %v4150_v14  ;;  %v2666_v45 = vld [vmem:[#allocation6 + $0x68] sm:$0xff]  ;;  %v2776_v46 = vld [vmem:[#allocation8 + $0x58] sm:$0xff] }
 0x4b2   : > { %v2805_v11 = vmul.f32 %v3134_v20, %v2789_v26  ;;  %3908 = vlog2.f32 %v2586_v3  ;;  %v3137_v13 = vsel %vm2520_vm13, 1.0, %v4150_v14  ;;  %v3138_v61 = vsel %vm2521_vm14, 1.0, %v4150_v14  ;;  %v2571_v20 = vld [vmem:[#allocation4 + $0x70] sm:$0xff] }
 0x4b3   : > { %v2790_v27 = vsub.f32 %v2758_v51, %v2774_v12  ;;  %3910 = vlog2.f32 %v2682_v25  ;;  %vm2522_vm15 = vcmp.ge.s32.totalorder %v2506_v1, 0  ;;  %v2777_v51 = vld [vmem:[#allocation8 + $0x60] sm:$0xff]  ;;  %v2780_v1 = vld [vmem:[#allocation8 + $0x78] sm:$0xff] }
 0x4b4   : > { %2821 = vst.msk [vmem:[%s4420_s23 + $0x40] sm:$0xff] %vm1768_vm1, %v2805_v11  ;;  %3912 = vlog2.f32 %v2587_v30  ;;  %v2667_v11 = vld [vmem:[#allocation6 + $0x70] sm:$0xff] }
 0x4b5   : > { %v2806_v52 = vmul.f32 %v3135_v49, %v2790_v27  ;;  %3914 = vlog2.f32 %v2683_v58  ;;  %v2572_v49 = vld [vmem:[#allocation4 + $0x78] sm:$0xff] }
 0x4b6   : > { %3916 = vlog2.f32 %v2588_v38 }
 0x4b7   : > { %2822 = vst.msk [vmem:[%s4420_s23 + $0x48] sm:$0xff] %vm1768_vm1, %v2806_v52  ;;  %3918 = vlog2.f32 %v2684_v16 }
 0x4b9   : > { %v3897_v17 = vpop.eup %3896 }
 0x4ba   : > { %v3899_v34 = vpop.eup %3898  ;;  %v2610_v37 = vmul.f32 0.6931472, %v3897_v17 }
 0x4bb   : > { %v3901_v48 = vpop.eup %3900  ;;  %v2706_v59 = vmul.f32 0.6931472, %v3899_v34  ;;  %v2507_v34 = vld [vmem:[%s4415_s6 + $0x70] sm:$0xff] }
 0x4bc   : > { %v3903_v9 = vpop.eup %3902  ;;  %v2631_v40 = vadd.f32 %v2610_v37, %v2567_v35  ;;  %v2612_v4 = vmul.f32 0.6931472, %v3901_v48  ;;  %v2668_v37 = vld [vmem:[#allocation6 + $0x78] sm:$0xff]  ;;  %vm2523_vm0 = vcmp.ge.s32.totalorder %v2507_v34, 0 }
 0x4bd   : > { %v3905_v21 = vpop.eup %3904  ;;  %v2727_v7 = vadd.f32 %v2706_v59, %v2663_v6  ;;  %v2708_v55 = vmul.f32 0.6931472, %v3903_v9  ;;  %v2778_v6 = vld [vmem:[#allocation8 + $0x68] sm:$0xff] }
 0x4be   : > { %v3907_v44 = vpop.eup %3906  ;;  %v2647_v23 = vmul.f32 0.8, %v2631_v40  ;;  %v2632_v8 = vadd.f32 %v2612_v4, %v2568_v47  ;;  %v2614_v22 = vmul.f32 0.6931472, %v3905_v21  ;;  %v3139_v4 = vsel %vm2522_vm15, 1.0, %v4150_v14  ;;  %v2508_v21 = vld [vmem:[%s4415_s6 + $0x78] sm:$0xff] }
 0x4bf   : > { %v3909_v56 = vpop.eup %3908  ;;  %v2743_v19 = vmul.f32 0.2, %v2727_v7  ;;  %v2728_v24 = vadd.f32 %v2708_v55, %v2664_v5  ;;  %v2710_v57 = vmul.f32 0.6931472, %v3907_v44  ;;  %vm2524_vm2 = vcmp.ge.s32.totalorder %v2508_v21, 0 }
 0x4c0   : > { %v3911_v41 = vpop.eup %3910  ;;  %v2648_v28 = vmul.f32 0.8, %v2632_v8  ;;  %v2633_v32 = vadd.f32 %v2614_v22, %v2569_v63  ;;  %v2616_v43 = vmul.f32 0.6931472, %v3909_v56  ;;  %v3140_v22 = vsel %vm2523_vm0, 1.0, %v4150_v14 }
 0x4c1   : > { %v3913_v2 = vpop.eup %3912  ;;  %v2759_v10 = vadd.f32 %v2743_v19, %v2647_v23  ;;  %v2744_v36 = vmul.f32 0.2, %v2728_v24  ;;  %v2729_v0 = vadd.f32 %v2710_v57, %v2665_v33  ;;  %v2712_v18 = vmul.f32 0.6931472, %v3911_v41 }
 0x4c2   : > { %v3915_v62 = vpop.eup %3914  ;;  %v2649_v39 = vmul.f32 0.8, %v2633_v32  ;;  %v2634_v54 = vadd.f32 %v2616_v43, %v2570_v29  ;;  %v2618_v15 = vmul.f32 0.6931472, %v3913_v2 }
 0x4c3   : > { %v3917_v3 = vpop.eup %3916  ;;  %v2791_v26 = vsub.f32 %v2759_v10, %v2775_v42  ;;  %v2760_v12 = vadd.f32 %v2744_v36, %v2648_v28  ;;  %v2745_v25 = vmul.f32 0.2, %v2729_v0  ;;  %v2730_v30 = vadd.f32 %v2712_v18, %v2666_v45 }
 0x4c4   : > { %v3919_v58 = vpop.eup %3918  ;;  %v2650_v27 = vmul.f32 0.8, %v2634_v54  ;;  %v2635_v38 = vadd.f32 %v2618_v15, %v2571_v20  ;;  %v2714_v16 = vmul.f32 0.6931472, %v3915_v62  ;;  %v2620_v52 = vmul.f32 0.6931472, %v3917_v3 }
 0x4c5   : > { %v2807_v31 = vmul.f32 %v3136_v53, %v2791_v26  ;;  %v2792_v17 = vsub.f32 %v2760_v12, %v2776_v46  ;;  %v2761_v35 = vadd.f32 %v2745_v25, %v2649_v39  ;;  %v2746_v60 = vmul.f32 0.2, %v2730_v30  ;;  %v2779_v53 = vld [vmem:[#allocation8 + $0x70] sm:$0xff] }
 0x4c6   : > { %v2651_v50 = vmul.f32 0.8, %v2635_v38  ;;  %v2731_v48 = vadd.f32 %v2714_v16, %v2667_v11  ;;  %v2636_v59 = vadd.f32 %v2620_v52, %v2572_v49  ;;  %v2716_v47 = vmul.f32 0.6931472, %v3919_v58 }
 0x4c7   : > { %2823 = vst.msk [vmem:[%s4420_s23 + $0x50] sm:$0xff] %vm1768_vm1, %v2807_v31  ;;  %v2808_v9 = vmul.f32 %v3137_v13, %v2792_v17  ;;  %v2793_v40 = vsub.f32 %v2761_v35, %v2777_v51  ;;  %v2762_v5 = vadd.f32 %v2746_v60, %v2650_v27  ;;  %v3141_v13 = vsel %vm2524_vm2, 1.0, %v4150_v14 }
 0x4c8   : > { %v2747_v7 = vmul.f32 0.2, %v2731_v48  ;;  %v2652_v55 = vmul.f32 0.8, %v2636_v59  ;;  %v2732_v63 = vadd.f32 %v2716_v47, %v2668_v37 }
 0x4c9   : > { %2824 = vst.msk [vmem:[%s4420_s23 + $0x58] sm:$0xff] %vm1768_vm1, %v2808_v9  ;;  %v2809_v33 = vmul.f32 %v3138_v61, %v2793_v40  ;;  %v2794_v44 = vsub.f32 %v2762_v5, %v2778_v6 }
 0x4ca   : > { %v2763_v23 = vadd.f32 %v2747_v7, %v2651_v50  ;;  %v2748_v42 = vmul.f32 0.2, %v2732_v63 }
 0x4cb   : > { %2825 = vst.msk [vmem:[%s4420_s23 + $0x60] sm:$0xff] %vm1768_vm1, %v2809_v33  ;;  %v2810_v8 = vmul.f32 %v3139_v4, %v2794_v44 }
 0x4cc   : > { %v2795_v56 = vsub.f32 %v2763_v23, %v2779_v53  ;;  %v2764_v19 = vadd.f32 %v2748_v42, %v2652_v55 }
 0x4cd   : > { %2826 = vst.msk [vmem:[%s4420_s23 + $0x68] sm:$0xff] %vm1768_vm1, %v2810_v8 }
 0x4ce   : > { %v2811_v24 = vmul.f32 %v3140_v22, %v2795_v56  ;;  %v2796_v57 = vsub.f32 %v2764_v19, %v2780_v1 }
 0x4d0   : > { %2827 = vst.msk [vmem:[%s4420_s23 + $0x70] sm:$0xff] %vm1768_vm1, %v2811_v24  ;;  %v2812_v29 = vmul.f32 %v3141_v13, %v2796_v57 }
 0x4d2   : > { %2828 = vst.msk [vmem:[%s4420_s23 + $0x78] sm:$0xff] %vm1768_vm1, %v2812_v29 }
 0x4d3 PF: > { %s5673_s26 = sld [smem:[#allocation24_spill]]  ;;  %s3197_s8 = sshll.u32 %s4128_s30, 6 }
 0x4d4   : > { %s5674_s18 = sld [smem:[#allocation31_spill]]  ;;  %s2850_s14 = sshll.u32 %s4424_s24, 4  ;;  %s5359_s14 = int_to_ptr.vmem [resolvable:$true] %s2850_s14 }
 0x4d5   : > { %s5675_s12 = sld [smem:[#allocation80_spill]]  ;;  %s5368_s0 = scalar_lea.sflag [#allocation11], %s433_s27 }
 0x4d6   : > { %s4000_s6 = scalar_lea.vmem %s5359_s14, 1024  ;;  %s4151_s30 = smov [#allocation16]  }
 0x4d7   : > { %p4001_p2 = scmp.ne.s32.totalorder %s5359_s14, %s4000_s6  ;;  %s4004_s15 = sshll.u32 %s4151_s30, 4  ;;  %s4005_s15 = int_to_ptr.vmem [resolvable:$false] %s4004_s15 }
 0x4d8   : > { %s4006_s29 = scalar_lea.vmem %s4005_s15, 2048  ;;  %p4007_p7 = scmp.lt.s32.totalorder %s5359_s14, %s4005_s15 }
 0x4d9   : > { %s2847_s11 = sadd.s32 %s5673_s26, %s3197_s8  ;;  %p4008_p11 = scmp.lt.s32.totalorder %s4006_s29, %s4000_s6 }
 0x4da   : > { %s3145_s13 = sshll.u32 %s2847_s11, 6  ;;  %p5676_p4 = scmp.ne.s32.totalorder %s5674_s18, 0 }
 0x4db   : > { %s5364_s5 = scalar_lea.hbm %s5675_s12, %s3145_s13  ;;  %p4009_p10 = por %p4008_p11, %p4007_p7 }
 0x4dc   : > { %p4002_p0 = pnand %p4001_p2, %p5676_p4 }
 0x4de   : > { %p4003_p9 = pneg %p4002_p0 }
 0x4e0   : > { %p4010_p1 = pnand %p4009_p10, %p4003_p9 }
 0x4e2   : > { %4013 = shalt.err (!%p4010_p1)
}
 0x4e3   : > { %s4014_s27 = scalar_lea.hbm %s5364_s5, 1024  ;;  %s4018_s19 = scalar_lea.hbm %s5675_s12, 8192 }
 0x4e4   : > { %p4015_p5 = scmp.ne.s32.totalorder %s5364_s5, %s4014_s27  ;;  %p4019_p8 = scmp.lt.s32.totalorder %s5364_s5, %s5675_s12 }
 0x4e5   : > { %p4020_p13 = scmp.lt.s32.totalorder %s4018_s19, %s4014_s27 }
 0x4e6   : > { %p4016_p3 = pnand %p4015_p5, %p5676_p4 }
 0x4e7   : > { %p4021_p12 = por %p4020_p13, %p4019_p8 }
 0x4e8   : > { %p4017_p6 = pneg %p4016_p3 }
 0x4ea   : > { %p4022_p2 = pnand %p4021_p12, %p4017_p6 }
 0x4ec   : > { %4025 = shalt.err (!%p4022_p2)
}
 0x4ed   : > { %s4152_s20 = smov 64   ;;  %s4153_s10 = smov 256  }
 0x4ee   : > { %s4154_s26 = smov 4  }
 0x4ef   : > { %3541 = dma.vmem_to_hbm [thread:$0]  (%p5676_p4), %s5359_s14, 1024, %s5364_s5, %s5368_s0, %s4152_s20, %s4153_s10, %s4154_s26  }
 0x4f0 PF: > { %s5677_s8 = sld [smem:[#allocation20_spill]]  ;;  %p3561_p0 = scmp.ge.s32.totalorder %s4140_s9, 2 }
 0x4f1   : > { %s5678_s11 = sld [smem:[#allocation32_spill]] }
 0x4f6   : > { %s2869_s13 = sand.u32 1, %s5677_s8  }
 0x4f7   : > { %p5679_p9 = scmp.ne.s32.totalorder %s5678_s11, 0  ;;  %s2870_s28 = scalar_lea.sflag [#allocation11], %s2869_s13 }
 0x4f9   : > { %p3554_p7 = pnand %p3561_p0, %p5679_p9 }
 0x4fb   : > { %p3555_p11 = pneg %p3554_p7 }
 0x4fd   : > { %4087 = dma.done.wait (%p3555_p11), %s2870_s28, 1024  }
 0x4fe   : > { %4089 = vsyncadd (%p3555_p11), %s2870_s28, 4294966272  ;;  %s22_s9 = sadd.s32 1, %s4140_s9   ;;  %s5681_s18 = sld [smem:[#allocation21_spill]] }
 0x4ff   : > { %p5396_p10 = scmp.ge.s32.totalorder %s22_s9, 10   ;;  %s5682_s23 = sld [smem:[#allocation30_spill]] }
 0x500   : > { %s5683_s14 = sld [smem:[#allocation28_spill]]  ;;  %s5690_s21 = smov %s4096_s22 }
 0x501   : > { %s5684_s26 = sld [smem:[#allocation22_spill]]  ;;  %s5692_s24 = smov %s4108_s25 }
 0x502   : > { %s5685_s27 = sld [smem:[#allocation23_spill]]  ;;  %s5694_s29 = smov %s4132_s7 }
 0x503   : > { %s5686_s28 = sld [smem:[#allocation29_spill]] }
 0x504   : > { %s5687_s30 = sld [smem:[#allocation25_spill]]  ;;  %s5691_s22 = smov %s5681_s18 }
 0x505   : > { %s5688_s5 = sld [smem:[#allocation26_spill]] }
 0x506   : > { %s5689_s8 = sld [smem:[#allocation27_spill]]  ;;  %s5693_s25 = smov %s5683_s14 }
 0x507   :  { %21 = sbr.rel (!%p5396_p10) target bundleno = 14 (0xe), region = 158 }
 0x50b   : > { %s5695_s7 = smov %s5688_s5 }
 0x50c   :  { %2883 = vsyncpa [#allocation10], 1 }
 0x50d   :  { %2885 = vsyncpa [#allocation10 + $0x1], 1 }
 0x50e   :  { %2886 = vsyncpa [#allocation13], 1 }
 0x50f   :  { %2887 = vsyncpa [#allocation11], 1 }
 0x510   :  { %2889 = vsyncpa [#allocation11 + $0x1], 1 }

// kernel: tpu_custom_call.1
= control target key start
LH: loop header
LB: loop body
LE: loop exit
PB: predicated region body
PF: predicated region fallthrough
CT: control target
= control target key end

     0   :  { %s5468_s0 = inlined_call_operand.vmem [shape: s32[256,1], index: 0, kind: input, shape index: {}]   ;;  %s5469_s1 = inlined_call_operand.hbm [shape: bf16[256,128], index: 1, kind: input, shape index: {}]   ;;  %s5470_s2 = inlined_call_operand.hbm [shape: bf16[128,128], index: 2, kind: input, shape index: {}]   ;;  %s5471_s3 = inlined_call_operand.hbm [shape: bf16[128,128], index: 3, kind: input, shape index: {}]   ;;  %s5472_s4 = inlined_call_operand.vmem [shape: bf16[128,512], index: 4, kind: input, shape index: {}]   ;;  %s5473_s5 = inlined_call_operand.hbm [shape: bf16[256,512], index: 5, kind: output, shape index: {0}]   ;;  %s5474_s6 = inlined_call_operand.vmem [shape: f32[256,1], index: 6, kind: output, shape index: {1}]  }
   0x1   :  { %5536 = sst [smem:[#allocation77_spill]] %s5468_s0 }
   0x2   :  { %5537 = sst [smem:[#allocation78_spill]] %s5470_s2 }
   0x3   :  { %5538 = sst [smem:[#allocation79_spill]] %s5473_s5 }
   0x4   :  { %5539 = sst [smem:[#allocation80_spill]] %s5474_s6 }
   0x5   :  { %12 = vsyncpa [#allocation10], 0 }
   0x6   :  { %14 = vsyncpa [#allocation10 + $0x1], 0 }
   0x7   :  { %15 = vsyncpa [#allocation13], 0 }
   0x8   :  { %16 = vsyncpa [#allocation11], 0 }
   0x9   :  { %18 = vsyncpa [#allocation11 + $0x1], 0  ;;  %s4213_s21 = smov 0   ;;  %s4215_s22 = smov 0  }
   0xa   :  { %s4217_s23 = smov 0   ;;  %s4219_s24 = smov 0  }
   0xb   :  { %s4221_s25 = smov 0   ;;  %s4223_s26 = smov 0  }
   0xc   :  { %s4225_s27 = smov 0   ;;  %s4227_s28 = smov 0  }
   0xd   :  { %s4229_s29 = smov 0   ;;  %s4231_s30 = smov 0  }
   0xe   :  { %s4233_s7 = smov 0   ;;  %s4235_s8 = smov 0  }
   0xf   :  { %s4237_s9 = smov 0  }
  0x10 LB: > { %5540 = sst [smem:[#allocation20_spill]] %s4113_s21  ;;  %s5475_s10 = sadd.s32 4294967295, %s4161_s9   ;;  %s4161_s9 = sphi %s4237_s9, %s24_s9   ;;  %s4157_s8 = sphi %s4235_s8, %s5719_s8   ;;  %s4153_s7 = sphi %s4233_s7, %s5718_s7   ;;  %s4149_s30 = sphi %s4231_s30, %s5717_s30   ;;  %s4145_s29 = sphi %s4229_s29, %s5716_s29   ;;  %s4141_s28 = sphi %s4227_s28, %s5715_s28   ;;  %s4137_s27 = sphi %s4225_s27, %s5714_s27   ;;  %s4133_s26 = sphi %s4223_s26, %s5713_s26   ;;  %s4129_s25 = sphi %s4221_s25, %s5712_s25   ;;  %s4125_s24 = sphi %s4219_s24, %s5711_s24   ;;  %s4121_s23 = sphi %s4217_s23, %s5704_s23   ;;  %s4117_s22 = sphi %s4215_s22, %s5710_s22   ;;  %s4113_s21 = sphi %s4213_s21, %s5709_s21  }
  0x11   : > { %5541 = sst [smem:[#allocation21_spill]] %s4121_s23  ;;  %s33_s12 = sadd.s32 1, %s4153_s7 }
  0x12   : > { %5542 = sst [smem:[#allocation22_spill]] %s4145_s29  ;;  %s36_s13 = sadd.s32 1, %s4157_s8 }
  0x13   : > { %5543 = sst [smem:[#allocation23_spill]] %s4149_s30  ;;  %p34_p0 = scmp.ge.s32.totalorder %s33_s12, 4 }
  0x14   : > { %s69_s14 = sadd.s32 1, %s4141_s28  ;;  %p76_p1 = scmp.ne.s32.totalorder %s4141_s28, %s4137_s27 }
  0x15   : > { %p77_p2 = scmp.eq.s32.totalorder %s4161_s9, 0  ;;  %s5721_s12 = smov (%p34_p0, %s33_s12), 0 }
  0x16   : > { %5544 = sst [smem:[#allocation24_spill]] %s5721_s12  ;;  %s5723_s13 = smov (!%p34_p0, %s36_s13), %s4157_s8 }
  0x17   : > { %p4289_p3 = por %p77_p2, %p76_p1  ;;  %p82_p4 = scmp.ne.s32.totalorder %s4137_s27, %s4133_s26 }
  0x18   : > { %p38_p5 = scmp.ge.s32.totalorder %s5723_s13, 2  ;;  %p4296_p6 = scmp.eq.s32.totalorder %s5475_s10, 0 }
  0x19   : > { %s134_s17 = ssub.s32 %s4153_s7, %s5721_s12  ;;  %s137_s18 = sadd.s32 1, %s4129_s25 }
  0x1a   : > { %s5546_s16 = scalar_select %p4296_p6, 1, 0 }
  0x1b   : > { %s5725_s13 = smov (%p38_p5, %s5723_s13), 0  ;;  %p4307_p7 = por %p4296_p6, %p82_p4 }
  0x1c   : > { %5547 = sst [smem:[#allocation25_spill]] %s5725_s13  ;;  %p135_p8 = scmp.eq.s32.totalorder %s134_s17, 0 }
  0x1d   : > { %s5548_s19 = scalar_select %p4307_p7, 1, 0 }
  0x1e   : > { %s66_s20 = ssub.s32 %s4157_s8, %s5725_s13  ;;  %p144_p9 = scmp.ne.s32.totalorder %s4129_s25, %s4125_s24 }
  0x1f   : > { %p67_p10 = scmp.eq.s32.totalorder %s66_s20, 0  ;;  %s162_s26 = sor.u32 %s134_s17, %s66_s20 }
  0x20   : > { %s4316_s11 = scalar_select %p135_p8, %s4129_s25, %s137_s18  }
  0x21   : > { %s4319_s10 = scalar_select %p67_p10, %s4141_s28, %s69_s14  }
  0x22   : > { %5549 = sst [smem:[#allocation26_spill]] %s4316_s11  ;;  %p4323_p11 = por %p144_p9, %p77_p2 }
  0x23   : > { %5550 = sst [smem:[#allocation27_spill]] %s4319_s10  ;;  %p163_p12 = scmp.eq.s32.totalorder %s162_s26, 0 }
  0x24   : > { %s165_s5 = sadd.s32 1, %s4121_s23  ;;  %p175_p13 = scmp.ne.s32.totalorder %s4121_s23, %s4117_s22 }
  0x25   : > { %s4331_s29 = scalar_select %p163_p12, %s4121_s23, %s165_s5  }
  0x26   : > { %s5553_s13 = sadd.s32 4294967295, %s4161_s9   ;;  %p181_p1 = scmp.ne.s32.totalorder %s4117_s22, %s4113_s21 }
  0x27   : > { %5552 = sst [smem:[#allocation28_spill]] %s4331_s29  ;;  %p176_p0 = scmp.eq.s32.totalorder %s5553_s13, 7 }
  0x28   : > { %s5554_s6 = sadd.s32 4294967294, %s4161_s9   ;;  %p3033_p5 = scmp.ge.s32.totalorder %s4161_s9, 1 }
  0x29   : > { %p182_p4 = scmp.eq.s32.totalorder %s5554_s6, 7  ;;  %p4340_p8 = por %p176_p0, %p175_p13 }
  0x2a   : > { %p215_p2 = scmp.lt.s32.totalorder %s4161_s9, 9  ;;  %s4163_s5 = smov [#allocation12]  }
  0x2b   : > { %s5555_s14 = scalar_select %p4340_p8, 1, 0 }
  0x2c   : > { %p4345_p9 = por %p182_p4, %p181_p1  ;;  %p4349_p10 = pnand %p3033_p5, %p215_p2 }
  0x2d   : > { %5556 = sst [smem:[#allocation29_spill]] %s5555_s14  ;;  %s227_s13 = sshll.u32 %s4163_s5, 4  ;;  %s228_s13 = int_to_ptr.vmem [resolvable:$true] %s227_s13 }
  0x2e   : > { %s5557_s17 = scalar_select %p4345_p9, 1, 0 }
  0x2f   : > { %s5559_s18 = scalar_select %p4349_p10, 1, 0 }
  0x30   : > { %5558 = sst [smem:[#allocation30_spill]] %s5557_s17  ;;  %p3568_p12 = pneg %p4349_p10 }
  0x31   : > { %s4164_s20 = smov [#allocation14]   ;;  %s3954_s10 = scalar_lea.vmem %s228_s13, 1024 }
  0x32   : > { %p4357_p13 = pnand %p3568_p12, %p4296_p6  ;;  %s240_s26 = sshll.u32 %s4164_s20, 4  ;;  %s241_s26 = int_to_ptr.vmem [resolvable:$true] %s240_s26 }
  0x33   : > { %p3955_p1 = scmp.ne.s32.totalorder %s228_s13, %s3954_s10  ;;  %p3962_p2 = scmp.lt.s32.totalorder %s228_s13, %s228_s13 }
  0x34   : > { %p3945_p0 = pneg %p4357_p13  ;;  %p3963_p9 = scmp.lt.s32.totalorder %s3954_s10, %s3954_s10 }
  0x36   : > { %p3957_p4 = pnand %p3955_p1, %p3945_p0  ;;  %p3964_p8 = por %p3963_p9, %p3962_p2 }
  0x38   : > { %p3958_p5 = pneg %p3957_p4 }
  0x3a   : > { %p3965_p12 = pnand %p3964_p8, %p3958_p5 }
  0x3c   : > { %3968 = shalt.err (!%p3965_p12)
}
  0x3d   : > { %s4165_s5 = smov 64   ;;  %s4166_s11 = smov 4  }
  0x3e   : > { %s5561_s2 = sld [smem:[#allocation78_spill]]  ;;  %s3980_s23 = scalar_lea.vmem %s241_s26, 1024 }
  0x3f   : > { %p3981_p6 = scmp.ne.s32.totalorder %s241_s26, %s3980_s23  ;;  %p3988_p7 = scmp.lt.s32.totalorder %s241_s26, %s241_s26 }
  0x40   : > { %p3989_p10 = scmp.lt.s32.totalorder %s3980_s23, %s3980_s23 }
  0x41   : > { %p3983_p1 = pnand %p3981_p6, %p3945_p0 }
  0x42   : > { %p3990_p9 = por %p3989_p10, %p3988_p7 }
  0x43   : > { %p3984_p4 = pneg %p3983_p1 }
  0x44   : > { %3571 = dma.hbm_to_vmem [thread:$0]  (!%p4357_p13), %s5561_s2, 1024, %s228_s13, [#allocation13], %s4165_s5, %s4165_s5, %s4166_s11  }
  0x45   : > { %p3991_p8 = pnand %p3990_p9, %p3984_p4 }
  0x47   : > { %3994 = shalt.err (!%p3991_p8)
}
  0x48   : > { %3574 = dma.hbm_to_vmem [thread:$0]  (!%p4357_p13), %s5471_s3, 1024, %s241_s26, [#allocation13], %s4165_s5, %s4165_s5, %s4166_s11  }
  0x49   : > { %p3036_p5 = scmp.ge.s32.totalorder %s4161_s9, 8 }
  0x4a   : > { %s263_s29 = sand.u32 (!%p3036_p5), 1, %s4141_s28   ;;  %s3173_s13 = sshll.u32 (!%p3036_p5), %s4157_s8, 10 }
  0x4b   : > { %250 = sbr.rel (%p3036_p5) target bundleno = 105 (0x69), region = 24  ;;  %s3037_s20 = sshll.u32 (!%p3036_p5), %s263_s29, 6 }
  0x4c   : > { %s273_s21 = scalar_lea.hbm (!%p3036_p5), %s5469_s1, %s3173_s13  ;;  %s267_s14 = scalar_lea.vmem (!%p3036_p5), [#allocation9], %s3037_s20 }
  0x4d   : > { %s274_s0 = sshll.u32 (!%p3036_p5), %s267_s14, 4  ;;  %s264_s6 = scalar_lea.sflag (!%p3036_p5), [#allocation10], %s263_s29  ;;  %s275_s0 = int_to_ptr.vmem [resolvable:$true] %s274_s0 }
  0x4e   : > { %s4007_s30 = scalar_lea.vmem (!%p3036_p5), %s275_s0, 1024  ;;  %s4167_s11 = smov (!%p3036_p5), [#allocation9]  }
  0x4f   : > { %p4008_p6 = scmp.ne.s32.totalorder (!%p3036_p5), %s275_s0, %s4007_s30  ;;  %s4011_s17 = sshll.u32 (!%p3036_p5), %s4167_s11, 4  ;;  %s4012_s17 = int_to_ptr.vmem [resolvable:$false] %s4011_s17 }
  0x50   : > { %s4013_s26 = scalar_lea.vmem %s4012_s17, 2048  ;;  %p4014_p13 = scmp.lt.s32.totalorder %s275_s0, %s4012_s17 }
  0x51   : > { %p4009_p7 = pnand %p4008_p6, %p4289_p3  ;;  %p4015_p0 = scmp.lt.s32.totalorder %s4013_s26, %s4007_s30 }
  0x53   : > { %p4010_p10 = pneg %p4009_p7  ;;  %p4016_p2 = por %p4015_p0, %p4014_p13 }
  0x55   : > { %p4017_p12 = pnand %p4016_p2, %p4010_p10 }
  0x57   : > { %4020 = shalt.err (!%p4017_p12)
}
  0x58   : > { %s4168_s2 = smov 64   ;;  %s4169_s5 = smov 4  }
  0x59   : > { %3560 = dma.hbm_to_vmem [thread:$0]  (%p4289_p3), %s273_s21, 1024, %s275_s0, %s264_s6, %s4168_s2, %s4168_s2, %s4169_s5  }
  0x5a   : > { %283 = sbr.rel (!%p4323_p11) target bundleno = 105 (0x69), region = 36  ;;  %s285_s14 = sand.u32 (%p4323_p11), 1, %s4129_s25  }
  0x5b   : > { %s3041_s10 = sshll.u32 (%p4323_p11), %s4153_s7, 2  ;;  %s3040_s29 = sshll.u32 (%p4323_p11), %s285_s14, 6 }
  0x5c   : > { %s4396_s30 = scalar_lea.vmem (%p4323_p11), %s5472_s4, %s3041_s10  ;;  %s287_s0 = scalar_lea.vmem (%p4323_p11), [#allocation15], %s3040_s29 }
  0x5d   : > { %v306_v0 = vld [vmem:[%s4396_s30] sm:$0xf] (%p4323_p11)  ;;  %v308_v1 = vld [vmem:[%s4396_s30 + $0x10] sm:$0xf] (%p4323_p11) }
  0x5e   : > { %307 = vst [vmem:[%s287_s0] sm:$0xf] (%p4323_p11), %v306_v0  ;;  %309 = vst [vmem:[%s287_s0 + $0x4] sm:$0xf] (%p4323_p11), %v308_v1  ;;  %v310_v2 = vld [vmem:[%s4396_s30 + $0x20] sm:$0xf] (%p4323_p11) }
  0x5f   : > { %v312_v3 = vld [vmem:[%s4396_s30 + $0x30] sm:$0xf]  ;;  %v314_v4 = vld [vmem:[%s4396_s30 + $0x40] sm:$0xf]  ;;  %311 = vst [vmem:[%s287_s0 + $0x8] sm:$0xf] %v310_v2 }
  0x60   : > { %313 = vst [vmem:[%s287_s0 + $0xc] sm:$0xf] %v312_v3  ;;  %315 = vst [vmem:[%s287_s0 + $0x10] sm:$0xf] %v314_v4  ;;  %v316_v5 = vld [vmem:[%s4396_s30 + $0x50] sm:$0xf] }
  0x61   : > { %v318_v6 = vld [vmem:[%s4396_s30 + $0x60] sm:$0xf]  ;;  %v320_v7 = vld [vmem:[%s4396_s30 + $0x70] sm:$0xf]  ;;  %317 = vst [vmem:[%s287_s0 + $0x14] sm:$0xf] %v316_v5 }
  0x62   : > { %319 = vst [vmem:[%s287_s0 + $0x18] sm:$0xf] %v318_v6  ;;  %321 = vst [vmem:[%s287_s0 + $0x1c] sm:$0xf] %v320_v7  ;;  %v322_v8 = vld [vmem:[%s4396_s30 + $0x80] sm:$0xf] }
  0x63   : > { %v324_v9 = vld [vmem:[%s4396_s30 + $0x90] sm:$0xf]  ;;  %v326_v10 = vld [vmem:[%s4396_s30 + $0xa0] sm:$0xf]  ;;  %323 = vst [vmem:[%s287_s0 + $0x20] sm:$0xf] %v322_v8 }
  0x64   : > { %325 = vst [vmem:[%s287_s0 + $0x24] sm:$0xf] %v324_v9  ;;  %327 = vst [vmem:[%s287_s0 + $0x28] sm:$0xf] %v326_v10  ;;  %v328_v11 = vld [vmem:[%s4396_s30 + $0xb0] sm:$0xf] }
  0x65   : > { %v330_v12 = vld [vmem:[%s4396_s30 + $0xc0] sm:$0xf]  ;;  %v332_v13 = vld [vmem:[%s4396_s30 + $0xd0] sm:$0xf]  ;;  %329 = vst [vmem:[%s287_s0 + $0x2c] sm:$0xf] %v328_v11 }
  0x66   : > { %331 = vst [vmem:[%s287_s0 + $0x30] sm:$0xf] %v330_v12  ;;  %333 = vst [vmem:[%s287_s0 + $0x34] sm:$0xf] %v332_v13  ;;  %v334_v14 = vld [vmem:[%s4396_s30 + $0xe0] sm:$0xf] }
  0x67   : > { %v336_v15 = vld [vmem:[%s4396_s30 + $0xf0] sm:$0xf]  ;;  %335 = vst [vmem:[%s287_s0 + $0x38] sm:$0xf] %v334_v14 }
  0x68   : > { %337 = vst [vmem:[%s287_s0 + $0x3c] sm:$0xf] %v336_v15 }
  0x69 PF: > { %p5562_p3 = scmp.ne.s32.totalorder %s5559_s18, 0 }
  0x6b   : > { %396 = sbr.rel (%p5562_p3) target bundleno = 1249 (0x4e1), region = 77 }
  0x70   : > { %s398_s21 = sand.u32 1, %s4137_s27   ;;  %p5563_p11 = scmp.ne.s32.totalorder %s5548_s19, 0 }
  0x71   : > { %s3043_s12 = sshll.u32 %s398_s21, 6  ;;  %s399_s15 = scalar_lea.sflag [#allocation10], %s398_s21 }
  0x72   : > { %s4417_s23 = scalar_lea.vmem [#allocation9], %s3043_s12 }
  0x73   : > { %4100 = dma.done.wait (%p5563_p11), %s399_s15, 1024  }
  0x74   : > { %4102 = vsyncadd (%p5563_p11), %s399_s15, 4294966272  ;;  %p5564_p1 = scmp.ne.s32.totalorder %s5546_s16, 0 }
  0x76   : > { %4104 = dma.done.wait (%p5564_p1), [#allocation13], 2048  }
  0x77   : > { %4106 = vsyncadd (%p5564_p1), [#allocation13], 4294965248  ;;  %s5565_s18 = sld [smem:[#allocation23_spill]]  ;;  %s416_s6 = sand.u32 1, %s4125_s24  }
  0x78   : > { %s450_s11 = sand.u32 1, %s4117_s22   ;;  %s3046_s17 = sshll.u32 %s416_s6, 6 }
  0x79   : > { %s3047_s26 = sshll.u32 %s450_s11, 6  ;;  %s5566_s10 = sld [smem:[#allocation77_spill]] }
  0x7a   : > { %s5567_s20 = sld [smem:[#allocation80_spill]]  ;;  %s4442_s0 = scalar_lea.vmem [#allocation15], %s3046_s17 }
  0x7b   : > { %s4444_s24 = scalar_lea.vmem [#allocation16], %s3047_s26  ;;  %s5568_s21 = sld [smem:[#allocation22_spill]] }
  0x7d   : > { %s3048_s2 = sshll.u32 %s5565_s18, 4 }
  0x7e   : > { %p461_p4 = scmp.lt.s32.totalorder %s3048_s2, 31 }
  0x80   : > { %s5727_s2 = smov (!%p461_p4, %s3048_s2), 31 }
  0x81   : > { %s3049_s19 = sshll.u32 %s5727_s2, 3  ;;  %p3052_p9 = scmp.ne.s32.totalorder %s5568_s21, 0 }
  0x82   : > { %s4435_s29 = scalar_lea.vmem %s5566_s10, %s3049_s19  ;;  %s4440_s30 = scalar_lea.vmem %s5567_s20, %s3049_s19 }
  0x83   : > { %478 = sbr.rel (%p3052_p9) target bundleno = 396 (0x18c), region = 97 }
  0x88   : > { %v3701_v16 = vld [vmem:[#allocation12 + $0x38] sm:$0xff]   ;;  %v3703_v18 = vld [vmem:[#allocation12 + $0x30] sm:$0xff]   ;;  %v3705_v20 = vld [vmem:[#allocation12 + $0x28] sm:$0xff]   ;;  %vm1025_vm0 = vcmask 7168   ;;  %v4170_v40 = vmov -1e+30  }
  0x89   : > { %v3702_v17 = vld [vmem:[#allocation14 + $0x38] sm:$0xff]   ;;  %3428 = vmatprep.subr.bf16.mxu0 %v3701_v16  ;;  %v3704_v19 = vld [vmem:[#allocation14 + $0x30] sm:$0xff]   ;;  %v3706_v21 = vld [vmem:[#allocation14 + $0x28] sm:$0xff]   ;;  %1026 = vst.msk [vmem:[#allocation4] sm:$0xff] %vm1025_vm0, %v4170_v40  ;;  %v4171_v41 = vmov 0.0  }
  0x8a   : > { %3460 = vmatprep.subr.bf16.mxu1 %v3702_v17  ;;  %3429 = vmatpush3.bf16.msra.mxu0 %v3701_v16  ;;  %v3707_v22 = vld [vmem:[#allocation12 + $0x20] sm:$0xff]   ;;  %v3709_v24 = vld [vmem:[#allocation12 + $0x18] sm:$0xff]   ;;  %v3711_v26 = vld [vmem:[#allocation12 + $0x10] sm:$0xff]   ;;  %1027 = vst.msk [vmem:[#allocation4 + $0x8] sm:$0xff] %vm1025_vm0, %v4170_v40 }
  0x8b   : > { %3461 = vmatpush3.bf16.msra.mxu1 %v3702_v17  ;;  %3430 = vmatprep.subr.bf16.mxu0 %v3703_v18  ;;  %v3708_v23 = vld [vmem:[#allocation14 + $0x20] sm:$0xff]   ;;  %v3710_v25 = vld [vmem:[#allocation14 + $0x18] sm:$0xff]   ;;  %v3712_v28 = vld [vmem:[#allocation14 + $0x10] sm:$0xff]   ;;  %1028 = vst.msk [vmem:[#allocation4 + $0x10] sm:$0xff] %vm1025_vm0, %v4170_v40 }
  0x8c   : > { %3462 = vmatprep.subr.bf16.mxu1 %v3704_v19  ;;  %v3717_v27 = vld [vmem:[%s4417_s23] sm:$0xff]   ;;  %v3713_v29 = vld [vmem:[#allocation12 + $0x8] sm:$0xff]   ;;  %v3719_v34 = vld [vmem:[%s4417_s23 + $0x10] sm:$0xff]   ;;  %1029 = vst.msk [vmem:[#allocation4 + $0x18] sm:$0xff] %vm1025_vm0, %v4170_v40 }
  0x8d   : > { %3444 = vmatprep.mubr.bf16.mxu0 %v3717_v27  ;;  %3476 = vmatprep.mubr.bf16.mxu1 %v3717_v27  ;;  %v3714_v30 = vld [vmem:[#allocation14 + $0x8] sm:$0xff]   ;;  %v3715_v31 = vld [vmem:[#allocation12] sm:$0xff]   ;;  %v3720_v35 = vld [vmem:[%s4417_s23 + $0x18] sm:$0xff]   ;;  %1030 = vst.msk [vmem:[#allocation4 + $0x20] sm:$0xff] %vm1025_vm0, %v4170_v40 }
  0x8e   : > { %3431 = vmatpush3.bf16.msra.mxu0 %v3703_v18  ;;  %v3716_v32 = vld [vmem:[#allocation14] sm:$0xff]   ;;  %v3718_v33 = vld [vmem:[%s4417_s23 + $0x8] sm:$0xff]   ;;  %v3723_v38 = vld [vmem:[%s4417_s23 + $0x30] sm:$0xff]   ;;  %1031 = vst.msk [vmem:[#allocation4 + $0x28] sm:$0xff] %vm1025_vm0, %v4170_v40 }
  0x8f   : > { %3463 = vmatpush3.bf16.msra.mxu1 %v3704_v19  ;;  %3432 = vmatprep.subr.bf16.mxu0 %v3705_v20  ;;  %v3721_v36 = vld [vmem:[%s4417_s23 + $0x20] sm:$0xff]   ;;  %v3722_v37 = vld [vmem:[%s4417_s23 + $0x28] sm:$0xff]   ;;  %v3724_v39 = vld [vmem:[%s4417_s23 + $0x38] sm:$0xff]   ;;  %1032 = vst.msk [vmem:[#allocation4 + $0x30] sm:$0xff] %vm1025_vm0, %v4170_v40 }
  0x90   : > { %3464 = vmatprep.subr.bf16.mxu1 %v3706_v21  ;;  %1033 = vst.msk [vmem:[#allocation4 + $0x38] sm:$0xff] %vm1025_vm0, %v4170_v40  ;;  %1034 = vst.msk [vmem:[#allocation4 + $0x40] sm:$0xff] %vm1025_vm0, %v4170_v40 }
  0x91   : > { %1035 = vst.msk [vmem:[#allocation4 + $0x48] sm:$0xff] %vm1025_vm0, %v4170_v40  ;;  %1036 = vst.msk [vmem:[#allocation4 + $0x50] sm:$0xff] %vm1025_vm0, %v4170_v40 }
  0x92   : > { %3433 = vmatpush3.bf16.msra.mxu0 %v3705_v20  ;;  %1037 = vst.msk [vmem:[#allocation4 + $0x58] sm:$0xff] %vm1025_vm0, %v4170_v40  ;;  %1038 = vst.msk [vmem:[#allocation4 + $0x60] sm:$0xff] %vm1025_vm0, %v4170_v40 }
  0x93   : > { %3465 = vmatpush3.bf16.msra.mxu1 %v3706_v21  ;;  %3434 = vmatprep.subr.bf16.mxu0 %v3707_v22  ;;  %1039 = vst.msk [vmem:[#allocation4 + $0x68] sm:$0xff] %vm1025_vm0, %v4170_v40  ;;  %1040 = vst.msk [vmem:[#allocation4 + $0x70] sm:$0xff] %vm1025_vm0, %v4170_v40 }
  0x94   : > { %3466 = vmatprep.subr.bf16.mxu1 %v3708_v23  ;;  %1041 = vst.msk [vmem:[#allocation4 + $0x78] sm:$0xff] %vm1025_vm0, %v4170_v40  ;;  %1042 = vst.msk [vmem:[#allocation6] sm:$0xff] %vm1025_vm0, %v4170_v40 }
  0x95   : > { %1043 = vst.msk [vmem:[#allocation6 + $0x8] sm:$0xff] %vm1025_vm0, %v4170_v40  ;;  %1044 = vst.msk [vmem:[#allocation6 + $0x10] sm:$0xff] %vm1025_vm0, %v4170_v40 }
  0x96   : > { %3435 = vmatpush3.bf16.msra.mxu0 %v3707_v22  ;;  %1045 = vst.msk [vmem:[#allocation6 + $0x18] sm:$0xff] %vm1025_vm0, %v4170_v40  ;;  %1046 = vst.msk [vmem:[#allocation6 + $0x20] sm:$0xff] %vm1025_vm0, %v4170_v40 }
  0x97   : > { %3467 = vmatpush3.bf16.msra.mxu1 %v3708_v23  ;;  %3436 = vmatprep.subr.bf16.mxu0 %v3709_v24  ;;  %1047 = vst.msk [vmem:[#allocation6 + $0x28] sm:$0xff] %vm1025_vm0, %v4170_v40  ;;  %1048 = vst.msk [vmem:[#allocation6 + $0x30] sm:$0xff] %vm1025_vm0, %v4170_v40 }
  0x98   : > { %3468 = vmatprep.subr.bf16.mxu1 %v3710_v25  ;;  %1049 = vst.msk [vmem:[#allocation6 + $0x38] sm:$0xff] %vm1025_vm0, %v4170_v40  ;;  %1050 = vst.msk [vmem:[#allocation6 + $0x40] sm:$0xff] %vm1025_vm0, %v4170_v40 }
  0x99   : > { %1051 = vst.msk [vmem:[#allocation6 + $0x48] sm:$0xff] %vm1025_vm0, %v4170_v40  ;;  %1052 = vst.msk [vmem:[#allocation6 + $0x50] sm:$0xff] %vm1025_vm0, %v4170_v40 }
  0x9a   : > { %3437 = vmatpush3.bf16.msra.mxu0 %v3709_v24  ;;  %1053 = vst.msk [vmem:[#allocation6 + $0x58] sm:$0xff] %vm1025_vm0, %v4170_v40  ;;  %1054 = vst.msk [vmem:[#allocation6 + $0x60] sm:$0xff] %vm1025_vm0, %v4170_v40 }
  0x9b   : > { %3469 = vmatpush3.bf16.msra.mxu1 %v3710_v25  ;;  %3438 = vmatprep.subr.bf16.mxu0 %v3711_v26  ;;  %1055 = vst.msk [vmem:[#allocation6 + $0x68] sm:$0xff] %vm1025_vm0, %v4170_v40  ;;  %1056 = vst.msk [vmem:[#allocation6 + $0x70] sm:$0xff] %vm1025_vm0, %v4170_v40 }
  0x9c   : > { %3470 = vmatprep.subr.bf16.mxu1 %v3712_v28  ;;  %1057 = vst.msk [vmem:[#allocation6 + $0x78] sm:$0xff] %vm1025_vm0, %v4170_v40  ;;  %1058 = vst.msk [vmem:[#allocation5] sm:$0xff] %vm1025_vm0, %v4171_v41 }
  0x9d   : > { %1059 = vst.msk [vmem:[#allocation5 + $0x8] sm:$0xff] %vm1025_vm0, %v4171_v41  ;;  %1060 = vst.msk [vmem:[#allocation5 + $0x10] sm:$0xff] %vm1025_vm0, %v4171_v41 }
  0x9e   : > { %3439 = vmatpush3.bf16.msra.mxu0 %v3711_v26  ;;  %1061 = vst.msk [vmem:[#allocation5 + $0x18] sm:$0xff] %vm1025_vm0, %v4171_v41  ;;  %1062 = vst.msk [vmem:[#allocation5 + $0x20] sm:$0xff] %vm1025_vm0, %v4171_v41 }
  0x9f   : > { %3471 = vmatpush3.bf16.msra.mxu1 %v3712_v28  ;;  %3440 = vmatprep.subr.bf16.mxu0 %v3713_v29  ;;  %1063 = vst.msk [vmem:[#allocation5 + $0x28] sm:$0xff] %vm1025_vm0, %v4171_v41  ;;  %1064 = vst.msk [vmem:[#allocation5 + $0x30] sm:$0xff] %vm1025_vm0, %v4171_v41 }
  0xa0   : > { %3472 = vmatprep.subr.bf16.mxu1 %v3714_v30  ;;  %1065 = vst.msk [vmem:[#allocation5 + $0x38] sm:$0xff] %vm1025_vm0, %v4171_v41  ;;  %1066 = vst.msk [vmem:[#allocation5 + $0x40] sm:$0xff] %vm1025_vm0, %v4171_v41 }
  0xa1   : > { %1067 = vst.msk [vmem:[#allocation5 + $0x48] sm:$0xff] %vm1025_vm0, %v4171_v41  ;;  %1068 = vst.msk [vmem:[#allocation5 + $0x50] sm:$0xff] %vm1025_vm0, %v4171_v41 }
  0xa2   : > { %3441 = vmatpush3.bf16.msra.mxu0 %v3713_v29  ;;  %1069 = vst.msk [vmem:[#allocation5 + $0x58] sm:$0xff] %vm1025_vm0, %v4171_v41  ;;  %1070 = vst.msk [vmem:[#allocation5 + $0x60] sm:$0xff] %vm1025_vm0, %v4171_v41 }
  0xa3   : > { %3473 = vmatpush3.bf16.msra.mxu1 %v3714_v30  ;;  %3442 = vmatprep.subr.bf16.mxu0 %v3715_v31  ;;  %1071 = vst.msk [vmem:[#allocation5 + $0x68] sm:$0xff] %vm1025_vm0, %v4171_v41  ;;  %1072 = vst.msk [vmem:[#allocation5 + $0x70] sm:$0xff] %vm1025_vm0, %v4171_v41 }
  0xa4   : > { %3474 = vmatprep.subr.bf16.mxu1 %v3716_v32  ;;  %1073 = vst.msk [vmem:[#allocation5 + $0x78] sm:$0xff] %vm1025_vm0, %v4171_v41  ;;  %1074 = vst.msk [vmem:[#allocation7] sm:$0xff] %vm1025_vm0, %v4171_v41 }
  0xa5   : > { %1075 = vst.msk [vmem:[#allocation7 + $0x8] sm:$0xff] %vm1025_vm0, %v4171_v41  ;;  %1076 = vst.msk [vmem:[#allocation7 + $0x10] sm:$0xff] %vm1025_vm0, %v4171_v41 }
  0xa6   : > { %3443 = vmatpush3.bf16.msra.mxu0 %v3715_v31  ;;  %1077 = vst.msk [vmem:[#allocation7 + $0x18] sm:$0xff] %vm1025_vm0, %v4171_v41  ;;  %1078 = vst.msk [vmem:[#allocation7 + $0x20] sm:$0xff] %vm1025_vm0, %v4171_v41 }
  0xa7   : > { %3475 = vmatpush3.bf16.msra.mxu1 %v3716_v32  ;;  %1079 = vst.msk [vmem:[#allocation7 + $0x28] sm:$0xff] %vm1025_vm0, %v4171_v41  ;;  %1080 = vst.msk [vmem:[#allocation7 + $0x30] sm:$0xff] %vm1025_vm0, %v4171_v41 }
  0xa8   : > { %1081 = vst.msk [vmem:[#allocation7 + $0x38] sm:$0xff] %vm1025_vm0, %v4171_v41  ;;  %1082 = vst.msk [vmem:[#allocation7 + $0x40] sm:$0xff] %vm1025_vm0, %v4171_v41 }
  0xa9   : > { %3445 = vmatmul.mubr.bf16.vlgmr.msra.gmra.mxu0 %v3718_v33  ;;  %1083 = vst.msk [vmem:[#allocation7 + $0x48] sm:$0xff] %vm1025_vm0, %v4171_v41  ;;  %1084 = vst.msk [vmem:[#allocation7 + $0x50] sm:$0xff] %vm1025_vm0, %v4171_v41 }
  0xaa   : > { %3477 = vmatmul.mubr.bf16.vlgmr.msra.gmra.mxu1 %v3718_v33  ;;  %3448 = vmatprep.mubr.bf16.mxu0 %v3719_v34  ;;  %1085 = vst.msk [vmem:[#allocation7 + $0x58] sm:$0xff] %vm1025_vm0, %v4171_v41  ;;  %1086 = vst.msk [vmem:[#allocation7 + $0x60] sm:$0xff] %vm1025_vm0, %v4171_v41 }
  0xab   : > { %3480 = vmatprep.mubr.bf16.mxu1 %v3719_v34  ;;  %1087 = vst.msk [vmem:[#allocation7 + $0x68] sm:$0xff] %vm1025_vm0, %v4171_v41  ;;  %1088 = vst.msk [vmem:[#allocation7 + $0x70] sm:$0xff] %vm1025_vm0, %v4171_v41 }
  0xac   : > { %1089 = vst.msk [vmem:[#allocation7 + $0x78] sm:$0xff] %vm1025_vm0, %v4171_v41  ;;  %1090 = vst.msk [vmem:[#allocation8] sm:$0xff] %vm1025_vm0, %v4171_v41 }
  0xad   : > { %1091 = vst.msk [vmem:[#allocation8 + $0x8] sm:$0xff] %vm1025_vm0, %v4171_v41  ;;  %1092 = vst.msk [vmem:[#allocation8 + $0x10] sm:$0xff] %vm1025_vm0, %v4171_v41 }
  0xae   : > { %1093 = vst.msk [vmem:[#allocation8 + $0x18] sm:$0xff] %vm1025_vm0, %v4171_v41  ;;  %1094 = vst.msk [vmem:[#allocation8 + $0x20] sm:$0xff] %vm1025_vm0, %v4171_v41 }
  0xaf   : > { %1095 = vst.msk [vmem:[#allocation8 + $0x28] sm:$0xff] %vm1025_vm0, %v4171_v41  ;;  %1096 = vst.msk [vmem:[#allocation8 + $0x30] sm:$0xff] %vm1025_vm0, %v4171_v41 }
  0xb0   : > { %1097 = vst.msk [vmem:[#allocation8 + $0x38] sm:$0xff] %vm1025_vm0, %v4171_v41  ;;  %1098 = vst.msk [vmem:[#allocation8 + $0x40] sm:$0xff] %vm1025_vm0, %v4171_v41 }
  0xb1   : > { %3449 = vmatmul.mubr.bf16.gmra.mxu0 %v3720_v35  ;;  %1099 = vst.msk [vmem:[#allocation8 + $0x48] sm:$0xff] %vm1025_vm0, %v4171_v41  ;;  %1100 = vst.msk [vmem:[#allocation8 + $0x50] sm:$0xff] %vm1025_vm0, %v4171_v41 }
  0xb2   : > { %3481 = vmatmul.mubr.bf16.gmra.mxu1 %v3720_v35  ;;  %3452 = vmatprep.mubr.bf16.mxu0 %v3721_v36  ;;  %1101 = vst.msk [vmem:[#allocation8 + $0x58] sm:$0xff] %vm1025_vm0, %v4171_v41  ;;  %1102 = vst.msk [vmem:[#allocation8 + $0x60] sm:$0xff] %vm1025_vm0, %v4171_v41 }
  0xb3   : > { %3484 = vmatprep.mubr.bf16.mxu1 %v3721_v36  ;;  %1103 = vst.msk [vmem:[#allocation8 + $0x68] sm:$0xff] %vm1025_vm0, %v4171_v41  ;;  %1104 = vst.msk [vmem:[#allocation8 + $0x70] sm:$0xff] %vm1025_vm0, %v4171_v41 }
  0xb4   : > { %1105 = vst.msk [vmem:[#allocation8 + $0x78] sm:$0xff] %vm1025_vm0, %v4171_v41 }
  0xb9   : > { %3453 = vmatmul.mubr.bf16.gmra.mxu0 %v3722_v37 }
  0xba   : > { %3485 = vmatmul.mubr.bf16.gmra.mxu1 %v3722_v37  ;;  %3456 = vmatprep.mubr.bf16.mxu0 %v3723_v38 }
  0xbb   : > { %3488 = vmatprep.mubr.bf16.mxu1 %v3723_v38 }
  0xc1   : > { %3457 = vmatmul.mubr.bf16.gmra.mxu0 %v3724_v39 }
  0xc2   : > { %3489 = vmatmul.mubr.bf16.gmra.mxu1 %v3724_v39 }
 0x169   : > { %v3446_v42 = vpop.f32.mrf.mxu0 }
 0x16a   : > { %v3478_v43 = vpop.f32.mrf.mxu1 }
 0x16b   : > { %v641_v44 = vpop.f32.mrf.mxu0 }
 0x16c   : > { %v882_v45 = vpop.f32.mrf.mxu1 }
 0x16d   : > { %v3447_v46 = vpop.f32.mrf.mxu0 }
 0x16e   : > { %v3231_v47 = vpack.c.bf16 %v3447_v46, %v3446_v42  ;;  %v3479_v48 = vpop.f32.mrf.mxu1 }
 0x16f   : > { %v3271_v49 = vpack.c.bf16 %v3479_v48, %v3478_v43  ;;  %v644_v50 = vpop.f32.mrf.mxu0 }
 0x170   : > { %3343 = vst [vmem:[#allocation2 + $0x8] sm:$0xff] %v3231_v47   ;;  %v3226_v51 = vpack.c.bf16 %v644_v50, %v641_v44  ;;  %v885_v52 = vpop.f32.mrf.mxu1 }
 0x171   : > { %3350 = vst [vmem:[#allocation3 + $0x8] sm:$0xff] %v3271_v49   ;;  %v3266_v53 = vpack.c.bf16 %v885_v52, %v882_v45  ;;  %v3450_v54 = vpop.f32.mrf.mxu0 }
 0x172   : > { %3227 = vst [vmem:[#allocation2] sm:$0xff] %v3226_v51   ;;  %v3482_v55 = vpop.f32.mrf.mxu1 }
 0x173   : > { %3267 = vst [vmem:[#allocation3] sm:$0xff] %v3266_v53   ;;  %v657_v56 = vpop.f32.mrf.mxu0 }
 0x174   : > { %v898_v57 = vpop.f32.mrf.mxu1 }
 0x175   : > { %v3451_v58 = vpop.f32.mrf.mxu0 }
 0x176   : > { %v3241_v59 = vpack.c.bf16 %v3451_v58, %v3450_v54  ;;  %v3483_v60 = vpop.f32.mrf.mxu1 }
 0x177   : > { %v3281_v61 = vpack.c.bf16 %v3483_v60, %v3482_v55  ;;  %v660_v62 = vpop.f32.mrf.mxu0 }
 0x178   : > { %3345 = vst [vmem:[#allocation2 + $0x18] sm:$0xff] %v3241_v59   ;;  %v3236_v63 = vpack.c.bf16 %v660_v62, %v657_v56  ;;  %v901_v0 = vpop.f32.mrf.mxu1 }
 0x179   : > { %3352 = vst [vmem:[#allocation3 + $0x18] sm:$0xff] %v3281_v61   ;;  %v3276_v1 = vpack.c.bf16 %v901_v0, %v898_v57  ;;  %v3454_v2 = vpop.f32.mrf.mxu0 }
 0x17a   : > { %3344 = vst [vmem:[#allocation2 + $0x10] sm:$0xff] %v3236_v63   ;;  %v3486_v3 = vpop.f32.mrf.mxu1 }
 0x17b   : > { %3351 = vst [vmem:[#allocation3 + $0x10] sm:$0xff] %v3276_v1   ;;  %v673_v4 = vpop.f32.mrf.mxu0 }
 0x17c   : > { %v914_v5 = vpop.f32.mrf.mxu1 }
 0x17d   : > { %v3455_v6 = vpop.f32.mrf.mxu0 }
 0x17e   : > { %v3251_v7 = vpack.c.bf16 %v3455_v6, %v3454_v2  ;;  %v3487_v8 = vpop.f32.mrf.mxu1 }
 0x17f   : > { %v3291_v9 = vpack.c.bf16 %v3487_v8, %v3486_v3  ;;  %v676_v10 = vpop.f32.mrf.mxu0 }
 0x180   : > { %3347 = vst [vmem:[#allocation2 + $0x28] sm:$0xff] %v3251_v7   ;;  %v3246_v11 = vpack.c.bf16 %v676_v10, %v673_v4  ;;  %v917_v12 = vpop.f32.mrf.mxu1 }
 0x181   : > { %3354 = vst [vmem:[#allocation3 + $0x28] sm:$0xff] %v3291_v9   ;;  %v3286_v13 = vpack.c.bf16 %v917_v12, %v914_v5  ;;  %v3458_v14 = vpop.f32.mrf.mxu0 }
 0x182   : > { %3346 = vst [vmem:[#allocation2 + $0x20] sm:$0xff] %v3246_v11   ;;  %v3490_v15 = vpop.f32.mrf.mxu1 }
 0x183   : > { %3353 = vst [vmem:[#allocation3 + $0x20] sm:$0xff] %v3286_v13   ;;  %v689_v16 = vpop.f32.mrf.mxu0 }
 0x184   : > { %v930_v17 = vpop.f32.mrf.mxu1 }
 0x185   : > { %v3459_v18 = vpop.f32.mrf.mxu0 }
 0x186   : > { %v3261_v19 = vpack.c.bf16 %v3459_v18, %v3458_v14  ;;  %v3491_v20 = vpop.f32.mrf.mxu1 }
 0x187   : > { %v3301_v21 = vpack.c.bf16 %v3491_v20, %v3490_v15  ;;  %v692_v22 = vpop.f32.mrf.mxu0 }
 0x188   : > { %3349 = vst [vmem:[#allocation2 + $0x38] sm:$0xff] %v3261_v19   ;;  %v3256_v23 = vpack.c.bf16 %v692_v22, %v689_v16  ;;  %v933_v24 = vpop.f32.mrf.mxu1 }
 0x189   : > { %3356 = vst [vmem:[#allocation3 + $0x38] sm:$0xff] %v3301_v21   ;;  %v3296_v25 = vpack.c.bf16 %v933_v24, %v930_v17 }
 0x18a   : > { %3348 = vst [vmem:[#allocation2 + $0x30] sm:$0xff] %v3256_v23  }
 0x18b   : > { %3355 = vst [vmem:[#allocation3 + $0x30] sm:$0xff] %v3296_v25  }
 0x18c PF: > { %v3727_v26 = vld [vmem:[%s4442_s0 + $0x38] sm:$0xff]   ;;  %v3728_v27 = vld [vmem:[%s4442_s0 + $0x30] sm:$0xff]   ;;  %v4172_v28 = vmov 0   ;;  %v3729_v29 = vld [vmem:[%s4442_s0 + $0x28] sm:$0xff]   ;;  %s5569_s12 = sld [smem:[#allocation22_spill]]  ;;  %v1492_v12 = vlaneseq }
 0x18d   : > { %3726 = vset.pattern.permute.xlu1 %v4172_v28  ;;  %3725 = vset.pattern.permute.xlu0 %v4172_v28  ;;  %v3730_v30 = vld [vmem:[%s4442_s0 + $0x20] sm:$0xff]   ;;  %v3731_v33 = vld [vmem:[%s4442_s0 + $0x18] sm:$0xff]   ;;  %v3732_v34 = vld [vmem:[%s4442_s0 + $0x10] sm:$0xff]  }
 0x18e   : > { %3492 = vmatprep.subr.bf16.mxu0 %v3727_v26  ;;  %3524 = vmatprep.subr.bf16.mxu1 %v3727_v26  ;;  %v3735_v31 = vld [vmem:[#allocation2] sm:$0xff]   ;;  %v3733_v35 = vld [vmem:[%s4442_s0 + $0x8] sm:$0xff]   ;;  %v1627_v37 = vld [vmem:[%s4435_s29 + $0x10] sm:$0xff]  ;;  %v1493_v23 = vand.u32 127, %v1492_v12 }
 0x18f   : > { %3493 = vmatpush3.bf16.msra.mxu0 %v3727_v26  ;;  %3525 = vmatpush3.bf16.msra.mxu1 %v3727_v26  ;;  %v3736_v32 = vld [vmem:[#allocation3] sm:$0xff]   ;;  %v1628_v39 = vld [vmem:[%s4435_s29 + $0x18] sm:$0xff]  ;;  %v1626_v40 = vld [vmem:[%s4435_s29 + $0x8] sm:$0xff] }
 0x190   : > { %3494 = vmatprep.subr.bf16.mxu0 %v3728_v27  ;;  %3526 = vmatprep.subr.bf16.mxu1 %v3728_v27  ;;  %v3734_v36 = vld [vmem:[%s4442_s0] sm:$0xff]   ;;  %v3737_v41 = vld [vmem:[#allocation2 + $0x8] sm:$0xff]   ;;  %v3739_v45 = vld [vmem:[#allocation2 + $0x10] sm:$0xff]  }
 0x191   : > { %3508 = vmatprep.mubr.bf16.mxu0 %v3735_v31  ;;  %3540 = vmatprep.mubr.bf16.mxu1 %v3736_v32  ;;  %v1625_v38 = vld [vmem:[%s4435_s29] sm:$0xff]  ;;  %v3738_v42 = vld [vmem:[#allocation3 + $0x8] sm:$0xff]   ;;  %v3740_v46 = vld [vmem:[#allocation3 + $0x10] sm:$0xff]  }
 0x192   : > { %1648 = vperm.xlu1 %3726, %v1627_v37   ;;  %1642 = vperm.xlu0 %3725, %v1625_v38   ;;  %v1630_v43 = vld [vmem:[%s4435_s29 + $0x28] sm:$0xff]  ;;  %v1629_v44 = vld [vmem:[%s4435_s29 + $0x20] sm:$0xff]  ;;  %v1632_v47 = vld [vmem:[%s4435_s29 + $0x38] sm:$0xff]  ;;  %s3133_s15 = sshll.u32 %s5569_s12, 7  ;;  %p3150_p8 = scmp.ne.s32.totalorder %s5569_s12, 3 }
 0x193   : > { %3495 = vmatpush3.bf16.msra.mxu0 %v3728_v27  ;;  %3527 = vmatpush3.bf16.msra.mxu1 %v3728_v27  ;;  %v1631_v48 = vld [vmem:[%s4435_s29 + $0x30] sm:$0xff]  ;;  %v3741_v49 = vld [vmem:[#allocation2 + $0x18] sm:$0xff]   ;;  %v1634_v51 = vld [vmem:[%s4435_s29 + $0x48] sm:$0xff]  ;;  %v1495_v31 = vstv %s3133_s15 }
 0x194   : > { %3496 = vmatprep.subr.bf16.mxu0 %v3729_v29  ;;  %3528 = vmatprep.subr.bf16.mxu1 %v3729_v29  ;;  %v3742_v50 = vld [vmem:[#allocation3 + $0x18] sm:$0xff]   ;;  %v1633_v52 = vld [vmem:[%s4435_s29 + $0x40] sm:$0xff]  ;;  %v1635_v56 = vld [vmem:[%s4435_s29 + $0x50] sm:$0xff] }
 0x195   : > { %v3743_v53 = vld [vmem:[#allocation2 + $0x20] sm:$0xff]   ;;  %v1636_v55 = vld [vmem:[%s4435_s29 + $0x58] sm:$0xff]  ;;  %v3745_v57 = vld [vmem:[#allocation2 + $0x28] sm:$0xff]  }
 0x196   : > { %1651 = vperm.xlu1 %3726, %v1628_v39   ;;  %1645 = vperm.xlu0 %3725, %v1626_v40   ;;  %v3744_v54 = vld [vmem:[#allocation3 + $0x20] sm:$0xff]   ;;  %v3746_v58 = vld [vmem:[#allocation3 + $0x28] sm:$0xff]   ;;  %v3747_v61 = vld [vmem:[#allocation2 + $0x30] sm:$0xff]  }
 0x197   : > { %3497 = vmatpush3.bf16.msra.mxu0 %v3729_v29  ;;  %3529 = vmatpush3.bf16.msra.mxu1 %v3729_v29  ;;  %v1638_v59 = vld [vmem:[%s4435_s29 + $0x68] sm:$0xff]  ;;  %v1637_v60 = vld [vmem:[%s4435_s29 + $0x60] sm:$0xff]  ;;  %v3748_v62 = vld [vmem:[#allocation3 + $0x30] sm:$0xff]  }
 0x198   : > { %3498 = vmatprep.subr.bf16.mxu0 %v3730_v30  ;;  %3530 = vmatprep.subr.bf16.mxu1 %v3730_v30  ;;  %v1640_v63 = vld [vmem:[%s4435_s29 + $0x78] sm:$0xff]  ;;  %v1639_v0 = vld [vmem:[%s4435_s29 + $0x70] sm:$0xff] }
 0x199   : > { %v3749_v1 = vld [vmem:[#allocation2 + $0x38] sm:$0xff]  }
 0x19a   : > { %1657 = vperm.xlu1 %3726, %v1630_v43   ;;  %1654 = vperm.xlu0 %3725, %v1629_v44   ;;  %v3750_v2 = vld [vmem:[#allocation3 + $0x38] sm:$0xff]  }
 0x19b   : > { %3499 = vmatpush3.bf16.msra.mxu0 %v3730_v30  ;;  %3531 = vmatpush3.bf16.msra.mxu1 %v3730_v30 }
 0x19c   : > { %3500 = vmatprep.subr.bf16.mxu0 %v3731_v33  ;;  %3532 = vmatprep.subr.bf16.mxu1 %v3731_v33 }
 0x19e   : > { %1663 = vperm.xlu1 %3726, %v1632_v47   ;;  %1660 = vperm.xlu0 %3725, %v1631_v48  }
 0x19f   : > { %3501 = vmatpush3.bf16.msra.mxu0 %v3731_v33  ;;  %3533 = vmatpush3.bf16.msra.mxu1 %v3731_v33 }
 0x1a0   : > { %3502 = vmatprep.subr.bf16.mxu0 %v3732_v34  ;;  %3534 = vmatprep.subr.bf16.mxu1 %v3732_v34 }
 0x1a2   : > { %1669 = vperm.xlu1 %3726, %v1634_v51   ;;  %1666 = vperm.xlu0 %3725, %v1633_v52  }
 0x1a3   : > { %3503 = vmatpush3.bf16.msra.mxu0 %v3732_v34  ;;  %3535 = vmatpush3.bf16.msra.mxu1 %v3732_v34 }
 0x1a4   : > { %3504 = vmatprep.subr.bf16.mxu0 %v3733_v35  ;;  %3536 = vmatprep.subr.bf16.mxu1 %v3733_v35 }
 0x1a6   : > { %1675 = vperm.xlu1 %3726, %v1636_v55   ;;  %1672 = vperm.xlu0 %3725, %v1635_v56  }
 0x1a7   : > { %3505 = vmatpush3.bf16.msra.mxu0 %v3733_v35  ;;  %3537 = vmatpush3.bf16.msra.mxu1 %v3733_v35 }
 0x1a8   : > { %3506 = vmatprep.subr.bf16.mxu0 %v3734_v36  ;;  %3538 = vmatprep.subr.bf16.mxu1 %v3734_v36 }
 0x1aa   : > { %1681 = vperm.xlu1 %3726, %v1638_v59   ;;  %1678 = vperm.xlu0 %3725, %v1637_v60  }
 0x1ab   : > { %3507 = vmatpush3.bf16.msra.mxu0 %v3734_v36  ;;  %3539 = vmatpush3.bf16.msra.mxu1 %v3734_v36 }
 0x1ae   : > { %3509 = vmatmul.mubr.bf16.vlgmr.msra.gmra.mxu0 %v3737_v41  ;;  %3541 = vmatmul.mubr.bf16.vlgmr.msra.gmra.mxu1 %v3738_v42  ;;  %v4627_v41 = vadd.s32 %v1495_v31, %v1493_v23 }
 0x1af   : > { %3512 = vmatprep.mubr.bf16.mxu0 %v3739_v45  ;;  %3544 = vmatprep.mubr.bf16.mxu1 %v3740_v46 }
 0x1b0   : > { %1687 = vperm.xlu1 %3726, %v1640_v63   ;;  %1684 = vperm.xlu0 %3725, %v1639_v0  }
 0x1b6   : > { %3513 = vmatmul.mubr.bf16.gmra.mxu0 %v3741_v49  ;;  %3545 = vmatmul.mubr.bf16.gmra.mxu1 %v3742_v50 }
 0x1b7   : > { %3516 = vmatprep.mubr.bf16.mxu0 %v3743_v53  ;;  %3548 = vmatprep.mubr.bf16.mxu1 %v3744_v54 }
 0x1be   : > { %3517 = vmatmul.mubr.bf16.gmra.mxu0 %v3745_v57  ;;  %3549 = vmatmul.mubr.bf16.gmra.mxu1 %v3746_v58 }
 0x1bf   : > { %3520 = vmatprep.mubr.bf16.mxu0 %v3747_v61  ;;  %3552 = vmatprep.mubr.bf16.mxu1 %v3748_v62 }
 0x1c6   : > { %3521 = vmatmul.mubr.bf16.gmra.mxu0 %v3749_v1  ;;  %3553 = vmatmul.mubr.bf16.gmra.mxu1 %v3750_v2 }
 0x20d   : > { %v4559_v3 = vpop.permute.xlu1 %1648  ;;  %v4596_v24 = vpop.permute.xlu0 %1642 }
 0x20e   : > { %vm1691_vm1 = vcmp.eq.s32.totalorder %v4627_v41, %v4559_v3  ;;  %vm1689_vm2 = vcmp.eq.s32.totalorder %v4627_v41, %v4596_v24 }
 0x211   : > { %v4579_v13 = vpop.permute.xlu1 %1651  ;;  %v1646_v46 = vpop.permute.xlu0 %1645 }
 0x212   : > { %vm1692_vm3 = vcmp.eq.s32.totalorder %v4627_v41, %v4579_v13  ;;  %vm1690_vm4 = vcmp.eq.s32.totalorder %v4627_v41, %v1646_v46 }
 0x215   : > { %v4610_v32 = vpop.permute.xlu1 %1657  ;;  %v4674_v1 = vpop.permute.xlu0 %1654 }
 0x216   : > { %vm1693_vm7 = vcmp.eq.s32.totalorder %v4627_v41, %v4674_v1  ;;  %vm1694_vm10 = vcmp.eq.s32.totalorder %v4627_v41, %v4610_v32 }
 0x219   : > { %v4645_v52 = vpop.permute.xlu1 %1663 }
 0x21a   : > { %vm1696_vm8 = vcmp.eq.s32.totalorder %v4627_v41, %v4645_v52 }
 0x26e   : > { %v4561_v4 = vpop.f32.mrf.mxu0  ;;  %v4563_v5 = vpop.f32.mrf.mxu1 }
 0x26f   : > { %v1499_v6 = vsub.f32 %v4563_v5, %v4561_v4  ;;  %2174 = vmax.xlane.f32.xlu0 %v4563_v5  ;;  %1822 = vmax.xlane.f32.xlu1 %v4561_v4 }
 0x270   : > { %v4569_v7 = vpop.f32.mrf.mxu0  ;;  %v4571_v8 = vpop.f32.mrf.mxu1 }
 0x271   : > { %v1497_v9 = vsub.f32 %v4571_v8, %v4569_v7  ;;  %v1515_v14 = vmul.f32 0.2, %v1499_v6 }
 0x272   : > { %v4575_v10 = vpop.f32.mrf.mxu0  ;;  %v4577_v11 = vpop.f32.mrf.mxu1 }
 0x273   : > { %v1500_v15 = vsub.f32 %v4577_v11, %v4575_v10  ;;  %2170 = vmax.xlane.f32.xlu0 %v4571_v8  ;;  %1818 = vmax.xlane.f32.xlu1 %v4569_v7  ;;  %v1513_v20 = vmul.f32 0.2, %v1497_v9  ;;  %v1531_v27 = vadd.f32 %v4561_v4, %v1515_v14  ;;  %v4688_v14 = vpop.permute.xlu1 %1669 }
 0x274   : > { %v4585_v16 = vpop.f32.mrf.mxu0  ;;  %v4587_v17 = vpop.f32.mrf.mxu1  ;;  %vm1698_vm15 = vcmp.eq.s32.totalorder %v4627_v41, %v4688_v14 }
 0x275   : > { %v1516_v18 = vmul.f32 0.2, %v1500_v15  ;;  %v1498_v19 = vsub.f32 %v4587_v17, %v4585_v16  ;;  %v1529_v38 = vadd.f32 %v1513_v20, %v4569_v7  ;;  %v1723_v63 = vsel %vm1691_vm1, %v1531_v27, 0.0 }
 0x276   : > { %v4592_v21 = vpop.f32.mrf.mxu0  ;;  %v4594_v22 = vpop.f32.mrf.mxu1  ;;  %vm1785_vm1 = vcmask 7168  }
 0x277   : > { %v1514_v25 = vmul.f32 0.2, %v1498_v19  ;;  %v1503_v26 = vsub.f32 %v4594_v22, %v4592_v21  ;;  %2172 = vmax.xlane.f32.xlu1 %v4587_v17  ;;  %1824 = vmax.xlane.f32.xlu0 %v4575_v10  ;;  %v4604_v28 = vadd.f32 %v4575_v10, %v1516_v18  ;;  %v1721_v24 = vsel %vm1689_vm2, %v1529_v38, 0.0 }
 0x278   : > { %v4606_v29 = vpop.f32.mrf.mxu0  ;;  %v4608_v30 = vpop.f32.mrf.mxu1 }
 0x279   : > { %v1519_v33 = vmul.f32 0.2, %v1503_v26  ;;  %v1501_v34 = vsub.f32 %v4608_v30, %v4606_v29  ;;  %v3311_v35 = vpack.c.bf16 %v4604_v28, %v1531_v27  ;;  %v4621_v39 = vadd.f32 %v1514_v25, %v4585_v16 }
 0x27a   : > { %v4615_v36 = vpop.f32.mrf.mxu0  ;;  %v4617_v37 = vpop.f32.mrf.mxu1 }
 0x27b   : > { %v1504_v40 = vsub.f32 %v4617_v37, %v4615_v36  ;;  %2176 = vmax.xlane.f32.xlu0 %v4577_v11  ;;  %1830 = vmax.xlane.f32.xlu1 %v4592_v21  ;;  %3357 = vst [vmem:[%s4444_s24 + $0x8] sm:$0xff] %v3311_v35   ;;  %v1517_v42 = vmul.f32 0.2, %v1501_v34  ;;  %v3306_v45 = vpack.c.bf16 %v4621_v39, %v1529_v38  ;;  %v1661_v35 = vpop.permute.xlu0 %1660 }
 0x27c   : > { %v4630_v43 = vpop.f32.mrf.mxu0  ;;  %v4632_v44 = vpop.f32.mrf.mxu1  ;;  %v4638_v49 = vadd.f32 %v4592_v21, %v1519_v33  ;;  %vm1695_vm5 = vcmp.eq.s32.totalorder %v4627_v41, %v1661_v35 }
 0x27d   : > { %v1520_v47 = vmul.f32 0.2, %v1504_v40  ;;  %v1502_v48 = vsub.f32 %v4632_v44, %v4630_v43  ;;  %3307 = vst [vmem:[%s4444_s24] sm:$0xff] %v3306_v45   ;;  %v4661_v58 = vadd.f32 %v1517_v42, %v4606_v29 }
 0x27e   : > { %v4640_v50 = vpop.f32.mrf.mxu0  ;;  %v4642_v51 = vpop.f32.mrf.mxu1 }
 0x27f   : > { %v1518_v53 = vmul.f32 0.2, %v1502_v48  ;;  %v1507_v54 = vsub.f32 %v4642_v51, %v4640_v50  ;;  %1820 = vmax.xlane.f32.xlu0 %v4585_v16  ;;  %2182 = vmax.xlane.f32.xlu1 %v4594_v22  ;;  %v4654_v55 = vadd.f32 %v4615_v36, %v1520_v47  ;;  %v1724_v47 = vsel %vm1692_vm3, %v4604_v28, 0.0 }
 0x280   : > { %v4656_v56 = vpop.f32.mrf.mxu0  ;;  %v4658_v57 = vpop.f32.mrf.mxu1  ;;  %v1722_v48 = vsel %vm1690_vm4, %v4621_v39, 0.0 }
 0x281   : > { %v3321_v59 = vpack.c.bf16 %v4654_v55, %v4638_v49  ;;  %v1505_v60 = vsub.f32 %v4658_v57, %v4656_v56  ;;  %v4672_v0 = vadd.f32 %v1518_v53, %v4630_v43  ;;  %v1523_v2 = vmul.f32 0.2, %v1507_v54 }
 0x282   : > { %v4667_v61 = vpop.f32.mrf.mxu0  ;;  %v4669_v62 = vpop.f32.mrf.mxu1 }
 0x283   : > { %v1508_v3 = vsub.f32 %v4669_v62, %v4667_v61  ;;  %1741 = vadd.xlane.f32.xlu0 %v1723_v63  ;;  %1826 = vmax.xlane.f32.xlu1 %v4606_v29  ;;  %3359 = vst [vmem:[%s4444_s24 + $0x18] sm:$0xff] %v3321_v59   ;;  %v3316_v12 = vpack.c.bf16 %v4672_v0, %v4661_v58  ;;  %v1521_v19 = vmul.f32 0.2, %v1505_v60  ;;  %v1676_v59 = vpop.permute.xlu1 %1675  ;;  %v1726_v52 = vsel %vm1694_vm10, %v4672_v0, 0.0 }
 0x284   : > { %v4682_v6 = vpop.f32.mrf.mxu0  ;;  %v4684_v9 = vpop.f32.mrf.mxu1  ;;  %v1539_v27 = vadd.f32 %v4640_v50, %v1523_v2  ;;  %vm1700_vm12 = vcmp.eq.s32.totalorder %v4627_v41, %v1676_v59 }
 0x285   : > { %v1524_v15 = vmul.f32 0.2, %v1508_v3  ;;  %v1506_v18 = vsub.f32 %v4684_v9, %v4682_v6  ;;  %3358 = vst [vmem:[%s4444_s24 + $0x10] sm:$0xff] %v3316_v12   ;;  %v1537_v53 = vadd.f32 %v1521_v19, %v4656_v56  ;;  %v1727_v12 = vsel %vm1695_vm5, %v4638_v49, 0.0 }
 0x286   : > { %v4692_v20 = vpop.f32.mrf.mxu0  ;;  %v4694_v23 = vpop.f32.mrf.mxu1 }
 0x287   : > { %v1522_v25 = vmul.f32 0.2, %v1506_v18  ;;  %v1511_v26 = vsub.f32 %v4694_v23, %v4692_v20  ;;  %1737 = vadd.xlane.f32.xlu0 %v1721_v24  ;;  %2178 = vmax.xlane.f32.xlu1 %v4608_v30  ;;  %v4705_v31 = vadd.f32 %v4667_v61, %v1524_v15  ;;  %v1682_v24 = vpop.permute.xlu1 %1681 }
 0x288   : > { %v4707_v33 = vpop.f32.mrf.mxu0  ;;  %v4709_v34 = vpop.f32.mrf.mxu1  ;;  %vm1702_vm6 = vcmp.eq.s32.totalorder %v4627_v41, %v1682_v24 }
 0x289   : > { %v1509_v38 = vsub.f32 %v4709_v34, %v4707_v33  ;;  %v3331_v40 = vpack.c.bf16 %v4705_v31, %v1539_v27  ;;  %v4727_v54 = vadd.f32 %v1522_v25, %v4682_v6  ;;  %v1527_v60 = vmul.f32 0.2, %v1511_v26 }
 0x28a   : > { %v4714_v42 = vpop.f32.mrf.mxu0  ;;  %v4716_v45 = vpop.f32.mrf.mxu1  ;;  %v1732_v32 = vsel %vm1700_vm12, %v4705_v31, 0.0 }
 0x28b   : > { %v1512_v63 = vsub.f32 %v4716_v45, %v4714_v42  ;;  %1743 = vadd.xlane.f32.xlu0 %v1724_v47  ;;  %1739 = vadd.xlane.f32.xlu1 %v1722_v48  ;;  %3361 = vst [vmem:[%s4444_s24 + $0x28] sm:$0xff] %v3331_v40   ;;  %v3326_v39 = vpack.c.bf16 %v4727_v54, %v1537_v53  ;;  %v1525_v46 = vmul.f32 0.2, %v1509_v38  ;;  %v1725_v40 = vsel %vm1693_vm7, %v4661_v58, 0.0  ;;  %v1667_v47 = vpop.permute.xlu0 %1666  ;;  %v1688_v59 = vpop.permute.xlu1 %1687 }
 0x28c   : > { %v4733_v13 = vpop.f32.mrf.mxu0  ;;  %v4735_v28 = vpop.f32.mrf.mxu1  ;;  %v1543_v18 = vadd.f32 %v4692_v20, %v1527_v60  ;;  %v1728_v48 = vsel %vm1696_vm8, %v4654_v55, 0.0  ;;  %vm1697_vm11 = vcmp.eq.s32.totalorder %v4627_v41, %v1667_v47  ;;  %vm1704_vm0 = vcmp.eq.s32.totalorder %v4627_v41, %v1688_v59  ;;  %v4857_v59 = vld [vmem:[#allocation4 + $0x8] sm:$0xff] }
 0x28d   : > { %v1528_v2 = vmul.f32 0.2, %v1512_v63  ;;  %v1510_v3 = vsub.f32 %v4735_v28, %v4733_v13  ;;  %3360 = vst [vmem:[%s4444_s24 + $0x20] sm:$0xff] %v3326_v39   ;;  %v1541_v25 = vadd.f32 %v1525_v46, %v4707_v33  ;;  %v1729_v55 = vsel %vm1697_vm11, %v1537_v53, 0.0  ;;  %v4788_v39 = vld [vmem:[#allocation6 + $0x10] sm:$0xff] }
 0x28e   : > { %v1730_v53 = vsel %vm1698_vm15, %v4727_v54, 0.0  ;;  %v4790_v46 = vld [vmem:[#allocation4 + $0x10] sm:$0xff] }
 0x28f   : > { %v1526_v15 = vmul.f32 0.2, %v1510_v3  ;;  %1749 = vadd.xlane.f32.xlu1 %v1727_v12  ;;  %1832 = vmax.xlane.f32.xlu0 %v4615_v36  ;;  %v1544_v19 = vadd.f32 %v4714_v42, %v1528_v2  ;;  %v1673_v60 = vpop.permute.xlu0 %1672  ;;  %v4798_v12 = vld [vmem:[#allocation6] sm:$0xff] }
 0x290   : > { %vm1699_vm9 = vcmp.eq.s32.totalorder %v4627_v41, %v1673_v60 }
 0x291   : > { %v3341_v26 = vpack.c.bf16 %v1544_v19, %v1543_v18  ;;  %v1542_v35 = vadd.f32 %v1526_v15, %v4733_v13  ;;  %v1731_v58 = vsel %vm1699_vm9, %v1539_v27, 0.0  ;;  %v1736_v63 = vsel %vm1704_vm0, %v1544_v19, 0.0  ;;  %v4800_v15 = vld [vmem:[#allocation4] sm:$0xff] }
 0x293   : > { %2184 = vmax.xlane.f32.xlu0 %v4617_v37  ;;  %1838 = vmax.xlane.f32.xlu1 %v4640_v50  ;;  %3363 = vst [vmem:[%s4444_s24 + $0x38] sm:$0xff] %v3341_v26   ;;  %v1734_v49 = vsel %vm1702_vm6, %v1542_v35, 0.0  ;;  %v3336_v38 = vpack.c.bf16 %v1542_v35, %v1541_v25  ;;  %v1679_v1 = vpop.permute.xlu0 %1678  ;;  %v4818_v35 = vld [vmem:[#allocation6 + $0x8] sm:$0xff] }
 0x294   : > { %vm1701_vm14 = vcmp.eq.s32.totalorder %v4627_v41, %v1679_v1  ;;  %v1705_v1 = vld [vmem:[#allocation8] sm:$0xff] }
 0x295   : > { %3362 = vst [vmem:[%s4444_s24 + $0x30] sm:$0xff] %v3336_v38   ;;  %v1733_v31 = vsel %vm1701_vm14, %v1541_v25, 0.0  ;;  %v4891_v38 = vld [vmem:[#allocation6 + $0x20] sm:$0xff] }
 0x296   : > { %5575 = vst [vmem:[#allocation36_spill] sm:$0xff] %v4891_v38 }
 0x297   : > { %1828 = vmax.xlane.f32.xlu0 %v4630_v43  ;;  %2190 = vmax.xlane.f32.xlu1 %v4642_v51  ;;  %v1685_v0 = vpop.permute.xlu0 %1684 }
 0x298   : > { %vm1703_vm13 = vcmp.eq.s32.totalorder %v4627_v41, %v1685_v0 }
 0x299   : > { %v1735_v27 = vsel %vm1703_vm13, %v1543_v18, 0.0 }
 0x29b   : > { %2180 = vmax.xlane.f32.xlu0 %v4632_v44  ;;  %1745 = vadd.xlane.f32.xlu1 %v1725_v40 }
 0x29f   : > { %1751 = vadd.xlane.f32.xlu0 %v1728_v48  ;;  %1834 = vmax.xlane.f32.xlu1 %v4656_v56 }
 0x2a3   : > { %2186 = vmax.xlane.f32.xlu1 %v4658_v57  ;;  %1840 = vmax.xlane.f32.xlu0 %v4667_v61 }
 0x2a7   : > { %1757 = vadd.xlane.f32.xlu1 %v1731_v58  ;;  %2192 = vmax.xlane.f32.xlu0 %v4669_v62 }
 0x2ab   : > { %1747 = vadd.xlane.f32.xlu0 %v1726_v52  ;;  %1846 = vmax.xlane.f32.xlu1 %v4692_v20  ;;  %v4838_v52 = vld [vmem:[#allocation6 + $0x18] sm:$0xff] }
 0x2af   : > { %1836 = vmax.xlane.f32.xlu0 %v4682_v6  ;;  %2198 = vmax.xlane.f32.xlu1 %v4694_v23 }
 0x2b3   : > { %2188 = vmax.xlane.f32.xlu0 %v4684_v9  ;;  %1753 = vadd.xlane.f32.xlu1 %v1729_v55  ;;  %v4840_v55 = vld [vmem:[#allocation4 + $0x30] sm:$0xff] }
 0x2b4   : > { %5570 = vst [vmem:[#allocation31_spill] sm:$0xff] %v4840_v55 }
 0x2b7   : > { %1759 = vadd.xlane.f32.xlu0 %v1732_v32  ;;  %1842 = vmax.xlane.f32.xlu1 %v4707_v33 }
 0x2bb   : > { %2194 = vmax.xlane.f32.xlu1 %v4709_v34  ;;  %1848 = vmax.xlane.f32.xlu0 %v4714_v42 }
 0x2bf   : > { %1765 = vadd.xlane.f32.xlu1 %v1735_v27  ;;  %2200 = vmax.xlane.f32.xlu0 %v4716_v45 }
 0x2c3   : > { %1761 = vadd.xlane.f32.xlu1 %v1733_v31  ;;  %1755 = vadd.xlane.f32.xlu0 %v1730_v53 }
 0x2c7   : > { %1844 = vmax.xlane.f32.xlu0 %v4733_v13 }
 0x2cb   : > { %2196 = vmax.xlane.f32.xlu0 %v4735_v28 }
 0x2cf   : > { %1767 = vadd.xlane.f32.xlu0 %v1736_v63  ;;  %v4859_v63 = vld [vmem:[#allocation6 + $0x30] sm:$0xff] }
 0x2d0   : > { %5572 = vst [vmem:[#allocation33_spill] sm:$0xff] %v4859_v63 }
 0x2d3   : > { %1763 = vadd.xlane.f32.xlu0 %v1734_v49  ;;  %v4820_v49 = vld [vmem:[#allocation4 + $0x18] sm:$0xff] }
 0x2f8   : > { %v2175_v14 = vpop.xlane.xlu0 %2174  ;;  %v1823_v2 = vpop.xlane.xlu1 %1822 }
 0x2f9   : > { %v4793_v54 = vmax.f32 %v4788_v39, %v2175_v14  ;;  %v4796_v3 = vmax.f32 %v4790_v46, %v1823_v2 }
 0x2fb   : > { %2492 = vst.msk [vmem:[#allocation6 + $0x10] sm:$0xff] %vm1785_vm1, %v4793_v54  ;;  %2140 = vst.msk [vmem:[#allocation4 + $0x10] sm:$0xff] %vm1785_vm1, %v4796_v3  ;;  %1958 = vperm.xlu1 %3726, %v4796_v3   ;;  %2310 = vperm.xlu0 %3725, %v4793_v54  }
 0x2fc   : > { %v2171_v19 = vpop.xlane.xlu0 %2170  ;;  %v1819_v24 = vpop.xlane.xlu1 %1818 }
 0x2fd   : > { %v4813_v25 = vmax.f32 %v4798_v12, %v2171_v19  ;;  %v4816_v26 = vmax.f32 %v4800_v15, %v1819_v24 }
 0x2ff   : > { %2490 = vst.msk [vmem:[#allocation6] sm:$0xff] %vm1785_vm1, %v4813_v25  ;;  %2138 = vst.msk [vmem:[#allocation4] sm:$0xff] %vm1785_vm1, %v4816_v26  ;;  %1948 = vperm.xlu1 %3726, %v4816_v26   ;;  %2300 = vperm.xlu0 %3725, %v4813_v25  }
 0x300   : > { %v2173_v47 = vpop.xlane.xlu1 %2172  ;;  %v1825_v48 = vpop.xlane.xlu0 %1824 }
 0x301   : > { %v4833_v60 = vmax.f32 %v4818_v35, %v2173_v47  ;;  %v4836_v58 = vmax.f32 %v4820_v49, %v1825_v48 }
 0x303   : > { %2491 = vst.msk [vmem:[#allocation6 + $0x8] sm:$0xff] %vm1785_vm1, %v4833_v60  ;;  %2141 = vst.msk [vmem:[#allocation4 + $0x18] sm:$0xff] %vm1785_vm1, %v4836_v58  ;;  %1963 = vperm.xlu1 %3726, %v4836_v58  }
 0x304   : > { %v2177_v0 = vpop.xlane.xlu0 %2176  ;;  %v1831_v27 = vpop.xlane.xlu1 %1830 }
 0x305   : > { %v4852_v31 = vmax.f32 %v4838_v52, %v2177_v0  ;;  %v4855_v53 = vmax.f32 %v4840_v55, %v1831_v27  ;;  %v1707_v0 = vld [vmem:[#allocation8 + $0x10] sm:$0xff]  ;;  %v4876_v27 = vld [vmem:[#allocation4 + $0x20] sm:$0xff] }
 0x306   : > { %5574 = vst [vmem:[#allocation35_spill] sm:$0xff] %v4876_v27  ;;  %v4918_v55 = vld [vmem:[#allocation4 + $0x50] sm:$0xff] }
 0x307   : > { %5571 = vst [vmem:[#allocation32_spill] sm:$0xff] %v4855_v53  ;;  %2493 = vst.msk [vmem:[#allocation6 + $0x18] sm:$0xff] %vm1785_vm1, %v4852_v31  ;;  %2315 = vperm.xlu1 %3726, %v4852_v31  }
 0x308   : > { %2144 = vst.msk [vmem:[#allocation4 + $0x30] sm:$0xff] %vm1785_vm1, %v4855_v53  ;;  %v1821_v19 = vpop.xlane.xlu0 %1820  ;;  %v2183_v24 = vpop.xlane.xlu1 %2182  ;;  %5580 = vst [vmem:[#allocation41_spill] sm:$0xff] %v4918_v55 }
 0x309   : > { %v4871_v47 = vmax.f32 %v4857_v59, %v1821_v19  ;;  %v4874_v48 = vmax.f32 %v4859_v63, %v2183_v24 }
 0x30b   : > { %5573 = vst [vmem:[#allocation34_spill] sm:$0xff] %v4874_v48  ;;  %2139 = vst.msk [vmem:[#allocation4 + $0x8] sm:$0xff] %vm1785_vm1, %v4871_v47  ;;  %2305 = vperm.xlu1 %3726, %v4833_v60   ;;  %1953 = vperm.xlu0 %3725, %v4871_v47  }
 0x30c   : > { %2496 = vst.msk [vmem:[#allocation6 + $0x30] sm:$0xff] %vm1785_vm1, %v4874_v48  ;;  %v1742_v19 = vpop.xlane.xlu0 %1741  ;;  %v1827_v24 = vpop.xlane.xlu1 %1826 }
 0x30d   : > { %v1771_v14 = vadd.f32 %v1742_v19, %v1707_v0  ;;  %v4889_v32 = vmax.f32 %v4876_v27, %v1827_v24  ;;  %v1708_v19 = vld [vmem:[#allocation8 + $0x18] sm:$0xff]  ;;  %v1706_v24 = vld [vmem:[#allocation8 + $0x8] sm:$0xff] }
 0x30f   : > { %1788 = vst.msk [vmem:[#allocation8 + $0x10] sm:$0xff] %vm1785_vm1, %v1771_v14  ;;  %2142 = vst.msk [vmem:[#allocation4 + $0x20] sm:$0xff] %vm1785_vm1, %v4889_v32  ;;  %1978 = vperm.xlu0 %3725, %v4855_v53  }
 0x310   : > { %v1738_v40 = vpop.xlane.xlu0 %1737  ;;  %v2179_v41 = vpop.xlane.xlu1 %2178 }
 0x311   : > { %v1769_v18 = vadd.f32 %v1738_v40, %v1705_v1  ;;  %v4900_v0 = vmax.f32 %v4891_v38, %v2179_v41  ;;  %v1711_v40 = vld [vmem:[#allocation8 + $0x30] sm:$0xff]  ;;  %v4908_v1 = vld [vmem:[#allocation4 + $0x38] sm:$0xff] }
 0x312   : > { %5577 = vst [vmem:[#allocation38_spill] sm:$0xff] %v4908_v1 }
 0x313   : > { %5576 = vst [vmem:[#allocation37_spill] sm:$0xff] %v4900_v0  ;;  %1786 = vst.msk [vmem:[#allocation8] sm:$0xff] %vm1785_vm1, %v1769_v18  ;;  %2330 = vperm.xlu0 %3725, %v4874_v48   ;;  %v4916_v48 = vld [vmem:[#allocation6 + $0x38] sm:$0xff] }
 0x314   : > { %2494 = vst.msk [vmem:[#allocation6 + $0x20] sm:$0xff] %vm1785_vm1, %v4900_v0  ;;  %v1744_v2 = vpop.xlane.xlu0 %1743  ;;  %v1740_v27 = vpop.xlane.xlu1 %1739  ;;  %5579 = vst [vmem:[#allocation40_spill] sm:$0xff] %v4916_v48 }
 0x315   : > { %v1772_v63 = vadd.f32 %v1744_v2, %v1708_v19  ;;  %v1770_v53 = vadd.f32 %v1740_v27, %v1706_v24  ;;  %v4933_v24 = vld [vmem:[#allocation4 + $0x28] sm:$0xff] }
 0x316   : > { %5583 = vst [vmem:[#allocation44_spill] sm:$0xff] %v4933_v24  ;;  %v4953_v2 = vld [vmem:[#allocation6 + $0x28] sm:$0xff] }
 0x317   : > { %1789 = vst.msk [vmem:[#allocation8 + $0x18] sm:$0xff] %vm1785_vm1, %v1772_v63  ;;  %1787 = vst.msk [vmem:[#allocation8 + $0x8] sm:$0xff] %vm1785_vm1, %v1770_v53  ;;  %1968 = vperm.xlu0 %3725, %v4889_v32  }
 0x318   : > { %v1750_v41 = vpop.xlane.xlu1 %1749  ;;  %v1833_v18 = vpop.xlane.xlu0 %1832  ;;  %5587 = vst [vmem:[#allocation48_spill] sm:$0xff] %v4953_v2 }
 0x319   : > { %v1775_v14 = vadd.f32 %v1750_v41, %v1711_v40  ;;  %v4914_v38 = vmax.f32 %v4908_v1, %v1833_v18  ;;  %v1712_v41 = vld [vmem:[#allocation8 + $0x38] sm:$0xff] }
 0x31b   : > { %5578 = vst [vmem:[#allocation39_spill] sm:$0xff] %v4914_v38  ;;  %1792 = vst.msk [vmem:[#allocation8 + $0x30] sm:$0xff] %vm1785_vm1, %v1775_v14  ;;  %1983 = vperm.xlu1 %3726, %v4914_v38   ;;  %2320 = vperm.xlu0 %3725, %v4900_v0   ;;  %v4935_v14 = vld [vmem:[#allocation6 + $0x50] sm:$0xff] }
 0x31c   : > { %2145 = vst.msk [vmem:[#allocation4 + $0x38] sm:$0xff] %vm1785_vm1, %v4914_v38  ;;  %v2185_v53 = vpop.xlane.xlu0 %2184  ;;  %v1839_v63 = vpop.xlane.xlu1 %1838  ;;  %5584 = vst [vmem:[#allocation45_spill] sm:$0xff] %v4935_v14 }
 0x31d   : > { %v4928_v27 = vmax.f32 %v4916_v48, %v2185_v53  ;;  %v4931_v19 = vmax.f32 %v4918_v55, %v1839_v63  ;;  %v1709_v48 = vld [vmem:[#allocation8 + $0x20] sm:$0xff] }
 0x31f   : > { %5581 = vst [vmem:[#allocation42_spill] sm:$0xff] %v4928_v27  ;;  %5582 = vst [vmem:[#allocation43_spill] sm:$0xff] %v4931_v19  ;;  %2335 = vperm.xlu1 %3726, %v4928_v27   ;;  %1998 = vperm.xlu0 %3725, %v4931_v19  }
 0x320   : > { %2497 = vst.msk [vmem:[#allocation6 + $0x38] sm:$0xff] %vm1785_vm1, %v4928_v27  ;;  %2148 = vst.msk [vmem:[#allocation4 + $0x50] sm:$0xff] %vm1785_vm1, %v4931_v19  ;;  %v1829_v18 = vpop.xlane.xlu0 %1828  ;;  %v2191_v53 = vpop.xlane.xlu1 %2190 }
 0x321   : > { %v4948_v63 = vmax.f32 %v4933_v24, %v1829_v18  ;;  %v4951_v40 = vmax.f32 %v4935_v14, %v2191_v53  ;;  %v4968_v24 = vld [vmem:[#allocation4 + $0x40] sm:$0xff] }
 0x322   : > { %5589 = vst [vmem:[#allocation50_spill] sm:$0xff] %v4968_v24 }
 0x323   : > { %5585 = vst [vmem:[#allocation46_spill] sm:$0xff] %v4948_v63  ;;  %5586 = vst [vmem:[#allocation47_spill] sm:$0xff] %v4951_v40  ;;  %1973 = vperm.xlu1 %3726, %v4948_v63   ;;  %2350 = vperm.xlu0 %3725, %v4951_v40  }
 0x324   : > { %2143 = vst.msk [vmem:[#allocation4 + $0x28] sm:$0xff] %vm1785_vm1, %v4948_v63  ;;  %2500 = vst.msk [vmem:[#allocation6 + $0x50] sm:$0xff] %vm1785_vm1, %v4951_v40  ;;  %v2181_v18 = vpop.xlane.xlu0 %2180  ;;  %v1746_v53 = vpop.xlane.xlu1 %1745 }
 0x325   : > { %v4966_v55 = vmax.f32 %v4953_v2, %v2181_v18  ;;  %v1773_v27 = vadd.f32 %v1746_v53, %v1709_v48  ;;  %v4979_v48 = vld [vmem:[#allocation6 + $0x40] sm:$0xff]  ;;  %v4981_v53 = vld [vmem:[#allocation4 + $0x58] sm:$0xff] }
 0x326   : > { %5591 = vst [vmem:[#allocation52_spill] sm:$0xff] %v4979_v48  ;;  %5592 = vst [vmem:[#allocation53_spill] sm:$0xff] %v4981_v53  ;;  %v4995_v2 = vld [vmem:[#allocation6 + $0x58] sm:$0xff] }
 0x327   : > { %5588 = vst [vmem:[#allocation49_spill] sm:$0xff] %v4966_v55  ;;  %2495 = vst.msk [vmem:[#allocation6 + $0x28] sm:$0xff] %vm1785_vm1, %v4966_v55  ;;  %2325 = vperm.xlu1 %3726, %v4966_v55  }
 0x328   : > { %1790 = vst.msk [vmem:[#allocation8 + $0x20] sm:$0xff] %vm1785_vm1, %v1773_v27  ;;  %v1752_v19 = vpop.xlane.xlu0 %1751  ;;  %v1835_v40 = vpop.xlane.xlu1 %1834  ;;  %5595 = vst [vmem:[#allocation56_spill] sm:$0xff] %v4995_v2 }
 0x329   : > { %v1776_v14 = vadd.f32 %v1752_v19, %v1712_v41  ;;  %v4977_v18 = vmax.f32 %v4968_v24, %v1835_v40  ;;  %v1715_v41 = vld [vmem:[#allocation8 + $0x50] sm:$0xff] }
 0x32b   : > { %5590 = vst [vmem:[#allocation51_spill] sm:$0xff] %v4977_v18  ;;  %1793 = vst.msk [vmem:[#allocation8 + $0x38] sm:$0xff] %vm1785_vm1, %v1776_v14  ;;  %1988 = vperm.xlu0 %3725, %v4977_v18   ;;  %v1710_v14 = vld [vmem:[#allocation8 + $0x28] sm:$0xff] }
 0x32c   : > { %2146 = vst.msk [vmem:[#allocation4 + $0x40] sm:$0xff] %vm1785_vm1, %v4977_v18  ;;  %v2187_v27 = vpop.xlane.xlu1 %2186  ;;  %v1841_v55 = vpop.xlane.xlu0 %1840 }
 0x32d   : > { %v4990_v19 = vmax.f32 %v4979_v48, %v2187_v27  ;;  %v4993_v40 = vmax.f32 %v4981_v53, %v1841_v55  ;;  %v5010_v48 = vld [vmem:[#allocation4 + $0x70] sm:$0xff] }
 0x32e   : > { %5597 = vst [vmem:[#allocation58_spill] sm:$0xff] %v5010_v48 }
 0x32f   : > { %5593 = vst [vmem:[#allocation54_spill] sm:$0xff] %v4990_v19  ;;  %5594 = vst [vmem:[#allocation55_spill] sm:$0xff] %v4993_v40  ;;  %2003 = vperm.xlu1 %3726, %v4993_v40   ;;  %2340 = vperm.xlu0 %3725, %v4990_v19  }
 0x330   : > { %2498 = vst.msk [vmem:[#allocation6 + $0x40] sm:$0xff] %vm1785_vm1, %v4990_v19  ;;  %2149 = vst.msk [vmem:[#allocation4 + $0x58] sm:$0xff] %vm1785_vm1, %v4993_v40  ;;  %v1758_v55 = vpop.xlane.xlu1 %1757  ;;  %v2193_v27 = vpop.xlane.xlu0 %2192 }
 0x331   : > { %v1779_v18 = vadd.f32 %v1758_v55, %v1715_v41  ;;  %v5008_v24 = vmax.f32 %v4995_v2, %v2193_v27  ;;  %v5021_v55 = vld [vmem:[#allocation4 + $0x48] sm:$0xff]  ;;  %v5023_v27 = vld [vmem:[#allocation6 + $0x70] sm:$0xff] }
 0x332   : > { %5599 = vst [vmem:[#allocation60_spill] sm:$0xff] %v5021_v55  ;;  %5600 = vst [vmem:[#allocation61_spill] sm:$0xff] %v5023_v27 }
 0x333   : > { %5596 = vst [vmem:[#allocation57_spill] sm:$0xff] %v5008_v24  ;;  %1796 = vst.msk [vmem:[#allocation8 + $0x50] sm:$0xff] %vm1785_vm1, %v1779_v18  ;;  %2355 = vperm.xlu1 %3726, %v5008_v24  }
 0x334   : > { %2501 = vst.msk [vmem:[#allocation6 + $0x58] sm:$0xff] %vm1785_vm1, %v5008_v24  ;;  %v1748_v19 = vpop.xlane.xlu0 %1747  ;;  %v1847_v40 = vpop.xlane.xlu1 %1846 }
 0x335   : > { %v1774_v53 = vadd.f32 %v1748_v19, %v1710_v14  ;;  %v5019_v41 = vmax.f32 %v5010_v48, %v1847_v40  ;;  %v5036_v40 = vld [vmem:[#allocation6 + $0x48] sm:$0xff]  ;;  %v1713_v14 = vld [vmem:[#allocation8 + $0x40] sm:$0xff] }
 0x336   : > { %5603 = vst [vmem:[#allocation64_spill] sm:$0xff] %v5036_v40 }
 0x337   : > { %5598 = vst [vmem:[#allocation59_spill] sm:$0xff] %v5019_v41  ;;  %1791 = vst.msk [vmem:[#allocation8 + $0x28] sm:$0xff] %vm1785_vm1, %v1774_v53  ;;  %v1716_v53 = vld [vmem:[#allocation8 + $0x58] sm:$0xff] }
 0x338   : > { %2152 = vst.msk [vmem:[#allocation4 + $0x70] sm:$0xff] %vm1785_vm1, %v5019_v41  ;;  %v1837_v0 = vpop.xlane.xlu0 %1836  ;;  %v2199_v24 = vpop.xlane.xlu1 %2198 }
 0x339   : > { %v5031_v2 = vmax.f32 %v5021_v55, %v1837_v0  ;;  %v5034_v19 = vmax.f32 %v5023_v27, %v2199_v24  ;;  %v5051_v55 = vld [vmem:[#allocation4 + $0x60] sm:$0xff] }
 0x33a   : > { %5605 = vst [vmem:[#allocation66_spill] sm:$0xff] %v5051_v55 }
 0x33b   : > { %5601 = vst [vmem:[#allocation62_spill] sm:$0xff] %v5031_v2  ;;  %5602 = vst [vmem:[#allocation63_spill] sm:$0xff] %v5034_v19  ;;  %1993 = vperm.xlu1 %3726, %v5031_v2   ;;  %2370 = vperm.xlu0 %3725, %v5034_v19  }
 0x33c   : > { %2147 = vst.msk [vmem:[#allocation4 + $0x48] sm:$0xff] %vm1785_vm1, %v5031_v2  ;;  %2504 = vst.msk [vmem:[#allocation6 + $0x70] sm:$0xff] %vm1785_vm1, %v5034_v19  ;;  %v2189_v0 = vpop.xlane.xlu0 %2188  ;;  %v1754_v24 = vpop.xlane.xlu1 %1753 }
 0x33d   : > { %v5049_v48 = vmax.f32 %v5036_v40, %v2189_v0  ;;  %v1777_v63 = vadd.f32 %v1754_v24, %v1713_v14  ;;  %v5062_v14 = vld [vmem:[#allocation6 + $0x60] sm:$0xff]  ;;  %v5064_v24 = vld [vmem:[#allocation4 + $0x78] sm:$0xff] }
 0x33e   : > { %5607 = vst [vmem:[#allocation68_spill] sm:$0xff] %v5062_v14  ;;  %5608 = vst [vmem:[#allocation69_spill] sm:$0xff] %v5064_v24  ;;  %v5078_v40 = vld [vmem:[#allocation6 + $0x78] sm:$0xff] }
 0x33f   : > { %5604 = vst [vmem:[#allocation65_spill] sm:$0xff] %v5049_v48  ;;  %2499 = vst.msk [vmem:[#allocation6 + $0x48] sm:$0xff] %vm1785_vm1, %v5049_v48  ;;  %2345 = vperm.xlu1 %3726, %v5049_v48  }
 0x340   : > { %1794 = vst.msk [vmem:[#allocation8 + $0x40] sm:$0xff] %vm1785_vm1, %v1777_v63  ;;  %v1760_v18 = vpop.xlane.xlu0 %1759  ;;  %v1843_v19 = vpop.xlane.xlu1 %1842  ;;  %5611 = vst [vmem:[#allocation72_spill] sm:$0xff] %v5078_v40 }
 0x341   : > { %v1780_v27 = vadd.f32 %v1760_v18, %v1716_v53  ;;  %v5060_v0 = vmax.f32 %v5051_v55, %v1843_v19  ;;  %v1719_v53 = vld [vmem:[#allocation8 + $0x70] sm:$0xff] }
 0x343   : > { %5606 = vst [vmem:[#allocation67_spill] sm:$0xff] %v5060_v0  ;;  %1797 = vst.msk [vmem:[#allocation8 + $0x58] sm:$0xff] %vm1785_vm1, %v1780_v27  ;;  %2018 = vperm.xlu1 %3726, %v5019_v41   ;;  %v1717_v27 = vld [vmem:[#allocation8 + $0x60] sm:$0xff] }
 0x344   : > { %2150 = vst.msk [vmem:[#allocation4 + $0x60] sm:$0xff] %vm1785_vm1, %v5060_v0  ;;  %v2195_v63 = vpop.xlane.xlu1 %2194  ;;  %v1849_v48 = vpop.xlane.xlu0 %1848 }
 0x345   : > { %v5073_v18 = vmax.f32 %v5062_v14, %v2195_v63  ;;  %v5076_v19 = vmax.f32 %v5064_v24, %v1849_v48  ;;  %v1714_v14 = vld [vmem:[#allocation8 + $0x48] sm:$0xff] }
 0x347   : > { %5609 = vst [vmem:[#allocation70_spill] sm:$0xff] %v5073_v18  ;;  %5610 = vst [vmem:[#allocation71_spill] sm:$0xff] %v5076_v19  ;;  %2008 = vperm.xlu1 %3726, %v5060_v0   ;;  %2360 = vperm.xlu0 %3725, %v5073_v18  }
 0x348   : > { %2502 = vst.msk [vmem:[#allocation6 + $0x60] sm:$0xff] %vm1785_vm1, %v5073_v18  ;;  %2153 = vst.msk [vmem:[#allocation4 + $0x78] sm:$0xff] %vm1785_vm1, %v5076_v19  ;;  %v1766_v48 = vpop.xlane.xlu1 %1765  ;;  %v2201_v63 = vpop.xlane.xlu0 %2200 }
 0x349   : > { %v1783_v55 = vadd.f32 %v1766_v48, %v1719_v53  ;;  %v5091_v41 = vmax.f32 %v5078_v40, %v2201_v63  ;;  %v5099_v53 = vld [vmem:[#allocation4 + $0x68] sm:$0xff] }
 0x34a   : > { %5612 = vst [vmem:[#allocation73_spill] sm:$0xff] %v5099_v53  ;;  %v5106_v63 = vld [vmem:[#allocation6 + $0x68] sm:$0xff] }
 0x34b   : > { %1800 = vst.msk [vmem:[#allocation8 + $0x70] sm:$0xff] %vm1785_vm1, %v1783_v55  ;;  %2505 = vst.msk [vmem:[#allocation6 + $0x78] sm:$0xff] %vm1785_vm1, %v5091_v41  ;;  %2023 = vperm.xlu1 %3726, %v5076_v19  }
 0x34c   : > { %v1762_v24 = vpop.xlane.xlu1 %1761  ;;  %v1756_v18 = vpop.xlane.xlu0 %1755  ;;  %5614 = vst [vmem:[#allocation75_spill] sm:$0xff] %v5106_v63 }
 0x34d   : > { %v1781_v0 = vadd.f32 %v1762_v24, %v1717_v27  ;;  %v1778_v2 = vadd.f32 %v1756_v18, %v1714_v14 }
 0x34f   : > { %1798 = vst.msk [vmem:[#allocation8 + $0x60] sm:$0xff] %vm1785_vm1, %v1781_v0  ;;  %1795 = vst.msk [vmem:[#allocation8 + $0x48] sm:$0xff] %vm1785_vm1, %v1778_v2  ;;  %v1720_v0 = vld [vmem:[#allocation8 + $0x78] sm:$0xff] }
 0x350   : > { %v1845_v48 = vpop.xlane.xlu0 %1844 }
 0x351   : > { %v5104_v55 = vmax.f32 %v5099_v53, %v1845_v48  ;;  %v1718_v48 = vld [vmem:[#allocation8 + $0x68] sm:$0xff] }
 0x353   : > { %5613 = vst [vmem:[#allocation74_spill] sm:$0xff] %v5104_v55  ;;  %2151 = vst.msk [vmem:[#allocation4 + $0x68] sm:$0xff] %vm1785_vm1, %v5104_v55  ;;  %2013 = vperm.xlu0 %3725, %v5104_v55  }
 0x354   : > { %v2197_v14 = vpop.xlane.xlu0 %2196 }
 0x355   : > { %v5114_v24 = vmax.f32 %v5106_v63, %v2197_v14 }
 0x357   : > { %5615 = vst [vmem:[#allocation76_spill] sm:$0xff] %v5114_v24  ;;  %2503 = vst.msk [vmem:[#allocation6 + $0x68] sm:$0xff] %vm1785_vm1, %v5114_v24  ;;  %2365 = vperm.xlu1 %3726, %v5114_v24  }
 0x358   : > { %v1768_v18 = vpop.xlane.xlu0 %1767 }
 0x359   : > { %v1784_v27 = vadd.f32 %v1768_v18, %v1720_v0 }
 0x35b   : > { %1801 = vst.msk [vmem:[#allocation8 + $0x78] sm:$0xff] %vm1785_vm1, %v1784_v27  ;;  %2375 = vperm.xlu1 %3726, %v5091_v41  }
 0x35c   : > { %v1764_v38 = vpop.xlane.xlu0 %1763 }
 0x35d   : > { %v1782_v40 = vadd.f32 %v1764_v38, %v1718_v48 }
 0x35f   : > { %1799 = vst.msk [vmem:[#allocation8 + $0x68] sm:$0xff] %vm1785_vm1, %v1782_v40 }
 0x376   : > { %v1959_v14 = vpop.permute.xlu1 %1958  ;;  %v2311_v55 = vpop.permute.xlu0 %2310 }
 0x377   : > { %v2028_v2 = vsub.f32 %v4561_v4, %v1959_v14  ;;  %v2380_v63 = vsub.f32 %v4563_v5, %v2311_v55 }
 0x379   : > { %v2046_v53 = vmul.f32 1.442695, %v2028_v2  ;;  %v2398_v19 = vmul.f32 1.442695, %v2380_v63 }
 0x37a   : > { %v1949_v24 = vpop.permute.xlu1 %1948  ;;  %v2301_v1 = vpop.permute.xlu0 %2300 }
 0x37b   : > { %3751 = vpow2.f32 %v2046_v53  ;;  %v2026_v0 = vsub.f32 %v4569_v7, %v1949_v24  ;;  %v2378_v18 = vsub.f32 %v4571_v8, %v2301_v1 }
 0x37c   : > { %3753 = vpow2.f32 %v2398_v19 }
 0x37d   : > { %v2042_v27 = vmul.f32 1.442695, %v2026_v0  ;;  %v2394_v38 = vmul.f32 1.442695, %v2378_v18 }
 0x37e   : > { %v1964_v48 = vpop.permute.xlu1 %1963 }
 0x37f   : > { %3755 = vpow2.f32 %v2042_v27  ;;  %v2029_v40 = vsub.f32 %v4575_v10, %v1964_v48 }
 0x380   : > { %3757 = vpow2.f32 %v2394_v38 }
 0x381   : > { %v2048_v4 = vmul.f32 1.442695, %v2029_v40 }
 0x382   : > { %v2316_v14 = vpop.permute.xlu1 %2315 }
 0x383   : > { %3759 = vpow2.f32 %v2048_v4  ;;  %v2381_v5 = vsub.f32 %v4577_v11, %v2316_v14 }
 0x385   : > { %v2400_v55 = vmul.f32 1.442695, %v2381_v5 }
 0x386   : > { %v2306_v63 = vpop.permute.xlu1 %2305  ;;  %v1954_v53 = vpop.permute.xlu0 %1953 }
 0x387   : > { %3761 = vpow2.f32 %v2400_v55  ;;  %v2379_v7 = vsub.f32 %v4587_v17, %v2306_v63  ;;  %v2027_v8 = vsub.f32 %v4585_v16, %v1954_v53 }
 0x388   : > { %v3752_v1 = vpop.eup %3751 }
 0x389   : > { %v3754_v19 = vpop.eup %3753  ;;  %v2396_v24 = vmul.f32 1.442695, %v2379_v7  ;;  %v2044_v2 = vmul.f32 1.442695, %v2027_v8  ;;  %2078 = vadd.xlane.f32.xlu0 %v3752_v1 }
 0x38a   : > { %2430 = vadd.xlane.f32.xlu1 %v3754_v19  ;;  %v1979_v10 = vpop.permute.xlu0 %1978 }
 0x38b   : > { %3763 = vpow2.f32 %v2396_v24  ;;  %v2032_v0 = vsub.f32 %v4592_v21, %v1979_v10 }
 0x38c   : > { %v3756_v18 = vpop.eup %3755  ;;  %3765 = vpow2.f32 %v2044_v2 }
 0x38d   : > { %v3758_v11 = vpop.eup %3757  ;;  %v2054_v27 = vmul.f32 1.442695, %v2032_v0  ;;  %2074 = vadd.xlane.f32.xlu0 %v3756_v18 }
 0x38e   : > { %2426 = vadd.xlane.f32.xlu1 %v3758_v11  ;;  %v2331_v38 = vpop.permute.xlu0 %2330 }
 0x38f   : > { %3767 = vpow2.f32 %v2054_v27  ;;  %v2384_v16 = vsub.f32 %v4594_v22, %v2331_v38 }
 0x390   : > { %v3760_v17 = vpop.eup %3759 }
 0x391   : > { %v2406_v48 = vmul.f32 1.442695, %v2384_v16  ;;  %2080 = vadd.xlane.f32.xlu0 %v3760_v17 }
 0x392   : > { %v1969_v40 = vpop.permute.xlu0 %1968 }
 0x393   : > { %3769 = vpow2.f32 %v2406_v48  ;;  %v2030_v4 = vsub.f32 %v4606_v29, %v1969_v40 }
 0x394   : > { %v3762_v14 = vpop.eup %3761 }
 0x395   : > { %v2050_v5 = vmul.f32 1.442695, %v2030_v4  ;;  %2432 = vadd.xlane.f32.xlu0 %v3762_v14 }
 0x396   : > { %v1984_v21 = vpop.permute.xlu1 %1983  ;;  %v2321_v55 = vpop.permute.xlu0 %2320 }
 0x397   : > { %3771 = vpow2.f32 %v2050_v5  ;;  %v2033_v63 = vsub.f32 %v4615_v36, %v1984_v21  ;;  %v2382_v53 = vsub.f32 %v4608_v30, %v2321_v55 }
 0x398   : > { %v3764_v7 = vpop.eup %3763 }
 0x399   : > { %v3766_v8 = vpop.eup %3765  ;;  %v2056_v22 = vmul.f32 1.442695, %v2033_v63  ;;  %v2402_v1 = vmul.f32 1.442695, %v2382_v53  ;;  %2428 = vadd.xlane.f32.xlu0 %v3764_v7 }
 0x39a   : > { %2076 = vadd.xlane.f32.xlu1 %v3766_v8  ;;  %v2336_v19 = vpop.permute.xlu1 %2335  ;;  %v1999_v24 = vpop.permute.xlu0 %1998 }
 0x39b   : > { %3773 = vpow2.f32 %v2056_v22  ;;  %v2385_v29 = vsub.f32 %v4617_v37, %v2336_v19  ;;  %v2036_v2 = vsub.f32 %v4640_v50, %v1999_v24 }
 0x39c   : > { %v3768_v10 = vpop.eup %3767  ;;  %3775 = vpow2.f32 %v2402_v1 }
 0x39d   : > { %v2408_v0 = vmul.f32 1.442695, %v2385_v29  ;;  %v2062_v18 = vmul.f32 1.442695, %v2036_v2 }
 0x39e   : > { %2086 = vadd.xlane.f32.xlu1 %v3768_v10  ;;  %v1974_v36 = vpop.permute.xlu1 %1973  ;;  %v2351_v30 = vpop.permute.xlu0 %2350 }
 0x39f   : > { %3777 = vpow2.f32 %v2408_v0  ;;  %v2031_v11 = vsub.f32 %v4630_v43, %v1974_v36  ;;  %v2388_v27 = vsub.f32 %v4642_v51, %v2351_v30 }
 0x3a0   : > { %v3770_v38 = vpop.eup %3769  ;;  %3779 = vpow2.f32 %v2062_v18 }
 0x3a1   : > { %v2052_v16 = vmul.f32 1.442695, %v2031_v11  ;;  %v2414_v17 = vmul.f32 1.442695, %v2388_v27 }
 0x3a2   : > { %2438 = vadd.xlane.f32.xlu1 %v3770_v38  ;;  %v2326_v37 = vpop.permute.xlu1 %2325 }
 0x3a3   : > { %3781 = vpow2.f32 %v2052_v16  ;;  %v2383_v50 = vsub.f32 %v4632_v44, %v2326_v37 }
 0x3a4   : > { %v3772_v48 = vpop.eup %3771  ;;  %3783 = vpow2.f32 %v2414_v17 }
 0x3a5   : > { %v2404_v40 = vmul.f32 1.442695, %v2383_v50 }
 0x3a6   : > { %2082 = vadd.xlane.f32.xlu1 %v3772_v48  ;;  %v1989_v4 = vpop.permute.xlu0 %1988 }
 0x3a7   : > { %3785 = vpow2.f32 %v2404_v40  ;;  %v2034_v14 = vsub.f32 %v4656_v56, %v1989_v4 }
 0x3a8   : > { %v3774_v43 = vpop.eup %3773 }
 0x3a9   : > { %v3776_v5 = vpop.eup %3775  ;;  %v2058_v51 = vmul.f32 1.442695, %v2034_v14  ;;  %2088 = vadd.xlane.f32.xlu0 %v3774_v43 }
 0x3aa   : > { %2434 = vadd.xlane.f32.xlu1 %v3776_v5  ;;  %v2004_v21 = vpop.permute.xlu1 %2003  ;;  %v2341_v55 = vpop.permute.xlu0 %2340 }
 0x3ab   : > { %3787 = vpow2.f32 %v2058_v51  ;;  %v2037_v63 = vsub.f32 %v4667_v61, %v2004_v21  ;;  %v2386_v44 = vsub.f32 %v4658_v57, %v2341_v55 }
 0x3ac   : > { %v3778_v53 = vpop.eup %3777 }
 0x3ad   : > { %v3780_v7 = vpop.eup %3779  ;;  %v2064_v8 = vmul.f32 1.442695, %v2037_v63  ;;  %v2410_v22 = vmul.f32 1.442695, %v2386_v44  ;;  %2440 = vadd.xlane.f32.xlu0 %v3778_v53 }
 0x3ae   : > { %2094 = vadd.xlane.f32.xlu1 %v3780_v7  ;;  %v2356_v1 = vpop.permute.xlu1 %2355 }
 0x3af   : > { %3789 = vpow2.f32 %v2064_v8  ;;  %v2389_v56 = vsub.f32 %v4669_v62, %v2356_v1 }
 0x3b0   : > { %v3782_v19 = vpop.eup %3781  ;;  %3791 = vpow2.f32 %v2410_v22 }
 0x3b1   : > { %v3784_v24 = vpop.eup %3783  ;;  %v2416_v29 = vmul.f32 1.442695, %v2389_v56  ;;  %2084 = vadd.xlane.f32.xlu0 %v3782_v19 }
 0x3b2   : > { %2446 = vadd.xlane.f32.xlu1 %v3784_v24 }
 0x3b3   : > { %3793 = vpow2.f32 %v2416_v29 }
 0x3b4   : > { %v3786_v61 = vpop.eup %3785 }
 0x3b5   : > { %2436 = vadd.xlane.f32.xlu0 %v3786_v61  ;;  %v5616_v61 = vsub.f32 %v4790_v46, %v4796_v3  ;;  %v5622_v3 = vsub.f32 %v4818_v35, %v4833_v60  ;;  %v1866_v60 = vld [vmem:[#allocation5] sm:$0xff] }
 0x3b6   : > { %v1994_v57 = vpop.permute.xlu1 %1993  ;;  %v2371_v27 = vpop.permute.xlu0 %2370 }
 0x3b7   : > { %v2035_v2 = vsub.f32 %v4682_v6, %v1994_v57  ;;  %v2392_v43 = vsub.f32 %v4694_v23, %v2371_v27  ;;  %v1902_v57 = vmul.f32 1.442695, %v5616_v61 }
 0x3b8   : > { %v3788_v10 = vpop.eup %3787 }
 0x3b9   : > { %v2060_v0 = vmul.f32 1.442695, %v2035_v2  ;;  %2090 = vadd.xlane.f32.xlu1 %v3788_v10  ;;  %v2422_v21 = vmul.f32 1.442695, %v2392_v43  ;;  %v5618_v10 = vsub.f32 %v4800_v15, %v4816_v26  ;;  %v2252_v15 = vmul.f32 1.442695, %v5622_v3 }
 0x3ba   : > { %v2346_v18 = vpop.permute.xlu1 %2345  ;;  %v5642_v3 = vld [vmem:[#allocation43_spill] sm:$0xff] }
 0x3bb   : > { %3795 = vpow2.f32 %v2060_v0  ;;  %v2387_v36 = vsub.f32 %v4684_v9, %v2346_v18  ;;  %v1898_v0 = vmul.f32 1.442695, %v5618_v10  ;;  %v5619_v18 = vsub.f32 %v4798_v12, %v4813_v25 }
 0x3bc   : > { %v3790_v62 = vpop.eup %3789  ;;  %v5623_v12 = vsub.f32 %v4857_v59, %v4871_v47 }
 0x3bd   : > { %v3792_v30 = vpop.eup %3791  ;;  %v2412_v11 = vmul.f32 1.442695, %v2387_v36  ;;  %2096 = vadd.xlane.f32.xlu0 %v3790_v62  ;;  %v2250_v36 = vmul.f32 1.442695, %v5619_v18  ;;  %v5620_v62 = vsub.f32 %v4820_v49, %v4836_v58  ;;  %v2220_v49 = vld [vmem:[#allocation7 + $0x10] sm:$0xff]  ;;  %v5638_v18 = vld [vmem:[#allocation40_spill] sm:$0xff] }
 0x3be   : > { %2442 = vadd.xlane.f32.xlu1 %v3792_v30  ;;  %v2019_v38 = vpop.permute.xlu1 %2018  ;;  %v1900_v25 = vmul.f32 1.442695, %v5623_v12  ;;  %v1868_v30 = vld [vmem:[#allocation5 + $0x10] sm:$0xff] }
 0x3bf   : > { %3797 = vpow2.f32 %v2412_v11  ;;  %v2040_v16 = vsub.f32 %v4692_v20, %v2019_v38  ;;  %v1904_v46 = vmul.f32 1.442695, %v5620_v62  ;;  %v5624_v38 = vld [vmem:[#allocation31_spill] sm:$0xff] }
 0x3c0   : > { %v3794_v17 = vpop.eup %3793 }
 0x3c1   : > { %v2070_v37 = vmul.f32 1.442695, %v2040_v16  ;;  %2448 = vadd.xlane.f32.xlu0 %v3794_v17  ;;  %v5625_v16 = vld [vmem:[#allocation32_spill] sm:$0xff] }
 0x3c2   : > { %v2009_v6 = vpop.permute.xlu1 %2008  ;;  %v2361_v50 = vpop.permute.xlu0 %2360 }
 0x3c3   : > { %3799 = vpow2.f32 %v2070_v37  ;;  %v2038_v48 = vsub.f32 %v4707_v33, %v2009_v6  ;;  %v2390_v9 = vsub.f32 %v4709_v34, %v2361_v50 }
 0x3c5   : > { %v2066_v40 = vmul.f32 1.442695, %v2038_v48  ;;  %v2418_v4 = vmul.f32 1.442695, %v2390_v9  ;;  %v2218_v48 = vld [vmem:[#allocation7] sm:$0xff] }
 0x3c6   : > { %v2024_v14 = vpop.permute.xlu1 %2023 }
 0x3c7   : > { %3801 = vpow2.f32 %v2066_v40  ;;  %v2041_v5 = vsub.f32 %v4714_v42, %v2024_v14  ;;  %v5627_v40 = vld [vmem:[#allocation33_spill] sm:$0xff] }
 0x3c8   : > { %v3796_v51 = vpop.eup %3795  ;;  %3803 = vpow2.f32 %v2418_v4  ;;  %v5628_v4 = vld [vmem:[#allocation34_spill] sm:$0xff] }
 0x3c9   : > { %v2072_v20 = vmul.f32 1.442695, %v2041_v5  ;;  %2092 = vadd.xlane.f32.xlu0 %v3796_v51  ;;  %v5629_v14 = vsub.f32 %v5627_v40, %v5628_v4  ;;  %v5651_v40 = vld [vmem:[#allocation49_spill] sm:$0xff] }
 0x3cb   : > { %3805 = vpow2.f32 %v2072_v20  ;;  %v2262_v43 = vmul.f32 1.442695, %v5629_v14  ;;  %v1869_v20 = vld [vmem:[#allocation5 + $0x18] sm:$0xff] }
 0x3cc   : > { %v3798_v55 = vpop.eup %3797  ;;  %3807 = vpow2.f32 %v2422_v21 }
 0x3cd   : > { %2444 = vadd.xlane.f32.xlu0 %v3798_v55 }
 0x3ce   : > { %v2014_v63 = vpop.permute.xlu0 %2013 }
 0x3cf   : > { %v2039_v33 = vsub.f32 %v4733_v13, %v2014_v63 }
 0x3d0   : > { %v3800_v34 = vpop.eup %3799 }
 0x3d1   : > { %v2068_v44 = vmul.f32 1.442695, %v2039_v33  ;;  %2102 = vadd.xlane.f32.xlu1 %v3800_v34 }
 0x3d2   : > { %v2366_v53 = vpop.permute.xlu1 %2365 }
 0x3d3   : > { %3809 = vpow2.f32 %v2068_v44  ;;  %v2391_v23 = vsub.f32 %v4735_v28, %v2366_v53  ;;  %v5630_v44 = vld [vmem:[#allocation35_spill] sm:$0xff] }
 0x3d4   : > { %v3802_v42 = vpop.eup %3801  ;;  %v5631_v53 = vsub.f32 %v5630_v44, %v4889_v32 }
 0x3d5   : > { %v2420_v7 = vmul.f32 1.442695, %v2391_v23  ;;  %2098 = vadd.xlane.f32.xlu1 %v3802_v42  ;;  %v3804_v22 = vpop.eup %3803 }
 0x3d6   : > { %v2376_v8 = vpop.permute.xlu1 %2375  ;;  %v1906_v23 = vmul.f32 1.442695, %v5631_v53 }
 0x3d7   : > { %3811 = vpow2.f32 %v2420_v7  ;;  %v2393_v1 = vsub.f32 %v4716_v45, %v2376_v8  ;;  %v5617_v45 = vsub.f32 %v4788_v39, %v4793_v54  ;;  %v5621_v39 = vsub.f32 %v4838_v52, %v4852_v31  ;;  %v2221_v7 = vld [vmem:[#allocation7 + $0x18] sm:$0xff] }
 0x3d8   : > { %v3806_v56 = vpop.eup %3805  ;;  %v5626_v52 = vsub.f32 %v5624_v38, %v5625_v16  ;;  %v5644_v38 = vld [vmem:[#allocation44_spill] sm:$0xff]  ;;  %v5645_v16 = vld [vmem:[#allocation46_spill] sm:$0xff] }
 0x3d9   : > { %v2424_v19 = vmul.f32 1.442695, %v2393_v1  ;;  %2104 = vadd.xlane.f32.xlu0 %v3806_v56  ;;  %2450 = vadd.xlane.f32.xlu1 %v3804_v22  ;;  %v3808_v13 = vpop.eup %3807  ;;  %v2254_v2 = vmul.f32 1.442695, %v5617_v45  ;;  %v2256_v54 = vmul.f32 1.442695, %v5621_v39 }
 0x3da   : > { %v1910_v31 = vmul.f32 1.442695, %v5626_v52  ;;  %v5632_v22 = vld [vmem:[#allocation38_spill] sm:$0xff]  ;;  %v5633_v1 = vld [vmem:[#allocation39_spill] sm:$0xff]  ;;  %v2219_v45 = vld [vmem:[#allocation7 + $0x8] sm:$0xff]  ;;  %v5646_v52 = vsub.f32 %v5644_v38, %v5645_v16 }
 0x3db   : > { %3813 = vpow2.f32 %v2424_v19  ;;  %v5634_v56 = vsub.f32 %v5632_v22, %v5633_v1  ;;  %v5656_v1 = vld [vmem:[#allocation53_spill] sm:$0xff] }
 0x3dc   : > { %3815 = vpow2.f32 %v1902_v57  ;;  %v2228_v38 = vld [vmem:[#allocation7 + $0x50] sm:$0xff] }
 0x3dd   : > { %2454 = vadd.xlane.f32.xlu1 %v3808_v13  ;;  %3817 = vpow2.f32 %v2254_v2  ;;  %v1912_v19 = vmul.f32 1.442695, %v5634_v56  ;;  %v5657_v56 = vld [vmem:[#allocation55_spill] sm:$0xff] }
 0x3de   : > { %3819 = vpow2.f32 %v1898_v0  ;;  %v1867_v0 = vld [vmem:[#allocation5 + $0x8] sm:$0xff] }
 0x3df   : > { %3821 = vpow2.f32 %v2250_v36  ;;  %v5639_v36 = vld [vmem:[#allocation42_spill] sm:$0xff] }
 0x3e0   : > { %v3810_v24 = vpop.eup %3809  ;;  %3823 = vpow2.f32 %v1904_v46  ;;  %v5640_v62 = vsub.f32 %v5638_v18, %v5639_v36 }
 0x3e1   : > { %2100 = vadd.xlane.f32.xlu0 %v3810_v24  ;;  %3825 = vpow2.f32 %v2256_v54  ;;  %v5641_v54 = vld [vmem:[#allocation41_spill] sm:$0xff] }
 0x3e2   : > { %3827 = vpow2.f32 %v2252_v15  ;;  %v2264_v46 = vmul.f32 1.442695, %v5640_v62  ;;  %v5643_v15 = vsub.f32 %v5641_v54, %v5642_v3  ;;  %v1876_v62 = vld [vmem:[#allocation5 + $0x50] sm:$0xff] }
 0x3e3   : > { %3829 = vpow2.f32 %v1900_v25  ;;  %v5663_v54 = vld [vmem:[#allocation57_spill] sm:$0xff] }
 0x3e4   : > { %v3812_v29 = vpop.eup %3811  ;;  %3831 = vpow2.f32 %v1910_v31  ;;  %v1908_v31 = vmul.f32 1.442695, %v5646_v52 }
 0x3e5   : > { %2452 = vadd.xlane.f32.xlu0 %v3812_v29  ;;  %3833 = vpow2.f32 %v2262_v43  ;;  %v5635_v29 = vld [vmem:[#allocation36_spill] sm:$0xff] }
 0x3e6   : > { %3835 = vpow2.f32 %v1906_v23  ;;  %v1873_v23 = vld [vmem:[#allocation5 + $0x38] sm:$0xff] }
 0x3e7   : > { %3837 = vpow2.f32 %v1912_v19  ;;  %v5658_v19 = vsub.f32 %v5656_v1, %v5657_v56 }
 0x3e8   : > { %v3814_v28 = vpop.eup %3813 }
 0x3e9   : > { %2456 = vadd.xlane.f32.xlu0 %v3814_v28  ;;  %v3816_v26 = vpop.eup %3815  ;;  %v5636_v28 = vld [vmem:[#allocation37_spill] sm:$0xff] }
 0x3ea   : > { %v3818_v11 = vpop.eup %3817  ;;  %v1932_v58 = vmul.f32 %v3816_v26, %v1868_v30  ;;  %v5637_v61 = vsub.f32 %v5635_v29, %v5636_v28  ;;  %v1918_v26 = vmul.f32 1.442695, %v5643_v15  ;;  %v5659_v28 = vld [vmem:[#allocation52_spill] sm:$0xff] }
 0x3eb   : > { %v3820_v27 = vpop.eup %3819  ;;  %v2284_v17 = vmul.f32 %v3818_v11, %v2220_v49 }
 0x3ec   : > { %v3822_v37 = vpop.eup %3821  ;;  %v1930_v47 = vmul.f32 %v3820_v27, %v1866_v60  ;;  %v2258_v57 = vmul.f32 1.442695, %v5637_v61  ;;  %v5660_v61 = vld [vmem:[#allocation54_spill] sm:$0xff] }
 0x3ed   : > { %v3824_v9 = vpop.eup %3823  ;;  %v2282_v5 = vmul.f32 %v3822_v37, %v2218_v48 }
 0x3ee   : > { %v1933_v33 = vmul.f32 %v3824_v9, %v1869_v20  ;;  %v3826_v34 = vpop.eup %3825  ;;  %3839 = vpow2.f32 %v2258_v57  ;;  %v5650_v9 = vld [vmem:[#allocation48_spill] sm:$0xff]  ;;  %v1870_v20 = vld [vmem:[#allocation5 + $0x20] sm:$0xff]  ;;  %v5661_v57 = vsub.f32 %v5659_v28, %v5660_v61 }
 0x3ef   : > { %v2285_v13 = vmul.f32 %v3826_v34, %v2221_v7  ;;  %v3828_v24 = vpop.eup %3827  ;;  %3841 = vpow2.f32 %v2264_v46  ;;  %v5652_v4 = vsub.f32 %v5650_v9, %v5651_v40 }
 0x3f0   : > { %v3830_v2 = vpop.eup %3829  ;;  %v2283_v39 = vmul.f32 %v3828_v24, %v2219_v45  ;;  %3843 = vpow2.f32 %v1918_v26 }
 0x3f1   : > { %v1931_v12 = vmul.f32 %v3830_v2, %v1867_v0  ;;  %v3832_v30 = vpop.eup %3831  ;;  %3845 = vpow2.f32 %v1908_v31  ;;  %v2260_v14 = vmul.f32 1.442695, %v5652_v4 }
 0x412   : > { %v2079_v35 = vpop.xlane.xlu0 %2078 }
 0x413   : > { %v2431_v6 = vpop.xlane.xlu1 %2430  ;;  %v2108_v50 = vadd.f32 %v2079_v35, %v1932_v58  ;;  %v1872_v58 = vld [vmem:[#allocation5 + $0x30] sm:$0xff]  ;;  %v5648_v35 = vld [vmem:[#allocation47_spill] sm:$0xff] }
 0x414   : > { %v2460_v59 = vadd.f32 %v2431_v6, %v2284_v17  ;;  %v5647_v17 = vld [vmem:[#allocation45_spill] sm:$0xff]  ;;  %v1936_v6 = vmul.f32 %v3832_v30, %v1872_v58 }
 0x415   : > { %2124 = vst.msk [vmem:[#allocation5 + $0x10] sm:$0xff] %vm1785_vm1, %v2108_v50  ;;  %v5649_v60 = vsub.f32 %v5647_v17, %v5648_v35  ;;  %v3834_v50 = vpop.eup %3833 }
 0x416   : > { %2476 = vst.msk [vmem:[#allocation7 + $0x10] sm:$0xff] %vm1785_vm1, %v2460_v59  ;;  %v2075_v51 = vpop.xlane.xlu0 %2074  ;;  %v2224_v59 = vld [vmem:[#allocation7 + $0x30] sm:$0xff] }
 0x417   : > { %v2427_v21 = vpop.xlane.xlu1 %2426  ;;  %v2106_v55 = vadd.f32 %v2075_v51, %v1930_v47  ;;  %v2270_v37 = vmul.f32 1.442695, %v5649_v60  ;;  %v2288_v43 = vmul.f32 %v3834_v50, %v2224_v59  ;;  %v2223_v60 = vld [vmem:[#allocation7 + $0x28] sm:$0xff]  ;;  %v5666_v59 = vld [vmem:[#allocation62_spill] sm:$0xff] }
 0x418   : > { %v2458_v63 = vadd.f32 %v2427_v21, %v2282_v5  ;;  %v3836_v5 = vpop.eup %3835 }
 0x419   : > { %2122 = vst.msk [vmem:[#allocation5] sm:$0xff] %vm1785_vm1, %v2106_v55  ;;  %3847 = vpow2.f32 %v2270_v37  ;;  %v5653_v55 = vld [vmem:[#allocation50_spill] sm:$0xff]  ;;  %v3838_v44 = vpop.eup %3837  ;;  %v1934_v53 = vmul.f32 %v3836_v5, %v1870_v20  ;;  %v5669_v20 = vld [vmem:[#allocation65_spill] sm:$0xff] }
 0x41a   : > { %2474 = vst.msk [vmem:[#allocation7] sm:$0xff] %vm1785_vm1, %v2458_v63  ;;  %v2081_v42 = vpop.xlane.xlu0 %2080  ;;  %3849 = vpow2.f32 %v2260_v14  ;;  %v5654_v63 = vld [vmem:[#allocation51_spill] sm:$0xff]  ;;  %v1937_v24 = vmul.f32 %v3838_v44, %v1873_v23  ;;  %v1877_v44 = vld [vmem:[#allocation5 + $0x58] sm:$0xff] }
 0x41b   : > { %v2109_v8 = vadd.f32 %v2081_v42, %v1933_v33  ;;  %v5655_v33 = vsub.f32 %v5653_v55, %v5654_v63  ;;  %v3840_v42 = vpop.eup %3839 }
 0x41c   : > { %v3842_v29 = vpop.eup %3841 }
 0x41d   : > { %2125 = vst.msk [vmem:[#allocation5 + $0x18] sm:$0xff] %vm1785_vm1, %v2109_v8  ;;  %v1914_v34 = vmul.f32 1.442695, %v5655_v33  ;;  %v2222_v8 = vld [vmem:[#allocation7 + $0x20] sm:$0xff]  ;;  %v3844_v0 = vpop.eup %3843 }
 0x41e   : > { %v2433_v32 = vpop.xlane.xlu0 %2432  ;;  %v2286_v45 = vmul.f32 %v3840_v42, %v2222_v8  ;;  %v2226_v42 = vld [vmem:[#allocation7 + $0x40] sm:$0xff] }
 0x41f   : > { %v2461_v10 = vadd.f32 %v2433_v32, %v2285_v13  ;;  %3851 = vpow2.f32 %v1914_v34  ;;  %v1920_v13 = vmul.f32 1.442695, %v5658_v19  ;;  %v2266_v32 = vmul.f32 1.442695, %v5661_v57  ;;  %v5672_v8 = vld [vmem:[#allocation59_spill] sm:$0xff] }
 0x421   : > { %2477 = vst.msk [vmem:[#allocation7 + $0x18] sm:$0xff] %vm1785_vm1, %v2461_v10  ;;  %v2225_v10 = vld [vmem:[#allocation7 + $0x38] sm:$0xff]  ;;  %3853 = vpow2.f32 %v1920_v13 }
 0x422   : > { %v2429_v25 = vpop.xlane.xlu0 %2428  ;;  %v2289_v26 = vmul.f32 %v3842_v29, %v2225_v10  ;;  %3855 = vpow2.f32 %v2266_v32  ;;  %v2229_v29 = vld [vmem:[#allocation7 + $0x58] sm:$0xff] }
 0x423   : > { %v2077_v11 = vpop.xlane.xlu1 %2076  ;;  %v2459_v49 = vadd.f32 %v2429_v25, %v2283_v39  ;;  %v5662_v39 = vld [vmem:[#allocation56_spill] sm:$0xff]  ;;  %v1940_v25 = vmul.f32 %v3844_v0, %v1876_v62  ;;  %v5674_v32 = vld [vmem:[#allocation66_spill] sm:$0xff] }
 0x424   : > { %v2107_v27 = vadd.f32 %v2077_v11, %v1931_v12  ;;  %v5664_v3 = vsub.f32 %v5662_v39, %v5663_v54  ;;  %v3846_v12 = vpop.eup %3845  ;;  %v1871_v11 = vld [vmem:[#allocation5 + $0x28] sm:$0xff] }
 0x425   : > { %2475 = vst.msk [vmem:[#allocation7 + $0x8] sm:$0xff] %vm1785_vm1, %v2459_v49  ;;  %v1935_v52 = vmul.f32 %v3846_v12, %v1871_v11  ;;  %v5677_v62 = vld [vmem:[#allocation68_spill] sm:$0xff]  ;;  %v5683_v11 = vld [vmem:[#allocation61_spill] sm:$0xff] }
 0x426   : > { %2123 = vst.msk [vmem:[#allocation5 + $0x8] sm:$0xff] %vm1785_vm1, %v2107_v27  ;;  %v2272_v15 = vmul.f32 1.442695, %v5664_v3  ;;  %v3848_v49 = vpop.eup %3847  ;;  %v5680_v3 = vld [vmem:[#allocation69_spill] sm:$0xff] }
 0x427   : > { %v2087_v48 = vpop.xlane.xlu1 %2086  ;;  %v3850_v31 = vpop.eup %3849  ;;  %v2292_v17 = vmul.f32 %v3848_v49, %v2228_v38  ;;  %v5684_v49 = vld [vmem:[#allocation63_spill] sm:$0xff] }
 0x428   : > { %v2112_v47 = vadd.f32 %v2087_v48, %v1936_v6  ;;  %3857 = vpow2.f32 %v2272_v15  ;;  %v5665_v48 = vld [vmem:[#allocation60_spill] sm:$0xff]  ;;  %v2287_v40 = vmul.f32 %v3850_v31, %v2223_v60  ;;  %v5681_v15 = vld [vmem:[#allocation71_spill] sm:$0xff]  ;;  %v5687_v60 = vld [vmem:[#allocation74_spill] sm:$0xff] }
 0x429   : > { %v2227_v31 = vld [vmem:[#allocation7 + $0x48] sm:$0xff] }
 0x42a   : > { %2128 = vst.msk [vmem:[#allocation5 + $0x30] sm:$0xff] %vm1785_vm1, %v2112_v47  ;;  %v5667_v47 = vsub.f32 %v5665_v48, %v5666_v59 }
 0x42b   : > { %v2439_v51 = vpop.xlane.xlu1 %2438 }
 0x42c   : > { %v2464_v21 = vadd.f32 %v2439_v51, %v2288_v43  ;;  %v1916_v9 = vmul.f32 1.442695, %v5667_v47  ;;  %v3852_v4 = vpop.eup %3851  ;;  %v1874_v43 = vld [vmem:[#allocation5 + $0x40] sm:$0xff]  ;;  %v5668_v51 = vld [vmem:[#allocation64_spill] sm:$0xff]  ;;  %v1880_v47 = vld [vmem:[#allocation5 + $0x70] sm:$0xff] }
 0x42d   : > { %v1938_v63 = vmul.f32 %v3852_v4, %v1874_v43  ;;  %v5690_v4 = vld [vmem:[#allocation76_spill] sm:$0xff] }
 0x42e   : > { %2480 = vst.msk [vmem:[#allocation7 + $0x30] sm:$0xff] %vm1785_vm1, %v2464_v21  ;;  %3859 = vpow2.f32 %v1916_v9  ;;  %v5670_v21 = vsub.f32 %v5668_v51, %v5669_v20  ;;  %v3854_v33 = vpop.eup %3853 }
 0x42f   : > { %v2083_v7 = vpop.xlane.xlu1 %2082  ;;  %v1941_v56 = vmul.f32 %v3854_v33, %v1877_v44  ;;  %v5692_v33 = vld [vmem:[#allocation72_spill] sm:$0xff] }
 0x430   : > { %v2110_v22 = vadd.f32 %v2083_v7, %v1934_v53  ;;  %v2268_v55 = vmul.f32 1.442695, %v5670_v21  ;;  %v3856_v53 = vpop.eup %3855  ;;  %v5671_v7 = vld [vmem:[#allocation58_spill] sm:$0xff]  ;;  %v1878_v21 = vld [vmem:[#allocation5 + $0x60] sm:$0xff] }
 0x431   : > { %v2290_v13 = vmul.f32 %v3856_v53, %v2226_v42 }
 0x432   : > { %2126 = vst.msk [vmem:[#allocation5 + $0x20] sm:$0xff] %vm1785_vm1, %v2110_v22  ;;  %v2089_v2 = vpop.xlane.xlu0 %2088  ;;  %v5673_v22 = vsub.f32 %v5671_v7, %v5672_v8  ;;  %3861 = vpow2.f32 %v2268_v55  ;;  %v2230_v7 = vld [vmem:[#allocation7 + $0x60] sm:$0xff]  ;;  %v1881_v8 = vld [vmem:[#allocation5 + $0x78] sm:$0xff] }
 0x433   : > { %v2435_v18 = vpop.xlane.xlu1 %2434  ;;  %v2113_v36 = vadd.f32 %v2089_v2, %v1937_v24 }
 0x434   : > { %v2462_v46 = vadd.f32 %v2435_v18, %v2286_v45  ;;  %v1926_v1 = vmul.f32 1.442695, %v5673_v22  ;;  %v5675_v45 = vld [vmem:[#allocation67_spill] sm:$0xff] }
 0x435   : > { %2129 = vst.msk [vmem:[#allocation5 + $0x38] sm:$0xff] %vm1785_vm1, %v2113_v36  ;;  %v3858_v19 = vpop.eup %3857  ;;  %v5676_v2 = vsub.f32 %v5674_v32, %v5675_v45  ;;  %v1879_v45 = vld [vmem:[#allocation5 + $0x68] sm:$0xff] }
 0x436   : > { %2478 = vst.msk [vmem:[#allocation7 + $0x20] sm:$0xff] %vm1785_vm1, %v2462_v46  ;;  %v2441_v30 = vpop.xlane.xlu0 %2440  ;;  %3863 = vpow2.f32 %v1926_v1  ;;  %v2293_v0 = vmul.f32 %v3858_v19, %v2229_v29  ;;  %v5678_v46 = vld [vmem:[#allocation70_spill] sm:$0xff]  ;;  %v2232_v29 = vld [vmem:[#allocation7 + $0x70] sm:$0xff] }
 0x437   : > { %v2095_v58 = vpop.xlane.xlu1 %2094  ;;  %v2465_v27 = vadd.f32 %v2441_v30, %v2289_v26  ;;  %v1922_v10 = vmul.f32 1.442695, %v5676_v2  ;;  %v5679_v39 = vsub.f32 %v5677_v62, %v5678_v46  ;;  %v5682_v26 = vsub.f32 %v5680_v3, %v5681_v15  ;;  %v1875_v30 = vld [vmem:[#allocation5 + $0x48] sm:$0xff]  ;;  %v2233_v3 = vld [vmem:[#allocation7 + $0x78] sm:$0xff] }
 0x438   : > { %v2116_v16 = vadd.f32 %v2095_v58, %v1940_v25  ;;  %v5685_v58 = vsub.f32 %v5683_v11, %v5684_v49 }
 0x439   : > { %2481 = vst.msk [vmem:[#allocation7 + $0x38] sm:$0xff] %vm1785_vm1, %v2465_v27  ;;  %v2274_v54 = vmul.f32 1.442695, %v5679_v39  ;;  %3865 = vpow2.f32 %v1922_v10  ;;  %v1928_v12 = vmul.f32 1.442695, %v5682_v26 }
 0x43a   : > { %2132 = vst.msk [vmem:[#allocation5 + $0x50] sm:$0xff] %vm1785_vm1, %v2116_v16  ;;  %v2085_v35 = vpop.xlane.xlu0 %2084  ;;  %v2278_v27 = vmul.f32 1.442695, %v5685_v58 }
 0x43b   : > { %v2447_v37 = vpop.xlane.xlu1 %2446  ;;  %v2111_v6 = vadd.f32 %v2085_v35, %v1935_v52  ;;  %v3860_v25 = vpop.eup %3859  ;;  %3867 = vpow2.f32 %v2274_v54  ;;  %v5686_v35 = vld [vmem:[#allocation73_spill] sm:$0xff] }
 0x43c   : > { %v2468_v50 = vadd.f32 %v2447_v37, %v2292_v17  ;;  %3869 = vpow2.f32 %v1928_v12  ;;  %v1939_v38 = vmul.f32 %v3860_v25, %v1875_v30  ;;  %v5688_v37 = vsub.f32 %v5686_v35, %v5687_v60 }
 0x43d   : > { %2127 = vst.msk [vmem:[#allocation5 + $0x28] sm:$0xff] %vm1785_vm1, %v2111_v6  ;;  %3871 = vpow2.f32 %v2278_v27 }
 0x43e   : > { %2484 = vst.msk [vmem:[#allocation7 + $0x50] sm:$0xff] %vm1785_vm1, %v2468_v50  ;;  %v2437_v14 = vpop.xlane.xlu0 %2436  ;;  %v1924_v6 = vmul.f32 1.442695, %v5688_v37 }
 0x43f   : > { %v2463_v5 = vadd.f32 %v2437_v14, %v2287_v40  ;;  %v3862_v16 = vpop.eup %3861  ;;  %v5689_v40 = vld [vmem:[#allocation75_spill] sm:$0xff] }
 0x440   : > { %v2291_v50 = vmul.f32 %v3862_v16, %v2227_v31  ;;  %3873 = vpow2.f32 %v1924_v6  ;;  %v5691_v14 = vsub.f32 %v5689_v40, %v5690_v4 }
 0x441   : > { %2479 = vst.msk [vmem:[#allocation7 + $0x28] sm:$0xff] %vm1785_vm1, %v2463_v5 }
 0x442   : > { %v2091_v34 = vpop.xlane.xlu1 %2090  ;;  %v2276_v43 = vmul.f32 1.442695, %v5691_v14 }
 0x443   : > { %v2114_v23 = vadd.f32 %v2091_v34, %v1938_v63  ;;  %v3864_v48 = vpop.eup %3863  ;;  %v5693_v34 = vsub.f32 %v5692_v33, %v5091_v41 }
 0x444   : > { %v1944_v5 = vmul.f32 %v3864_v48, %v1880_v47  ;;  %3875 = vpow2.f32 %v2276_v43 }
 0x445   : > { %2130 = vst.msk [vmem:[#allocation5 + $0x40] sm:$0xff] %vm1785_vm1, %v2114_v23  ;;  %v2280_v44 = vmul.f32 1.442695, %v5693_v34 }
 0x446   : > { %v2097_v24 = vpop.xlane.xlu0 %2096  ;;  %v3866_v51 = vpop.eup %3865 }
 0x447   : > { %v2443_v28 = vpop.xlane.xlu1 %2442  ;;  %v2117_v61 = vadd.f32 %v2097_v24, %v1941_v56  ;;  %v1942_v53 = vmul.f32 %v3866_v51, %v1878_v21  ;;  %3877 = vpow2.f32 %v2280_v44 }
 0x448   : > { %v2466_v57 = vadd.f32 %v2443_v28, %v2290_v13  ;;  %v3868_v63 = vpop.eup %3867 }
 0x449   : > { %2133 = vst.msk [vmem:[#allocation5 + $0x58] sm:$0xff] %vm1785_vm1, %v2117_v61  ;;  %v3870_v23 = vpop.eup %3869  ;;  %v2294_v1 = vmul.f32 %v3868_v63, %v2230_v7 }
 0x44a   : > { %2482 = vst.msk [vmem:[#allocation7 + $0x40] sm:$0xff] %vm1785_vm1, %v2466_v57  ;;  %v2449_v18 = vpop.xlane.xlu0 %2448  ;;  %v1945_v56 = vmul.f32 %v3870_v23, %v1881_v8  ;;  %v3872_v19 = vpop.eup %3871 }
 0x44b   : > { %v2469_v36 = vadd.f32 %v2449_v18, %v2293_v0  ;;  %v2296_v61 = vmul.f32 %v3872_v19, %v2232_v29 }
 0x44d   : > { %2485 = vst.msk [vmem:[#allocation7 + $0x58] sm:$0xff] %vm1785_vm1, %v2469_v36  ;;  %v3874_v57 = vpop.eup %3873  ;;  %v2231_v36 = vld [vmem:[#allocation7 + $0x68] sm:$0xff] }
 0x44e   : > { %v1943_v10 = vmul.f32 %v3874_v57, %v1879_v45 }
 0x451   : > { %v3876_v0 = vpop.eup %3875 }
 0x452   : > { %v2093_v52 = vpop.xlane.xlu0 %2092  ;;  %v2295_v46 = vmul.f32 %v3876_v0, %v2231_v36 }
 0x453   : > { %v2115_v17 = vadd.f32 %v2093_v52, %v1939_v38 }
 0x454   : > { %v3878_v39 = vpop.eup %3877 }
 0x455   : > { %2131 = vst.msk [vmem:[#allocation5 + $0x48] sm:$0xff] %vm1785_vm1, %v2115_v17  ;;  %v2297_v26 = vmul.f32 %v3878_v39, %v2233_v3 }
 0x456   : > { %v2445_v59 = vpop.xlane.xlu0 %2444 }
 0x457   : > { %v2467_v9 = vadd.f32 %v2445_v59, %v2291_v50 }
 0x459   : > { %2483 = vst.msk [vmem:[#allocation7 + $0x48] sm:$0xff] %vm1785_vm1, %v2467_v9 }
 0x45a   : > { %v2103_v20 = vpop.xlane.xlu1 %2102 }
 0x45b   : > { %v2120_v55 = vadd.f32 %v2103_v20, %v1944_v5 }
 0x45d   : > { %2136 = vst.msk [vmem:[#allocation5 + $0x70] sm:$0xff] %vm1785_vm1, %v2120_v55 }
 0x45e   : > { %v2099_v42 = vpop.xlane.xlu1 %2098 }
 0x45f   : > { %v2118_v22 = vadd.f32 %v2099_v42, %v1942_v53 }
 0x461   : > { %2134 = vst.msk [vmem:[#allocation5 + $0x60] sm:$0xff] %vm1785_vm1, %v2118_v22 }
 0x462   : > { %v2451_v13 = vpop.xlane.xlu1 %2450  ;;  %v2105_v24 = vpop.xlane.xlu0 %2104 }
 0x463   : > { %v2470_v41 = vadd.f32 %v2451_v13, %v2294_v1  ;;  %v2121_v28 = vadd.f32 %v2105_v24, %v1945_v56 }
 0x465   : > { %2486 = vst.msk [vmem:[#allocation7 + $0x60] sm:$0xff] %vm1785_vm1, %v2470_v41  ;;  %2137 = vst.msk [vmem:[#allocation5 + $0x78] sm:$0xff] %vm1785_vm1, %v2121_v28 }
 0x466   : > { %v2455_v32 = vpop.xlane.xlu1 %2454 }
 0x467   : > { %v2472_v2 = vadd.f32 %v2455_v32, %v2296_v61 }
 0x469   : > { %2488 = vst.msk [vmem:[#allocation7 + $0x70] sm:$0xff] %vm1785_vm1, %v2472_v2 }
 0x46a   : > { %v2101_v18 = vpop.xlane.xlu0 %2100 }
 0x46b   : > { %v2119_v62 = vadd.f32 %v2101_v18, %v1943_v10 }
 0x46d   : > { %2135 = vst.msk [vmem:[#allocation5 + $0x68] sm:$0xff] %vm1785_vm1, %v2119_v62 }
 0x46e   : > { %v2453_v54 = vpop.xlane.xlu0 %2452 }
 0x46f   : > { %v2471_v15 = vadd.f32 %v2453_v54, %v2295_v46 }
 0x471   : > { %2487 = vst.msk [vmem:[#allocation7 + $0x68] sm:$0xff] %vm1785_vm1, %v2471_v15  ;;  %2509 = sbr.rel (%p3150_p8) target bundleno = 1219 (0x4c3), region = 101 }
 0x472   : > { %v2457_v12 = vpop.xlane.xlu0 %2456 }
 0x473   : > { %v2473_v25 = vadd.f32 %v2457_v12, %v2297_v26 }
 0x475   : > { %2489 = vst.msk [vmem:[#allocation7 + $0x78] sm:$0xff] %vm1785_vm1, %v2473_v25 }
 0x476   : > { %v2590_v30 = vld [vmem:[#allocation5] sm:$0xff]  ;;  %v2591_v49 = vld [vmem:[#allocation5 + $0x8] sm:$0xff]  ;;  %v2592_v27 = vld [vmem:[#allocation5 + $0x10] sm:$0xff]  ;;  %v4173_v14 = vmov 0.0  }
 0x477   : > { %3879 = vlog2.f32 %v2590_v30  ;;  %v2686_v11 = vld [vmem:[#allocation7] sm:$0xff]  ;;  %v2687_v58 = vld [vmem:[#allocation7 + $0x8] sm:$0xff]  ;;  %v2688_v38 = vld [vmem:[#allocation7 + $0x10] sm:$0xff] }
 0x478   : > { %3881 = vlog2.f32 %v2686_v11  ;;  %v2593_v16 = vld [vmem:[#allocation5 + $0x18] sm:$0xff]  ;;  %v2510_v31 = vld [vmem:[%s4435_s29] sm:$0xff]  ;;  %v2511_v17 = vld [vmem:[%s4435_s29 + $0x8] sm:$0xff] }
 0x479   : > { %3883 = vlog2.f32 %v2591_v49  ;;  %v2689_v52 = vld [vmem:[#allocation7 + $0x18] sm:$0xff]  ;;  %v2594_v35 = vld [vmem:[#allocation5 + $0x20] sm:$0xff]  ;;  %v2512_v60 = vld [vmem:[%s4435_s29 + $0x10] sm:$0xff]  ;;  %vm2526_vm2 = vcmp.ge.s32.totalorder %v2510_v31, 0  ;;  %vm2527_vm3 = vcmp.ge.s32.totalorder %v2511_v17, 0 }
 0x47a   : > { %3885 = vlog2.f32 %v2687_v58  ;;  %v2690_v37 = vld [vmem:[#allocation7 + $0x20] sm:$0xff]  ;;  %v2513_v6 = vld [vmem:[%s4435_s29 + $0x18] sm:$0xff]  ;;  %v2595_v50 = vld [vmem:[#allocation5 + $0x28] sm:$0xff]  ;;  %vm2528_vm4 = vcmp.ge.s32.totalorder %v2512_v60, 0  ;;  %v5292_v43 = vsel %vm2526_vm2, 1.0, %v4173_v14  ;;  %v5295_v51 = vsel %vm2527_vm3, 1.0, %v4173_v14 }
 0x47b   : > { %3887 = vlog2.f32 %v2592_v27  ;;  %v2691_v48 = vld [vmem:[#allocation7 + $0x28] sm:$0xff]  ;;  %v2514_v59 = vld [vmem:[%s4435_s29 + $0x20] sm:$0xff]  ;;  %v2596_v47 = vld [vmem:[#allocation5 + $0x30] sm:$0xff]  ;;  %vm2529_vm5 = vcmp.ge.s32.totalorder %v2513_v6, 0  ;;  %v5300_v34 = vsel %vm2528_vm4, 1.0, %v4173_v14 }
 0x47c   : > { %3889 = vlog2.f32 %v2688_v38  ;;  %v2515_v9 = vld [vmem:[%s4435_s29 + $0x28] sm:$0xff]  ;;  %v2692_v40 = vld [vmem:[#allocation7 + $0x30] sm:$0xff]  ;;  %v2574_v5 = vld [vmem:[#allocation4] sm:$0xff]  ;;  %vm2530_vm6 = vcmp.ge.s32.totalorder %v2514_v59, 0  ;;  %v5304_v7 = vsel %vm2529_vm5, 1.0, %v4173_v14 }
 0x47d   : > { %3891 = vlog2.f32 %v2593_v16  ;;  %v2516_v20 = vld [vmem:[%s4435_s29 + $0x30] sm:$0xff]  ;;  %v2597_v21 = vld [vmem:[#allocation5 + $0x38] sm:$0xff]  ;;  %v2670_v33 = vld [vmem:[#allocation6] sm:$0xff]  ;;  %vm2531_vm7 = vcmp.ge.s32.totalorder %v2515_v9, 0  ;;  %v5308_v57 = vsel %vm2530_vm6, 1.0, %v4173_v14 }
 0x47e   : > { %3893 = vlog2.f32 %v2689_v52  ;;  %v2693_v44 = vld [vmem:[#allocation7 + $0x38] sm:$0xff]  ;;  %v2575_v42 = vld [vmem:[#allocation4 + $0x8] sm:$0xff]  ;;  %v2598_v8 = vld [vmem:[#allocation5 + $0x40] sm:$0xff]  ;;  %vm2532_vm8 = vcmp.ge.s32.totalorder %v2516_v20, 0  ;;  %v5312_v36 = vsel %vm2531_vm7, 1.0, %v4173_v14 }
 0x47f   : > { %3895 = vlog2.f32 %v2594_v35  ;;  %v2671_v19 = vld [vmem:[#allocation6 + $0x8] sm:$0xff]  ;;  %v2694_v13 = vld [vmem:[#allocation7 + $0x40] sm:$0xff]  ;;  %v2576_v28 = vld [vmem:[#allocation4 + $0x10] sm:$0xff]  ;;  %v5316_v3 = vsel %vm2532_vm8, 1.0, %v4173_v14 }
 0x480   : > { %3897 = vlog2.f32 %v2690_v37  ;;  %v2672_v61 = vld [vmem:[#allocation6 + $0x10] sm:$0xff]  ;;  %v2599_v32 = vld [vmem:[#allocation5 + $0x48] sm:$0xff]  ;;  %v2577_v18 = vld [vmem:[#allocation4 + $0x18] sm:$0xff] }
 0x481   : > { %3899 = vlog2.f32 %v2595_v50  ;;  %v2695_v15 = vld [vmem:[#allocation7 + $0x48] sm:$0xff]  ;;  %v2782_v12 = vld [vmem:[#allocation8] sm:$0xff]  ;;  %v2673_v49 = vld [vmem:[#allocation6 + $0x18] sm:$0xff] }
 0x482   : > { %3901 = vlog2.f32 %v2691_v48  ;;  %v2578_v31 = vld [vmem:[#allocation4 + $0x20] sm:$0xff]  ;;  %v2783_v35 = vld [vmem:[#allocation8 + $0x8] sm:$0xff]  ;;  %v2784_v37 = vld [vmem:[#allocation8 + $0x10] sm:$0xff] }
 0x483   : > { %3903 = vlog2.f32 %v2596_v47  ;;  %v5319_v20 = vld [vmem:[%s4435_s29 + $0x38] sm:$0xff] }
 0x484   : > { %v3880_v4 = vpop.eup %3879  ;;  %3905 = vlog2.f32 %v2692_v40  ;;  %vm2533_vm9 = vcmp.ge.s32.totalorder %v5319_v20, 0 }
 0x485   : > { %v3882_v55 = vpop.eup %3881  ;;  %v2607_v63 = vmul.f32 0.6931472, %v3880_v4  ;;  %3907 = vlog2.f32 %v2597_v21  ;;  %v2674_v4 = vld [vmem:[#allocation6 + $0x20] sm:$0xff] }
 0x486   : > { %v3884_v53 = vpop.eup %3883  ;;  %v2703_v23 = vmul.f32 0.6931472, %v3882_v55  ;;  %3909 = vlog2.f32 %v2693_v44 }
 0x487   : > { %v3886_v22 = vpop.eup %3885  ;;  %v2638_v1 = vadd.f32 %v2607_v63, %v2574_v5  ;;  %v2609_v56 = vmul.f32 0.6931472, %v3884_v53  ;;  %3911 = vlog2.f32 %v2598_v8  ;;  %v2579_v5 = vld [vmem:[#allocation4 + $0x28] sm:$0xff] }
 0x488   : > { %v3888_v24 = vpop.eup %3887  ;;  %v2734_v29 = vadd.f32 %v2703_v23, %v2670_v33  ;;  %v2705_v41 = vmul.f32 0.6931472, %v3886_v22  ;;  %3913 = vlog2.f32 %v2694_v13 }
 0x489   : > { %v3890_v45 = vpop.eup %3889  ;;  %v2654_v2 = vmul.f32 0.8, %v2638_v1  ;;  %v2639_v10 = vadd.f32 %v2609_v56, %v2575_v42  ;;  %v2611_v0 = vmul.f32 0.6931472, %v3888_v24  ;;  %3915 = vlog2.f32 %v2599_v32  ;;  %v2675_v1 = vld [vmem:[#allocation6 + $0x28] sm:$0xff] }
 0x48a   : > { %v3892_v62 = vpop.eup %3891  ;;  %v2750_v46 = vmul.f32 0.2, %v2734_v29  ;;  %v2735_v39 = vadd.f32 %v2705_v41, %v2671_v19  ;;  %v2707_v54 = vmul.f32 0.6931472, %v3890_v45  ;;  %3917 = vlog2.f32 %v2695_v15  ;;  %v2785_v19 = vld [vmem:[#allocation8 + $0x18] sm:$0xff] }
 0x48b   : > { %v3894_v26 = vpop.eup %3893  ;;  %v2655_v25 = vmul.f32 0.8, %v2639_v10  ;;  %v2640_v30 = vadd.f32 %v2611_v0, %v2576_v28  ;;  %v2613_v11 = vmul.f32 0.6931472, %v3892_v62  ;;  %v2580_v28 = vld [vmem:[#allocation4 + $0x30] sm:$0xff]  ;;  %v2581_v0 = vld [vmem:[#allocation4 + $0x38] sm:$0xff] }
 0x48c   : > { %v3896_v58 = vpop.eup %3895  ;;  %v2766_v27 = vadd.f32 %v2750_v46, %v2654_v2  ;;  %v2751_v38 = vmul.f32 0.2, %v2735_v39  ;;  %v2736_v16 = vadd.f32 %v2707_v54, %v2672_v61  ;;  %v2709_v52 = vmul.f32 0.6931472, %v3894_v26  ;;  %v2676_v10 = vld [vmem:[#allocation6 + $0x30] sm:$0xff] }
 0x48d   : > { %v3898_v17 = vpop.eup %3897  ;;  %v2656_v60 = vmul.f32 0.8, %v2640_v30  ;;  %v2641_v6 = vadd.f32 %v2613_v11, %v2577_v18  ;;  %v2615_v50 = vmul.f32 0.6931472, %v3896_v58  ;;  %v2677_v11 = vld [vmem:[#allocation6 + $0x38] sm:$0xff] }
 0x48e   : > { %v3900_v48 = vpop.eup %3899  ;;  %v2798_v59 = vsub.f32 %v2766_v27, %v2782_v12  ;;  %v2767_v47 = vadd.f32 %v2751_v38, %v2655_v25  ;;  %v2752_v9 = vmul.f32 0.2, %v2736_v16  ;;  %v2737_v40 = vadd.f32 %v2709_v52, %v2673_v49  ;;  %v2786_v25 = vld [vmem:[#allocation8 + $0x20] sm:$0xff] }
 0x48f   : > { %v3902_v21 = vpop.eup %3901  ;;  %v2657_v55 = vmul.f32 0.8, %v2641_v6  ;;  %v2642_v63 = vadd.f32 %v2615_v50, %v2578_v31  ;;  %v2711_v33 = vmul.f32 0.6931472, %v3898_v17  ;;  %v2617_v44 = vmul.f32 0.6931472, %v3900_v48 }
 0x490   : > { %v3904_v53 = vpop.eup %3903  ;;  %v2814_v23 = vmul.f32 %v5292_v43, %v2798_v59  ;;  %v2799_v42 = vsub.f32 %v2767_v47, %v2783_v35  ;;  %v2768_v8 = vadd.f32 %v2752_v9, %v2656_v60  ;;  %v2753_v22 = vmul.f32 0.2, %v2737_v40  ;;  %v2518_v52 = vld [vmem:[%s4435_s29 + $0x40] sm:$0xff]  ;;  %v2787_v35 = vld [vmem:[#allocation8 + $0x28] sm:$0xff]  ;;  %v2788_v40 = vld [vmem:[#allocation8 + $0x30] sm:$0xff] }
 0x491   : > { %v3906_v56 = vpop.eup %3905  ;;  %v2658_v13 = vmul.f32 0.8, %v2642_v63  ;;  %v2738_v24 = vadd.f32 %v2711_v33, %v2674_v4  ;;  %v2643_v29 = vadd.f32 %v2617_v44, %v2579_v5  ;;  %v2713_v41 = vmul.f32 0.6931472, %v3902_v21  ;;  %v2582_v31 = vld [vmem:[#allocation4 + $0x40] sm:$0xff]  ;;  %v2789_v44 = vld [vmem:[#allocation8 + $0x38] sm:$0xff] }
 0x492   : > { %v3908_v61 = vpop.eup %3907  ;;  %2830 = vst.msk [vmem:[%s4440_s30] sm:$0xff] %vm1785_vm1, %v2814_v23  ;;  %v2815_v32 = vmul.f32 %v5295_v51, %v2799_v42  ;;  %v2800_v43 = vsub.f32 %v2768_v8, %v2784_v37  ;;  %v2769_v45 = vadd.f32 %v2753_v22, %v2657_v55  ;;  %v2619_v2 = vmul.f32 0.6931472, %v3904_v53  ;;  %v2678_v47 = vld [vmem:[#allocation6 + $0x40] sm:$0xff]  ;;  %v2583_v53 = vld [vmem:[#allocation4 + $0x48] sm:$0xff]  ;;  %v2600_v23 = vld [vmem:[#allocation5 + $0x50] sm:$0xff] }
 0x493   : > { %v3910_v18 = vpop.eup %3909  ;;  %v2754_v62 = vmul.f32 0.2, %v2738_v24  ;;  %v2659_v46 = vmul.f32 0.8, %v2643_v29  ;;  %v2739_v39 = vadd.f32 %v2713_v41, %v2675_v1  ;;  %v2715_v54 = vmul.f32 0.6931472, %v3906_v56 }
 0x494   : > { %v3912_v15 = vpop.eup %3911  ;;  %2831 = vst.msk [vmem:[%s4440_s30 + $0x8] sm:$0xff] %vm1785_vm1, %v2815_v32  ;;  %v2816_v26 = vmul.f32 %v5300_v34, %v2800_v43  ;;  %v2801_v12 = vsub.f32 %v2769_v45, %v2785_v19  ;;  %v2644_v51 = vadd.f32 %v2619_v2, %v2580_v28  ;;  %v2621_v30 = vmul.f32 0.6931472, %v3908_v61  ;;  %v2679_v56 = vld [vmem:[#allocation6 + $0x48] sm:$0xff]  ;;  %v2696_v19 = vld [vmem:[#allocation7 + $0x50] sm:$0xff]  ;;  %v2601_v41 = vld [vmem:[#allocation5 + $0x58] sm:$0xff] }
 0x495   : > { %v3914_v49 = vpop.eup %3913  ;;  %v2770_v58 = vadd.f32 %v2754_v62, %v2658_v13  ;;  %v2755_v27 = vmul.f32 0.2, %v2739_v39  ;;  %v2740_v38 = vadd.f32 %v2715_v54, %v2676_v10  ;;  %v2717_v16 = vmul.f32 0.6931472, %v3910_v18  ;;  %v2519_v32 = vld [vmem:[%s4435_s29 + $0x48] sm:$0xff]  ;;  %v2697_v45 = vld [vmem:[#allocation7 + $0x58] sm:$0xff] }
 0x496   : > { %2832 = vst.msk [vmem:[%s4440_s30 + $0x10] sm:$0xff] %vm1785_vm1, %v2816_v26  ;;  %v2817_v17 = vmul.f32 %v5304_v7, %v2801_v12  ;;  %v2660_v60 = vmul.f32 0.8, %v2644_v51  ;;  %v2645_v34 = vadd.f32 %v2621_v30, %v2581_v0  ;;  %v2623_v37 = vmul.f32 0.6931472, %v3912_v15  ;;  %v3916_v9 = vpop.eup %3915  ;;  %v2602_v18 = vld [vmem:[#allocation5 + $0x60] sm:$0xff] }
 0x497   : > { %v2802_v6 = vsub.f32 %v2770_v58, %v2786_v25  ;;  %v2771_v50 = vadd.f32 %v2755_v27, %v2659_v46  ;;  %v2756_v48 = vmul.f32 0.2, %v2740_v38  ;;  %v2741_v59 = vadd.f32 %v2717_v16, %v2677_v11  ;;  %v3918_v42 = vpop.eup %3917  ;;  %v2698_v39 = vld [vmem:[#allocation7 + $0x60] sm:$0xff]  ;;  %v2791_v12 = vld [vmem:[#allocation8 + $0x48] sm:$0xff]  ;;  %v2604_v30 = vld [vmem:[#allocation5 + $0x70] sm:$0xff] }
 0x498   : > { %2833 = vst.msk [vmem:[%s4440_s30 + $0x18] sm:$0xff] %vm1785_vm1, %v2817_v17  ;;  %v2661_v4 = vmul.f32 0.8, %v2645_v34  ;;  %vm2534_vm10 = vcmp.ge.s32.totalorder %v2518_v52, 0  ;;  %v2646_v5 = vadd.f32 %v2623_v37, %v2582_v31  ;;  %v2719_v21 = vmul.f32 0.6931472, %v3914_v49 }
 0x499   : > { %v2818_v7 = vmul.f32 %v5308_v57, %v2802_v6  ;;  %v2803_v55 = vsub.f32 %v2771_v50, %v2787_v35  ;;  %v2772_v63 = vadd.f32 %v2756_v48, %v2660_v60  ;;  %v2757_v33 = vmul.f32 0.2, %v2741_v59  ;;  %v2699_v25 = vld [vmem:[#allocation7 + $0x68] sm:$0xff]  ;;  %v2700_v58 = vld [vmem:[#allocation7 + $0x70] sm:$0xff]  ;;  %v2605_v38 = vld [vmem:[#allocation5 + $0x78] sm:$0xff] }
 0x49a   : > { %v2662_v8 = vmul.f32 0.8, %v2646_v5  ;;  %v2742_v22 = vadd.f32 %v2719_v21, %v2678_v47  ;;  %v2625_v1 = vmul.f32 0.6931472, %v3916_v9  ;;  %v2721_v29 = vmul.f32 0.6931472, %v3918_v42 }
 0x49b   : > { %2834 = vst.msk [vmem:[%s4440_s30 + $0x20] sm:$0xff] %vm1785_vm1, %v2818_v7  ;;  %v2819_v13 = vmul.f32 %v5312_v36, %v2803_v55  ;;  %v2804_v24 = vsub.f32 %v2772_v63, %v2788_v40  ;;  %v2773_v57 = vadd.f32 %v2757_v33, %v2661_v4  ;;  %v3158_v28 = vsel %vm2533_vm9, 1.0, %v4173_v14  ;;  %v2790_v36 = vld [vmem:[#allocation8 + $0x40] sm:$0xff]  ;;  %v2701_v16 = vld [vmem:[#allocation7 + $0x78] sm:$0xff]  ;;  %v2520_v31 = vld [vmem:[%s4435_s29 + $0x50] sm:$0xff] }
 0x49c   : > { %v2758_v61 = vmul.f32 0.2, %v2742_v22  ;;  %v2647_v43 = vadd.f32 %v2625_v1, %v2583_v53  ;;  %3919 = vlog2.f32 %v2600_v23  ;;  %v2743_v0 = vadd.f32 %v2721_v29, %v2679_v56  ;;  %v2584_v35 = vld [vmem:[#allocation4 + $0x50] sm:$0xff]  ;;  %v2521_v60 = vld [vmem:[%s4435_s29 + $0x58] sm:$0xff]  ;;  %v2522_v50 = vld [vmem:[%s4435_s29 + $0x60] sm:$0xff] }
 0x49d   : > { %2835 = vst.msk [vmem:[%s4440_s30 + $0x28] sm:$0xff] %vm1785_vm1, %v2819_v13  ;;  %v2820_v2 = vmul.f32 %v5316_v3, %v2804_v24  ;;  %v2805_v10 = vsub.f32 %v2773_v57, %v2789_v44  ;;  %3921 = vlog2.f32 %v2696_v19  ;;  %v3159_v20 = vsel %vm2534_vm10, 1.0, %v4173_v14  ;;  %v2603_v3 = vld [vmem:[#allocation5 + $0x68] sm:$0xff]  ;;  %v2680_v6 = vld [vmem:[#allocation6 + $0x50] sm:$0xff]  ;;  %v2585_v47 = vld [vmem:[#allocation4 + $0x58] sm:$0xff] }
 0x49e   : > { %v2774_v62 = vadd.f32 %v2758_v61, %v2662_v8  ;;  %v2663_v46 = vmul.f32 0.8, %v2647_v43  ;;  %3923 = vlog2.f32 %v2601_v41  ;;  %vm2535_vm11 = vcmp.ge.s32.totalorder %v2519_v32, 0  ;;  %v2681_v5 = vld [vmem:[#allocation6 + $0x58] sm:$0xff]  ;;  %v2586_v63 = vld [vmem:[#allocation4 + $0x60] sm:$0xff]  ;;  %v2792_v42 = vld [vmem:[#allocation8 + $0x50] sm:$0xff] }
 0x49f   : > { %2836 = vst.msk [vmem:[%s4440_s30 + $0x30] sm:$0xff] %vm1785_vm1, %v2820_v2  ;;  %v2821_v54 = vmul.f32 %v3158_v28, %v2805_v10  ;;  %v2759_v15 = vmul.f32 0.2, %v2743_v0  ;;  %3925 = vlog2.f32 %v2697_v45  ;;  %v3160_v49 = vsel %vm2535_vm11, 1.0, %v4173_v14  ;;  %v2682_v33 = vld [vmem:[#allocation6 + $0x60] sm:$0xff]  ;;  %v2523_v1 = vld [vmem:[%s4435_s29 + $0x68] sm:$0xff] }
 0x4a0   : > { %v2806_v26 = vsub.f32 %v2774_v62, %v2790_v36  ;;  %3927 = vlog2.f32 %v2602_v18  ;;  %vm2536_vm12 = vcmp.ge.s32.totalorder %v2520_v31, 0  ;;  %vm2537_vm13 = vcmp.ge.s32.totalorder %v2521_v60, 0  ;;  %v2587_v29 = vld [vmem:[#allocation4 + $0x68] sm:$0xff] }
 0x4a1   : > { %2837 = vst.msk [vmem:[%s4440_s30 + $0x38] sm:$0xff] %vm1785_vm1, %v2821_v54  ;;  %v2775_v51 = vadd.f32 %v2759_v15, %v2663_v46  ;;  %3929 = vlog2.f32 %v2698_v39  ;;  %vm2538_vm14 = vcmp.ge.s32.totalorder %v2522_v50, 0  ;;  %v3161_v53 = vsel %vm2536_vm12, 1.0, %v4173_v14  ;;  %v2683_v45 = vld [vmem:[#allocation6 + $0x68] sm:$0xff]  ;;  %v2793_v46 = vld [vmem:[#allocation8 + $0x58] sm:$0xff] }
 0x4a2   : > { %v2822_v11 = vmul.f32 %v3159_v20, %v2806_v26  ;;  %3931 = vlog2.f32 %v2603_v3  ;;  %v3162_v13 = vsel %vm2537_vm13, 1.0, %v4173_v14  ;;  %v3163_v61 = vsel %vm2538_vm14, 1.0, %v4173_v14  ;;  %v2588_v20 = vld [vmem:[#allocation4 + $0x70] sm:$0xff] }
 0x4a3   : > { %v2807_v27 = vsub.f32 %v2775_v51, %v2791_v12  ;;  %3933 = vlog2.f32 %v2699_v25  ;;  %vm2539_vm15 = vcmp.ge.s32.totalorder %v2523_v1, 0  ;;  %v2794_v51 = vld [vmem:[#allocation8 + $0x60] sm:$0xff]  ;;  %v2797_v1 = vld [vmem:[#allocation8 + $0x78] sm:$0xff] }
 0x4a4   : > { %2838 = vst.msk [vmem:[%s4440_s30 + $0x40] sm:$0xff] %vm1785_vm1, %v2822_v11  ;;  %3935 = vlog2.f32 %v2604_v30  ;;  %v2684_v11 = vld [vmem:[#allocation6 + $0x70] sm:$0xff] }
 0x4a5   : > { %v2823_v52 = vmul.f32 %v3160_v49, %v2807_v27  ;;  %3937 = vlog2.f32 %v2700_v58  ;;  %v2589_v49 = vld [vmem:[#allocation4 + $0x78] sm:$0xff] }
 0x4a6   : > { %3939 = vlog2.f32 %v2605_v38 }
 0x4a7   : > { %2839 = vst.msk [vmem:[%s4440_s30 + $0x48] sm:$0xff] %vm1785_vm1, %v2823_v52  ;;  %3941 = vlog2.f32 %v2701_v16 }
 0x4a9   : > { %v3920_v17 = vpop.eup %3919 }
 0x4aa   : > { %v3922_v34 = vpop.eup %3921  ;;  %v2627_v37 = vmul.f32 0.6931472, %v3920_v17 }
 0x4ab   : > { %v3924_v48 = vpop.eup %3923  ;;  %v2723_v59 = vmul.f32 0.6931472, %v3922_v34  ;;  %v2524_v34 = vld [vmem:[%s4435_s29 + $0x70] sm:$0xff] }
 0x4ac   : > { %v3926_v9 = vpop.eup %3925  ;;  %v2648_v40 = vadd.f32 %v2627_v37, %v2584_v35  ;;  %v2629_v4 = vmul.f32 0.6931472, %v3924_v48  ;;  %v2685_v37 = vld [vmem:[#allocation6 + $0x78] sm:$0xff]  ;;  %vm2540_vm0 = vcmp.ge.s32.totalorder %v2524_v34, 0 }
 0x4ad   : > { %v3928_v21 = vpop.eup %3927  ;;  %v2744_v7 = vadd.f32 %v2723_v59, %v2680_v6  ;;  %v2725_v55 = vmul.f32 0.6931472, %v3926_v9  ;;  %v2795_v6 = vld [vmem:[#allocation8 + $0x68] sm:$0xff] }
 0x4ae   : > { %v3930_v44 = vpop.eup %3929  ;;  %v2664_v23 = vmul.f32 0.8, %v2648_v40  ;;  %v2649_v8 = vadd.f32 %v2629_v4, %v2585_v47  ;;  %v2631_v22 = vmul.f32 0.6931472, %v3928_v21  ;;  %v3164_v4 = vsel %vm2539_vm15, 1.0, %v4173_v14  ;;  %v2525_v21 = vld [vmem:[%s4435_s29 + $0x78] sm:$0xff] }
 0x4af   : > { %v3932_v56 = vpop.eup %3931  ;;  %v2760_v19 = vmul.f32 0.2, %v2744_v7  ;;  %v2745_v24 = vadd.f32 %v2725_v55, %v2681_v5  ;;  %v2727_v57 = vmul.f32 0.6931472, %v3930_v44  ;;  %vm2541_vm2 = vcmp.ge.s32.totalorder %v2525_v21, 0 }
 0x4b0   : > { %v3934_v41 = vpop.eup %3933  ;;  %v2665_v28 = vmul.f32 0.8, %v2649_v8  ;;  %v2650_v32 = vadd.f32 %v2631_v22, %v2586_v63  ;;  %v2633_v43 = vmul.f32 0.6931472, %v3932_v56  ;;  %v3165_v22 = vsel %vm2540_vm0, 1.0, %v4173_v14 }
 0x4b1   : > { %v3936_v2 = vpop.eup %3935  ;;  %v2776_v10 = vadd.f32 %v2760_v19, %v2664_v23  ;;  %v2761_v36 = vmul.f32 0.2, %v2745_v24  ;;  %v2746_v0 = vadd.f32 %v2727_v57, %v2682_v33  ;;  %v2729_v18 = vmul.f32 0.6931472, %v3934_v41 }
 0x4b2   : > { %v3938_v62 = vpop.eup %3937  ;;  %v2666_v39 = vmul.f32 0.8, %v2650_v32  ;;  %v2651_v54 = vadd.f32 %v2633_v43, %v2587_v29  ;;  %v2635_v15 = vmul.f32 0.6931472, %v3936_v2 }
 0x4b3   : > { %v3940_v3 = vpop.eup %3939  ;;  %v2808_v26 = vsub.f32 %v2776_v10, %v2792_v42  ;;  %v2777_v12 = vadd.f32 %v2761_v36, %v2665_v28  ;;  %v2762_v25 = vmul.f32 0.2, %v2746_v0  ;;  %v2747_v30 = vadd.f32 %v2729_v18, %v2683_v45 }
 0x4b4   : > { %v3942_v58 = vpop.eup %3941  ;;  %v2667_v27 = vmul.f32 0.8, %v2651_v54  ;;  %v2652_v38 = vadd.f32 %v2635_v15, %v2588_v20  ;;  %v2731_v16 = vmul.f32 0.6931472, %v3938_v62  ;;  %v2637_v52 = vmul.f32 0.6931472, %v3940_v3 }
 0x4b5   : > { %v2824_v31 = vmul.f32 %v3161_v53, %v2808_v26  ;;  %v2809_v17 = vsub.f32 %v2777_v12, %v2793_v46  ;;  %v2778_v35 = vadd.f32 %v2762_v25, %v2666_v39  ;;  %v2763_v60 = vmul.f32 0.2, %v2747_v30  ;;  %v2796_v53 = vld [vmem:[#allocation8 + $0x70] sm:$0xff] }
 0x4b6   : > { %v2668_v50 = vmul.f32 0.8, %v2652_v38  ;;  %v2748_v48 = vadd.f32 %v2731_v16, %v2684_v11  ;;  %v2653_v59 = vadd.f32 %v2637_v52, %v2589_v49  ;;  %v2733_v47 = vmul.f32 0.6931472, %v3942_v58 }
 0x4b7   : > { %2840 = vst.msk [vmem:[%s4440_s30 + $0x50] sm:$0xff] %vm1785_vm1, %v2824_v31  ;;  %v2825_v9 = vmul.f32 %v3162_v13, %v2809_v17  ;;  %v2810_v40 = vsub.f32 %v2778_v35, %v2794_v51  ;;  %v2779_v5 = vadd.f32 %v2763_v60, %v2667_v27  ;;  %v3166_v13 = vsel %vm2541_vm2, 1.0, %v4173_v14 }
 0x4b8   : > { %v2764_v7 = vmul.f32 0.2, %v2748_v48  ;;  %v2669_v55 = vmul.f32 0.8, %v2653_v59  ;;  %v2749_v63 = vadd.f32 %v2733_v47, %v2685_v37 }
 0x4b9   : > { %2841 = vst.msk [vmem:[%s4440_s30 + $0x58] sm:$0xff] %vm1785_vm1, %v2825_v9  ;;  %v2826_v33 = vmul.f32 %v3163_v61, %v2810_v40  ;;  %v2811_v44 = vsub.f32 %v2779_v5, %v2795_v6 }
 0x4ba   : > { %v2780_v23 = vadd.f32 %v2764_v7, %v2668_v50  ;;  %v2765_v42 = vmul.f32 0.2, %v2749_v63 }
 0x4bb   : > { %2842 = vst.msk [vmem:[%s4440_s30 + $0x60] sm:$0xff] %vm1785_vm1, %v2826_v33  ;;  %v2827_v8 = vmul.f32 %v3164_v4, %v2811_v44 }
 0x4bc   : > { %v2812_v56 = vsub.f32 %v2780_v23, %v2796_v53  ;;  %v2781_v19 = vadd.f32 %v2765_v42, %v2669_v55 }
 0x4bd   : > { %2843 = vst.msk [vmem:[%s4440_s30 + $0x68] sm:$0xff] %vm1785_vm1, %v2827_v8 }
 0x4be   : > { %v2828_v24 = vmul.f32 %v3165_v22, %v2812_v56  ;;  %v2813_v57 = vsub.f32 %v2781_v19, %v2797_v1 }
 0x4c0   : > { %2844 = vst.msk [vmem:[%s4440_s30 + $0x70] sm:$0xff] %vm1785_vm1, %v2828_v24  ;;  %v2829_v29 = vmul.f32 %v3166_v13, %v2813_v57 }
 0x4c2   : > { %2845 = vst.msk [vmem:[%s4440_s30 + $0x78] sm:$0xff] %vm1785_vm1, %v2829_v29 }
 0x4c3 PF: > { %s5694_s23 = sld [smem:[#allocation23_spill]]  ;;  %s2867_s2 = sshll.u32 %s4444_s24, 4  ;;  %s5387_s2 = int_to_ptr.vmem [resolvable:$true] %s2867_s2 }
 0x4c4   : > { %s5695_s18 = sld [smem:[#allocation22_spill]]  ;;  %s5396_s16 = scalar_lea.sflag [#allocation11], %s450_s11 }
 0x4c5   : > { %s5696_s6 = sld [smem:[#allocation29_spill]]  ;;  %s4021_s13 = scalar_lea.vmem %s5387_s2, 1024 }
 0x4c6   : > { %s5697_s10 = sld [smem:[#allocation79_spill]]  ;;  %p4022_p5 = scmp.ne.s32.totalorder %s5387_s2, %s4021_s13 }
 0x4c7   : > { %s4174_s20 = smov [#allocation16]  }
 0x4c8   : > { %s4025_s30 = sshll.u32 %s4174_s20, 4  ;;  %s4026_s30 = int_to_ptr.vmem [resolvable:$false] %s4025_s30 }
 0x4c9   : > { %s3222_s17 = sshll.u32 %s5694_s23, 6  ;;  %s4027_s0 = scalar_lea.vmem %s4026_s30, 2048 }
 0x4ca   : > { %s2864_s26 = sadd.s32 %s5695_s18, %s3222_s17  ;;  %p4028_p13 = scmp.lt.s32.totalorder %s5387_s2, %s4026_s30 }
 0x4cb   : > { %s3170_s19 = sshll.u32 %s2864_s26, 6  ;;  %p5698_p6 = scmp.ne.s32.totalorder %s5696_s6, 0 }
 0x4cc   : > { %s5392_s29 = scalar_lea.hbm %s5697_s10, %s3170_s19  ;;  %p4029_p0 = scmp.lt.s32.totalorder %s4027_s0, %s4021_s13 }
 0x4cd   : > { %p4023_p7 = pnand %p4022_p5, %p5698_p6 }
 0x4ce   : > { %p4030_p2 = por %p4029_p0, %p4028_p13 }
 0x4cf   : > { %p4024_p10 = pneg %p4023_p7 }
 0x4d1   : > { %p4031_p12 = pnand %p4030_p2, %p4024_p10 }
 0x4d3   : > { %4034 = shalt.err (!%p4031_p12)
}
 0x4d4   : > { %s4035_s11 = scalar_lea.hbm %s5392_s29, 1024  ;;  %s4039_s12 = scalar_lea.hbm %s5697_s10, 8192 }
 0x4d5   : > { %p4036_p3 = scmp.ne.s32.totalorder %s5392_s29, %s4035_s11  ;;  %p4040_p4 = scmp.lt.s32.totalorder %s5392_s29, %s5697_s10 }
 0x4d6   : > { %p4041_p9 = scmp.lt.s32.totalorder %s4039_s12, %s4035_s11 }
 0x4d7   : > { %p4037_p11 = pnand %p4036_p3, %p5698_p6 }
 0x4d8   : > { %p4042_p8 = por %p4041_p9, %p4040_p4 }
 0x4d9   : > { %p4038_p1 = pneg %p4037_p11 }
 0x4db   : > { %p4043_p5 = pnand %p4042_p8, %p4038_p1 }
 0x4dd   : > { %4046 = shalt.err (!%p4043_p5)
}
 0x4de   : > { %s4175_s18 = smov 64   ;;  %s4176_s17 = smov 256  }
 0x4df   : > { %s4177_s26 = smov 4  }
 0x4e0   : > { %3566 = dma.vmem_to_hbm [thread:$0]  (%p5698_p6), %s5387_s2, 1024, %s5392_s29, %s5396_s16, %s4175_s18, %s4176_s17, %s4177_s26  }
 0x4e1 PF: > { %s5699_s19 = sld [smem:[#allocation20_spill]]  ;;  %p3583_p7 = scmp.ge.s32.totalorder %s4161_s9, 2 }
 0x4e2   : > { %s5700_s5 = sld [smem:[#allocation30_spill]] }
 0x4e7   : > { %s2886_s14 = sand.u32 1, %s5699_s19  }
 0x4e8   : > { %p5701_p10 = scmp.ne.s32.totalorder %s5700_s5, 0  ;;  %s2887_s13 = scalar_lea.sflag [#allocation11], %s2886_s14 }
 0x4ea   : > { %p3576_p13 = pnand %p3583_p7, %p5701_p10 }
 0x4ec   : > { %p3577_p0 = pneg %p3576_p13 }
 0x4ee   : > { %4108 = dma.done.wait (%p3577_p0), %s2887_s13, 1024  }
 0x4ef   : > { %4110 = vsyncadd (%p3577_p0), %s2887_s13, 4294966272  ;;  %s24_s9 = sadd.s32 1, %s4161_s9   ;;  %s5703_s6 = sld [smem:[#allocation21_spill]] }
 0x4f0   : > { %p5424_p2 = scmp.ge.s32.totalorder %s24_s9, 10   ;;  %s5704_s23 = sld [smem:[#allocation28_spill]] }
 0x4f1   : > { %s5705_s2 = sld [smem:[#allocation26_spill]]  ;;  %s5709_s21 = smov %s4117_s22 }
 0x4f2   : > { %s5706_s29 = sld [smem:[#allocation27_spill]]  ;;  %s5711_s24 = smov %s4129_s25 }
 0x4f3   : > { %s5707_s16 = sld [smem:[#allocation24_spill]]  ;;  %s5713_s26 = smov %s4137_s27 }
 0x4f4   : > { %s5708_s0 = sld [smem:[#allocation25_spill]]  ;;  %s5714_s27 = smov %s4141_s28 }
 0x4f5   : > { %s5710_s22 = smov %s5703_s6  ;;  %s5717_s30 = smov %s4157_s8 }
 0x4f6   :  { %23 = sbr.rel (!%p5424_p2) target bundleno = 16 (0x10), region = 165 }
 0x4f7   : > { %s5712_s25 = smov %s5705_s2 }
 0x4f8   : > { %s5715_s28 = smov %s5706_s29  ;;  %s5716_s29 = smov %s4153_s7 }
 0x4f9   : > { %s5718_s7 = smov %s5707_s16 }
 0x4fa   : > { %s5719_s8 = smov %s5708_s0 }
 0x4fb   :  { %2900 = vsyncpa [#allocation10], 1 }
 0x4fc   :  { %2902 = vsyncpa [#allocation10 + $0x1], 1 }
 0x4fd   :  { %2903 = vsyncpa [#allocation13], 1 }
 0x4fe   :  { %2904 = vsyncpa [#allocation11], 1 }
 0x4ff   :  { %2906 = vsyncpa [#allocation11 + $0x1], 1 }

</bundles_post_ra>
